<compile_context>
chip_gen: v7x
topology: tpu7x:2x2x1
jax: 0.10.0
libtpu: 0.0.40
codegen_flags: <defaults>
</compile_context>

<pallas_src>
import functools

import jax
import jax.numpy as jnp
from jax.experimental import pallas as pl
from jax.experimental.pallas import tpu as pltpu

BN_EPS = 1e-5


def _cdiv(a, b):
    return -(-a // b)


def _round_up(x, m):
    return (x + m - 1) // m * m


def _conv_tile_channels(x_ref, w_ref, *, kh, kw, c_in, c_out, th, wo):
    """Per-channel ConvTranspose2d (stride=1, pad=0) tiles: list of c_out (th, wo) f32.

    x_ref: (c_in, hp, wp) zero-padded image (VMEM) for this batch index; the halo row
           window of this row tile is sliced here (grid axis 1 = row-tile index).
    w_ref: (kh*kw*c_in*c_out,) flat tap weights in SMEM,
           flat index ((a*kw + b)*c_in + ci)*c_out + co  <->  wt[ci, co, kh-1-a, kw-1-b].
    """
    r0 = pl.program_id(1) * th
    slab = x_ref[:, pl.ds(r0, th + kh - 1), :]           # (c_in, th+kh-1, wp)
    accs = [jnp.zeros((th, wo), jnp.float32) for _ in range(c_out)]
    for b in range(kw):
        slab_b = slab[:, :, b:b + wo]                    # hoist lane shift: kw, not kh*kw*c_in
        for a in range(kh):
            for ci in range(c_in):
                x_ab = slab_b[ci, a:a + th, :]           # (th, wo), ~1 vreg
                base = ((a * kw + b) * c_in + ci) * c_out
                for co in range(c_out):
                    # scalar (SMEM) x vector FMA on the VPU
                    accs[co] = accs[co] + w_ref[base + co] * x_ab
    return accs


def _stats_kernel(x_ref, w_ref, mean_ref, m2_ref, *,
                  kh, kw, c_in, c_out, th, wo, ho):
    """Pass 1: conv tile -> per-tile per-channel mean and sum of squared deviations."""
    accs = _conv_tile_channels(x_ref, w_ref, kh=kh, kw=kw, c_in=c_in,
                               c_out=c_out, th=th, wo=wo)
    acc = jnp.stack(accs, axis=0)                        # (c_out, th, wo)

    r0 = pl.program_id(1) * th
    valid_rows = jnp.minimum(th, ho - r0)                # >= 1 by construction
    cnt = (valid_rows * wo).astype(jnp.float32)

    # Rows >= ho come from zero-padded input, so their conv output is exactly 0: the
    # plain sum already equals the sum over valid rows; only the squared-deviation sum
    # and the divisor need the row mask.
    sum_t = jnp.sum(jnp.sum(acc, axis=2, keepdims=True), axis=1, keepdims=True)
    mean_t = sum_t / cnt                                 # (c_out, 1, 1)
    row_id = jax.lax.broadcasted_iota(jnp.int32, (1, th, wo), 1)
    diff = acc - mean_t
    dev2 = jnp.where(row_id < valid_rows, diff * diff, 0.0)
    m2_t = jnp.sum(jnp.sum(dev2, axis=2, keepdims=True), axis=1, keepdims=True)

    mean_ref[...] = mean_t
    m2_ref[...] = m2_t


def _apply_kernel(x_ref, w_ref, scale_ref, shift_ref, o_ref, *,
                  kh, kw, c_in, c_out, th, wo):
    """Pass 2: recompute conv tile, apply fused BN (y*scale + shift) and ReLU."""
    accs = _conv_tile_channels(x_ref, w_ref, kh=kh, kw=kw, c_in=c_in,
                               c_out=c_out, th=th, wo=wo)
    ys = [jnp.maximum(accs[co] * scale_ref[co] + shift_ref[co], 0.0)
          for co in range(c_out)]
    o_ref[...] = jnp.stack(ys, axis=0).astype(o_ref.dtype)   # (c_out, th, wo)


@functools.partial(jax.jit, static_argnames=("kernel_size", "tile_rows"))
def upblock_forward(x_nchw, wt, bias, gamma, beta, kernel_size=(3, 3), tile_rows=None):
    """UpBlock forward.  x_nchw: (N, Cin, H, W); wt: ConvTranspose2d weight (Cin, Cout, kH, kW).

    The ConvTranspose2d bias is exactly cancelled by the train-mode BatchNorm mean
    subtraction, so it never enters the kernels.
    """
    del bias
    kh, kw = kernel_size
    n, c_in, h, w = x_nchw.shape
    c_out = wt.shape[1]
    ho, wo = h + kh - 1, w + kw - 1
    k_taps = kh * kw * c_in

    # --- output-row tiling ------------------------------------------------------------
    # Cap at 8 rows (one sublane group per channel in the f32 accumulator, also capped so
    # c_out*th*wo*4B stays ~64 KiB) and prefer a tile that divides Ho exactly (no padded
    # rows, no final row slice).  Several tiles per image give pipeline depth and let
    # v7x's two TensorCores split the ("parallel", "parallel") grid.
    if tile_rows is None:
        acc_cap = max(1, 16384 // max(1, c_out * wo))
        t0 = max(1, min(8, acc_cap, ho))
        tile_rows = t0
        for cand in range(t0, max(1, t0 - 3) - 1, -1):
            if ho % cand == 0:
                tile_rows = cand
                break
    th = max(1, min(int(tile_rows), ho))
    nb = _cdiv(ho, th)
    ho_pad = nb * th

    # --- zero-padded NCHW input (full-correlation halo + row-tile remainder) -----------
    # NOTE: each grid step holds one whole padded image in VMEM (fine for decoder-scale
    # images; very large H*W would want an explicit halo DMA instead).
    hp = ho_pad + kh - 1
    wp = wo + kw - 1
    x_pad = jnp.pad(x_nchw.astype(jnp.float32),
                    ((0, 0), (0, 0), (kh - 1, hp - (kh - 1) - h), (kw - 1, kw - 1)))

    # --- ConvTranspose2d weight -> flat per-tap scalar table (SMEM) ---------------------
    # flat index ((a*kw + b)*c_in + ci)*c_out + co  <->  wt[ci, co, kh-1-a, kw-1-b]
    w_flip = wt[:, :, ::-1, ::-1].astype(jnp.float32)                 # (c_in, c_out, kh, kw)
    w_flat = jnp.transpose(w_flip, (2, 3, 0, 1)).reshape(-1)          # (kh*kw*c_in*c_out,)

    statics = dict(kh=kh, kw=kw, c_in=c_in, c_out=c_out, th=th, wo=wo)
    x_spec = pl.BlockSpec((None, c_in, hp, wp), lambda i, j: (i, 0, 0, 0))
    smem_spec = pl.BlockSpec(memory_space=pltpu.MemorySpace.SMEM)
    stat_spec = pl.BlockSpec((None, None, c_out, 1, 1), lambda i, j: (i, j, 0, 0, 0))
    out_spec = pl.BlockSpec((None, c_out, None, th, wo), lambda i, j: (i, 0, j, 0, 0))

    # Double-buffered block footprint (f32, VMEM-tile padded) + headroom, <= 32 MiB.
    blk_bytes = 4 * (c_in * _round_up(hp, 8) * _round_up(wp, 128)
                     + c_out * _round_up(th, 8) * _round_up(wo, 128)
                     + 2 * c_out * 8 * 128)
    vmem_limit = int(min(32 * 1024 * 1024, max(16 * 1024 * 1024, 8 * blk_bytes)))
    cparams = pltpu.CompilerParams(
        dimension_semantics=("parallel", "parallel"),
        vmem_limit_bytes=vmem_limit)

    grid = (n, nb)

    # ---- pass 1: conv tile -> per-tile per-channel mean / M2 ---------------------------
    mean_t, m2_t = pl.pallas_call(
        functools.partial(_stats_kernel, ho=ho, **statics),
        out_shape=(jax.ShapeDtypeStruct((n, nb, c_out, 1, 1), jnp.float32),
                   jax.ShapeDtypeStruct((n, nb, c_out, 1, 1), jnp.float32)),
        grid=grid,
        in_specs=[x_spec, smem_spec],
        out_specs=(stat_spec, stat_spec),
        compiler_params=cparams,
    )(x_pad, w_flat)

    # ---- combine tile statistics (Chan's parallel variance) and fuse BN ----------------
    mean_t = mean_t[..., 0, 0]                                        # (n, nb, c_out)
    m2_t = m2_t[..., 0, 0]
    cnt_t = (jnp.clip(ho - jnp.arange(nb) * th, 0, th) * wo
             ).astype(jnp.float32)[None, :, None]                     # (1, nb, 1)
    total = jnp.float32(n * ho * wo)
    mean = jnp.sum(cnt_t * mean_t, axis=(0, 1)) / total               # (c_out,)
    m2 = (jnp.sum(m2_t, axis=(0, 1))
          + jnp.sum(cnt_t * jnp.square(mean_t - mean), axis=(0, 1)))
    var = m2 / total                                                  # biased (train mode)
    scale = gamma.astype(jnp.float32) * jax.lax.rsqrt(var + BN_EPS)
    shift = beta.astype(jnp.float32) - mean * scale

    # ---- pass 2: recompute conv tile, y*scale + shift, ReLU, NCHW-ordered blocks -------
    out5 = pl.pallas_call(
        functools.partial(_apply_kernel, **statics),
        out_shape=jax.ShapeDtypeStruct((n, c_out, nb, th, wo), x_nchw.dtype),
        grid=grid,
        in_specs=[x_spec, smem_spec, smem_spec, smem_spec],
        out_specs=out_spec,
        compiler_params=cparams,
    )(x_pad, w_flat, scale, shift)

    out = out5.reshape(n, c_out, ho_pad, wo)                          # contiguous -> free
    if ho_pad != ho:
        out = out[:, :, :ho, :]
    return out


def reference_upblock(x_nchw, wt, bias, gamma, beta, kernel_size=(3, 3)):
    """Pure-JAX reference: ConvTranspose2d(s=1, p=0) + train-mode BatchNorm2d + ReLU."""
    kh, kw = kernel_size
    n, c_in, h, w = x_nchw.shape
    c_out = wt.shape[1]
    ho, wo = h + kh - 1, w + kw - 1
    x = jnp.transpose(x_nchw, (0, 2, 3, 1)).astype(jnp.float32)
    xp = jnp.pad(x, ((0, 0), (kh - 1, kh - 1), (kw - 1, kw - 1), (0, 0)))
    y = jnp.zeros((n, ho, wo, c_out), jnp.float32)
    for a in range(kh):
        for b in range(kw):
            wk = wt[:, :, kh - 1 - a, kw - 1 - b].astype(jnp.float32)   # (c_in, c_out)
            y = y + jnp.einsum("nhwc,cd->nhwd", xp[:, a:a + ho, b:b + wo, :], wk)
    y = y + bias.reshape(1, 1, 1, c_out).astype(jnp.float32)
    mean = jnp.mean(y, axis=(0, 1, 2), keepdims=True)
    var = jnp.mean(jnp.square(y - mean), axis=(0, 1, 2), keepdims=True)
    y = (y - mean) * jax.lax.rsqrt(var + BN_EPS)
    y = y * gamma.reshape(1, 1, 1, c_out) + beta.reshape(1, 1, 1, c_out)
    y = jnp.maximum(y, 0.0)
    return jnp.transpose(y, (0, 3, 1, 2))


def init_upblock_params(key, in_channels, out_channels, kernel_size=(3, 3)):
    kh, kw = kernel_size
    # kaiming_normal_(mode='fan_in', nonlinearity='relu') on the ConvTranspose2d weight
    # (shape (Cin, Cout, kH, kW)): fan_in = Cout * kH * kW, gain = sqrt(2).
    fan_in = out_channels * kh * kw
    std = (2.0 / fan_in) ** 0.5
    wt = std * jax.random.normal(key, (in_channels, out_channels, kh, kw), jnp.float32)
    bias = jnp.zeros((out_channels,), jnp.float32)       # module init (zeros_)
    gamma = jnp.ones((out_channels,), jnp.float32)       # BatchNorm2d affine init
    beta = jnp.zeros((out_channels,), jnp.float32)
    return wt, bias, gamma, beta


if __name__ == "__main__":
    key = jax.random.PRNGKey(0)
    k_x, k_w, k_b, k_g, k_be = jax.random.split(key, 5)

    N, C_IN, H, W = 2, 4, 16, 16
    C_OUT = 8
    KS = (3, 3)   # stride=(1,1), padding=(0,0), output_padding=(0,0) -- module defaults

    x = jax.random.normal(k_x, (N, C_IN, H, W), jnp.float32)
    wt, bias, gamma, beta = init_upblock_params(k_w, C_IN, C_OUT, KS)
    # The module initializes the bias to zero; use a nonzero bias (and perturbed
    # gamma/beta) here so that the exact bias/BN-mean cancellation and the fused affine
    # are actually exercised by the numerics check.
    bias = 0.5 * jax.random.normal(k_b, (C_OUT,), jnp.float32)
    gamma = 1.0 + 0.2 * jax.random.normal(k_g, (C_OUT,), jnp.float32)
    beta = 0.1 * jax.random.normal(k_be, (C_OUT,), jnp.float32)

    ref = reference_upblock(x, wt, bias, gamma, beta, KS)
    expected_shape = (N, C_OUT, H + KS[0] - 1, W + KS[1] - 1)

    # Default tiling (divides Ho exactly -> no padded rows) and an explicit tile_rows=8
    # (exercises the padded-row / masked-stats / Chan-combine path with unequal counts).
    for tr in (None, 8):
        out = upblock_forward(x, wt, bias, gamma, beta, kernel_size=KS, tile_rows=tr)
        out = jax.block_until_ready(out)
        assert out.shape == expected_shape, (out.shape, expected_shape)
        assert bool(jnp.all(jnp.isfinite(out)))
        assert bool(jnp.all(out >= 0.0))        # ReLU output
        max_err = float(jnp.max(jnp.abs(out - ref)))
        assert max_err < 1e-3, f"tile_rows={tr}: max abs err vs reference = {max_err}"

    print("KERNEL_OK")
</pallas_src>

<mosaic_0001>
module attributes {stable_mosaic.version = 11 : i64} {
  func.func @_stats_kernel(%arg0: i32, %arg1: i32, %arg2: memref<1x4x20x20xf32, #tpu.memory_space<vmem>>, %arg3: memref<288xf32, #tpu.memory_space<smem>>, %arg4: memref<1x1x8x1x1xf32, #tpu.memory_space<vmem>>, %arg5: memref<1x1x8x1x1xf32, #tpu.memory_space<vmem>>) attributes {dimension_semantics = [#tpu.dimension_semantics<parallel>, #tpu.dimension_semantics<parallel>], iteration_bounds = array<i64: 2, 3>, scalar_prefetch = 0 : i64, scratch_operands = 0 : i64, tpu.core_type = #tpu.core_type<tc>, window_params = [{transform_indices = @transform_0, window_bounds = array<i64: 1, 4, 20, 20>}, {transform_indices = @transform_1, window_bounds = array<i64: 288>}, {transform_indices = @transform_2, window_bounds = array<i64: 1, 1, 8, 1, 1>}, {transform_indices = @transform_3, window_bounds = array<i64: 1, 1, 8, 1, 1>}]} {
    %c6_i32 = arith.constant 6 : i32
    %0 = arith.muli %arg1, %c6_i32 : i32
    %c0 = arith.constant 0 : index
    %c0_0 = arith.constant 0 : index
    %1 = arith.index_cast %0 : i32 to index
    %c0_1 = arith.constant 0 : index
    %2 = vector.load %arg2[%c0, %c0_0, %1, %c0_1] : memref<1x4x20x20xf32, #tpu.memory_space<vmem>>, vector<1x4x8x20xf32>
    %3 = vector.shape_cast %2 : vector<1x4x8x20xf32> to vector<4x8x20xf32>
    %cst = arith.constant 0.000000e+00 : f32
    %4 = vector.broadcast %cst : f32 to vector<6x18xf32>
    %cst_2 = arith.constant 0.000000e+00 : f32
    %5 = vector.broadcast %cst_2 : f32 to vector<6x18xf32>
    %cst_3 = arith.constant 0.000000e+00 : f32
    %6 = vector.broadcast %cst_3 : f32 to vector<6x18xf32>
    %cst_4 = arith.constant 0.000000e+00 : f32
    %7 = vector.broadcast %cst_4 : f32 to vector<6x18xf32>
    %cst_5 = arith.constant 0.000000e+00 : f32
    %8 = vector.broadcast %cst_5 : f32 to vector<6x18xf32>
    %cst_6 = arith.constant 0.000000e+00 : f32
    %9 = vector.broadcast %cst_6 : f32 to vector<6x18xf32>
    %cst_7 = arith.constant 0.000000e+00 : f32
    %10 = vector.broadcast %cst_7 : f32 to vector<6x18xf32>
    %cst_8 = arith.constant 0.000000e+00 : f32
    %11 = vector.broadcast %cst_8 : f32 to vector<6x18xf32>
    %12 = vector.extract_strided_slice %3 {offsets = [0, 0, 0], sizes = [4, 8, 18], strides = [1, 1, 1]} : vector<4x8x20xf32> to vector<4x8x18xf32>
    %13 = vector.extract_strided_slice %12 {offsets = [0, 0, 0], sizes = [1, 6, 18], strides = [1, 1, 1]} : vector<4x8x18xf32> to vector<1x6x18xf32>
    %14 = vector.shape_cast %13 : vector<1x6x18xf32> to vector<6x18xf32>
    %c0_9 = arith.constant 0 : index
    %15 = memref.load %arg3[%c0_9] : memref<288xf32, #tpu.memory_space<smem>>
    %16 = vector.broadcast %15 : f32 to vector<6x18xf32>
    %17 = arith.mulf %16, %14 : vector<6x18xf32>
    %18 = arith.addf %4, %17 : vector<6x18xf32>
    %c1 = arith.constant 1 : index
    %19 = memref.load %arg3[%c1] : memref<288xf32, #tpu.memory_space<smem>>
    %20 = vector.broadcast %19 : f32 to vector<6x18xf32>
    %21 = arith.mulf %20, %14 : vector<6x18xf32>
    %22 = arith.addf %5, %21 : vector<6x18xf32>
    %c2 = arith.constant 2 : index
    %23 = memref.load %arg3[%c2] : memref<288xf32, #tpu.memory_space<smem>>
    %24 = vector.broadcast %23 : f32 to vector<6x18xf32>
    %25 = arith.mulf %24, %14 : vector<6x18xf32>
    %26 = arith.addf %6, %25 : vector<6x18xf32>
    %c3 = arith.constant 3 : index
    %27 = memref.load %arg3[%c3] : memref<288xf32, #tpu.memory_space<smem>>
    %28 = vector.broadcast %27 : f32 to vector<6x18xf32>
    %29 = arith.mulf %28, %14 : vector<6x18xf32>
    %30 = arith.addf %7, %29 : vector<6x18xf32>
    %c4 = arith.constant 4 : index
    %31 = memref.load %arg3[%c4] : memref<288xf32, #tpu.memory_space<smem>>
    %32 = vector.broadcast %31 : f32 to vector<6x18xf32>
    %33 = arith.mulf %32, %14 : vector<6x18xf32>
    %34 = arith.addf %8, %33 : vector<6x18xf32>
    %c5 = arith.constant 5 : index
    %35 = memref.load %arg3[%c5] : memref<288xf32, #tpu.memory_space<smem>>
    %36 = vector.broadcast %35 : f32 to vector<6x18xf32>
    %37 = arith.mulf %36, %14 : vector<6x18xf32>
    %38 = arith.addf %9, %37 : vector<6x18xf32>
    %c6 = arith.constant 6 : index
    %39 = memref.load %arg3[%c6] : memref<288xf32, #tpu.memory_space<smem>>
    %40 = vector.broadcast %39 : f32 to vector<6x18xf32>
    %41 = arith.mulf %40, %14 : vector<6x18xf32>
    %42 = arith.addf %10, %41 : vector<6x18xf32>
    %c7 = arith.constant 7 : index
    %43 = memref.load %arg3[%c7] : memref<288xf32, #tpu.memory_space<smem>>
    %44 = vector.broadcast %43 : f32 to vector<6x18xf32>
    %45 = arith.mulf %44, %14 : vector<6x18xf32>
    %46 = arith.addf %11, %45 : vector<6x18xf32>
    %47 = vector.extract_strided_slice %12 {offsets = [1, 0, 0], sizes = [1, 6, 18], strides = [1, 1, 1]} : vector<4x8x18xf32> to vector<1x6x18xf32>
    %48 = vector.shape_cast %47 : vector<1x6x18xf32> to vector<6x18xf32>
    %c8 = arith.constant 8 : index
    %49 = memref.load %arg3[%c8] : memref<288xf32, #tpu.memory_space<smem>>
    %50 = vector.broadcast %49 : f32 to vector<6x18xf32>
    %51 = arith.mulf %50, %48 : vector<6x18xf32>
    %52 = arith.addf %18, %51 : vector<6x18xf32>
    %c9 = arith.constant 9 : index
    %53 = memref.load %arg3[%c9] : memref<288xf32, #tpu.memory_space<smem>>
    %54 = vector.broadcast %53 : f32 to vector<6x18xf32>
    %55 = arith.mulf %54, %48 : vector<6x18xf32>
    %56 = arith.addf %22, %55 : vector<6x18xf32>
    %c10 = arith.constant 10 : index
    %57 = memref.load %arg3[%c10] : memref<288xf32, #tpu.memory_space<smem>>
    %58 = vector.broadcast %57 : f32 to vector<6x18xf32>
    %59 = arith.mulf %58, %48 : vector<6x18xf32>
    %60 = arith.addf %26, %59 : vector<6x18xf32>
    %c11 = arith.constant 11 : index
    %61 = memref.load %arg3[%c11] : memref<288xf32, #tpu.memory_space<smem>>
    %62 = vector.broadcast %61 : f32 to vector<6x18xf32>
    %63 = arith.mulf %62, %48 : vector<6x18xf32>
    %64 = arith.addf %30, %63 : vector<6x18xf32>
    %c12 = arith.constant 12 : index
    %65 = memref.load %arg3[%c12] : memref<288xf32, #tpu.memory_space<smem>>
    %66 = vector.broadcast %65 : f32 to vector<6x18xf32>
    %67 = arith.mulf %66, %48 : vector<6x18xf32>
    %68 = arith.addf %34, %67 : vector<6x18xf32>
    %c13 = arith.constant 13 : index
    %69 = memref.load %arg3[%c13] : memref<288xf32, #tpu.memory_space<smem>>
    %70 = vector.broadcast %69 : f32 to vector<6x18xf32>
    %71 = arith.mulf %70, %48 : vector<6x18xf32>
    %72 = arith.addf %38, %71 : vector<6x18xf32>
    %c14 = arith.constant 14 : index
    %73 = memref.load %arg3[%c14] : memref<288xf32, #tpu.memory_space<smem>>
    %74 = vector.broadcast %73 : f32 to vector<6x18xf32>
    %75 = arith.mulf %74, %48 : vector<6x18xf32>
    %76 = arith.addf %42, %75 : vector<6x18xf32>
    %c15 = arith.constant 15 : index
    %77 = memref.load %arg3[%c15] : memref<288xf32, #tpu.memory_space<smem>>
    %78 = vector.broadcast %77 : f32 to vector<6x18xf32>
    %79 = arith.mulf %78, %48 : vector<6x18xf32>
    %80 = arith.addf %46, %79 : vector<6x18xf32>
    %81 = vector.extract_strided_slice %12 {offsets = [2, 0, 0], sizes = [1, 6, 18], strides = [1, 1, 1]} : vector<4x8x18xf32> to vector<1x6x18xf32>
    %82 = vector.shape_cast %81 : vector<1x6x18xf32> to vector<6x18xf32>
    %c16 = arith.constant 16 : index
    %83 = memref.load %arg3[%c16] : memref<288xf32, #tpu.memory_space<smem>>
    %84 = vector.broadcast %83 : f32 to vector<6x18xf32>
    %85 = arith.mulf %84, %82 : vector<6x18xf32>
    %86 = arith.addf %52, %85 : vector<6x18xf32>
    %c17 = arith.constant 17 : index
    %87 = memref.load %arg3[%c17] : memref<288xf32, #tpu.memory_space<smem>>
    %88 = vector.broadcast %87 : f32 to vector<6x18xf32>
    %89 = arith.mulf %88, %82 : vector<6x18xf32>
    %90 = arith.addf %56, %89 : vector<6x18xf32>
    %c18 = arith.constant 18 : index
    %91 = memref.load %arg3[%c18] : memref<288xf32, #tpu.memory_space<smem>>
    %92 = vector.broadcast %91 : f32 to vector<6x18xf32>
    %93 = arith.mulf %92, %82 : vector<6x18xf32>
    %94 = arith.addf %60, %93 : vector<6x18xf32>
    %c19 = arith.constant 19 : index
    %95 = memref.load %arg3[%c19] : memref<288xf32, #tpu.memory_space<smem>>
    %96 = vector.broadcast %95 : f32 to vector<6x18xf32>
    %97 = arith.mulf %96, %82 : vector<6x18xf32>
    %98 = arith.addf %64, %97 : vector<6x18xf32>
    %c20 = arith.constant 20 : index
    %99 = memref.load %arg3[%c20] : memref<288xf32, #tpu.memory_space<smem>>
    %100 = vector.broadcast %99 : f32 to vector<6x18xf32>
    %101 = arith.mulf %100, %82 : vector<6x18xf32>
    %102 = arith.addf %68, %101 : vector<6x18xf32>
    %c21 = arith.constant 21 : index
    %103 = memref.load %arg3[%c21] : memref<288xf32, #tpu.memory_space<smem>>
    %104 = vector.broadcast %103 : f32 to vector<6x18xf32>
    %105 = arith.mulf %104, %82 : vector<6x18xf32>
    %106 = arith.addf %72, %105 : vector<6x18xf32>
    %c22 = arith.constant 22 : index
    %107 = memref.load %arg3[%c22] : memref<288xf32, #tpu.memory_space<smem>>
    %108 = vector.broadcast %107 : f32 to vector<6x18xf32>
    %109 = arith.mulf %108, %82 : vector<6x18xf32>
    %110 = arith.addf %76, %109 : vector<6x18xf32>
    %c23 = arith.constant 23 : index
    %111 = memref.load %arg3[%c23] : memref<288xf32, #tpu.memory_space<smem>>
    %112 = vector.broadcast %111 : f32 to vector<6x18xf32>
    %113 = arith.mulf %112, %82 : vector<6x18xf32>
    %114 = arith.addf %80, %113 : vector<6x18xf32>
    %115 = vector.extract_strided_slice %12 {offsets = [3, 0, 0], sizes = [1, 6, 18], strides = [1, 1, 1]} : vector<4x8x18xf32> to vector<1x6x18xf32>
    %116 = vector.shape_cast %115 : vector<1x6x18xf32> to vector<6x18xf32>
    %c24 = arith.constant 24 : index
    %117 = memref.load %arg3[%c24] : memref<288xf32, #tpu.memory_space<smem>>
    %118 = vector.broadcast %117 : f32 to vector<6x18xf32>
    %119 = arith.mulf %118, %116 : vector<6x18xf32>
    %120 = arith.addf %86, %119 : vector<6x18xf32>
    %c25 = arith.constant 25 : index
    %121 = memref.load %arg3[%c25] : memref<288xf32, #tpu.memory_space<smem>>
    %122 = vector.broadcast %121 : f32 to vector<6x18xf32>
    %123 = arith.mulf %122, %116 : vector<6x18xf32>
    %124 = arith.addf %90, %123 : vector<6x18xf32>
    %c26 = arith.constant 26 : index
    %125 = memref.load %arg3[%c26] : memref<288xf32, #tpu.memory_space<smem>>
    %126 = vector.broadcast %125 : f32 to vector<6x18xf32>
    %127 = arith.mulf %126, %116 : vector<6x18xf32>
    %128 = arith.addf %94, %127 : vector<6x18xf32>
    %c27 = arith.constant 27 : index
    %129 = memref.load %arg3[%c27] : memref<288xf32, #tpu.memory_space<smem>>
    %130 = vector.broadcast %129 : f32 to vector<6x18xf32>
    %131 = arith.mulf %130, %116 : vector<6x18xf32>
    %132 = arith.addf %98, %131 : vector<6x18xf32>
    %c28 = arith.constant 28 : index
    %133 = memref.load %arg3[%c28] : memref<288xf32, #tpu.memory_space<smem>>
    %134 = vector.broadcast %133 : f32 to vector<6x18xf32>
    %135 = arith.mulf %134, %116 : vector<6x18xf32>
    %136 = arith.addf %102, %135 : vector<6x18xf32>
    %c29 = arith.constant 29 : index
    %137 = memref.load %arg3[%c29] : memref<288xf32, #tpu.memory_space<smem>>
    %138 = vector.broadcast %137 : f32 to vector<6x18xf32>
    %139 = arith.mulf %138, %116 : vector<6x18xf32>
    %140 = arith.addf %106, %139 : vector<6x18xf32>
    %c30 = arith.constant 30 : index
    %141 = memref.load %arg3[%c30] : memref<288xf32, #tpu.memory_space<smem>>
    %142 = vector.broadcast %141 : f32 to vector<6x18xf32>
    %143 = arith.mulf %142, %116 : vector<6x18xf32>
    %144 = arith.addf %110, %143 : vector<6x18xf32>
    %c31 = arith.constant 31 : index
    %145 = memref.load %arg3[%c31] : memref<288xf32, #tpu.memory_space<smem>>
    %146 = vector.broadcast %145 : f32 to vector<6x18xf32>
    %147 = arith.mulf %146, %116 : vector<6x18xf32>
    %148 = arith.addf %114, %147 : vector<6x18xf32>
    %149 = vector.extract_strided_slice %12 {offsets = [0, 1, 0], sizes = [1, 6, 18], strides = [1, 1, 1]} : vector<4x8x18xf32> to vector<1x6x18xf32>
    %150 = vector.shape_cast %149 : vector<1x6x18xf32> to vector<6x18xf32>
    %c96 = arith.constant 96 : index
    %151 = memref.load %arg3[%c96] : memref<288xf32, #tpu.memory_space<smem>>
    %152 = vector.broadcast %151 : f32 to vector<6x18xf32>
    %153 = arith.mulf %152, %150 : vector<6x18xf32>
    %154 = arith.addf %120, %153 : vector<6x18xf32>
    %c97 = arith.constant 97 : index
    %155 = memref.load %arg3[%c97] : memref<288xf32, #tpu.memory_space<smem>>
    %156 = vector.broadcast %155 : f32 to vector<6x18xf32>
    %157 = arith.mulf %156, %150 : vector<6x18xf32>
    %158 = arith.addf %124, %157 : vector<6x18xf32>
    %c98 = arith.constant 98 : index
    %159 = memref.load %arg3[%c98] : memref<288xf32, #tpu.memory_space<smem>>
    %160 = vector.broadcast %159 : f32 to vector<6x18xf32>
    %161 = arith.mulf %160, %150 : vector<6x18xf32>
    %162 = arith.addf %128, %161 : vector<6x18xf32>
    %c99 = arith.constant 99 : index
    %163 = memref.load %arg3[%c99] : memref<288xf32, #tpu.memory_space<smem>>
    %164 = vector.broadcast %163 : f32 to vector<6x18xf32>
    %165 = arith.mulf %164, %150 : vector<6x18xf32>
    %166 = arith.addf %132, %165 : vector<6x18xf32>
    %c100 = arith.constant 100 : index
    %167 = memref.load %arg3[%c100] : memref<288xf32, #tpu.memory_space<smem>>
    %168 = vector.broadcast %167 : f32 to vector<6x18xf32>
    %169 = arith.mulf %168, %150 : vector<6x18xf32>
    %170 = arith.addf %136, %169 : vector<6x18xf32>
    %c101 = arith.constant 101 : index
    %171 = memref.load %arg3[%c101] : memref<288xf32, #tpu.memory_space<smem>>
    %172 = vector.broadcast %171 : f32 to vector<6x18xf32>
    %173 = arith.mulf %172, %150 : vector<6x18xf32>
    %174 = arith.addf %140, %173 : vector<6x18xf32>
    %c102 = arith.constant 102 : index
    %175 = memref.load %arg3[%c102] : memref<288xf32, #tpu.memory_space<smem>>
    %176 = vector.broadcast %175 : f32 to vector<6x18xf32>
    %177 = arith.mulf %176, %150 : vector<6x18xf32>
    %178 = arith.addf %144, %177 : vector<6x18xf32>
    %c103 = arith.constant 103 : index
    %179 = memref.load %arg3[%c103] : memref<288xf32, #tpu.memory_space<smem>>
    %180 = vector.broadcast %179 : f32 to vector<6x18xf32>
    %181 = arith.mulf %180, %150 : vector<6x18xf32>
    %182 = arith.addf %148, %181 : vector<6x18xf32>
    %183 = vector.extract_strided_slice %12 {offsets = [1, 1, 0], sizes = [1, 6, 18], strides = [1, 1, 1]} : vector<4x8x18xf32> to vector<1x6x18xf32>
    %184 = vector.shape_cast %183 : vector<1x6x18xf32> to vector<6x18xf32>
    %c104 = arith.constant 104 : index
    %185 = memref.load %arg3[%c104] : memref<288xf32, #tpu.memory_space<smem>>
    %186 = vector.broadcast %185 : f32 to vector<6x18xf32>
    %187 = arith.mulf %186, %184 : vector<6x18xf32>
    %188 = arith.addf %154, %187 : vector<6x18xf32>
    %c105 = arith.constant 105 : index
    %189 = memref.load %arg3[%c105] : memref<288xf32, #tpu.memory_space<smem>>
    %190 = vector.broadcast %189 : f32 to vector<6x18xf32>
    %191 = arith.mulf %190, %184 : vector<6x18xf32>
    %192 = arith.addf %158, %191 : vector<6x18xf32>
    %c106 = arith.constant 106 : index
    %193 = memref.load %arg3[%c106] : memref<288xf32, #tpu.memory_space<smem>>
    %194 = vector.broadcast %193 : f32 to vector<6x18xf32>
    %195 = arith.mulf %194, %184 : vector<6x18xf32>
    %196 = arith.addf %162, %195 : vector<6x18xf32>
    %c107 = arith.constant 107 : index
    %197 = memref.load %arg3[%c107] : memref<288xf32, #tpu.memory_space<smem>>
    %198 = vector.broadcast %197 : f32 to vector<6x18xf32>
    %199 = arith.mulf %198, %184 : vector<6x18xf32>
    %200 = arith.addf %166, %199 : vector<6x18xf32>
    %c108 = arith.constant 108 : index
    %201 = memref.load %arg3[%c108] : memref<288xf32, #tpu.memory_space<smem>>
    %202 = vector.broadcast %201 : f32 to vector<6x18xf32>
    %203 = arith.mulf %202, %184 : vector<6x18xf32>
    %204 = arith.addf %170, %203 : vector<6x18xf32>
    %c109 = arith.constant 109 : index
    %205 = memref.load %arg3[%c109] : memref<288xf32, #tpu.memory_space<smem>>
    %206 = vector.broadcast %205 : f32 to vector<6x18xf32>
    %207 = arith.mulf %206, %184 : vector<6x18xf32>
    %208 = arith.addf %174, %207 : vector<6x18xf32>
    %c110 = arith.constant 110 : index
    %209 = memref.load %arg3[%c110] : memref<288xf32, #tpu.memory_space<smem>>
    %210 = vector.broadcast %209 : f32 to vector<6x18xf32>
    %211 = arith.mulf %210, %184 : vector<6x18xf32>
    %212 = arith.addf %178, %211 : vector<6x18xf32>
    %c111 = arith.constant 111 : index
    %213 = memref.load %arg3[%c111] : memref<288xf32, #tpu.memory_space<smem>>
    %214 = vector.broadcast %213 : f32 to vector<6x18xf32>
    %215 = arith.mulf %214, %184 : vector<6x18xf32>
    %216 = arith.addf %182, %215 : vector<6x18xf32>
    %217 = vector.extract_strided_slice %12 {offsets = [2, 1, 0], sizes = [1, 6, 18], strides = [1, 1, 1]} : vector<4x8x18xf32> to vector<1x6x18xf32>
    %218 = vector.shape_cast %217 : vector<1x6x18xf32> to vector<6x18xf32>
    %c112 = arith.constant 112 : index
    %219 = memref.load %arg3[%c112] : memref<288xf32, #tpu.memory_space<smem>>
    %220 = vector.broadcast %219 : f32 to vector<6x18xf32>
    %221 = arith.mulf %220, %218 : vector<6x18xf32>
    %222 = arith.addf %188, %221 : vector<6x18xf32>
    %c113 = arith.constant 113 : index
    %223 = memref.load %arg3[%c113] : memref<288xf32, #tpu.memory_space<smem>>
    %224 = vector.broadcast %223 : f32 to vector<6x18xf32>
    %225 = arith.mulf %224, %218 : vector<6x18xf32>
    %226 = arith.addf %192, %225 : vector<6x18xf32>
    %c114 = arith.constant 114 : index
    %227 = memref.load %arg3[%c114] : memref<288xf32, #tpu.memory_space<smem>>
    %228 = vector.broadcast %227 : f32 to vector<6x18xf32>
    %229 = arith.mulf %228, %218 : vector<6x18xf32>
    %230 = arith.addf %196, %229 : vector<6x18xf32>
    %c115 = arith.constant 115 : index
    %231 = memref.load %arg3[%c115] : memref<288xf32, #tpu.memory_space<smem>>
    %232 = vector.broadcast %231 : f32 to vector<6x18xf32>
    %233 = arith.mulf %232, %218 : vector<6x18xf32>
    %234 = arith.addf %200, %233 : vector<6x18xf32>
    %c116 = arith.constant 116 : index
    %235 = memref.load %arg3[%c116] : memref<288xf32, #tpu.memory_space<smem>>
    %236 = vector.broadcast %235 : f32 to vector<6x18xf32>
    %237 = arith.mulf %236, %218 : vector<6x18xf32>
    %238 = arith.addf %204, %237 : vector<6x18xf32>
    %c117 = arith.constant 117 : index
    %239 = memref.load %arg3[%c117] : memref<288xf32, #tpu.memory_space<smem>>
    %240 = vector.broadcast %239 : f32 to vector<6x18xf32>
    %241 = arith.mulf %240, %218 : vector<6x18xf32>
    %242 = arith.addf %208, %241 : vector<6x18xf32>
    %c118 = arith.constant 118 : index
    %243 = memref.load %arg3[%c118] : memref<288xf32, #tpu.memory_space<smem>>
    %244 = vector.broadcast %243 : f32 to vector<6x18xf32>
    %245 = arith.mulf %244, %218 : vector<6x18xf32>
    %246 = arith.addf %212, %245 : vector<6x18xf32>
    %c119 = arith.constant 119 : index
    %247 = memref.load %arg3[%c119] : memref<288xf32, #tpu.memory_space<smem>>
    %248 = vector.broadcast %247 : f32 to vector<6x18xf32>
    %249 = arith.mulf %248, %218 : vector<6x18xf32>
    %250 = arith.addf %216, %249 : vector<6x18xf32>
    %251 = vector.extract_strided_slice %12 {offsets = [3, 1, 0], sizes = [1, 6, 18], strides = [1, 1, 1]} : vector<4x8x18xf32> to vector<1x6x18xf32>
    %252 = vector.shape_cast %251 : vector<1x6x18xf32> to vector<6x18xf32>
    %c120 = arith.constant 120 : index
    %253 = memref.load %arg3[%c120] : memref<288xf32, #tpu.memory_space<smem>>
    %254 = vector.broadcast %253 : f32 to vector<6x18xf32>
    %255 = arith.mulf %254, %252 : vector<6x18xf32>
    %256 = arith.addf %222, %255 : vector<6x18xf32>
    %c121 = arith.constant 121 : index
    %257 = memref.load %arg3[%c121] : memref<288xf32, #tpu.memory_space<smem>>
    %258 = vector.broadcast %257 : f32 to vector<6x18xf32>
    %259 = arith.mulf %258, %252 : vector<6x18xf32>
    %260 = arith.addf %226, %259 : vector<6x18xf32>
    %c122 = arith.constant 122 : index
    %261 = memref.load %arg3[%c122] : memref<288xf32, #tpu.memory_space<smem>>
    %262 = vector.broadcast %261 : f32 to vector<6x18xf32>
    %263 = arith.mulf %262, %252 : vector<6x18xf32>
    %264 = arith.addf %230, %263 : vector<6x18xf32>
    %c123 = arith.constant 123 : index
    %265 = memref.load %arg3[%c123] : memref<288xf32, #tpu.memory_space<smem>>
    %266 = vector.broadcast %265 : f32 to vector<6x18xf32>
    %267 = arith.mulf %266, %252 : vector<6x18xf32>
    %268 = arith.addf %234, %267 : vector<6x18xf32>
    %c124 = arith.constant 124 : index
    %269 = memref.load %arg3[%c124] : memref<288xf32, #tpu.memory_space<smem>>
    %270 = vector.broadcast %269 : f32 to vector<6x18xf32>
    %271 = arith.mulf %270, %252 : vector<6x18xf32>
    %272 = arith.addf %238, %271 : vector<6x18xf32>
    %c125 = arith.constant 125 : index
    %273 = memref.load %arg3[%c125] : memref<288xf32, #tpu.memory_space<smem>>
    %274 = vector.broadcast %273 : f32 to vector<6x18xf32>
    %275 = arith.mulf %274, %252 : vector<6x18xf32>
    %276 = arith.addf %242, %275 : vector<6x18xf32>
    %c126 = arith.constant 126 : index
    %277 = memref.load %arg3[%c126] : memref<288xf32, #tpu.memory_space<smem>>
    %278 = vector.broadcast %277 : f32 to vector<6x18xf32>
    %279 = arith.mulf %278, %252 : vector<6x18xf32>
    %280 = arith.addf %246, %279 : vector<6x18xf32>
    %c127 = arith.constant 127 : index
    %281 = memref.load %arg3[%c127] : memref<288xf32, #tpu.memory_space<smem>>
    %282 = vector.broadcast %281 : f32 to vector<6x18xf32>
    %283 = arith.mulf %282, %252 : vector<6x18xf32>
    %284 = arith.addf %250, %283 : vector<6x18xf32>
    %285 = vector.extract_strided_slice %12 {offsets = [0, 2, 0], sizes = [1, 6, 18], strides = [1, 1, 1]} : vector<4x8x18xf32> to vector<1x6x18xf32>
    %286 = vector.shape_cast %285 : vector<1x6x18xf32> to vector<6x18xf32>
    %c192 = arith.constant 192 : index
    %287 = memref.load %arg3[%c192] : memref<288xf32, #tpu.memory_space<smem>>
    %288 = vector.broadcast %287 : f32 to vector<6x18xf32>
    %289 = arith.mulf %288, %286 : vector<6x18xf32>
    %290 = arith.addf %256, %289 : vector<6x18xf32>
    %c193 = arith.constant 193 : index
    %291 = memref.load %arg3[%c193] : memref<288xf32, #tpu.memory_space<smem>>
    %292 = vector.broadcast %291 : f32 to vector<6x18xf32>
    %293 = arith.mulf %292, %286 : vector<6x18xf32>
    %294 = arith.addf %260, %293 : vector<6x18xf32>
    %c194 = arith.constant 194 : index
    %295 = memref.load %arg3[%c194] : memref<288xf32, #tpu.memory_space<smem>>
    %296 = vector.broadcast %295 : f32 to vector<6x18xf32>
    %297 = arith.mulf %296, %286 : vector<6x18xf32>
    %298 = arith.addf %264, %297 : vector<6x18xf32>
    %c195 = arith.constant 195 : index
    %299 = memref.load %arg3[%c195] : memref<288xf32, #tpu.memory_space<smem>>
    %300 = vector.broadcast %299 : f32 to vector<6x18xf32>
    %301 = arith.mulf %300, %286 : vector<6x18xf32>
    %302 = arith.addf %268, %301 : vector<6x18xf32>
    %c196 = arith.constant 196 : index
    %303 = memref.load %arg3[%c196] : memref<288xf32, #tpu.memory_space<smem>>
    %304 = vector.broadcast %303 : f32 to vector<6x18xf32>
    %305 = arith.mulf %304, %286 : vector<6x18xf32>
    %306 = arith.addf %272, %305 : vector<6x18xf32>
    %c197 = arith.constant 197 : index
    %307 = memref.load %arg3[%c197] : memref<288xf32, #tpu.memory_space<smem>>
    %308 = vector.broadcast %307 : f32 to vector<6x18xf32>
    %309 = arith.mulf %308, %286 : vector<6x18xf32>
    %310 = arith.addf %276, %309 : vector<6x18xf32>
    %c198 = arith.constant 198 : index
    %311 = memref.load %arg3[%c198] : memref<288xf32, #tpu.memory_space<smem>>
    %312 = vector.broadcast %311 : f32 to vector<6x18xf32>
    %313 = arith.mulf %312, %286 : vector<6x18xf32>
    %314 = arith.addf %280, %313 : vector<6x18xf32>
    %c199 = arith.constant 199 : index
    %315 = memref.load %arg3[%c199] : memref<288xf32, #tpu.memory_space<smem>>
    %316 = vector.broadcast %315 : f32 to vector<6x18xf32>
    %317 = arith.mulf %316, %286 : vector<6x18xf32>
    %318 = arith.addf %284, %317 : vector<6x18xf32>
    %319 = vector.extract_strided_slice %12 {offsets = [1, 2, 0], sizes = [1, 6, 18], strides = [1, 1, 1]} : vector<4x8x18xf32> to vector<1x6x18xf32>
    %320 = vector.shape_cast %319 : vector<1x6x18xf32> to vector<6x18xf32>
    %c200 = arith.constant 200 : index
    %321 = memref.load %arg3[%c200] : memref<288xf32, #tpu.memory_space<smem>>
    %322 = vector.broadcast %321 : f32 to vector<6x18xf32>
    %323 = arith.mulf %322, %320 : vector<6x18xf32>
    %324 = arith.addf %290, %323 : vector<6x18xf32>
    %c201 = arith.constant 201 : index
    %325 = memref.load %arg3[%c201] : memref<288xf32, #tpu.memory_space<smem>>
    %326 = vector.broadcast %325 : f32 to vector<6x18xf32>
    %327 = arith.mulf %326, %320 : vector<6x18xf32>
    %328 = arith.addf %294, %327 : vector<6x18xf32>
    %c202 = arith.constant 202 : index
    %329 = memref.load %arg3[%c202] : memref<288xf32, #tpu.memory_space<smem>>
    %330 = vector.broadcast %329 : f32 to vector<6x18xf32>
    %331 = arith.mulf %330, %320 : vector<6x18xf32>
    %332 = arith.addf %298, %331 : vector<6x18xf32>
    %c203 = arith.constant 203 : index
    %333 = memref.load %arg3[%c203] : memref<288xf32, #tpu.memory_space<smem>>
    %334 = vector.broadcast %333 : f32 to vector<6x18xf32>
    %335 = arith.mulf %334, %320 : vector<6x18xf32>
    %336 = arith.addf %302, %335 : vector<6x18xf32>
    %c204 = arith.constant 204 : index
    %337 = memref.load %arg3[%c204] : memref<288xf32, #tpu.memory_space<smem>>
    %338 = vector.broadcast %337 : f32 to vector<6x18xf32>
    %339 = arith.mulf %338, %320 : vector<6x18xf32>
    %340 = arith.addf %306, %339 : vector<6x18xf32>
    %c205 = arith.constant 205 : index
    %341 = memref.load %arg3[%c205] : memref<288xf32, #tpu.memory_space<smem>>
    %342 = vector.broadcast %341 : f32 to vector<6x18xf32>
    %343 = arith.mulf %342, %320 : vector<6x18xf32>
    %344 = arith.addf %310, %343 : vector<6x18xf32>
    %c206 = arith.constant 206 : index
    %345 = memref.load %arg3[%c206] : memref<288xf32, #tpu.memory_space<smem>>
    %346 = vector.broadcast %345 : f32 to vector<6x18xf32>
    %347 = arith.mulf %346, %320 : vector<6x18xf32>
    %348 = arith.addf %314, %347 : vector<6x18xf32>
    %c207 = arith.constant 207 : index
    %349 = memref.load %arg3[%c207] : memref<288xf32, #tpu.memory_space<smem>>
    %350 = vector.broadcast %349 : f32 to vector<6x18xf32>
    %351 = arith.mulf %350, %320 : vector<6x18xf32>
    %352 = arith.addf %318, %351 : vector<6x18xf32>
    %353 = vector.extract_strided_slice %12 {offsets = [2, 2, 0], sizes = [1, 6, 18], strides = [1, 1, 1]} : vector<4x8x18xf32> to vector<1x6x18xf32>
    %354 = vector.shape_cast %353 : vector<1x6x18xf32> to vector<6x18xf32>
    %c208 = arith.constant 208 : index
    %355 = memref.load %arg3[%c208] : memref<288xf32, #tpu.memory_space<smem>>
    %356 = vector.broadcast %355 : f32 to vector<6x18xf32>
    %357 = arith.mulf %356, %354 : vector<6x18xf32>
    %358 = arith.addf %324, %357 : vector<6x18xf32>
    %c209 = arith.constant 209 : index
    %359 = memref.load %arg3[%c209] : memref<288xf32, #tpu.memory_space<smem>>
    %360 = vector.broadcast %359 : f32 to vector<6x18xf32>
    %361 = arith.mulf %360, %354 : vector<6x18xf32>
    %362 = arith.addf %328, %361 : vector<6x18xf32>
    %c210 = arith.constant 210 : index
    %363 = memref.load %arg3[%c210] : memref<288xf32, #tpu.memory_space<smem>>
    %364 = vector.broadcast %363 : f32 to vector<6x18xf32>
    %365 = arith.mulf %364, %354 : vector<6x18xf32>
    %366 = arith.addf %332, %365 : vector<6x18xf32>
    %c211 = arith.constant 211 : index
    %367 = memref.load %arg3[%c211] : memref<288xf32, #tpu.memory_space<smem>>
    %368 = vector.broadcast %367 : f32 to vector<6x18xf32>
    %369 = arith.mulf %368, %354 : vector<6x18xf32>
    %370 = arith.addf %336, %369 : vector<6x18xf32>
    %c212 = arith.constant 212 : index
    %371 = memref.load %arg3[%c212] : memref<288xf32, #tpu.memory_space<smem>>
    %372 = vector.broadcast %371 : f32 to vector<6x18xf32>
    %373 = arith.mulf %372, %354 : vector<6x18xf32>
    %374 = arith.addf %340, %373 : vector<6x18xf32>
    %c213 = arith.constant 213 : index
    %375 = memref.load %arg3[%c213] : memref<288xf32, #tpu.memory_space<smem>>
    %376 = vector.broadcast %375 : f32 to vector<6x18xf32>
    %377 = arith.mulf %376, %354 : vector<6x18xf32>
    %378 = arith.addf %344, %377 : vector<6x18xf32>
    %c214 = arith.constant 214 : index
    %379 = memref.load %arg3[%c214] : memref<288xf32, #tpu.memory_space<smem>>
    %380 = vector.broadcast %379 : f32 to vector<6x18xf32>
    %381 = arith.mulf %380, %354 : vector<6x18xf32>
    %382 = arith.addf %348, %381 : vector<6x18xf32>
    %c215 = arith.constant 215 : index
    %383 = memref.load %arg3[%c215] : memref<288xf32, #tpu.memory_space<smem>>
    %384 = vector.broadcast %383 : f32 to vector<6x18xf32>
    %385 = arith.mulf %384, %354 : vector<6x18xf32>
    %386 = arith.addf %352, %385 : vector<6x18xf32>
    %387 = vector.extract_strided_slice %12 {offsets = [3, 2, 0], sizes = [1, 6, 18], strides = [1, 1, 1]} : vector<4x8x18xf32> to vector<1x6x18xf32>
    %388 = vector.shape_cast %387 : vector<1x6x18xf32> to vector<6x18xf32>
    %c216 = arith.constant 216 : index
    %389 = memref.load %arg3[%c216] : memref<288xf32, #tpu.memory_space<smem>>
    %390 = vector.broadcast %389 : f32 to vector<6x18xf32>
    %391 = arith.mulf %390, %388 : vector<6x18xf32>
    %392 = arith.addf %358, %391 : vector<6x18xf32>
    %c217 = arith.constant 217 : index
    %393 = memref.load %arg3[%c217] : memref<288xf32, #tpu.memory_space<smem>>
    %394 = vector.broadcast %393 : f32 to vector<6x18xf32>
    %395 = arith.mulf %394, %388 : vector<6x18xf32>
    %396 = arith.addf %362, %395 : vector<6x18xf32>
    %c218 = arith.constant 218 : index
    %397 = memref.load %arg3[%c218] : memref<288xf32, #tpu.memory_space<smem>>
    %398 = vector.broadcast %397 : f32 to vector<6x18xf32>
    %399 = arith.mulf %398, %388 : vector<6x18xf32>
    %400 = arith.addf %366, %399 : vector<6x18xf32>
    %c219 = arith.constant 219 : index
    %401 = memref.load %arg3[%c219] : memref<288xf32, #tpu.memory_space<smem>>
    %402 = vector.broadcast %401 : f32 to vector<6x18xf32>
    %403 = arith.mulf %402, %388 : vector<6x18xf32>
    %404 = arith.addf %370, %403 : vector<6x18xf32>
    %c220 = arith.constant 220 : index
    %405 = memref.load %arg3[%c220] : memref<288xf32, #tpu.memory_space<smem>>
    %406 = vector.broadcast %405 : f32 to vector<6x18xf32>
    %407 = arith.mulf %406, %388 : vector<6x18xf32>
    %408 = arith.addf %374, %407 : vector<6x18xf32>
    %c221 = arith.constant 221 : index
    %409 = memref.load %arg3[%c221] : memref<288xf32, #tpu.memory_space<smem>>
    %410 = vector.broadcast %409 : f32 to vector<6x18xf32>
    %411 = arith.mulf %410, %388 : vector<6x18xf32>
    %412 = arith.addf %378, %411 : vector<6x18xf32>
    %c222 = arith.constant 222 : index
    %413 = memref.load %arg3[%c222] : memref<288xf32, #tpu.memory_space<smem>>
    %414 = vector.broadcast %413 : f32 to vector<6x18xf32>
    %415 = arith.mulf %414, %388 : vector<6x18xf32>
    %416 = arith.addf %382, %415 : vector<6x18xf32>
    %c223 = arith.constant 223 : index
    %417 = memref.load %arg3[%c223] : memref<288xf32, #tpu.memory_space<smem>>
    %418 = vector.broadcast %417 : f32 to vector<6x18xf32>
    %419 = arith.mulf %418, %388 : vector<6x18xf32>
    %420 = arith.addf %386, %419 : vector<6x18xf32>
    %421 = vector.extract_strided_slice %3 {offsets = [0, 0, 1], sizes = [4, 8, 18], strides = [1, 1, 1]} : vector<4x8x20xf32> to vector<4x8x18xf32>
    %422 = vector.extract_strided_slice %421 {offsets = [0, 0, 0], sizes = [1, 6, 18], strides = [1, 1, 1]} : vector<4x8x18xf32> to vector<1x6x18xf32>
    %423 = vector.shape_cast %422 : vector<1x6x18xf32> to vector<6x18xf32>
    %c32 = arith.constant 32 : index
    %424 = memref.load %arg3[%c32] : memref<288xf32, #tpu.memory_space<smem>>
    %425 = vector.broadcast %424 : f32 to vector<6x18xf32>
    %426 = arith.mulf %425, %423 : vector<6x18xf32>
    %427 = arith.addf %392, %426 : vector<6x18xf32>
    %c33 = arith.constant 33 : index
    %428 = memref.load %arg3[%c33] : memref<288xf32, #tpu.memory_space<smem>>
    %429 = vector.broadcast %428 : f32 to vector<6x18xf32>
    %430 = arith.mulf %429, %423 : vector<6x18xf32>
    %431 = arith.addf %396, %430 : vector<6x18xf32>
    %c34 = arith.constant 34 : index
    %432 = memref.load %arg3[%c34] : memref<288xf32, #tpu.memory_space<smem>>
    %433 = vector.broadcast %432 : f32 to vector<6x18xf32>
    %434 = arith.mulf %433, %423 : vector<6x18xf32>
    %435 = arith.addf %400, %434 : vector<6x18xf32>
    %c35 = arith.constant 35 : index
    %436 = memref.load %arg3[%c35] : memref<288xf32, #tpu.memory_space<smem>>
    %437 = vector.broadcast %436 : f32 to vector<6x18xf32>
    %438 = arith.mulf %437, %423 : vector<6x18xf32>
    %439 = arith.addf %404, %438 : vector<6x18xf32>
    %c36 = arith.constant 36 : index
    %440 = memref.load %arg3[%c36] : memref<288xf32, #tpu.memory_space<smem>>
    %441 = vector.broadcast %440 : f32 to vector<6x18xf32>
    %442 = arith.mulf %441, %423 : vector<6x18xf32>
    %443 = arith.addf %408, %442 : vector<6x18xf32>
    %c37 = arith.constant 37 : index
    %444 = memref.load %arg3[%c37] : memref<288xf32, #tpu.memory_space<smem>>
    %445 = vector.broadcast %444 : f32 to vector<6x18xf32>
    %446 = arith.mulf %445, %423 : vector<6x18xf32>
    %447 = arith.addf %412, %446 : vector<6x18xf32>
    %c38 = arith.constant 38 : index
    %448 = memref.load %arg3[%c38] : memref<288xf32, #tpu.memory_space<smem>>
    %449 = vector.broadcast %448 : f32 to vector<6x18xf32>
    %450 = arith.mulf %449, %423 : vector<6x18xf32>
    %451 = arith.addf %416, %450 : vector<6x18xf32>
    %c39 = arith.constant 39 : index
    %452 = memref.load %arg3[%c39] : memref<288xf32, #tpu.memory_space<smem>>
    %453 = vector.broadcast %452 : f32 to vector<6x18xf32>
    %454 = arith.mulf %453, %423 : vector<6x18xf32>
    %455 = arith.addf %420, %454 : vector<6x18xf32>
    %456 = vector.extract_strided_slice %421 {offsets = [1, 0, 0], sizes = [1, 6, 18], strides = [1, 1, 1]} : vector<4x8x18xf32> to vector<1x6x18xf32>
    %457 = vector.shape_cast %456 : vector<1x6x18xf32> to vector<6x18xf32>
    %c40 = arith.constant 40 : index
    %458 = memref.load %arg3[%c40] : memref<288xf32, #tpu.memory_space<smem>>
    %459 = vector.broadcast %458 : f32 to vector<6x18xf32>
    %460 = arith.mulf %459, %457 : vector<6x18xf32>
    %461 = arith.addf %427, %460 : vector<6x18xf32>
    %c41 = arith.constant 41 : index
    %462 = memref.load %arg3[%c41] : memref<288xf32, #tpu.memory_space<smem>>
    %463 = vector.broadcast %462 : f32 to vector<6x18xf32>
    %464 = arith.mulf %463, %457 : vector<6x18xf32>
    %465 = arith.addf %431, %464 : vector<6x18xf32>
    %c42 = arith.constant 42 : index
    %466 = memref.load %arg3[%c42] : memref<288xf32, #tpu.memory_space<smem>>
    %467 = vector.broadcast %466 : f32 to vector<6x18xf32>
    %468 = arith.mulf %467, %457 : vector<6x18xf32>
    %469 = arith.addf %435, %468 : vector<6x18xf32>
    %c43 = arith.constant 43 : index
    %470 = memref.load %arg3[%c43] : memref<288xf32, #tpu.memory_space<smem>>
    %471 = vector.broadcast %470 : f32 to vector<6x18xf32>
    %472 = arith.mulf %471, %457 : vector<6x18xf32>
    %473 = arith.addf %439, %472 : vector<6x18xf32>
    %c44 = arith.constant 44 : index
    %474 = memref.load %arg3[%c44] : memref<288xf32, #tpu.memory_space<smem>>
    %475 = vector.broadcast %474 : f32 to vector<6x18xf32>
    %476 = arith.mulf %475, %457 : vector<6x18xf32>
    %477 = arith.addf %443, %476 : vector<6x18xf32>
    %c45 = arith.constant 45 : index
    %478 = memref.load %arg3[%c45] : memref<288xf32, #tpu.memory_space<smem>>
    %479 = vector.broadcast %478 : f32 to vector<6x18xf32>
    %480 = arith.mulf %479, %457 : vector<6x18xf32>
    %481 = arith.addf %447, %480 : vector<6x18xf32>
    %c46 = arith.constant 46 : index
    %482 = memref.load %arg3[%c46] : memref<288xf32, #tpu.memory_space<smem>>
    %483 = vector.broadcast %482 : f32 to vector<6x18xf32>
    %484 = arith.mulf %483, %457 : vector<6x18xf32>
    %485 = arith.addf %451, %484 : vector<6x18xf32>
    %c47 = arith.constant 47 : index
    %486 = memref.load %arg3[%c47] : memref<288xf32, #tpu.memory_space<smem>>
    %487 = vector.broadcast %486 : f32 to vector<6x18xf32>
    %488 = arith.mulf %487, %457 : vector<6x18xf32>
    %489 = arith.addf %455, %488 : vector<6x18xf32>
    %490 = vector.extract_strided_slice %421 {offsets = [2, 0, 0], sizes = [1, 6, 18], strides = [1, 1, 1]} : vector<4x8x18xf32> to vector<1x6x18xf32>
    %491 = vector.shape_cast %490 : vector<1x6x18xf32> to vector<6x18xf32>
    %c48 = arith.constant 48 : index
    %492 = memref.load %arg3[%c48] : memref<288xf32, #tpu.memory_space<smem>>
    %493 = vector.broadcast %492 : f32 to vector<6x18xf32>
    %494 = arith.mulf %493, %491 : vector<6x18xf32>
    %495 = arith.addf %461, %494 : vector<6x18xf32>
    %c49 = arith.constant 49 : index
    %496 = memref.load %arg3[%c49] : memref<288xf32, #tpu.memory_space<smem>>
    %497 = vector.broadcast %496 : f32 to vector<6x18xf32>
    %498 = arith.mulf %497, %491 : vector<6x18xf32>
    %499 = arith.addf %465, %498 : vector<6x18xf32>
    %c50 = arith.constant 50 : index
    %500 = memref.load %arg3[%c50] : memref<288xf32, #tpu.memory_space<smem>>
    %501 = vector.broadcast %500 : f32 to vector<6x18xf32>
    %502 = arith.mulf %501, %491 : vector<6x18xf32>
    %503 = arith.addf %469, %502 : vector<6x18xf32>
    %c51 = arith.constant 51 : index
    %504 = memref.load %arg3[%c51] : memref<288xf32, #tpu.memory_space<smem>>
    %505 = vector.broadcast %504 : f32 to vector<6x18xf32>
    %506 = arith.mulf %505, %491 : vector<6x18xf32>
    %507 = arith.addf %473, %506 : vector<6x18xf32>
    %c52 = arith.constant 52 : index
    %508 = memref.load %arg3[%c52] : memref<288xf32, #tpu.memory_space<smem>>
    %509 = vector.broadcast %508 : f32 to vector<6x18xf32>
    %510 = arith.mulf %509, %491 : vector<6x18xf32>
    %511 = arith.addf %477, %510 : vector<6x18xf32>
    %c53 = arith.constant 53 : index
    %512 = memref.load %arg3[%c53] : memref<288xf32, #tpu.memory_space<smem>>
    %513 = vector.broadcast %512 : f32 to vector<6x18xf32>
    %514 = arith.mulf %513, %491 : vector<6x18xf32>
    %515 = arith.addf %481, %514 : vector<6x18xf32>
    %c54 = arith.constant 54 : index
    %516 = memref.load %arg3[%c54] : memref<288xf32, #tpu.memory_space<smem>>
    %517 = vector.broadcast %516 : f32 to vector<6x18xf32>
    %518 = arith.mulf %517, %491 : vector<6x18xf32>
    %519 = arith.addf %485, %518 : vector<6x18xf32>
    %c55 = arith.constant 55 : index
    %520 = memref.load %arg3[%c55] : memref<288xf32, #tpu.memory_space<smem>>
    %521 = vector.broadcast %520 : f32 to vector<6x18xf32>
    %522 = arith.mulf %521, %491 : vector<6x18xf32>
    %523 = arith.addf %489, %522 : vector<6x18xf32>
    %524 = vector.extract_strided_slice %421 {offsets = [3, 0, 0], sizes = [1, 6, 18], strides = [1, 1, 1]} : vector<4x8x18xf32> to vector<1x6x18xf32>
    %525 = vector.shape_cast %524 : vector<1x6x18xf32> to vector<6x18xf32>
    %c56 = arith.constant 56 : index
    %526 = memref.load %arg3[%c56] : memref<288xf32, #tpu.memory_space<smem>>
    %527 = vector.broadcast %526 : f32 to vector<6x18xf32>
    %528 = arith.mulf %527, %525 : vector<6x18xf32>
    %529 = arith.addf %495, %528 : vector<6x18xf32>
    %c57 = arith.constant 57 : index
    %530 = memref.load %arg3[%c57] : memref<288xf32, #tpu.memory_space<smem>>
    %531 = vector.broadcast %530 : f32 to vector<6x18xf32>
    %532 = arith.mulf %531, %525 : vector<6x18xf32>
    %533 = arith.addf %499, %532 : vector<6x18xf32>
    %c58 = arith.constant 58 : index
    %534 = memref.load %arg3[%c58] : memref<288xf32, #tpu.memory_space<smem>>
    %535 = vector.broadcast %534 : f32 to vector<6x18xf32>
    %536 = arith.mulf %535, %525 : vector<6x18xf32>
    %537 = arith.addf %503, %536 : vector<6x18xf32>
    %c59 = arith.constant 59 : index
    %538 = memref.load %arg3[%c59] : memref<288xf32, #tpu.memory_space<smem>>
    %539 = vector.broadcast %538 : f32 to vector<6x18xf32>
    %540 = arith.mulf %539, %525 : vector<6x18xf32>
    %541 = arith.addf %507, %540 : vector<6x18xf32>
    %c60 = arith.constant 60 : index
    %542 = memref.load %arg3[%c60] : memref<288xf32, #tpu.memory_space<smem>>
    %543 = vector.broadcast %542 : f32 to vector<6x18xf32>
    %544 = arith.mulf %543, %525 : vector<6x18xf32>
    %545 = arith.addf %511, %544 : vector<6x18xf32>
    %c61 = arith.constant 61 : index
    %546 = memref.load %arg3[%c61] : memref<288xf32, #tpu.memory_space<smem>>
    %547 = vector.broadcast %546 : f32 to vector<6x18xf32>
    %548 = arith.mulf %547, %525 : vector<6x18xf32>
    %549 = arith.addf %515, %548 : vector<6x18xf32>
    %c62 = arith.constant 62 : index
    %550 = memref.load %arg3[%c62] : memref<288xf32, #tpu.memory_space<smem>>
    %551 = vector.broadcast %550 : f32 to vector<6x18xf32>
    %552 = arith.mulf %551, %525 : vector<6x18xf32>
    %553 = arith.addf %519, %552 : vector<6x18xf32>
    %c63 = arith.constant 63 : index
    %554 = memref.load %arg3[%c63] : memref<288xf32, #tpu.memory_space<smem>>
    %555 = vector.broadcast %554 : f32 to vector<6x18xf32>
    %556 = arith.mulf %555, %525 : vector<6x18xf32>
    %557 = arith.addf %523, %556 : vector<6x18xf32>
    %558 = vector.extract_strided_slice %421 {offsets = [0, 1, 0], sizes = [1, 6, 18], strides = [1, 1, 1]} : vector<4x8x18xf32> to vector<1x6x18xf32>
    %559 = vector.shape_cast %558 : vector<1x6x18xf32> to vector<6x18xf32>
    %c128 = arith.constant 128 : index
    %560 = memref.load %arg3[%c128] : memref<288xf32, #tpu.memory_space<smem>>
    %561 = vector.broadcast %560 : f32 to vector<6x18xf32>
    %562 = arith.mulf %561, %559 : vector<6x18xf32>
    %563 = arith.addf %529, %562 : vector<6x18xf32>
    %c129 = arith.constant 129 : index
    %564 = memref.load %arg3[%c129] : memref<288xf32, #tpu.memory_space<smem>>
    %565 = vector.broadcast %564 : f32 to vector<6x18xf32>
    %566 = arith.mulf %565, %559 : vector<6x18xf32>
    %567 = arith.addf %533, %566 : vector<6x18xf32>
    %c130 = arith.constant 130 : index
    %568 = memref.load %arg3[%c130] : memref<288xf32, #tpu.memory_space<smem>>
    %569 = vector.broadcast %568 : f32 to vector<6x18xf32>
    %570 = arith.mulf %569, %559 : vector<6x18xf32>
    %571 = arith.addf %537, %570 : vector<6x18xf32>
    %c131 = arith.constant 131 : index
    %572 = memref.load %arg3[%c131] : memref<288xf32, #tpu.memory_space<smem>>
    %573 = vector.broadcast %572 : f32 to vector<6x18xf32>
    %574 = arith.mulf %573, %559 : vector<6x18xf32>
    %575 = arith.addf %541, %574 : vector<6x18xf32>
    %c132 = arith.constant 132 : index
    %576 = memref.load %arg3[%c132] : memref<288xf32, #tpu.memory_space<smem>>
    %577 = vector.broadcast %576 : f32 to vector<6x18xf32>
    %578 = arith.mulf %577, %559 : vector<6x18xf32>
    %579 = arith.addf %545, %578 : vector<6x18xf32>
    %c133 = arith.constant 133 : index
    %580 = memref.load %arg3[%c133] : memref<288xf32, #tpu.memory_space<smem>>
    %581 = vector.broadcast %580 : f32 to vector<6x18xf32>
    %582 = arith.mulf %581, %559 : vector<6x18xf32>
    %583 = arith.addf %549, %582 : vector<6x18xf32>
    %c134 = arith.constant 134 : index
    %584 = memref.load %arg3[%c134] : memref<288xf32, #tpu.memory_space<smem>>
    %585 = vector.broadcast %584 : f32 to vector<6x18xf32>
    %586 = arith.mulf %585, %559 : vector<6x18xf32>
    %587 = arith.addf %553, %586 : vector<6x18xf32>
    %c135 = arith.constant 135 : index
    %588 = memref.load %arg3[%c135] : memref<288xf32, #tpu.memory_space<smem>>
    %589 = vector.broadcast %588 : f32 to vector<6x18xf32>
    %590 = arith.mulf %589, %559 : vector<6x18xf32>
    %591 = arith.addf %557, %590 : vector<6x18xf32>
    %592 = vector.extract_strided_slice %421 {offsets = [1, 1, 0], sizes = [1, 6, 18], strides = [1, 1, 1]} : vector<4x8x18xf32> to vector<1x6x18xf32>
    %593 = vector.shape_cast %592 : vector<1x6x18xf32> to vector<6x18xf32>
    %c136 = arith.constant 136 : index
    %594 = memref.load %arg3[%c136] : memref<288xf32, #tpu.memory_space<smem>>
    %595 = vector.broadcast %594 : f32 to vector<6x18xf32>
    %596 = arith.mulf %595, %593 : vector<6x18xf32>
    %597 = arith.addf %563, %596 : vector<6x18xf32>
    %c137 = arith.constant 137 : index
    %598 = memref.load %arg3[%c137] : memref<288xf32, #tpu.memory_space<smem>>
    %599 = vector.broadcast %598 : f32 to vector<6x18xf32>
    %600 = arith.mulf %599, %593 : vector<6x18xf32>
    %601 = arith.addf %567, %600 : vector<6x18xf32>
    %c138 = arith.constant 138 : index
    %602 = memref.load %arg3[%c138] : memref<288xf32, #tpu.memory_space<smem>>
    %603 = vector.broadcast %602 : f32 to vector<6x18xf32>
    %604 = arith.mulf %603, %593 : vector<6x18xf32>
    %605 = arith.addf %571, %604 : vector<6x18xf32>
    %c139 = arith.constant 139 : index
    %606 = memref.load %arg3[%c139] : memref<288xf32, #tpu.memory_space<smem>>
    %607 = vector.broadcast %606 : f32 to vector<6x18xf32>
    %608 = arith.mulf %607, %593 : vector<6x18xf32>
    %609 = arith.addf %575, %608 : vector<6x18xf32>
    %c140 = arith.constant 140 : index
    %610 = memref.load %arg3[%c140] : memref<288xf32, #tpu.memory_space<smem>>
    %611 = vector.broadcast %610 : f32 to vector<6x18xf32>
    %612 = arith.mulf %611, %593 : vector<6x18xf32>
    %613 = arith.addf %579, %612 : vector<6x18xf32>
    %c141 = arith.constant 141 : index
    %614 = memref.load %arg3[%c141] : memref<288xf32, #tpu.memory_space<smem>>
    %615 = vector.broadcast %614 : f32 to vector<6x18xf32>
    %616 = arith.mulf %615, %593 : vector<6x18xf32>
    %617 = arith.addf %583, %616 : vector<6x18xf32>
    %c142 = arith.constant 142 : index
    %618 = memref.load %arg3[%c142] : memref<288xf32, #tpu.memory_space<smem>>
    %619 = vector.broadcast %618 : f32 to vector<6x18xf32>
    %620 = arith.mulf %619, %593 : vector<6x18xf32>
    %621 = arith.addf %587, %620 : vector<6x18xf32>
    %c143 = arith.constant 143 : index
    %622 = memref.load %arg3[%c143] : memref<288xf32, #tpu.memory_space<smem>>
    %623 = vector.broadcast %622 : f32 to vector<6x18xf32>
    %624 = arith.mulf %623, %593 : vector<6x18xf32>
    %625 = arith.addf %591, %624 : vector<6x18xf32>
    %626 = vector.extract_strided_slice %421 {offsets = [2, 1, 0], sizes = [1, 6, 18], strides = [1, 1, 1]} : vector<4x8x18xf32> to vector<1x6x18xf32>
    %627 = vector.shape_cast %626 : vector<1x6x18xf32> to vector<6x18xf32>
    %c144 = arith.constant 144 : index
    %628 = memref.load %arg3[%c144] : memref<288xf32, #tpu.memory_space<smem>>
    %629 = vector.broadcast %628 : f32 to vector<6x18xf32>
    %630 = arith.mulf %629, %627 : vector<6x18xf32>
    %631 = arith.addf %597, %630 : vector<6x18xf32>
    %c145 = arith.constant 145 : index
    %632 = memref.load %arg3[%c145] : memref<288xf32, #tpu.memory_space<smem>>
    %633 = vector.broadcast %632 : f32 to vector<6x18xf32>
    %634 = arith.mulf %633, %627 : vector<6x18xf32>
    %635 = arith.addf %601, %634 : vector<6x18xf32>
    %c146 = arith.constant 146 : index
    %636 = memref.load %arg3[%c146] : memref<288xf32, #tpu.memory_space<smem>>
    %637 = vector.broadcast %636 : f32 to vector<6x18xf32>
    %638 = arith.mulf %637, %627 : vector<6x18xf32>
    %639 = arith.addf %605, %638 : vector<6x18xf32>
    %c147 = arith.constant 147 : index
    %640 = memref.load %arg3[%c147] : memref<288xf32, #tpu.memory_space<smem>>
    %641 = vector.broadcast %640 : f32 to vector<6x18xf32>
    %642 = arith.mulf %641, %627 : vector<6x18xf32>
    %643 = arith.addf %609, %642 : vector<6x18xf32>
    %c148 = arith.constant 148 : index
    %644 = memref.load %arg3[%c148] : memref<288xf32, #tpu.memory_space<smem>>
    %645 = vector.broadcast %644 : f32 to vector<6x18xf32>
    %646 = arith.mulf %645, %627 : vector<6x18xf32>
    %647 = arith.addf %613, %646 : vector<6x18xf32>
    %c149 = arith.constant 149 : index
    %648 = memref.load %arg3[%c149] : memref<288xf32, #tpu.memory_space<smem>>
    %649 = vector.broadcast %648 : f32 to vector<6x18xf32>
    %650 = arith.mulf %649, %627 : vector<6x18xf32>
    %651 = arith.addf %617, %650 : vector<6x18xf32>
    %c150 = arith.constant 150 : index
    %652 = memref.load %arg3[%c150] : memref<288xf32, #tpu.memory_space<smem>>
    %653 = vector.broadcast %652 : f32 to vector<6x18xf32>
    %654 = arith.mulf %653, %627 : vector<6x18xf32>
    %655 = arith.addf %621, %654 : vector<6x18xf32>
    %c151 = arith.constant 151 : index
    %656 = memref.load %arg3[%c151] : memref<288xf32, #tpu.memory_space<smem>>
    %657 = vector.broadcast %656 : f32 to vector<6x18xf32>
    %658 = arith.mulf %657, %627 : vector<6x18xf32>
    %659 = arith.addf %625, %658 : vector<6x18xf32>
    %660 = vector.extract_strided_slice %421 {offsets = [3, 1, 0], sizes = [1, 6, 18], strides = [1, 1, 1]} : vector<4x8x18xf32> to vector<1x6x18xf32>
    %661 = vector.shape_cast %660 : vector<1x6x18xf32> to vector<6x18xf32>
    %c152 = arith.constant 152 : index
    %662 = memref.load %arg3[%c152] : memref<288xf32, #tpu.memory_space<smem>>
    %663 = vector.broadcast %662 : f32 to vector<6x18xf32>
    %664 = arith.mulf %663, %661 : vector<6x18xf32>
    %665 = arith.addf %631, %664 : vector<6x18xf32>
    %c153 = arith.constant 153 : index
    %666 = memref.load %arg3[%c153] : memref<288xf32, #tpu.memory_space<smem>>
    %667 = vector.broadcast %666 : f32 to vector<6x18xf32>
    %668 = arith.mulf %667, %661 : vector<6x18xf32>
    %669 = arith.addf %635, %668 : vector<6x18xf32>
    %c154 = arith.constant 154 : index
    %670 = memref.load %arg3[%c154] : memref<288xf32, #tpu.memory_space<smem>>
    %671 = vector.broadcast %670 : f32 to vector<6x18xf32>
    %672 = arith.mulf %671, %661 : vector<6x18xf32>
    %673 = arith.addf %639, %672 : vector<6x18xf32>
    %c155 = arith.constant 155 : index
    %674 = memref.load %arg3[%c155] : memref<288xf32, #tpu.memory_space<smem>>
    %675 = vector.broadcast %674 : f32 to vector<6x18xf32>
    %676 = arith.mulf %675, %661 : vector<6x18xf32>
    %677 = arith.addf %643, %676 : vector<6x18xf32>
    %c156 = arith.constant 156 : index
    %678 = memref.load %arg3[%c156] : memref<288xf32, #tpu.memory_space<smem>>
    %679 = vector.broadcast %678 : f32 to vector<6x18xf32>
    %680 = arith.mulf %679, %661 : vector<6x18xf32>
    %681 = arith.addf %647, %680 : vector<6x18xf32>
    %c157 = arith.constant 157 : index
    %682 = memref.load %arg3[%c157] : memref<288xf32, #tpu.memory_space<smem>>
    %683 = vector.broadcast %682 : f32 to vector<6x18xf32>
    %684 = arith.mulf %683, %661 : vector<6x18xf32>
    %685 = arith.addf %651, %684 : vector<6x18xf32>
    %c158 = arith.constant 158 : index
    %686 = memref.load %arg3[%c158] : memref<288xf32, #tpu.memory_space<smem>>
    %687 = vector.broadcast %686 : f32 to vector<6x18xf32>
    %688 = arith.mulf %687, %661 : vector<6x18xf32>
    %689 = arith.addf %655, %688 : vector<6x18xf32>
    %c159 = arith.constant 159 : index
    %690 = memref.load %arg3[%c159] : memref<288xf32, #tpu.memory_space<smem>>
    %691 = vector.broadcast %690 : f32 to vector<6x18xf32>
    %692 = arith.mulf %691, %661 : vector<6x18xf32>
    %693 = arith.addf %659, %692 : vector<6x18xf32>
    %694 = vector.extract_strided_slice %421 {offsets = [0, 2, 0], sizes = [1, 6, 18], strides = [1, 1, 1]} : vector<4x8x18xf32> to vector<1x6x18xf32>
    %695 = vector.shape_cast %694 : vector<1x6x18xf32> to vector<6x18xf32>
    %c224 = arith.constant 224 : index
    %696 = memref.load %arg3[%c224] : memref<288xf32, #tpu.memory_space<smem>>
    %697 = vector.broadcast %696 : f32 to vector<6x18xf32>
    %698 = arith.mulf %697, %695 : vector<6x18xf32>
    %699 = arith.addf %665, %698 : vector<6x18xf32>
    %c225 = arith.constant 225 : index
    %700 = memref.load %arg3[%c225] : memref<288xf32, #tpu.memory_space<smem>>
    %701 = vector.broadcast %700 : f32 to vector<6x18xf32>
    %702 = arith.mulf %701, %695 : vector<6x18xf32>
    %703 = arith.addf %669, %702 : vector<6x18xf32>
    %c226 = arith.constant 226 : index
    %704 = memref.load %arg3[%c226] : memref<288xf32, #tpu.memory_space<smem>>
    %705 = vector.broadcast %704 : f32 to vector<6x18xf32>
    %706 = arith.mulf %705, %695 : vector<6x18xf32>
    %707 = arith.addf %673, %706 : vector<6x18xf32>
    %c227 = arith.constant 227 : index
    %708 = memref.load %arg3[%c227] : memref<288xf32, #tpu.memory_space<smem>>
    %709 = vector.broadcast %708 : f32 to vector<6x18xf32>
    %710 = arith.mulf %709, %695 : vector<6x18xf32>
    %711 = arith.addf %677, %710 : vector<6x18xf32>
    %c228 = arith.constant 228 : index
    %712 = memref.load %arg3[%c228] : memref<288xf32, #tpu.memory_space<smem>>
    %713 = vector.broadcast %712 : f32 to vector<6x18xf32>
    %714 = arith.mulf %713, %695 : vector<6x18xf32>
    %715 = arith.addf %681, %714 : vector<6x18xf32>
    %c229 = arith.constant 229 : index
    %716 = memref.load %arg3[%c229] : memref<288xf32, #tpu.memory_space<smem>>
    %717 = vector.broadcast %716 : f32 to vector<6x18xf32>
    %718 = arith.mulf %717, %695 : vector<6x18xf32>
    %719 = arith.addf %685, %718 : vector<6x18xf32>
    %c230 = arith.constant 230 : index
    %720 = memref.load %arg3[%c230] : memref<288xf32, #tpu.memory_space<smem>>
    %721 = vector.broadcast %720 : f32 to vector<6x18xf32>
    %722 = arith.mulf %721, %695 : vector<6x18xf32>
    %723 = arith.addf %689, %722 : vector<6x18xf32>
    %c231 = arith.constant 231 : index
    %724 = memref.load %arg3[%c231] : memref<288xf32, #tpu.memory_space<smem>>
    %725 = vector.broadcast %724 : f32 to vector<6x18xf32>
    %726 = arith.mulf %725, %695 : vector<6x18xf32>
    %727 = arith.addf %693, %726 : vector<6x18xf32>
    %728 = vector.extract_strided_slice %421 {offsets = [1, 2, 0], sizes = [1, 6, 18], strides = [1, 1, 1]} : vector<4x8x18xf32> to vector<1x6x18xf32>
    %729 = vector.shape_cast %728 : vector<1x6x18xf32> to vector<6x18xf32>
    %c232 = arith.constant 232 : index
    %730 = memref.load %arg3[%c232] : memref<288xf32, #tpu.memory_space<smem>>
    %731 = vector.broadcast %730 : f32 to vector<6x18xf32>
    %732 = arith.mulf %731, %729 : vector<6x18xf32>
    %733 = arith.addf %699, %732 : vector<6x18xf32>
    %c233 = arith.constant 233 : index
    %734 = memref.load %arg3[%c233] : memref<288xf32, #tpu.memory_space<smem>>
    %735 = vector.broadcast %734 : f32 to vector<6x18xf32>
    %736 = arith.mulf %735, %729 : vector<6x18xf32>
    %737 = arith.addf %703, %736 : vector<6x18xf32>
    %c234 = arith.constant 234 : index
    %738 = memref.load %arg3[%c234] : memref<288xf32, #tpu.memory_space<smem>>
    %739 = vector.broadcast %738 : f32 to vector<6x18xf32>
    %740 = arith.mulf %739, %729 : vector<6x18xf32>
    %741 = arith.addf %707, %740 : vector<6x18xf32>
    %c235 = arith.constant 235 : index
    %742 = memref.load %arg3[%c235] : memref<288xf32, #tpu.memory_space<smem>>
    %743 = vector.broadcast %742 : f32 to vector<6x18xf32>
    %744 = arith.mulf %743, %729 : vector<6x18xf32>
    %745 = arith.addf %711, %744 : vector<6x18xf32>
    %c236 = arith.constant 236 : index
    %746 = memref.load %arg3[%c236] : memref<288xf32, #tpu.memory_space<smem>>
    %747 = vector.broadcast %746 : f32 to vector<6x18xf32>
    %748 = arith.mulf %747, %729 : vector<6x18xf32>
    %749 = arith.addf %715, %748 : vector<6x18xf32>
    %c237 = arith.constant 237 : index
    %750 = memref.load %arg3[%c237] : memref<288xf32, #tpu.memory_space<smem>>
    %751 = vector.broadcast %750 : f32 to vector<6x18xf32>
    %752 = arith.mulf %751, %729 : vector<6x18xf32>
    %753 = arith.addf %719, %752 : vector<6x18xf32>
    %c238 = arith.constant 238 : index
    %754 = memref.load %arg3[%c238] : memref<288xf32, #tpu.memory_space<smem>>
    %755 = vector.broadcast %754 : f32 to vector<6x18xf32>
    %756 = arith.mulf %755, %729 : vector<6x18xf32>
    %757 = arith.addf %723, %756 : vector<6x18xf32>
    %c239 = arith.constant 239 : index
    %758 = memref.load %arg3[%c239] : memref<288xf32, #tpu.memory_space<smem>>
    %759 = vector.broadcast %758 : f32 to vector<6x18xf32>
    %760 = arith.mulf %759, %729 : vector<6x18xf32>
    %761 = arith.addf %727, %760 : vector<6x18xf32>
    %762 = vector.extract_strided_slice %421 {offsets = [2, 2, 0], sizes = [1, 6, 18], strides = [1, 1, 1]} : vector<4x8x18xf32> to vector<1x6x18xf32>
    %763 = vector.shape_cast %762 : vector<1x6x18xf32> to vector<6x18xf32>
    %c240 = arith.constant 240 : index
    %764 = memref.load %arg3[%c240] : memref<288xf32, #tpu.memory_space<smem>>
    %765 = vector.broadcast %764 : f32 to vector<6x18xf32>
    %766 = arith.mulf %765, %763 : vector<6x18xf32>
    %767 = arith.addf %733, %766 : vector<6x18xf32>
    %c241 = arith.constant 241 : index
    %768 = memref.load %arg3[%c241] : memref<288xf32, #tpu.memory_space<smem>>
    %769 = vector.broadcast %768 : f32 to vector<6x18xf32>
    %770 = arith.mulf %769, %763 : vector<6x18xf32>
    %771 = arith.addf %737, %770 : vector<6x18xf32>
    %c242 = arith.constant 242 : index
    %772 = memref.load %arg3[%c242] : memref<288xf32, #tpu.memory_space<smem>>
    %773 = vector.broadcast %772 : f32 to vector<6x18xf32>
    %774 = arith.mulf %773, %763 : vector<6x18xf32>
    %775 = arith.addf %741, %774 : vector<6x18xf32>
    %c243 = arith.constant 243 : index
    %776 = memref.load %arg3[%c243] : memref<288xf32, #tpu.memory_space<smem>>
    %777 = vector.broadcast %776 : f32 to vector<6x18xf32>
    %778 = arith.mulf %777, %763 : vector<6x18xf32>
    %779 = arith.addf %745, %778 : vector<6x18xf32>
    %c244 = arith.constant 244 : index
    %780 = memref.load %arg3[%c244] : memref<288xf32, #tpu.memory_space<smem>>
    %781 = vector.broadcast %780 : f32 to vector<6x18xf32>
    %782 = arith.mulf %781, %763 : vector<6x18xf32>
    %783 = arith.addf %749, %782 : vector<6x18xf32>
    %c245 = arith.constant 245 : index
    %784 = memref.load %arg3[%c245] : memref<288xf32, #tpu.memory_space<smem>>
    %785 = vector.broadcast %784 : f32 to vector<6x18xf32>
    %786 = arith.mulf %785, %763 : vector<6x18xf32>
    %787 = arith.addf %753, %786 : vector<6x18xf32>
    %c246 = arith.constant 246 : index
    %788 = memref.load %arg3[%c246] : memref<288xf32, #tpu.memory_space<smem>>
    %789 = vector.broadcast %788 : f32 to vector<6x18xf32>
    %790 = arith.mulf %789, %763 : vector<6x18xf32>
    %791 = arith.addf %757, %790 : vector<6x18xf32>
    %c247 = arith.constant 247 : index
    %792 = memref.load %arg3[%c247] : memref<288xf32, #tpu.memory_space<smem>>
    %793 = vector.broadcast %792 : f32 to vector<6x18xf32>
    %794 = arith.mulf %793, %763 : vector<6x18xf32>
    %795 = arith.addf %761, %794 : vector<6x18xf32>
    %796 = vector.extract_strided_slice %421 {offsets = [3, 2, 0], sizes = [1, 6, 18], strides = [1, 1, 1]} : vector<4x8x18xf32> to vector<1x6x18xf32>
    %797 = vector.shape_cast %796 : vector<1x6x18xf32> to vector<6x18xf32>
    %c248 = arith.constant 248 : index
    %798 = memref.load %arg3[%c248] : memref<288xf32, #tpu.memory_space<smem>>
    %799 = vector.broadcast %798 : f32 to vector<6x18xf32>
    %800 = arith.mulf %799, %797 : vector<6x18xf32>
    %801 = arith.addf %767, %800 : vector<6x18xf32>
    %c249 = arith.constant 249 : index
    %802 = memref.load %arg3[%c249] : memref<288xf32, #tpu.memory_space<smem>>
    %803 = vector.broadcast %802 : f32 to vector<6x18xf32>
    %804 = arith.mulf %803, %797 : vector<6x18xf32>
    %805 = arith.addf %771, %804 : vector<6x18xf32>
    %c250 = arith.constant 250 : index
    %806 = memref.load %arg3[%c250] : memref<288xf32, #tpu.memory_space<smem>>
    %807 = vector.broadcast %806 : f32 to vector<6x18xf32>
    %808 = arith.mulf %807, %797 : vector<6x18xf32>
    %809 = arith.addf %775, %808 : vector<6x18xf32>
    %c251 = arith.constant 251 : index
    %810 = memref.load %arg3[%c251] : memref<288xf32, #tpu.memory_space<smem>>
    %811 = vector.broadcast %810 : f32 to vector<6x18xf32>
    %812 = arith.mulf %811, %797 : vector<6x18xf32>
    %813 = arith.addf %779, %812 : vector<6x18xf32>
    %c252 = arith.constant 252 : index
    %814 = memref.load %arg3[%c252] : memref<288xf32, #tpu.memory_space<smem>>
    %815 = vector.broadcast %814 : f32 to vector<6x18xf32>
    %816 = arith.mulf %815, %797 : vector<6x18xf32>
    %817 = arith.addf %783, %816 : vector<6x18xf32>
    %c253 = arith.constant 253 : index
    %818 = memref.load %arg3[%c253] : memref<288xf32, #tpu.memory_space<smem>>
    %819 = vector.broadcast %818 : f32 to vector<6x18xf32>
    %820 = arith.mulf %819, %797 : vector<6x18xf32>
    %821 = arith.addf %787, %820 : vector<6x18xf32>
    %c254 = arith.constant 254 : index
    %822 = memref.load %arg3[%c254] : memref<288xf32, #tpu.memory_space<smem>>
    %823 = vector.broadcast %822 : f32 to vector<6x18xf32>
    %824 = arith.mulf %823, %797 : vector<6x18xf32>
    %825 = arith.addf %791, %824 : vector<6x18xf32>
    %c255 = arith.constant 255 : index
    %826 = memref.load %arg3[%c255] : memref<288xf32, #tpu.memory_space<smem>>
    %827 = vector.broadcast %826 : f32 to vector<6x18xf32>
    %828 = arith.mulf %827, %797 : vector<6x18xf32>
    %829 = arith.addf %795, %828 : vector<6x18xf32>
    %830 = vector.extract_strided_slice %3 {offsets = [0, 0, 2], sizes = [4, 8, 18], strides = [1, 1, 1]} : vector<4x8x20xf32> to vector<4x8x18xf32>
    %831 = vector.extract_strided_slice %830 {offsets = [0, 0, 0], sizes = [1, 6, 18], strides = [1, 1, 1]} : vector<4x8x18xf32> to vector<1x6x18xf32>
    %832 = vector.shape_cast %831 : vector<1x6x18xf32> to vector<6x18xf32>
    %c64 = arith.constant 64 : index
    %833 = memref.load %arg3[%c64] : memref<288xf32, #tpu.memory_space<smem>>
    %834 = vector.broadcast %833 : f32 to vector<6x18xf32>
    %835 = arith.mulf %834, %832 : vector<6x18xf32>
    %836 = arith.addf %801, %835 : vector<6x18xf32>
    %c65 = arith.constant 65 : index
    %837 = memref.load %arg3[%c65] : memref<288xf32, #tpu.memory_space<smem>>
    %838 = vector.broadcast %837 : f32 to vector<6x18xf32>
    %839 = arith.mulf %838, %832 : vector<6x18xf32>
    %840 = arith.addf %805, %839 : vector<6x18xf32>
    %c66 = arith.constant 66 : index
    %841 = memref.load %arg3[%c66] : memref<288xf32, #tpu.memory_space<smem>>
    %842 = vector.broadcast %841 : f32 to vector<6x18xf32>
    %843 = arith.mulf %842, %832 : vector<6x18xf32>
    %844 = arith.addf %809, %843 : vector<6x18xf32>
    %c67 = arith.constant 67 : index
    %845 = memref.load %arg3[%c67] : memref<288xf32, #tpu.memory_space<smem>>
    %846 = vector.broadcast %845 : f32 to vector<6x18xf32>
    %847 = arith.mulf %846, %832 : vector<6x18xf32>
    %848 = arith.addf %813, %847 : vector<6x18xf32>
    %c68 = arith.constant 68 : index
    %849 = memref.load %arg3[%c68] : memref<288xf32, #tpu.memory_space<smem>>
    %850 = vector.broadcast %849 : f32 to vector<6x18xf32>
    %851 = arith.mulf %850, %832 : vector<6x18xf32>
    %852 = arith.addf %817, %851 : vector<6x18xf32>
    %c69 = arith.constant 69 : index
    %853 = memref.load %arg3[%c69] : memref<288xf32, #tpu.memory_space<smem>>
    %854 = vector.broadcast %853 : f32 to vector<6x18xf32>
    %855 = arith.mulf %854, %832 : vector<6x18xf32>
    %856 = arith.addf %821, %855 : vector<6x18xf32>
    %c70 = arith.constant 70 : index
    %857 = memref.load %arg3[%c70] : memref<288xf32, #tpu.memory_space<smem>>
    %858 = vector.broadcast %857 : f32 to vector<6x18xf32>
    %859 = arith.mulf %858, %832 : vector<6x18xf32>
    %860 = arith.addf %825, %859 : vector<6x18xf32>
    %c71 = arith.constant 71 : index
    %861 = memref.load %arg3[%c71] : memref<288xf32, #tpu.memory_space<smem>>
    %862 = vector.broadcast %861 : f32 to vector<6x18xf32>
    %863 = arith.mulf %862, %832 : vector<6x18xf32>
    %864 = arith.addf %829, %863 : vector<6x18xf32>
    %865 = vector.extract_strided_slice %830 {offsets = [1, 0, 0], sizes = [1, 6, 18], strides = [1, 1, 1]} : vector<4x8x18xf32> to vector<1x6x18xf32>
    %866 = vector.shape_cast %865 : vector<1x6x18xf32> to vector<6x18xf32>
    %c72 = arith.constant 72 : index
    %867 = memref.load %arg3[%c72] : memref<288xf32, #tpu.memory_space<smem>>
    %868 = vector.broadcast %867 : f32 to vector<6x18xf32>
    %869 = arith.mulf %868, %866 : vector<6x18xf32>
    %870 = arith.addf %836, %869 : vector<6x18xf32>
    %c73 = arith.constant 73 : index
    %871 = memref.load %arg3[%c73] : memref<288xf32, #tpu.memory_space<smem>>
    %872 = vector.broadcast %871 : f32 to vector<6x18xf32>
    %873 = arith.mulf %872, %866 : vector<6x18xf32>
    %874 = arith.addf %840, %873 : vector<6x18xf32>
    %c74 = arith.constant 74 : index
    %875 = memref.load %arg3[%c74] : memref<288xf32, #tpu.memory_space<smem>>
    %876 = vector.broadcast %875 : f32 to vector<6x18xf32>
    %877 = arith.mulf %876, %866 : vector<6x18xf32>
    %878 = arith.addf %844, %877 : vector<6x18xf32>
    %c75 = arith.constant 75 : index
    %879 = memref.load %arg3[%c75] : memref<288xf32, #tpu.memory_space<smem>>
    %880 = vector.broadcast %879 : f32 to vector<6x18xf32>
    %881 = arith.mulf %880, %866 : vector<6x18xf32>
    %882 = arith.addf %848, %881 : vector<6x18xf32>
    %c76 = arith.constant 76 : index
    %883 = memref.load %arg3[%c76] : memref<288xf32, #tpu.memory_space<smem>>
    %884 = vector.broadcast %883 : f32 to vector<6x18xf32>
    %885 = arith.mulf %884, %866 : vector<6x18xf32>
    %886 = arith.addf %852, %885 : vector<6x18xf32>
    %c77 = arith.constant 77 : index
    %887 = memref.load %arg3[%c77] : memref<288xf32, #tpu.memory_space<smem>>
    %888 = vector.broadcast %887 : f32 to vector<6x18xf32>
    %889 = arith.mulf %888, %866 : vector<6x18xf32>
    %890 = arith.addf %856, %889 : vector<6x18xf32>
    %c78 = arith.constant 78 : index
    %891 = memref.load %arg3[%c78] : memref<288xf32, #tpu.memory_space<smem>>
    %892 = vector.broadcast %891 : f32 to vector<6x18xf32>
    %893 = arith.mulf %892, %866 : vector<6x18xf32>
    %894 = arith.addf %860, %893 : vector<6x18xf32>
    %c79 = arith.constant 79 : index
    %895 = memref.load %arg3[%c79] : memref<288xf32, #tpu.memory_space<smem>>
    %896 = vector.broadcast %895 : f32 to vector<6x18xf32>
    %897 = arith.mulf %896, %866 : vector<6x18xf32>
    %898 = arith.addf %864, %897 : vector<6x18xf32>
    %899 = vector.extract_strided_slice %830 {offsets = [2, 0, 0], sizes = [1, 6, 18], strides = [1, 1, 1]} : vector<4x8x18xf32> to vector<1x6x18xf32>
    %900 = vector.shape_cast %899 : vector<1x6x18xf32> to vector<6x18xf32>
    %c80 = arith.constant 80 : index
    %901 = memref.load %arg3[%c80] : memref<288xf32, #tpu.memory_space<smem>>
    %902 = vector.broadcast %901 : f32 to vector<6x18xf32>
    %903 = arith.mulf %902, %900 : vector<6x18xf32>
    %904 = arith.addf %870, %903 : vector<6x18xf32>
    %c81 = arith.constant 81 : index
    %905 = memref.load %arg3[%c81] : memref<288xf32, #tpu.memory_space<smem>>
    %906 = vector.broadcast %905 : f32 to vector<6x18xf32>
    %907 = arith.mulf %906, %900 : vector<6x18xf32>
    %908 = arith.addf %874, %907 : vector<6x18xf32>
    %c82 = arith.constant 82 : index
    %909 = memref.load %arg3[%c82] : memref<288xf32, #tpu.memory_space<smem>>
    %910 = vector.broadcast %909 : f32 to vector<6x18xf32>
    %911 = arith.mulf %910, %900 : vector<6x18xf32>
    %912 = arith.addf %878, %911 : vector<6x18xf32>
    %c83 = arith.constant 83 : index
    %913 = memref.load %arg3[%c83] : memref<288xf32, #tpu.memory_space<smem>>
    %914 = vector.broadcast %913 : f32 to vector<6x18xf32>
    %915 = arith.mulf %914, %900 : vector<6x18xf32>
    %916 = arith.addf %882, %915 : vector<6x18xf32>
    %c84 = arith.constant 84 : index
    %917 = memref.load %arg3[%c84] : memref<288xf32, #tpu.memory_space<smem>>
    %918 = vector.broadcast %917 : f32 to vector<6x18xf32>
    %919 = arith.mulf %918, %900 : vector<6x18xf32>
    %920 = arith.addf %886, %919 : vector<6x18xf32>
    %c85 = arith.constant 85 : index
    %921 = memref.load %arg3[%c85] : memref<288xf32, #tpu.memory_space<smem>>
    %922 = vector.broadcast %921 : f32 to vector<6x18xf32>
    %923 = arith.mulf %922, %900 : vector<6x18xf32>
    %924 = arith.addf %890, %923 : vector<6x18xf32>
    %c86 = arith.constant 86 : index
    %925 = memref.load %arg3[%c86] : memref<288xf32, #tpu.memory_space<smem>>
    %926 = vector.broadcast %925 : f32 to vector<6x18xf32>
    %927 = arith.mulf %926, %900 : vector<6x18xf32>
    %928 = arith.addf %894, %927 : vector<6x18xf32>
    %c87 = arith.constant 87 : index
    %929 = memref.load %arg3[%c87] : memref<288xf32, #tpu.memory_space<smem>>
    %930 = vector.broadcast %929 : f32 to vector<6x18xf32>
    %931 = arith.mulf %930, %900 : vector<6x18xf32>
    %932 = arith.addf %898, %931 : vector<6x18xf32>
    %933 = vector.extract_strided_slice %830 {offsets = [3, 0, 0], sizes = [1, 6, 18], strides = [1, 1, 1]} : vector<4x8x18xf32> to vector<1x6x18xf32>
    %934 = vector.shape_cast %933 : vector<1x6x18xf32> to vector<6x18xf32>
    %c88 = arith.constant 88 : index
    %935 = memref.load %arg3[%c88] : memref<288xf32, #tpu.memory_space<smem>>
    %936 = vector.broadcast %935 : f32 to vector<6x18xf32>
    %937 = arith.mulf %936, %934 : vector<6x18xf32>
    %938 = arith.addf %904, %937 : vector<6x18xf32>
    %c89 = arith.constant 89 : index
    %939 = memref.load %arg3[%c89] : memref<288xf32, #tpu.memory_space<smem>>
    %940 = vector.broadcast %939 : f32 to vector<6x18xf32>
    %941 = arith.mulf %940, %934 : vector<6x18xf32>
    %942 = arith.addf %908, %941 : vector<6x18xf32>
    %c90 = arith.constant 90 : index
    %943 = memref.load %arg3[%c90] : memref<288xf32, #tpu.memory_space<smem>>
    %944 = vector.broadcast %943 : f32 to vector<6x18xf32>
    %945 = arith.mulf %944, %934 : vector<6x18xf32>
    %946 = arith.addf %912, %945 : vector<6x18xf32>
    %c91 = arith.constant 91 : index
    %947 = memref.load %arg3[%c91] : memref<288xf32, #tpu.memory_space<smem>>
    %948 = vector.broadcast %947 : f32 to vector<6x18xf32>
    %949 = arith.mulf %948, %934 : vector<6x18xf32>
    %950 = arith.addf %916, %949 : vector<6x18xf32>
    %c92 = arith.constant 92 : index
    %951 = memref.load %arg3[%c92] : memref<288xf32, #tpu.memory_space<smem>>
    %952 = vector.broadcast %951 : f32 to vector<6x18xf32>
    %953 = arith.mulf %952, %934 : vector<6x18xf32>
    %954 = arith.addf %920, %953 : vector<6x18xf32>
    %c93 = arith.constant 93 : index
    %955 = memref.load %arg3[%c93] : memref<288xf32, #tpu.memory_space<smem>>
    %956 = vector.broadcast %955 : f32 to vector<6x18xf32>
    %957 = arith.mulf %956, %934 : vector<6x18xf32>
    %958 = arith.addf %924, %957 : vector<6x18xf32>
    %c94 = arith.constant 94 : index
    %959 = memref.load %arg3[%c94] : memref<288xf32, #tpu.memory_space<smem>>
    %960 = vector.broadcast %959 : f32 to vector<6x18xf32>
    %961 = arith.mulf %960, %934 : vector<6x18xf32>
    %962 = arith.addf %928, %961 : vector<6x18xf32>
    %c95 = arith.constant 95 : index
    %963 = memref.load %arg3[%c95] : memref<288xf32, #tpu.memory_space<smem>>
    %964 = vector.broadcast %963 : f32 to vector<6x18xf32>
    %965 = arith.mulf %964, %934 : vector<6x18xf32>
    %966 = arith.addf %932, %965 : vector<6x18xf32>
    %967 = vector.extract_strided_slice %830 {offsets = [0, 1, 0], sizes = [1, 6, 18], strides = [1, 1, 1]} : vector<4x8x18xf32> to vector<1x6x18xf32>
    %968 = vector.shape_cast %967 : vector<1x6x18xf32> to vector<6x18xf32>
    %c160 = arith.constant 160 : index
    %969 = memref.load %arg3[%c160] : memref<288xf32, #tpu.memory_space<smem>>
    %970 = vector.broadcast %969 : f32 to vector<6x18xf32>
    %971 = arith.mulf %970, %968 : vector<6x18xf32>
    %972 = arith.addf %938, %971 : vector<6x18xf32>
    %c161 = arith.constant 161 : index
    %973 = memref.load %arg3[%c161] : memref<288xf32, #tpu.memory_space<smem>>
    %974 = vector.broadcast %973 : f32 to vector<6x18xf32>
    %975 = arith.mulf %974, %968 : vector<6x18xf32>
    %976 = arith.addf %942, %975 : vector<6x18xf32>
    %c162 = arith.constant 162 : index
    %977 = memref.load %arg3[%c162] : memref<288xf32, #tpu.memory_space<smem>>
    %978 = vector.broadcast %977 : f32 to vector<6x18xf32>
    %979 = arith.mulf %978, %968 : vector<6x18xf32>
    %980 = arith.addf %946, %979 : vector<6x18xf32>
    %c163 = arith.constant 163 : index
    %981 = memref.load %arg3[%c163] : memref<288xf32, #tpu.memory_space<smem>>
    %982 = vector.broadcast %981 : f32 to vector<6x18xf32>
    %983 = arith.mulf %982, %968 : vector<6x18xf32>
    %984 = arith.addf %950, %983 : vector<6x18xf32>
    %c164 = arith.constant 164 : index
    %985 = memref.load %arg3[%c164] : memref<288xf32, #tpu.memory_space<smem>>
    %986 = vector.broadcast %985 : f32 to vector<6x18xf32>
    %987 = arith.mulf %986, %968 : vector<6x18xf32>
    %988 = arith.addf %954, %987 : vector<6x18xf32>
    %c165 = arith.constant 165 : index
    %989 = memref.load %arg3[%c165] : memref<288xf32, #tpu.memory_space<smem>>
    %990 = vector.broadcast %989 : f32 to vector<6x18xf32>
    %991 = arith.mulf %990, %968 : vector<6x18xf32>
    %992 = arith.addf %958, %991 : vector<6x18xf32>
    %c166 = arith.constant 166 : index
    %993 = memref.load %arg3[%c166] : memref<288xf32, #tpu.memory_space<smem>>
    %994 = vector.broadcast %993 : f32 to vector<6x18xf32>
    %995 = arith.mulf %994, %968 : vector<6x18xf32>
    %996 = arith.addf %962, %995 : vector<6x18xf32>
    %c167 = arith.constant 167 : index
    %997 = memref.load %arg3[%c167] : memref<288xf32, #tpu.memory_space<smem>>
    %998 = vector.broadcast %997 : f32 to vector<6x18xf32>
    %999 = arith.mulf %998, %968 : vector<6x18xf32>
    %1000 = arith.addf %966, %999 : vector<6x18xf32>
    %1001 = vector.extract_strided_slice %830 {offsets = [1, 1, 0], sizes = [1, 6, 18], strides = [1, 1, 1]} : vector<4x8x18xf32> to vector<1x6x18xf32>
    %1002 = vector.shape_cast %1001 : vector<1x6x18xf32> to vector<6x18xf32>
    %c168 = arith.constant 168 : index
    %1003 = memref.load %arg3[%c168] : memref<288xf32, #tpu.memory_space<smem>>
    %1004 = vector.broadcast %1003 : f32 to vector<6x18xf32>
    %1005 = arith.mulf %1004, %1002 : vector<6x18xf32>
    %1006 = arith.addf %972, %1005 : vector<6x18xf32>
    %c169 = arith.constant 169 : index
    %1007 = memref.load %arg3[%c169] : memref<288xf32, #tpu.memory_space<smem>>
    %1008 = vector.broadcast %1007 : f32 to vector<6x18xf32>
    %1009 = arith.mulf %1008, %1002 : vector<6x18xf32>
    %1010 = arith.addf %976, %1009 : vector<6x18xf32>
    %c170 = arith.constant 170 : index
    %1011 = memref.load %arg3[%c170] : memref<288xf32, #tpu.memory_space<smem>>
    %1012 = vector.broadcast %1011 : f32 to vector<6x18xf32>
    %1013 = arith.mulf %1012, %1002 : vector<6x18xf32>
    %1014 = arith.addf %980, %1013 : vector<6x18xf32>
    %c171 = arith.constant 171 : index
    %1015 = memref.load %arg3[%c171] : memref<288xf32, #tpu.memory_space<smem>>
    %1016 = vector.broadcast %1015 : f32 to vector<6x18xf32>
    %1017 = arith.mulf %1016, %1002 : vector<6x18xf32>
    %1018 = arith.addf %984, %1017 : vector<6x18xf32>
    %c172 = arith.constant 172 : index
    %1019 = memref.load %arg3[%c172] : memref<288xf32, #tpu.memory_space<smem>>
    %1020 = vector.broadcast %1019 : f32 to vector<6x18xf32>
    %1021 = arith.mulf %1020, %1002 : vector<6x18xf32>
    %1022 = arith.addf %988, %1021 : vector<6x18xf32>
    %c173 = arith.constant 173 : index
    %1023 = memref.load %arg3[%c173] : memref<288xf32, #tpu.memory_space<smem>>
    %1024 = vector.broadcast %1023 : f32 to vector<6x18xf32>
    %1025 = arith.mulf %1024, %1002 : vector<6x18xf32>
    %1026 = arith.addf %992, %1025 : vector<6x18xf32>
    %c174 = arith.constant 174 : index
    %1027 = memref.load %arg3[%c174] : memref<288xf32, #tpu.memory_space<smem>>
    %1028 = vector.broadcast %1027 : f32 to vector<6x18xf32>
    %1029 = arith.mulf %1028, %1002 : vector<6x18xf32>
    %1030 = arith.addf %996, %1029 : vector<6x18xf32>
    %c175 = arith.constant 175 : index
    %1031 = memref.load %arg3[%c175] : memref<288xf32, #tpu.memory_space<smem>>
    %1032 = vector.broadcast %1031 : f32 to vector<6x18xf32>
    %1033 = arith.mulf %1032, %1002 : vector<6x18xf32>
    %1034 = arith.addf %1000, %1033 : vector<6x18xf32>
    %1035 = vector.extract_strided_slice %830 {offsets = [2, 1, 0], sizes = [1, 6, 18], strides = [1, 1, 1]} : vector<4x8x18xf32> to vector<1x6x18xf32>
    %1036 = vector.shape_cast %1035 : vector<1x6x18xf32> to vector<6x18xf32>
    %c176 = arith.constant 176 : index
    %1037 = memref.load %arg3[%c176] : memref<288xf32, #tpu.memory_space<smem>>
    %1038 = vector.broadcast %1037 : f32 to vector<6x18xf32>
    %1039 = arith.mulf %1038, %1036 : vector<6x18xf32>
    %1040 = arith.addf %1006, %1039 : vector<6x18xf32>
    %c177 = arith.constant 177 : index
    %1041 = memref.load %arg3[%c177] : memref<288xf32, #tpu.memory_space<smem>>
    %1042 = vector.broadcast %1041 : f32 to vector<6x18xf32>
    %1043 = arith.mulf %1042, %1036 : vector<6x18xf32>
    %1044 = arith.addf %1010, %1043 : vector<6x18xf32>
    %c178 = arith.constant 178 : index
    %1045 = memref.load %arg3[%c178] : memref<288xf32, #tpu.memory_space<smem>>
    %1046 = vector.broadcast %1045 : f32 to vector<6x18xf32>
    %1047 = arith.mulf %1046, %1036 : vector<6x18xf32>
    %1048 = arith.addf %1014, %1047 : vector<6x18xf32>
    %c179 = arith.constant 179 : index
    %1049 = memref.load %arg3[%c179] : memref<288xf32, #tpu.memory_space<smem>>
    %1050 = vector.broadcast %1049 : f32 to vector<6x18xf32>
    %1051 = arith.mulf %1050, %1036 : vector<6x18xf32>
    %1052 = arith.addf %1018, %1051 : vector<6x18xf32>
    %c180 = arith.constant 180 : index
    %1053 = memref.load %arg3[%c180] : memref<288xf32, #tpu.memory_space<smem>>
    %1054 = vector.broadcast %1053 : f32 to vector<6x18xf32>
    %1055 = arith.mulf %1054, %1036 : vector<6x18xf32>
    %1056 = arith.addf %1022, %1055 : vector<6x18xf32>
    %c181 = arith.constant 181 : index
    %1057 = memref.load %arg3[%c181] : memref<288xf32, #tpu.memory_space<smem>>
    %1058 = vector.broadcast %1057 : f32 to vector<6x18xf32>
    %1059 = arith.mulf %1058, %1036 : vector<6x18xf32>
    %1060 = arith.addf %1026, %1059 : vector<6x18xf32>
    %c182 = arith.constant 182 : index
    %1061 = memref.load %arg3[%c182] : memref<288xf32, #tpu.memory_space<smem>>
    %1062 = vector.broadcast %1061 : f32 to vector<6x18xf32>
    %1063 = arith.mulf %1062, %1036 : vector<6x18xf32>
    %1064 = arith.addf %1030, %1063 : vector<6x18xf32>
    %c183 = arith.constant 183 : index
    %1065 = memref.load %arg3[%c183] : memref<288xf32, #tpu.memory_space<smem>>
    %1066 = vector.broadcast %1065 : f32 to vector<6x18xf32>
    %1067 = arith.mulf %1066, %1036 : vector<6x18xf32>
    %1068 = arith.addf %1034, %1067 : vector<6x18xf32>
    %1069 = vector.extract_strided_slice %830 {offsets = [3, 1, 0], sizes = [1, 6, 18], strides = [1, 1, 1]} : vector<4x8x18xf32> to vector<1x6x18xf32>
    %1070 = vector.shape_cast %1069 : vector<1x6x18xf32> to vector<6x18xf32>
    %c184 = arith.constant 184 : index
    %1071 = memref.load %arg3[%c184] : memref<288xf32, #tpu.memory_space<smem>>
    %1072 = vector.broadcast %1071 : f32 to vector<6x18xf32>
    %1073 = arith.mulf %1072, %1070 : vector<6x18xf32>
    %1074 = arith.addf %1040, %1073 : vector<6x18xf32>
    %c185 = arith.constant 185 : index
    %1075 = memref.load %arg3[%c185] : memref<288xf32, #tpu.memory_space<smem>>
    %1076 = vector.broadcast %1075 : f32 to vector<6x18xf32>
    %1077 = arith.mulf %1076, %1070 : vector<6x18xf32>
    %1078 = arith.addf %1044, %1077 : vector<6x18xf32>
    %c186 = arith.constant 186 : index
    %1079 = memref.load %arg3[%c186] : memref<288xf32, #tpu.memory_space<smem>>
    %1080 = vector.broadcast %1079 : f32 to vector<6x18xf32>
    %1081 = arith.mulf %1080, %1070 : vector<6x18xf32>
    %1082 = arith.addf %1048, %1081 : vector<6x18xf32>
    %c187 = arith.constant 187 : index
    %1083 = memref.load %arg3[%c187] : memref<288xf32, #tpu.memory_space<smem>>
    %1084 = vector.broadcast %1083 : f32 to vector<6x18xf32>
    %1085 = arith.mulf %1084, %1070 : vector<6x18xf32>
    %1086 = arith.addf %1052, %1085 : vector<6x18xf32>
    %c188 = arith.constant 188 : index
    %1087 = memref.load %arg3[%c188] : memref<288xf32, #tpu.memory_space<smem>>
    %1088 = vector.broadcast %1087 : f32 to vector<6x18xf32>
    %1089 = arith.mulf %1088, %1070 : vector<6x18xf32>
    %1090 = arith.addf %1056, %1089 : vector<6x18xf32>
    %c189 = arith.constant 189 : index
    %1091 = memref.load %arg3[%c189] : memref<288xf32, #tpu.memory_space<smem>>
    %1092 = vector.broadcast %1091 : f32 to vector<6x18xf32>
    %1093 = arith.mulf %1092, %1070 : vector<6x18xf32>
    %1094 = arith.addf %1060, %1093 : vector<6x18xf32>
    %c190 = arith.constant 190 : index
    %1095 = memref.load %arg3[%c190] : memref<288xf32, #tpu.memory_space<smem>>
    %1096 = vector.broadcast %1095 : f32 to vector<6x18xf32>
    %1097 = arith.mulf %1096, %1070 : vector<6x18xf32>
    %1098 = arith.addf %1064, %1097 : vector<6x18xf32>
    %c191 = arith.constant 191 : index
    %1099 = memref.load %arg3[%c191] : memref<288xf32, #tpu.memory_space<smem>>
    %1100 = vector.broadcast %1099 : f32 to vector<6x18xf32>
    %1101 = arith.mulf %1100, %1070 : vector<6x18xf32>
    %1102 = arith.addf %1068, %1101 : vector<6x18xf32>
    %1103 = vector.extract_strided_slice %830 {offsets = [0, 2, 0], sizes = [1, 6, 18], strides = [1, 1, 1]} : vector<4x8x18xf32> to vector<1x6x18xf32>
    %1104 = vector.shape_cast %1103 : vector<1x6x18xf32> to vector<6x18xf32>
    %c256 = arith.constant 256 : index
    %1105 = memref.load %arg3[%c256] : memref<288xf32, #tpu.memory_space<smem>>
    %1106 = vector.broadcast %1105 : f32 to vector<6x18xf32>
    %1107 = arith.mulf %1106, %1104 : vector<6x18xf32>
    %1108 = arith.addf %1074, %1107 : vector<6x18xf32>
    %c257 = arith.constant 257 : index
    %1109 = memref.load %arg3[%c257] : memref<288xf32, #tpu.memory_space<smem>>
    %1110 = vector.broadcast %1109 : f32 to vector<6x18xf32>
    %1111 = arith.mulf %1110, %1104 : vector<6x18xf32>
    %1112 = arith.addf %1078, %1111 : vector<6x18xf32>
    %c258 = arith.constant 258 : index
    %1113 = memref.load %arg3[%c258] : memref<288xf32, #tpu.memory_space<smem>>
    %1114 = vector.broadcast %1113 : f32 to vector<6x18xf32>
    %1115 = arith.mulf %1114, %1104 : vector<6x18xf32>
    %1116 = arith.addf %1082, %1115 : vector<6x18xf32>
    %c259 = arith.constant 259 : index
    %1117 = memref.load %arg3[%c259] : memref<288xf32, #tpu.memory_space<smem>>
    %1118 = vector.broadcast %1117 : f32 to vector<6x18xf32>
    %1119 = arith.mulf %1118, %1104 : vector<6x18xf32>
    %1120 = arith.addf %1086, %1119 : vector<6x18xf32>
    %c260 = arith.constant 260 : index
    %1121 = memref.load %arg3[%c260] : memref<288xf32, #tpu.memory_space<smem>>
    %1122 = vector.broadcast %1121 : f32 to vector<6x18xf32>
    %1123 = arith.mulf %1122, %1104 : vector<6x18xf32>
    %1124 = arith.addf %1090, %1123 : vector<6x18xf32>
    %c261 = arith.constant 261 : index
    %1125 = memref.load %arg3[%c261] : memref<288xf32, #tpu.memory_space<smem>>
    %1126 = vector.broadcast %1125 : f32 to vector<6x18xf32>
    %1127 = arith.mulf %1126, %1104 : vector<6x18xf32>
    %1128 = arith.addf %1094, %1127 : vector<6x18xf32>
    %c262 = arith.constant 262 : index
    %1129 = memref.load %arg3[%c262] : memref<288xf32, #tpu.memory_space<smem>>
    %1130 = vector.broadcast %1129 : f32 to vector<6x18xf32>
    %1131 = arith.mulf %1130, %1104 : vector<6x18xf32>
    %1132 = arith.addf %1098, %1131 : vector<6x18xf32>
    %c263 = arith.constant 263 : index
    %1133 = memref.load %arg3[%c263] : memref<288xf32, #tpu.memory_space<smem>>
    %1134 = vector.broadcast %1133 : f32 to vector<6x18xf32>
    %1135 = arith.mulf %1134, %1104 : vector<6x18xf32>
    %1136 = arith.addf %1102, %1135 : vector<6x18xf32>
    %1137 = vector.extract_strided_slice %830 {offsets = [1, 2, 0], sizes = [1, 6, 18], strides = [1, 1, 1]} : vector<4x8x18xf32> to vector<1x6x18xf32>
    %1138 = vector.shape_cast %1137 : vector<1x6x18xf32> to vector<6x18xf32>
    %c264 = arith.constant 264 : index
    %1139 = memref.load %arg3[%c264] : memref<288xf32, #tpu.memory_space<smem>>
    %1140 = vector.broadcast %1139 : f32 to vector<6x18xf32>
    %1141 = arith.mulf %1140, %1138 : vector<6x18xf32>
    %1142 = arith.addf %1108, %1141 : vector<6x18xf32>
    %c265 = arith.constant 265 : index
    %1143 = memref.load %arg3[%c265] : memref<288xf32, #tpu.memory_space<smem>>
    %1144 = vector.broadcast %1143 : f32 to vector<6x18xf32>
    %1145 = arith.mulf %1144, %1138 : vector<6x18xf32>
    %1146 = arith.addf %1112, %1145 : vector<6x18xf32>
    %c266 = arith.constant 266 : index
    %1147 = memref.load %arg3[%c266] : memref<288xf32, #tpu.memory_space<smem>>
    %1148 = vector.broadcast %1147 : f32 to vector<6x18xf32>
    %1149 = arith.mulf %1148, %1138 : vector<6x18xf32>
    %1150 = arith.addf %1116, %1149 : vector<6x18xf32>
    %c267 = arith.constant 267 : index
    %1151 = memref.load %arg3[%c267] : memref<288xf32, #tpu.memory_space<smem>>
    %1152 = vector.broadcast %1151 : f32 to vector<6x18xf32>
    %1153 = arith.mulf %1152, %1138 : vector<6x18xf32>
    %1154 = arith.addf %1120, %1153 : vector<6x18xf32>
    %c268 = arith.constant 268 : index
    %1155 = memref.load %arg3[%c268] : memref<288xf32, #tpu.memory_space<smem>>
    %1156 = vector.broadcast %1155 : f32 to vector<6x18xf32>
    %1157 = arith.mulf %1156, %1138 : vector<6x18xf32>
    %1158 = arith.addf %1124, %1157 : vector<6x18xf32>
    %c269 = arith.constant 269 : index
    %1159 = memref.load %arg3[%c269] : memref<288xf32, #tpu.memory_space<smem>>
    %1160 = vector.broadcast %1159 : f32 to vector<6x18xf32>
    %1161 = arith.mulf %1160, %1138 : vector<6x18xf32>
    %1162 = arith.addf %1128, %1161 : vector<6x18xf32>
    %c270 = arith.constant 270 : index
    %1163 = memref.load %arg3[%c270] : memref<288xf32, #tpu.memory_space<smem>>
    %1164 = vector.broadcast %1163 : f32 to vector<6x18xf32>
    %1165 = arith.mulf %1164, %1138 : vector<6x18xf32>
    %1166 = arith.addf %1132, %1165 : vector<6x18xf32>
    %c271 = arith.constant 271 : index
    %1167 = memref.load %arg3[%c271] : memref<288xf32, #tpu.memory_space<smem>>
    %1168 = vector.broadcast %1167 : f32 to vector<6x18xf32>
    %1169 = arith.mulf %1168, %1138 : vector<6x18xf32>
    %1170 = arith.addf %1136, %1169 : vector<6x18xf32>
    %1171 = vector.extract_strided_slice %830 {offsets = [2, 2, 0], sizes = [1, 6, 18], strides = [1, 1, 1]} : vector<4x8x18xf32> to vector<1x6x18xf32>
    %1172 = vector.shape_cast %1171 : vector<1x6x18xf32> to vector<6x18xf32>
    %c272 = arith.constant 272 : index
    %1173 = memref.load %arg3[%c272] : memref<288xf32, #tpu.memory_space<smem>>
    %1174 = vector.broadcast %1173 : f32 to vector<6x18xf32>
    %1175 = arith.mulf %1174, %1172 : vector<6x18xf32>
    %1176 = arith.addf %1142, %1175 : vector<6x18xf32>
    %c273 = arith.constant 273 : index
    %1177 = memref.load %arg3[%c273] : memref<288xf32, #tpu.memory_space<smem>>
    %1178 = vector.broadcast %1177 : f32 to vector<6x18xf32>
    %1179 = arith.mulf %1178, %1172 : vector<6x18xf32>
    %1180 = arith.addf %1146, %1179 : vector<6x18xf32>
    %c274 = arith.constant 274 : index
    %1181 = memref.load %arg3[%c274] : memref<288xf32, #tpu.memory_space<smem>>
    %1182 = vector.broadcast %1181 : f32 to vector<6x18xf32>
    %1183 = arith.mulf %1182, %1172 : vector<6x18xf32>
    %1184 = arith.addf %1150, %1183 : vector<6x18xf32>
    %c275 = arith.constant 275 : index
    %1185 = memref.load %arg3[%c275] : memref<288xf32, #tpu.memory_space<smem>>
    %1186 = vector.broadcast %1185 : f32 to vector<6x18xf32>
    %1187 = arith.mulf %1186, %1172 : vector<6x18xf32>
    %1188 = arith.addf %1154, %1187 : vector<6x18xf32>
    %c276 = arith.constant 276 : index
    %1189 = memref.load %arg3[%c276] : memref<288xf32, #tpu.memory_space<smem>>
    %1190 = vector.broadcast %1189 : f32 to vector<6x18xf32>
    %1191 = arith.mulf %1190, %1172 : vector<6x18xf32>
    %1192 = arith.addf %1158, %1191 : vector<6x18xf32>
    %c277 = arith.constant 277 : index
    %1193 = memref.load %arg3[%c277] : memref<288xf32, #tpu.memory_space<smem>>
    %1194 = vector.broadcast %1193 : f32 to vector<6x18xf32>
    %1195 = arith.mulf %1194, %1172 : vector<6x18xf32>
    %1196 = arith.addf %1162, %1195 : vector<6x18xf32>
    %c278 = arith.constant 278 : index
    %1197 = memref.load %arg3[%c278] : memref<288xf32, #tpu.memory_space<smem>>
    %1198 = vector.broadcast %1197 : f32 to vector<6x18xf32>
    %1199 = arith.mulf %1198, %1172 : vector<6x18xf32>
    %1200 = arith.addf %1166, %1199 : vector<6x18xf32>
    %c279 = arith.constant 279 : index
    %1201 = memref.load %arg3[%c279] : memref<288xf32, #tpu.memory_space<smem>>
    %1202 = vector.broadcast %1201 : f32 to vector<6x18xf32>
    %1203 = arith.mulf %1202, %1172 : vector<6x18xf32>
    %1204 = arith.addf %1170, %1203 : vector<6x18xf32>
    %1205 = vector.extract_strided_slice %830 {offsets = [3, 2, 0], sizes = [1, 6, 18], strides = [1, 1, 1]} : vector<4x8x18xf32> to vector<1x6x18xf32>
    %1206 = vector.shape_cast %1205 : vector<1x6x18xf32> to vector<6x18xf32>
    %c280 = arith.constant 280 : index
    %1207 = memref.load %arg3[%c280] : memref<288xf32, #tpu.memory_space<smem>>
    %1208 = vector.broadcast %1207 : f32 to vector<6x18xf32>
    %1209 = arith.mulf %1208, %1206 : vector<6x18xf32>
    %1210 = arith.addf %1176, %1209 : vector<6x18xf32>
    %c281 = arith.constant 281 : index
    %1211 = memref.load %arg3[%c281] : memref<288xf32, #tpu.memory_space<smem>>
    %1212 = vector.broadcast %1211 : f32 to vector<6x18xf32>
    %1213 = arith.mulf %1212, %1206 : vector<6x18xf32>
    %1214 = arith.addf %1180, %1213 : vector<6x18xf32>
    %c282 = arith.constant 282 : index
    %1215 = memref.load %arg3[%c282] : memref<288xf32, #tpu.memory_space<smem>>
    %1216 = vector.broadcast %1215 : f32 to vector<6x18xf32>
    %1217 = arith.mulf %1216, %1206 : vector<6x18xf32>
    %1218 = arith.addf %1184, %1217 : vector<6x18xf32>
    %c283 = arith.constant 283 : index
    %1219 = memref.load %arg3[%c283] : memref<288xf32, #tpu.memory_space<smem>>
    %1220 = vector.broadcast %1219 : f32 to vector<6x18xf32>
    %1221 = arith.mulf %1220, %1206 : vector<6x18xf32>
    %1222 = arith.addf %1188, %1221 : vector<6x18xf32>
    %c284 = arith.constant 284 : index
    %1223 = memref.load %arg3[%c284] : memref<288xf32, #tpu.memory_space<smem>>
    %1224 = vector.broadcast %1223 : f32 to vector<6x18xf32>
    %1225 = arith.mulf %1224, %1206 : vector<6x18xf32>
    %1226 = arith.addf %1192, %1225 : vector<6x18xf32>
    %c285 = arith.constant 285 : index
    %1227 = memref.load %arg3[%c285] : memref<288xf32, #tpu.memory_space<smem>>
    %1228 = vector.broadcast %1227 : f32 to vector<6x18xf32>
    %1229 = arith.mulf %1228, %1206 : vector<6x18xf32>
    %1230 = arith.addf %1196, %1229 : vector<6x18xf32>
    %c286 = arith.constant 286 : index
    %1231 = memref.load %arg3[%c286] : memref<288xf32, #tpu.memory_space<smem>>
    %1232 = vector.broadcast %1231 : f32 to vector<6x18xf32>
    %1233 = arith.mulf %1232, %1206 : vector<6x18xf32>
    %1234 = arith.addf %1200, %1233 : vector<6x18xf32>
    %c287 = arith.constant 287 : index
    %1235 = memref.load %arg3[%c287] : memref<288xf32, #tpu.memory_space<smem>>
    %1236 = vector.broadcast %1235 : f32 to vector<6x18xf32>
    %1237 = arith.mulf %1236, %1206 : vector<6x18xf32>
    %1238 = arith.addf %1204, %1237 : vector<6x18xf32>
    %1239 = vector.shape_cast %1210 : vector<6x18xf32> to vector<1x6x18xf32>
    %1240 = vector.shape_cast %1214 : vector<6x18xf32> to vector<1x6x18xf32>
    %1241 = vector.shape_cast %1218 : vector<6x18xf32> to vector<1x6x18xf32>
    %1242 = vector.shape_cast %1222 : vector<6x18xf32> to vector<1x6x18xf32>
    %1243 = vector.shape_cast %1226 : vector<6x18xf32> to vector<1x6x18xf32>
    %1244 = vector.shape_cast %1230 : vector<6x18xf32> to vector<1x6x18xf32>
    %1245 = vector.shape_cast %1234 : vector<6x18xf32> to vector<1x6x18xf32>
    %1246 = vector.shape_cast %1238 : vector<6x18xf32> to vector<1x6x18xf32>
    %1247 = tpu.concatenate %1239, %1240, %1241, %1242, %1243, %1244, %1245, %1246 in 0 : vector<1x6x18xf32>, vector<1x6x18xf32>, vector<1x6x18xf32>, vector<1x6x18xf32>, vector<1x6x18xf32>, vector<1x6x18xf32>, vector<1x6x18xf32>, vector<1x6x18xf32> -> vector<8x6x18xf32>
    %c6_i32_10 = arith.constant 6 : i32
    %1248 = arith.muli %arg1, %c6_i32_10 : i32
    %c18_i32 = arith.constant 18 : i32
    %1249 = arith.subi %c18_i32, %1248 : i32
    %c6_i32_11 = arith.constant 6 : i32
    %1250 = arith.minsi %c6_i32_11, %1249 : i32
    %c18_i32_12 = arith.constant 18 : i32
    %1251 = arith.muli %1250, %c18_i32_12 : i32
    %1252 = arith.sitofp %1251 : i32 to f32
    %cst_13 = arith.constant dense<0.000000e+00> : vector<8x6xf32>
    %1253 = vector.multi_reduction <add>, %1247, %cst_13 [2] : vector<8x6x18xf32> to vector<8x6xf32>
    %1254 = vector.shape_cast %1253 : vector<8x6xf32> to vector<8x6x1xf32>
    %cst_14 = arith.constant dense<0.000000e+00> : vector<8x1xf32>
    %1255 = vector.multi_reduction <add>, %1254, %cst_14 [1] : vector<8x6x1xf32> to vector<8x1xf32>
    %1256 = vector.shape_cast %1255 : vector<8x1xf32> to vector<8x1x1xf32>
    %1257 = vector.broadcast %1252 : f32 to vector<8x1x1xf32>
    %1258 = arith.divf %1256, %1257 : vector<8x1x1xf32>
    %1259 = tpu.iota {dimensions = array<i32: 1>} : vector<1x6x18xi32>
    %1260 = vector.broadcast %1258 : vector<8x1x1xf32> to vector<8x6x18xf32>
    %1261 = arith.subf %1247, %1260 : vector<8x6x18xf32>
    %1262 = vector.broadcast %1250 : i32 to vector<1x6x18xi32>
    %1263 = arith.cmpi slt, %1259, %1262 : vector<1x6x18xi32>
    %1264 = arith.mulf %1261, %1261 : vector<8x6x18xf32>
    %cst_15 = arith.constant 0.000000e+00 : f32
    %1265 = vector.shape_cast %1263 : vector<1x6x18xi1> to vector<1x6x18xi1>
    %1266 = vector.broadcast %1265 : vector<1x6x18xi1> to vector<8x6x18xi1>
    %1267 = vector.broadcast %cst_15 : f32 to vector<8x6x18xf32>
    %1268 = arith.select %1266, %1264, %1267 : vector<8x6x18xi1>, vector<8x6x18xf32>
    %cst_16 = arith.constant dense<0.000000e+00> : vector<8x6xf32>
    %1269 = vector.multi_reduction <add>, %1268, %cst_16 [2] : vector<8x6x18xf32> to vector<8x6xf32>
    %1270 = vector.shape_cast %1269 : vector<8x6xf32> to vector<8x6x1xf32>
    %cst_17 = arith.constant dense<0.000000e+00> : vector<8x1xf32>
    %1271 = vector.multi_reduction <add>, %1270, %cst_17 [1] : vector<8x6x1xf32> to vector<8x1xf32>
    %1272 = vector.shape_cast %1271 : vector<8x1xf32> to vector<8x1x1xf32>
    %c0_18 = arith.constant 0 : index
    %c0_19 = arith.constant 0 : index
    %c0_20 = arith.constant 0 : index
    %c0_21 = arith.constant 0 : index
    %c0_22 = arith.constant 0 : index
    %1273 = vector.load %arg4[%c0_18, %c0_19, %c0_20, %c0_21, %c0_22] : memref<1x1x8x1x1xf32, #tpu.memory_space<vmem>>, vector<1x1x8x1x1xf32>
    %1274 = vector.shape_cast %1273 : vector<1x1x8x1x1xf32> to vector<8x1x1xf32>
    %1275 = vector.shape_cast %1258 : vector<8x1x1xf32> to vector<1x1x8x1x1xf32>
    tpu.vector_store %arg4[%c0_18, %c0_19, %c0_20, %c0_21, %c0_22], %1275 {strides = array<i32>} : memref<1x1x8x1x1xf32, #tpu.memory_space<vmem>>, vector<1x1x8x1x1xf32>,
    %c0_23 = arith.constant 0 : index
    %c0_24 = arith.constant 0 : index
    %c0_25 = arith.constant 0 : index
    %c0_26 = arith.constant 0 : index
    %c0_27 = arith.constant 0 : index
    %1276 = vector.load %arg5[%c0_23, %c0_24, %c0_25, %c0_26, %c0_27] : memref<1x1x8x1x1xf32, #tpu.memory_space<vmem>>, vector<1x1x8x1x1xf32>
    %1277 = vector.shape_cast %1276 : vector<1x1x8x1x1xf32> to vector<8x1x1xf32>
    %1278 = vector.shape_cast %1272 : vector<8x1x1xf32> to vector<1x1x8x1x1xf32>
    tpu.vector_store %arg5[%c0_23, %c0_24, %c0_25, %c0_26, %c0_27], %1278 {strides = array<i32>} : memref<1x1x8x1x1xf32, #tpu.memory_space<vmem>>, vector<1x1x8x1x1xf32>,
    return
  }
  func.func @transform_0(%arg0: i32, %arg1: i32) -> (i32, i32, i32, i32) {
    %c0_i32 = arith.constant 0 : i32
    %c0_i32_0 = arith.constant 0 : i32
    %c0_i32_1 = arith.constant 0 : i32
    %c0_i32_2 = arith.constant 0 : i32
    return %arg0, %c0_i32, %c0_i32_0, %c0_i32_1 : i32, i32, i32, i32
  }
  func.func @transform_1(%arg0: i32, %arg1: i32) -> i32 {
    %c0_i32 = arith.constant 0 : i32
    %c0_i32_0 = arith.constant 0 : i32
    return %c0_i32 : i32
  }
  func.func @transform_2(%arg0: i32, %arg1: i32) -> (i32, i32, i32, i32, i32) {
    %c0_i32 = arith.constant 0 : i32
    %c0_i32_0 = arith.constant 0 : i32
    %c0_i32_1 = arith.constant 0 : i32
    %c0_i32_2 = arith.constant 0 : i32
    return %arg0, %arg1, %c0_i32, %c0_i32_0, %c0_i32_1 : i32, i32, i32, i32, i32
  }
  func.func @transform_3(%arg0: i32, %arg1: i32) -> (i32, i32, i32, i32, i32) {
    %c0_i32 = arith.constant 0 : i32
    %c0_i32_0 = arith.constant 0 : i32
    %c0_i32_1 = arith.constant 0 : i32
    %c0_i32_2 = arith.constant 0 : i32
    return %arg0, %arg1, %c0_i32, %c0_i32_0, %c0_i32_1 : i32, i32, i32, i32, i32
  }
}

module attributes {stable_mosaic.version = 11 : i64} {
  func.func @_apply_kernel(%arg0: i32, %arg1: i32, %arg2: memref<1x4x20x20xf32, #tpu.memory_space<vmem>>, %arg3: memref<288xf32, #tpu.memory_space<smem>>, %arg4: memref<8xf32, #tpu.memory_space<smem>>, %arg5: memref<8xf32, #tpu.memory_space<smem>>, %arg6: memref<1x8x1x6x18xf32, #tpu.memory_space<vmem>>) attributes {dimension_semantics = [#tpu.dimension_semantics<parallel>, #tpu.dimension_semantics<parallel>], iteration_bounds = array<i64: 2, 3>, scalar_prefetch = 0 : i64, scratch_operands = 0 : i64, tpu.core_type = #tpu.core_type<tc>, window_params = [{transform_indices = @transform_0, window_bounds = array<i64: 1, 4, 20, 20>}, {transform_indices = @transform_1, window_bounds = array<i64: 288>}, {transform_indices = @transform_2, window_bounds = array<i64: 8>}, {transform_indices = @transform_3, window_bounds = array<i64: 8>}, {transform_indices = @transform_4, window_bounds = array<i64: 1, 8, 1, 6, 18>}]} {
    %c6_i32 = arith.constant 6 : i32
    %0 = arith.muli %arg1, %c6_i32 : i32
    %c0 = arith.constant 0 : index
    %c0_0 = arith.constant 0 : index
    %1 = arith.index_cast %0 : i32 to index
    %c0_1 = arith.constant 0 : index
    %2 = vector.load %arg2[%c0, %c0_0, %1, %c0_1] : memref<1x4x20x20xf32, #tpu.memory_space<vmem>>, vector<1x4x8x20xf32>
    %3 = vector.shape_cast %2 : vector<1x4x8x20xf32> to vector<4x8x20xf32>
    %cst = arith.constant 0.000000e+00 : f32
    %4 = vector.broadcast %cst : f32 to vector<6x18xf32>
    %cst_2 = arith.constant 0.000000e+00 : f32
    %5 = vector.broadcast %cst_2 : f32 to vector<6x18xf32>
    %cst_3 = arith.constant 0.000000e+00 : f32
    %6 = vector.broadcast %cst_3 : f32 to vector<6x18xf32>
    %cst_4 = arith.constant 0.000000e+00 : f32
    %7 = vector.broadcast %cst_4 : f32 to vector<6x18xf32>
    %cst_5 = arith.constant 0.000000e+00 : f32
    %8 = vector.broadcast %cst_5 : f32 to vector<6x18xf32>
    %cst_6 = arith.constant 0.000000e+00 : f32
    %9 = vector.broadcast %cst_6 : f32 to vector<6x18xf32>
    %cst_7 = arith.constant 0.000000e+00 : f32
    %10 = vector.broadcast %cst_7 : f32 to vector<6x18xf32>
    %cst_8 = arith.constant 0.000000e+00 : f32
    %11 = vector.broadcast %cst_8 : f32 to vector<6x18xf32>
    %12 = vector.extract_strided_slice %3 {offsets = [0, 0, 0], sizes = [4, 8, 18], strides = [1, 1, 1]} : vector<4x8x20xf32> to vector<4x8x18xf32>
    %13 = vector.extract_strided_slice %12 {offsets = [0, 0, 0], sizes = [1, 6, 18], strides = [1, 1, 1]} : vector<4x8x18xf32> to vector<1x6x18xf32>
    %14 = vector.shape_cast %13 : vector<1x6x18xf32> to vector<6x18xf32>
    %c0_9 = arith.constant 0 : index
    %15 = memref.load %arg3[%c0_9] : memref<288xf32, #tpu.memory_space<smem>>
    %16 = vector.broadcast %15 : f32 to vector<6x18xf32>
    %17 = arith.mulf %16, %14 : vector<6x18xf32>
    %18 = arith.addf %4, %17 : vector<6x18xf32>
    %c1 = arith.constant 1 : index
    %19 = memref.load %arg3[%c1] : memref<288xf32, #tpu.memory_space<smem>>
    %20 = vector.broadcast %19 : f32 to vector<6x18xf32>
    %21 = arith.mulf %20, %14 : vector<6x18xf32>
    %22 = arith.addf %5, %21 : vector<6x18xf32>
    %c2 = arith.constant 2 : index
    %23 = memref.load %arg3[%c2] : memref<288xf32, #tpu.memory_space<smem>>
    %24 = vector.broadcast %23 : f32 to vector<6x18xf32>
    %25 = arith.mulf %24, %14 : vector<6x18xf32>
    %26 = arith.addf %6, %25 : vector<6x18xf32>
    %c3 = arith.constant 3 : index
    %27 = memref.load %arg3[%c3] : memref<288xf32, #tpu.memory_space<smem>>
    %28 = vector.broadcast %27 : f32 to vector<6x18xf32>
    %29 = arith.mulf %28, %14 : vector<6x18xf32>
    %30 = arith.addf %7, %29 : vector<6x18xf32>
    %c4 = arith.constant 4 : index
    %31 = memref.load %arg3[%c4] : memref<288xf32, #tpu.memory_space<smem>>
    %32 = vector.broadcast %31 : f32 to vector<6x18xf32>
    %33 = arith.mulf %32, %14 : vector<6x18xf32>
    %34 = arith.addf %8, %33 : vector<6x18xf32>
    %c5 = arith.constant 5 : index
    %35 = memref.load %arg3[%c5] : memref<288xf32, #tpu.memory_space<smem>>
    %36 = vector.broadcast %35 : f32 to vector<6x18xf32>
    %37 = arith.mulf %36, %14 : vector<6x18xf32>
    %38 = arith.addf %9, %37 : vector<6x18xf32>
    %c6 = arith.constant 6 : index
    %39 = memref.load %arg3[%c6] : memref<288xf32, #tpu.memory_space<smem>>
    %40 = vector.broadcast %39 : f32 to vector<6x18xf32>
    %41 = arith.mulf %40, %14 : vector<6x18xf32>
    %42 = arith.addf %10, %41 : vector<6x18xf32>
    %c7 = arith.constant 7 : index
    %43 = memref.load %arg3[%c7] : memref<288xf32, #tpu.memory_space<smem>>
    %44 = vector.broadcast %43 : f32 to vector<6x18xf32>
    %45 = arith.mulf %44, %14 : vector<6x18xf32>
    %46 = arith.addf %11, %45 : vector<6x18xf32>
    %47 = vector.extract_strided_slice %12 {offsets = [1, 0, 0], sizes = [1, 6, 18], strides = [1, 1, 1]} : vector<4x8x18xf32> to vector<1x6x18xf32>
    %48 = vector.shape_cast %47 : vector<1x6x18xf32> to vector<6x18xf32>
    %c8 = arith.constant 8 : index
    %49 = memref.load %arg3[%c8] : memref<288xf32, #tpu.memory_space<smem>>
    %50 = vector.broadcast %49 : f32 to vector<6x18xf32>
    %51 = arith.mulf %50, %48 : vector<6x18xf32>
    %52 = arith.addf %18, %51 : vector<6x18xf32>
    %c9 = arith.constant 9 : index
    %53 = memref.load %arg3[%c9] : memref<288xf32, #tpu.memory_space<smem>>
    %54 = vector.broadcast %53 : f32 to vector<6x18xf32>
    %55 = arith.mulf %54, %48 : vector<6x18xf32>
    %56 = arith.addf %22, %55 : vector<6x18xf32>
    %c10 = arith.constant 10 : index
    %57 = memref.load %arg3[%c10] : memref<288xf32, #tpu.memory_space<smem>>
    %58 = vector.broadcast %57 : f32 to vector<6x18xf32>
    %59 = arith.mulf %58, %48 : vector<6x18xf32>
    %60 = arith.addf %26, %59 : vector<6x18xf32>
    %c11 = arith.constant 11 : index
    %61 = memref.load %arg3[%c11] : memref<288xf32, #tpu.memory_space<smem>>
    %62 = vector.broadcast %61 : f32 to vector<6x18xf32>
    %63 = arith.mulf %62, %48 : vector<6x18xf32>
    %64 = arith.addf %30, %63 : vector<6x18xf32>
    %c12 = arith.constant 12 : index
    %65 = memref.load %arg3[%c12] : memref<288xf32, #tpu.memory_space<smem>>
    %66 = vector.broadcast %65 : f32 to vector<6x18xf32>
    %67 = arith.mulf %66, %48 : vector<6x18xf32>
    %68 = arith.addf %34, %67 : vector<6x18xf32>
    %c13 = arith.constant 13 : index
    %69 = memref.load %arg3[%c13] : memref<288xf32, #tpu.memory_space<smem>>
    %70 = vector.broadcast %69 : f32 to vector<6x18xf32>
    %71 = arith.mulf %70, %48 : vector<6x18xf32>
    %72 = arith.addf %38, %71 : vector<6x18xf32>
    %c14 = arith.constant 14 : index
    %73 = memref.load %arg3[%c14] : memref<288xf32, #tpu.memory_space<smem>>
    %74 = vector.broadcast %73 : f32 to vector<6x18xf32>
    %75 = arith.mulf %74, %48 : vector<6x18xf32>
    %76 = arith.addf %42, %75 : vector<6x18xf32>
    %c15 = arith.constant 15 : index
    %77 = memref.load %arg3[%c15] : memref<288xf32, #tpu.memory_space<smem>>
    %78 = vector.broadcast %77 : f32 to vector<6x18xf32>
    %79 = arith.mulf %78, %48 : vector<6x18xf32>
    %80 = arith.addf %46, %79 : vector<6x18xf32>
    %81 = vector.extract_strided_slice %12 {offsets = [2, 0, 0], sizes = [1, 6, 18], strides = [1, 1, 1]} : vector<4x8x18xf32> to vector<1x6x18xf32>
    %82 = vector.shape_cast %81 : vector<1x6x18xf32> to vector<6x18xf32>
    %c16 = arith.constant 16 : index
    %83 = memref.load %arg3[%c16] : memref<288xf32, #tpu.memory_space<smem>>
    %84 = vector.broadcast %83 : f32 to vector<6x18xf32>
    %85 = arith.mulf %84, %82 : vector<6x18xf32>
    %86 = arith.addf %52, %85 : vector<6x18xf32>
    %c17 = arith.constant 17 : index
    %87 = memref.load %arg3[%c17] : memref<288xf32, #tpu.memory_space<smem>>
    %88 = vector.broadcast %87 : f32 to vector<6x18xf32>
    %89 = arith.mulf %88, %82 : vector<6x18xf32>
    %90 = arith.addf %56, %89 : vector<6x18xf32>
    %c18 = arith.constant 18 : index
    %91 = memref.load %arg3[%c18] : memref<288xf32, #tpu.memory_space<smem>>
    %92 = vector.broadcast %91 : f32 to vector<6x18xf32>
    %93 = arith.mulf %92, %82 : vector<6x18xf32>
    %94 = arith.addf %60, %93 : vector<6x18xf32>
    %c19 = arith.constant 19 : index
    %95 = memref.load %arg3[%c19] : memref<288xf32, #tpu.memory_space<smem>>
    %96 = vector.broadcast %95 : f32 to vector<6x18xf32>
    %97 = arith.mulf %96, %82 : vector<6x18xf32>
    %98 = arith.addf %64, %97 : vector<6x18xf32>
    %c20 = arith.constant 20 : index
    %99 = memref.load %arg3[%c20] : memref<288xf32, #tpu.memory_space<smem>>
    %100 = vector.broadcast %99 : f32 to vector<6x18xf32>
    %101 = arith.mulf %100, %82 : vector<6x18xf32>
    %102 = arith.addf %68, %101 : vector<6x18xf32>
    %c21 = arith.constant 21 : index
    %103 = memref.load %arg3[%c21] : memref<288xf32, #tpu.memory_space<smem>>
    %104 = vector.broadcast %103 : f32 to vector<6x18xf32>
    %105 = arith.mulf %104, %82 : vector<6x18xf32>
    %106 = arith.addf %72, %105 : vector<6x18xf32>
    %c22 = arith.constant 22 : index
    %107 = memref.load %arg3[%c22] : memref<288xf32, #tpu.memory_space<smem>>
    %108 = vector.broadcast %107 : f32 to vector<6x18xf32>
    %109 = arith.mulf %108, %82 : vector<6x18xf32>
    %110 = arith.addf %76, %109 : vector<6x18xf32>
    %c23 = arith.constant 23 : index
    %111 = memref.load %arg3[%c23] : memref<288xf32, #tpu.memory_space<smem>>
    %112 = vector.broadcast %111 : f32 to vector<6x18xf32>
    %113 = arith.mulf %112, %82 : vector<6x18xf32>
    %114 = arith.addf %80, %113 : vector<6x18xf32>
    %115 = vector.extract_strided_slice %12 {offsets = [3, 0, 0], sizes = [1, 6, 18], strides = [1, 1, 1]} : vector<4x8x18xf32> to vector<1x6x18xf32>
    %116 = vector.shape_cast %115 : vector<1x6x18xf32> to vector<6x18xf32>
    %c24 = arith.constant 24 : index
    %117 = memref.load %arg3[%c24] : memref<288xf32, #tpu.memory_space<smem>>
    %118 = vector.broadcast %117 : f32 to vector<6x18xf32>
    %119 = arith.mulf %118, %116 : vector<6x18xf32>
    %120 = arith.addf %86, %119 : vector<6x18xf32>
    %c25 = arith.constant 25 : index
    %121 = memref.load %arg3[%c25] : memref<288xf32, #tpu.memory_space<smem>>
    %122 = vector.broadcast %121 : f32 to vector<6x18xf32>
    %123 = arith.mulf %122, %116 : vector<6x18xf32>
    %124 = arith.addf %90, %123 : vector<6x18xf32>
    %c26 = arith.constant 26 : index
    %125 = memref.load %arg3[%c26] : memref<288xf32, #tpu.memory_space<smem>>
    %126 = vector.broadcast %125 : f32 to vector<6x18xf32>
    %127 = arith.mulf %126, %116 : vector<6x18xf32>
    %128 = arith.addf %94, %127 : vector<6x18xf32>
    %c27 = arith.constant 27 : index
    %129 = memref.load %arg3[%c27] : memref<288xf32, #tpu.memory_space<smem>>
    %130 = vector.broadcast %129 : f32 to vector<6x18xf32>
    %131 = arith.mulf %130, %116 : vector<6x18xf32>
    %132 = arith.addf %98, %131 : vector<6x18xf32>
    %c28 = arith.constant 28 : index
    %133 = memref.load %arg3[%c28] : memref<288xf32, #tpu.memory_space<smem>>
    %134 = vector.broadcast %133 : f32 to vector<6x18xf32>
    %135 = arith.mulf %134, %116 : vector<6x18xf32>
    %136 = arith.addf %102, %135 : vector<6x18xf32>
    %c29 = arith.constant 29 : index
    %137 = memref.load %arg3[%c29] : memref<288xf32, #tpu.memory_space<smem>>
    %138 = vector.broadcast %137 : f32 to vector<6x18xf32>
    %139 = arith.mulf %138, %116 : vector<6x18xf32>
    %140 = arith.addf %106, %139 : vector<6x18xf32>
    %c30 = arith.constant 30 : index
    %141 = memref.load %arg3[%c30] : memref<288xf32, #tpu.memory_space<smem>>
    %142 = vector.broadcast %141 : f32 to vector<6x18xf32>
    %143 = arith.mulf %142, %116 : vector<6x18xf32>
    %144 = arith.addf %110, %143 : vector<6x18xf32>
    %c31 = arith.constant 31 : index
    %145 = memref.load %arg3[%c31] : memref<288xf32, #tpu.memory_space<smem>>
    %146 = vector.broadcast %145 : f32 to vector<6x18xf32>
    %147 = arith.mulf %146, %116 : vector<6x18xf32>
    %148 = arith.addf %114, %147 : vector<6x18xf32>
    %149 = vector.extract_strided_slice %12 {offsets = [0, 1, 0], sizes = [1, 6, 18], strides = [1, 1, 1]} : vector<4x8x18xf32> to vector<1x6x18xf32>
    %150 = vector.shape_cast %149 : vector<1x6x18xf32> to vector<6x18xf32>
    %c96 = arith.constant 96 : index
    %151 = memref.load %arg3[%c96] : memref<288xf32, #tpu.memory_space<smem>>
    %152 = vector.broadcast %151 : f32 to vector<6x18xf32>
    %153 = arith.mulf %152, %150 : vector<6x18xf32>
    %154 = arith.addf %120, %153 : vector<6x18xf32>
    %c97 = arith.constant 97 : index
    %155 = memref.load %arg3[%c97] : memref<288xf32, #tpu.memory_space<smem>>
    %156 = vector.broadcast %155 : f32 to vector<6x18xf32>
    %157 = arith.mulf %156, %150 : vector<6x18xf32>
    %158 = arith.addf %124, %157 : vector<6x18xf32>
    %c98 = arith.constant 98 : index
    %159 = memref.load %arg3[%c98] : memref<288xf32, #tpu.memory_space<smem>>
    %160 = vector.broadcast %159 : f32 to vector<6x18xf32>
    %161 = arith.mulf %160, %150 : vector<6x18xf32>
    %162 = arith.addf %128, %161 : vector<6x18xf32>
    %c99 = arith.constant 99 : index
    %163 = memref.load %arg3[%c99] : memref<288xf32, #tpu.memory_space<smem>>
    %164 = vector.broadcast %163 : f32 to vector<6x18xf32>
    %165 = arith.mulf %164, %150 : vector<6x18xf32>
    %166 = arith.addf %132, %165 : vector<6x18xf32>
    %c100 = arith.constant 100 : index
    %167 = memref.load %arg3[%c100] : memref<288xf32, #tpu.memory_space<smem>>
    %168 = vector.broadcast %167 : f32 to vector<6x18xf32>
    %169 = arith.mulf %168, %150 : vector<6x18xf32>
    %170 = arith.addf %136, %169 : vector<6x18xf32>
    %c101 = arith.constant 101 : index
    %171 = memref.load %arg3[%c101] : memref<288xf32, #tpu.memory_space<smem>>
    %172 = vector.broadcast %171 : f32 to vector<6x18xf32>
    %173 = arith.mulf %172, %150 : vector<6x18xf32>
    %174 = arith.addf %140, %173 : vector<6x18xf32>
    %c102 = arith.constant 102 : index
    %175 = memref.load %arg3[%c102] : memref<288xf32, #tpu.memory_space<smem>>
    %176 = vector.broadcast %175 : f32 to vector<6x18xf32>
    %177 = arith.mulf %176, %150 : vector<6x18xf32>
    %178 = arith.addf %144, %177 : vector<6x18xf32>
    %c103 = arith.constant 103 : index
    %179 = memref.load %arg3[%c103] : memref<288xf32, #tpu.memory_space<smem>>
    %180 = vector.broadcast %179 : f32 to vector<6x18xf32>
    %181 = arith.mulf %180, %150 : vector<6x18xf32>
    %182 = arith.addf %148, %181 : vector<6x18xf32>
    %183 = vector.extract_strided_slice %12 {offsets = [1, 1, 0], sizes = [1, 6, 18], strides = [1, 1, 1]} : vector<4x8x18xf32> to vector<1x6x18xf32>
    %184 = vector.shape_cast %183 : vector<1x6x18xf32> to vector<6x18xf32>
    %c104 = arith.constant 104 : index
    %185 = memref.load %arg3[%c104] : memref<288xf32, #tpu.memory_space<smem>>
    %186 = vector.broadcast %185 : f32 to vector<6x18xf32>
    %187 = arith.mulf %186, %184 : vector<6x18xf32>
    %188 = arith.addf %154, %187 : vector<6x18xf32>
    %c105 = arith.constant 105 : index
    %189 = memref.load %arg3[%c105] : memref<288xf32, #tpu.memory_space<smem>>
    %190 = vector.broadcast %189 : f32 to vector<6x18xf32>
    %191 = arith.mulf %190, %184 : vector<6x18xf32>
    %192 = arith.addf %158, %191 : vector<6x18xf32>
    %c106 = arith.constant 106 : index
    %193 = memref.load %arg3[%c106] : memref<288xf32, #tpu.memory_space<smem>>
    %194 = vector.broadcast %193 : f32 to vector<6x18xf32>
    %195 = arith.mulf %194, %184 : vector<6x18xf32>
    %196 = arith.addf %162, %195 : vector<6x18xf32>
    %c107 = arith.constant 107 : index
    %197 = memref.load %arg3[%c107] : memref<288xf32, #tpu.memory_space<smem>>
    %198 = vector.broadcast %197 : f32 to vector<6x18xf32>
    %199 = arith.mulf %198, %184 : vector<6x18xf32>
    %200 = arith.addf %166, %199 : vector<6x18xf32>
    %c108 = arith.constant 108 : index
    %201 = memref.load %arg3[%c108] : memref<288xf32, #tpu.memory_space<smem>>
    %202 = vector.broadcast %201 : f32 to vector<6x18xf32>
    %203 = arith.mulf %202, %184 : vector<6x18xf32>
    %204 = arith.addf %170, %203 : vector<6x18xf32>
    %c109 = arith.constant 109 : index
    %205 = memref.load %arg3[%c109] : memref<288xf32, #tpu.memory_space<smem>>
    %206 = vector.broadcast %205 : f32 to vector<6x18xf32>
    %207 = arith.mulf %206, %184 : vector<6x18xf32>
    %208 = arith.addf %174, %207 : vector<6x18xf32>
    %c110 = arith.constant 110 : index
    %209 = memref.load %arg3[%c110] : memref<288xf32, #tpu.memory_space<smem>>
    %210 = vector.broadcast %209 : f32 to vector<6x18xf32>
    %211 = arith.mulf %210, %184 : vector<6x18xf32>
    %212 = arith.addf %178, %211 : vector<6x18xf32>
    %c111 = arith.constant 111 : index
    %213 = memref.load %arg3[%c111] : memref<288xf32, #tpu.memory_space<smem>>
    %214 = vector.broadcast %213 : f32 to vector<6x18xf32>
    %215 = arith.mulf %214, %184 : vector<6x18xf32>
    %216 = arith.addf %182, %215 : vector<6x18xf32>
    %217 = vector.extract_strided_slice %12 {offsets = [2, 1, 0], sizes = [1, 6, 18], strides = [1, 1, 1]} : vector<4x8x18xf32> to vector<1x6x18xf32>
    %218 = vector.shape_cast %217 : vector<1x6x18xf32> to vector<6x18xf32>
    %c112 = arith.constant 112 : index
    %219 = memref.load %arg3[%c112] : memref<288xf32, #tpu.memory_space<smem>>
    %220 = vector.broadcast %219 : f32 to vector<6x18xf32>
    %221 = arith.mulf %220, %218 : vector<6x18xf32>
    %222 = arith.addf %188, %221 : vector<6x18xf32>
    %c113 = arith.constant 113 : index
    %223 = memref.load %arg3[%c113] : memref<288xf32, #tpu.memory_space<smem>>
    %224 = vector.broadcast %223 : f32 to vector<6x18xf32>
    %225 = arith.mulf %224, %218 : vector<6x18xf32>
    %226 = arith.addf %192, %225 : vector<6x18xf32>
    %c114 = arith.constant 114 : index
    %227 = memref.load %arg3[%c114] : memref<288xf32, #tpu.memory_space<smem>>
    %228 = vector.broadcast %227 : f32 to vector<6x18xf32>
    %229 = arith.mulf %228, %218 : vector<6x18xf32>
    %230 = arith.addf %196, %229 : vector<6x18xf32>
    %c115 = arith.constant 115 : index
    %231 = memref.load %arg3[%c115] : memref<288xf32, #tpu.memory_space<smem>>
    %232 = vector.broadcast %231 : f32 to vector<6x18xf32>
    %233 = arith.mulf %232, %218 : vector<6x18xf32>
    %234 = arith.addf %200, %233 : vector<6x18xf32>
    %c116 = arith.constant 116 : index
    %235 = memref.load %arg3[%c116] : memref<288xf32, #tpu.memory_space<smem>>
    %236 = vector.broadcast %235 : f32 to vector<6x18xf32>
    %237 = arith.mulf %236, %218 : vector<6x18xf32>
    %238 = arith.addf %204, %237 : vector<6x18xf32>
    %c117 = arith.constant 117 : index
    %239 = memref.load %arg3[%c117] : memref<288xf32, #tpu.memory_space<smem>>
    %240 = vector.broadcast %239 : f32 to vector<6x18xf32>
    %241 = arith.mulf %240, %218 : vector<6x18xf32>
    %242 = arith.addf %208, %241 : vector<6x18xf32>
    %c118 = arith.constant 118 : index
    %243 = memref.load %arg3[%c118] : memref<288xf32, #tpu.memory_space<smem>>
    %244 = vector.broadcast %243 : f32 to vector<6x18xf32>
    %245 = arith.mulf %244, %218 : vector<6x18xf32>
    %246 = arith.addf %212, %245 : vector<6x18xf32>
    %c119 = arith.constant 119 : index
    %247 = memref.load %arg3[%c119] : memref<288xf32, #tpu.memory_space<smem>>
    %248 = vector.broadcast %247 : f32 to vector<6x18xf32>
    %249 = arith.mulf %248, %218 : vector<6x18xf32>
    %250 = arith.addf %216, %249 : vector<6x18xf32>
    %251 = vector.extract_strided_slice %12 {offsets = [3, 1, 0], sizes = [1, 6, 18], strides = [1, 1, 1]} : vector<4x8x18xf32> to vector<1x6x18xf32>
    %252 = vector.shape_cast %251 : vector<1x6x18xf32> to vector<6x18xf32>
    %c120 = arith.constant 120 : index
    %253 = memref.load %arg3[%c120] : memref<288xf32, #tpu.memory_space<smem>>
    %254 = vector.broadcast %253 : f32 to vector<6x18xf32>
    %255 = arith.mulf %254, %252 : vector<6x18xf32>
    %256 = arith.addf %222, %255 : vector<6x18xf32>
    %c121 = arith.constant 121 : index
    %257 = memref.load %arg3[%c121] : memref<288xf32, #tpu.memory_space<smem>>
    %258 = vector.broadcast %257 : f32 to vector<6x18xf32>
    %259 = arith.mulf %258, %252 : vector<6x18xf32>
    %260 = arith.addf %226, %259 : vector<6x18xf32>
    %c122 = arith.constant 122 : index
    %261 = memref.load %arg3[%c122] : memref<288xf32, #tpu.memory_space<smem>>
    %262 = vector.broadcast %261 : f32 to vector<6x18xf32>
    %263 = arith.mulf %262, %252 : vector<6x18xf32>
    %264 = arith.addf %230, %263 : vector<6x18xf32>
    %c123 = arith.constant 123 : index
    %265 = memref.load %arg3[%c123] : memref<288xf32, #tpu.memory_space<smem>>
    %266 = vector.broadcast %265 : f32 to vector<6x18xf32>
    %267 = arith.mulf %266, %252 : vector<6x18xf32>
    %268 = arith.addf %234, %267 : vector<6x18xf32>
    %c124 = arith.constant 124 : index
    %269 = memref.load %arg3[%c124] : memref<288xf32, #tpu.memory_space<smem>>
    %270 = vector.broadcast %269 : f32 to vector<6x18xf32>
    %271 = arith.mulf %270, %252 : vector<6x18xf32>
    %272 = arith.addf %238, %271 : vector<6x18xf32>
    %c125 = arith.constant 125 : index
    %273 = memref.load %arg3[%c125] : memref<288xf32, #tpu.memory_space<smem>>
    %274 = vector.broadcast %273 : f32 to vector<6x18xf32>
    %275 = arith.mulf %274, %252 : vector<6x18xf32>
    %276 = arith.addf %242, %275 : vector<6x18xf32>
    %c126 = arith.constant 126 : index
    %277 = memref.load %arg3[%c126] : memref<288xf32, #tpu.memory_space<smem>>
    %278 = vector.broadcast %277 : f32 to vector<6x18xf32>
    %279 = arith.mulf %278, %252 : vector<6x18xf32>
    %280 = arith.addf %246, %279 : vector<6x18xf32>
    %c127 = arith.constant 127 : index
    %281 = memref.load %arg3[%c127] : memref<288xf32, #tpu.memory_space<smem>>
    %282 = vector.broadcast %281 : f32 to vector<6x18xf32>
    %283 = arith.mulf %282, %252 : vector<6x18xf32>
    %284 = arith.addf %250, %283 : vector<6x18xf32>
    %285 = vector.extract_strided_slice %12 {offsets = [0, 2, 0], sizes = [1, 6, 18], strides = [1, 1, 1]} : vector<4x8x18xf32> to vector<1x6x18xf32>
    %286 = vector.shape_cast %285 : vector<1x6x18xf32> to vector<6x18xf32>
    %c192 = arith.constant 192 : index
    %287 = memref.load %arg3[%c192] : memref<288xf32, #tpu.memory_space<smem>>
    %288 = vector.broadcast %287 : f32 to vector<6x18xf32>
    %289 = arith.mulf %288, %286 : vector<6x18xf32>
    %290 = arith.addf %256, %289 : vector<6x18xf32>
    %c193 = arith.constant 193 : index
    %291 = memref.load %arg3[%c193] : memref<288xf32, #tpu.memory_space<smem>>
    %292 = vector.broadcast %291 : f32 to vector<6x18xf32>
    %293 = arith.mulf %292, %286 : vector<6x18xf32>
    %294 = arith.addf %260, %293 : vector<6x18xf32>
    %c194 = arith.constant 194 : index
    %295 = memref.load %arg3[%c194] : memref<288xf32, #tpu.memory_space<smem>>
    %296 = vector.broadcast %295 : f32 to vector<6x18xf32>
    %297 = arith.mulf %296, %286 : vector<6x18xf32>
    %298 = arith.addf %264, %297 : vector<6x18xf32>
    %c195 = arith.constant 195 : index
    %299 = memref.load %arg3[%c195] : memref<288xf32, #tpu.memory_space<smem>>
    %300 = vector.broadcast %299 : f32 to vector<6x18xf32>
    %301 = arith.mulf %300, %286 : vector<6x18xf32>
    %302 = arith.addf %268, %301 : vector<6x18xf32>
    %c196 = arith.constant 196 : index
    %303 = memref.load %arg3[%c196] : memref<288xf32, #tpu.memory_space<smem>>
    %304 = vector.broadcast %303 : f32 to vector<6x18xf32>
    %305 = arith.mulf %304, %286 : vector<6x18xf32>
    %306 = arith.addf %272, %305 : vector<6x18xf32>
    %c197 = arith.constant 197 : index
    %307 = memref.load %arg3[%c197] : memref<288xf32, #tpu.memory_space<smem>>
    %308 = vector.broadcast %307 : f32 to vector<6x18xf32>
    %309 = arith.mulf %308, %286 : vector<6x18xf32>
    %310 = arith.addf %276, %309 : vector<6x18xf32>
    %c198 = arith.constant 198 : index
    %311 = memref.load %arg3[%c198] : memref<288xf32, #tpu.memory_space<smem>>
    %312 = vector.broadcast %311 : f32 to vector<6x18xf32>
    %313 = arith.mulf %312, %286 : vector<6x18xf32>
    %314 = arith.addf %280, %313 : vector<6x18xf32>
    %c199 = arith.constant 199 : index
    %315 = memref.load %arg3[%c199] : memref<288xf32, #tpu.memory_space<smem>>
    %316 = vector.broadcast %315 : f32 to vector<6x18xf32>
    %317 = arith.mulf %316, %286 : vector<6x18xf32>
    %318 = arith.addf %284, %317 : vector<6x18xf32>
    %319 = vector.extract_strided_slice %12 {offsets = [1, 2, 0], sizes = [1, 6, 18], strides = [1, 1, 1]} : vector<4x8x18xf32> to vector<1x6x18xf32>
    %320 = vector.shape_cast %319 : vector<1x6x18xf32> to vector<6x18xf32>
    %c200 = arith.constant 200 : index
    %321 = memref.load %arg3[%c200] : memref<288xf32, #tpu.memory_space<smem>>
    %322 = vector.broadcast %321 : f32 to vector<6x18xf32>
    %323 = arith.mulf %322, %320 : vector<6x18xf32>
    %324 = arith.addf %290, %323 : vector<6x18xf32>
    %c201 = arith.constant 201 : index
    %325 = memref.load %arg3[%c201] : memref<288xf32, #tpu.memory_space<smem>>
    %326 = vector.broadcast %325 : f32 to vector<6x18xf32>
    %327 = arith.mulf %326, %320 : vector<6x18xf32>
    %328 = arith.addf %294, %327 : vector<6x18xf32>
    %c202 = arith.constant 202 : index
    %329 = memref.load %arg3[%c202] : memref<288xf32, #tpu.memory_space<smem>>
    %330 = vector.broadcast %329 : f32 to vector<6x18xf32>
    %331 = arith.mulf %330, %320 : vector<6x18xf32>
    %332 = arith.addf %298, %331 : vector<6x18xf32>
    %c203 = arith.constant 203 : index
    %333 = memref.load %arg3[%c203] : memref<288xf32, #tpu.memory_space<smem>>
    %334 = vector.broadcast %333 : f32 to vector<6x18xf32>
    %335 = arith.mulf %334, %320 : vector<6x18xf32>
    %336 = arith.addf %302, %335 : vector<6x18xf32>
    %c204 = arith.constant 204 : index
    %337 = memref.load %arg3[%c204] : memref<288xf32, #tpu.memory_space<smem>>
    %338 = vector.broadcast %337 : f32 to vector<6x18xf32>
    %339 = arith.mulf %338, %320 : vector<6x18xf32>
    %340 = arith.addf %306, %339 : vector<6x18xf32>
    %c205 = arith.constant 205 : index
    %341 = memref.load %arg3[%c205] : memref<288xf32, #tpu.memory_space<smem>>
    %342 = vector.broadcast %341 : f32 to vector<6x18xf32>
    %343 = arith.mulf %342, %320 : vector<6x18xf32>
    %344 = arith.addf %310, %343 : vector<6x18xf32>
    %c206 = arith.constant 206 : index
    %345 = memref.load %arg3[%c206] : memref<288xf32, #tpu.memory_space<smem>>
    %346 = vector.broadcast %345 : f32 to vector<6x18xf32>
    %347 = arith.mulf %346, %320 : vector<6x18xf32>
    %348 = arith.addf %314, %347 : vector<6x18xf32>
    %c207 = arith.constant 207 : index
    %349 = memref.load %arg3[%c207] : memref<288xf32, #tpu.memory_space<smem>>
    %350 = vector.broadcast %349 : f32 to vector<6x18xf32>
    %351 = arith.mulf %350, %320 : vector<6x18xf32>
    %352 = arith.addf %318, %351 : vector<6x18xf32>
    %353 = vector.extract_strided_slice %12 {offsets = [2, 2, 0], sizes = [1, 6, 18], strides = [1, 1, 1]} : vector<4x8x18xf32> to vector<1x6x18xf32>
    %354 = vector.shape_cast %353 : vector<1x6x18xf32> to vector<6x18xf32>
    %c208 = arith.constant 208 : index
    %355 = memref.load %arg3[%c208] : memref<288xf32, #tpu.memory_space<smem>>
    %356 = vector.broadcast %355 : f32 to vector<6x18xf32>
    %357 = arith.mulf %356, %354 : vector<6x18xf32>
    %358 = arith.addf %324, %357 : vector<6x18xf32>
    %c209 = arith.constant 209 : index
    %359 = memref.load %arg3[%c209] : memref<288xf32, #tpu.memory_space<smem>>
    %360 = vector.broadcast %359 : f32 to vector<6x18xf32>
    %361 = arith.mulf %360, %354 : vector<6x18xf32>
    %362 = arith.addf %328, %361 : vector<6x18xf32>
    %c210 = arith.constant 210 : index
    %363 = memref.load %arg3[%c210] : memref<288xf32, #tpu.memory_space<smem>>
    %364 = vector.broadcast %363 : f32 to vector<6x18xf32>
    %365 = arith.mulf %364, %354 : vector<6x18xf32>
    %366 = arith.addf %332, %365 : vector<6x18xf32>
    %c211 = arith.constant 211 : index
    %367 = memref.load %arg3[%c211] : memref<288xf32, #tpu.memory_space<smem>>
    %368 = vector.broadcast %367 : f32 to vector<6x18xf32>
    %369 = arith.mulf %368, %354 : vector<6x18xf32>
    %370 = arith.addf %336, %369 : vector<6x18xf32>
    %c212 = arith.constant 212 : index
    %371 = memref.load %arg3[%c212] : memref<288xf32, #tpu.memory_space<smem>>
    %372 = vector.broadcast %371 : f32 to vector<6x18xf32>
    %373 = arith.mulf %372, %354 : vector<6x18xf32>
    %374 = arith.addf %340, %373 : vector<6x18xf32>
    %c213 = arith.constant 213 : index
    %375 = memref.load %arg3[%c213] : memref<288xf32, #tpu.memory_space<smem>>
    %376 = vector.broadcast %375 : f32 to vector<6x18xf32>
    %377 = arith.mulf %376, %354 : vector<6x18xf32>
    %378 = arith.addf %344, %377 : vector<6x18xf32>
    %c214 = arith.constant 214 : index
    %379 = memref.load %arg3[%c214] : memref<288xf32, #tpu.memory_space<smem>>
    %380 = vector.broadcast %379 : f32 to vector<6x18xf32>
    %381 = arith.mulf %380, %354 : vector<6x18xf32>
    %382 = arith.addf %348, %381 : vector<6x18xf32>
    %c215 = arith.constant 215 : index
    %383 = memref.load %arg3[%c215] : memref<288xf32, #tpu.memory_space<smem>>
    %384 = vector.broadcast %383 : f32 to vector<6x18xf32>
    %385 = arith.mulf %384, %354 : vector<6x18xf32>
    %386 = arith.addf %352, %385 : vector<6x18xf32>
    %387 = vector.extract_strided_slice %12 {offsets = [3, 2, 0], sizes = [1, 6, 18], strides = [1, 1, 1]} : vector<4x8x18xf32> to vector<1x6x18xf32>
    %388 = vector.shape_cast %387 : vector<1x6x18xf32> to vector<6x18xf32>
    %c216 = arith.constant 216 : index
    %389 = memref.load %arg3[%c216] : memref<288xf32, #tpu.memory_space<smem>>
    %390 = vector.broadcast %389 : f32 to vector<6x18xf32>
    %391 = arith.mulf %390, %388 : vector<6x18xf32>
    %392 = arith.addf %358, %391 : vector<6x18xf32>
    %c217 = arith.constant 217 : index
    %393 = memref.load %arg3[%c217] : memref<288xf32, #tpu.memory_space<smem>>
    %394 = vector.broadcast %393 : f32 to vector<6x18xf32>
    %395 = arith.mulf %394, %388 : vector<6x18xf32>
    %396 = arith.addf %362, %395 : vector<6x18xf32>
    %c218 = arith.constant 218 : index
    %397 = memref.load %arg3[%c218] : memref<288xf32, #tpu.memory_space<smem>>
    %398 = vector.broadcast %397 : f32 to vector<6x18xf32>
    %399 = arith.mulf %398, %388 : vector<6x18xf32>
    %400 = arith.addf %366, %399 : vector<6x18xf32>
    %c219 = arith.constant 219 : index
    %401 = memref.load %arg3[%c219] : memref<288xf32, #tpu.memory_space<smem>>
    %402 = vector.broadcast %401 : f32 to vector<6x18xf32>
    %403 = arith.mulf %402, %388 : vector<6x18xf32>
    %404 = arith.addf %370, %403 : vector<6x18xf32>
    %c220 = arith.constant 220 : index
    %405 = memref.load %arg3[%c220] : memref<288xf32, #tpu.memory_space<smem>>
    %406 = vector.broadcast %405 : f32 to vector<6x18xf32>
    %407 = arith.mulf %406, %388 : vector<6x18xf32>
    %408 = arith.addf %374, %407 : vector<6x18xf32>
    %c221 = arith.constant 221 : index
    %409 = memref.load %arg3[%c221] : memref<288xf32, #tpu.memory_space<smem>>
    %410 = vector.broadcast %409 : f32 to vector<6x18xf32>
    %411 = arith.mulf %410, %388 : vector<6x18xf32>
    %412 = arith.addf %378, %411 : vector<6x18xf32>
    %c222 = arith.constant 222 : index
    %413 = memref.load %arg3[%c222] : memref<288xf32, #tpu.memory_space<smem>>
    %414 = vector.broadcast %413 : f32 to vector<6x18xf32>
    %415 = arith.mulf %414, %388 : vector<6x18xf32>
    %416 = arith.addf %382, %415 : vector<6x18xf32>
    %c223 = arith.constant 223 : index
    %417 = memref.load %arg3[%c223] : memref<288xf32, #tpu.memory_space<smem>>
    %418 = vector.broadcast %417 : f32 to vector<6x18xf32>
    %419 = arith.mulf %418, %388 : vector<6x18xf32>
    %420 = arith.addf %386, %419 : vector<6x18xf32>
    %421 = vector.extract_strided_slice %3 {offsets = [0, 0, 1], sizes = [4, 8, 18], strides = [1, 1, 1]} : vector<4x8x20xf32> to vector<4x8x18xf32>
    %422 = vector.extract_strided_slice %421 {offsets = [0, 0, 0], sizes = [1, 6, 18], strides = [1, 1, 1]} : vector<4x8x18xf32> to vector<1x6x18xf32>
    %423 = vector.shape_cast %422 : vector<1x6x18xf32> to vector<6x18xf32>
    %c32 = arith.constant 32 : index
    %424 = memref.load %arg3[%c32] : memref<288xf32, #tpu.memory_space<smem>>
    %425 = vector.broadcast %424 : f32 to vector<6x18xf32>
    %426 = arith.mulf %425, %423 : vector<6x18xf32>
    %427 = arith.addf %392, %426 : vector<6x18xf32>
    %c33 = arith.constant 33 : index
    %428 = memref.load %arg3[%c33] : memref<288xf32, #tpu.memory_space<smem>>
    %429 = vector.broadcast %428 : f32 to vector<6x18xf32>
    %430 = arith.mulf %429, %423 : vector<6x18xf32>
    %431 = arith.addf %396, %430 : vector<6x18xf32>
    %c34 = arith.constant 34 : index
    %432 = memref.load %arg3[%c34] : memref<288xf32, #tpu.memory_space<smem>>
    %433 = vector.broadcast %432 : f32 to vector<6x18xf32>
    %434 = arith.mulf %433, %423 : vector<6x18xf32>
    %435 = arith.addf %400, %434 : vector<6x18xf32>
    %c35 = arith.constant 35 : index
    %436 = memref.load %arg3[%c35] : memref<288xf32, #tpu.memory_space<smem>>
    %437 = vector.broadcast %436 : f32 to vector<6x18xf32>
    %438 = arith.mulf %437, %423 : vector<6x18xf32>
    %439 = arith.addf %404, %438 : vector<6x18xf32>
    %c36 = arith.constant 36 : index
    %440 = memref.load %arg3[%c36] : memref<288xf32, #tpu.memory_space<smem>>
    %441 = vector.broadcast %440 : f32 to vector<6x18xf32>
    %442 = arith.mulf %441, %423 : vector<6x18xf32>
    %443 = arith.addf %408, %442 : vector<6x18xf32>
    %c37 = arith.constant 37 : index
    %444 = memref.load %arg3[%c37] : memref<288xf32, #tpu.memory_space<smem>>
    %445 = vector.broadcast %444 : f32 to vector<6x18xf32>
    %446 = arith.mulf %445, %423 : vector<6x18xf32>
    %447 = arith.addf %412, %446 : vector<6x18xf32>
    %c38 = arith.constant 38 : index
    %448 = memref.load %arg3[%c38] : memref<288xf32, #tpu.memory_space<smem>>
    %449 = vector.broadcast %448 : f32 to vector<6x18xf32>
    %450 = arith.mulf %449, %423 : vector<6x18xf32>
    %451 = arith.addf %416, %450 : vector<6x18xf32>
    %c39 = arith.constant 39 : index
    %452 = memref.load %arg3[%c39] : memref<288xf32, #tpu.memory_space<smem>>
    %453 = vector.broadcast %452 : f32 to vector<6x18xf32>
    %454 = arith.mulf %453, %423 : vector<6x18xf32>
    %455 = arith.addf %420, %454 : vector<6x18xf32>
    %456 = vector.extract_strided_slice %421 {offsets = [1, 0, 0], sizes = [1, 6, 18], strides = [1, 1, 1]} : vector<4x8x18xf32> to vector<1x6x18xf32>
    %457 = vector.shape_cast %456 : vector<1x6x18xf32> to vector<6x18xf32>
    %c40 = arith.constant 40 : index
    %458 = memref.load %arg3[%c40] : memref<288xf32, #tpu.memory_space<smem>>
    %459 = vector.broadcast %458 : f32 to vector<6x18xf32>
    %460 = arith.mulf %459, %457 : vector<6x18xf32>
    %461 = arith.addf %427, %460 : vector<6x18xf32>
    %c41 = arith.constant 41 : index
    %462 = memref.load %arg3[%c41] : memref<288xf32, #tpu.memory_space<smem>>
    %463 = vector.broadcast %462 : f32 to vector<6x18xf32>
    %464 = arith.mulf %463, %457 : vector<6x18xf32>
    %465 = arith.addf %431, %464 : vector<6x18xf32>
    %c42 = arith.constant 42 : index
    %466 = memref.load %arg3[%c42] : memref<288xf32, #tpu.memory_space<smem>>
    %467 = vector.broadcast %466 : f32 to vector<6x18xf32>
    %468 = arith.mulf %467, %457 : vector<6x18xf32>
    %469 = arith.addf %435, %468 : vector<6x18xf32>
    %c43 = arith.constant 43 : index
    %470 = memref.load %arg3[%c43] : memref<288xf32, #tpu.memory_space<smem>>
    %471 = vector.broadcast %470 : f32 to vector<6x18xf32>
    %472 = arith.mulf %471, %457 : vector<6x18xf32>
    %473 = arith.addf %439, %472 : vector<6x18xf32>
    %c44 = arith.constant 44 : index
    %474 = memref.load %arg3[%c44] : memref<288xf32, #tpu.memory_space<smem>>
    %475 = vector.broadcast %474 : f32 to vector<6x18xf32>
    %476 = arith.mulf %475, %457 : vector<6x18xf32>
    %477 = arith.addf %443, %476 : vector<6x18xf32>
    %c45 = arith.constant 45 : index
    %478 = memref.load %arg3[%c45] : memref<288xf32, #tpu.memory_space<smem>>
    %479 = vector.broadcast %478 : f32 to vector<6x18xf32>
    %480 = arith.mulf %479, %457 : vector<6x18xf32>
    %481 = arith.addf %447, %480 : vector<6x18xf32>
    %c46 = arith.constant 46 : index
    %482 = memref.load %arg3[%c46] : memref<288xf32, #tpu.memory_space<smem>>
    %483 = vector.broadcast %482 : f32 to vector<6x18xf32>
    %484 = arith.mulf %483, %457 : vector<6x18xf32>
    %485 = arith.addf %451, %484 : vector<6x18xf32>
    %c47 = arith.constant 47 : index
    %486 = memref.load %arg3[%c47] : memref<288xf32, #tpu.memory_space<smem>>
    %487 = vector.broadcast %486 : f32 to vector<6x18xf32>
    %488 = arith.mulf %487, %457 : vector<6x18xf32>
    %489 = arith.addf %455, %488 : vector<6x18xf32>
    %490 = vector.extract_strided_slice %421 {offsets = [2, 0, 0], sizes = [1, 6, 18], strides = [1, 1, 1]} : vector<4x8x18xf32> to vector<1x6x18xf32>
    %491 = vector.shape_cast %490 : vector<1x6x18xf32> to vector<6x18xf32>
    %c48 = arith.constant 48 : index
    %492 = memref.load %arg3[%c48] : memref<288xf32, #tpu.memory_space<smem>>
    %493 = vector.broadcast %492 : f32 to vector<6x18xf32>
    %494 = arith.mulf %493, %491 : vector<6x18xf32>
    %495 = arith.addf %461, %494 : vector<6x18xf32>
    %c49 = arith.constant 49 : index
    %496 = memref.load %arg3[%c49] : memref<288xf32, #tpu.memory_space<smem>>
    %497 = vector.broadcast %496 : f32 to vector<6x18xf32>
    %498 = arith.mulf %497, %491 : vector<6x18xf32>
    %499 = arith.addf %465, %498 : vector<6x18xf32>
    %c50 = arith.constant 50 : index
    %500 = memref.load %arg3[%c50] : memref<288xf32, #tpu.memory_space<smem>>
    %501 = vector.broadcast %500 : f32 to vector<6x18xf32>
    %502 = arith.mulf %501, %491 : vector<6x18xf32>
    %503 = arith.addf %469, %502 : vector<6x18xf32>
    %c51 = arith.constant 51 : index
    %504 = memref.load %arg3[%c51] : memref<288xf32, #tpu.memory_space<smem>>
    %505 = vector.broadcast %504 : f32 to vector<6x18xf32>
    %506 = arith.mulf %505, %491 : vector<6x18xf32>
    %507 = arith.addf %473, %506 : vector<6x18xf32>
    %c52 = arith.constant 52 : index
    %508 = memref.load %arg3[%c52] : memref<288xf32, #tpu.memory_space<smem>>
    %509 = vector.broadcast %508 : f32 to vector<6x18xf32>
    %510 = arith.mulf %509, %491 : vector<6x18xf32>
    %511 = arith.addf %477, %510 : vector<6x18xf32>
    %c53 = arith.constant 53 : index
    %512 = memref.load %arg3[%c53] : memref<288xf32, #tpu.memory_space<smem>>
    %513 = vector.broadcast %512 : f32 to vector<6x18xf32>
    %514 = arith.mulf %513, %491 : vector<6x18xf32>
    %515 = arith.addf %481, %514 : vector<6x18xf32>
    %c54 = arith.constant 54 : index
    %516 = memref.load %arg3[%c54] : memref<288xf32, #tpu.memory_space<smem>>
    %517 = vector.broadcast %516 : f32 to vector<6x18xf32>
    %518 = arith.mulf %517, %491 : vector<6x18xf32>
    %519 = arith.addf %485, %518 : vector<6x18xf32>
    %c55 = arith.constant 55 : index
    %520 = memref.load %arg3[%c55] : memref<288xf32, #tpu.memory_space<smem>>
    %521 = vector.broadcast %520 : f32 to vector<6x18xf32>
    %522 = arith.mulf %521, %491 : vector<6x18xf32>
    %523 = arith.addf %489, %522 : vector<6x18xf32>
    %524 = vector.extract_strided_slice %421 {offsets = [3, 0, 0], sizes = [1, 6, 18], strides = [1, 1, 1]} : vector<4x8x18xf32> to vector<1x6x18xf32>
    %525 = vector.shape_cast %524 : vector<1x6x18xf32> to vector<6x18xf32>
    %c56 = arith.constant 56 : index
    %526 = memref.load %arg3[%c56] : memref<288xf32, #tpu.memory_space<smem>>
    %527 = vector.broadcast %526 : f32 to vector<6x18xf32>
    %528 = arith.mulf %527, %525 : vector<6x18xf32>
    %529 = arith.addf %495, %528 : vector<6x18xf32>
    %c57 = arith.constant 57 : index
    %530 = memref.load %arg3[%c57] : memref<288xf32, #tpu.memory_space<smem>>
    %531 = vector.broadcast %530 : f32 to vector<6x18xf32>
    %532 = arith.mulf %531, %525 : vector<6x18xf32>
    %533 = arith.addf %499, %532 : vector<6x18xf32>
    %c58 = arith.constant 58 : index
    %534 = memref.load %arg3[%c58] : memref<288xf32, #tpu.memory_space<smem>>
    %535 = vector.broadcast %534 : f32 to vector<6x18xf32>
    %536 = arith.mulf %535, %525 : vector<6x18xf32>
    %537 = arith.addf %503, %536 : vector<6x18xf32>
    %c59 = arith.constant 59 : index
    %538 = memref.load %arg3[%c59] : memref<288xf32, #tpu.memory_space<smem>>
    %539 = vector.broadcast %538 : f32 to vector<6x18xf32>
    %540 = arith.mulf %539, %525 : vector<6x18xf32>
    %541 = arith.addf %507, %540 : vector<6x18xf32>
    %c60 = arith.constant 60 : index
    %542 = memref.load %arg3[%c60] : memref<288xf32, #tpu.memory_space<smem>>
    %543 = vector.broadcast %542 : f32 to vector<6x18xf32>
    %544 = arith.mulf %543, %525 : vector<6x18xf32>
    %545 = arith.addf %511, %544 : vector<6x18xf32>
    %c61 = arith.constant 61 : index
    %546 = memref.load %arg3[%c61] : memref<288xf32, #tpu.memory_space<smem>>
    %547 = vector.broadcast %546 : f32 to vector<6x18xf32>
    %548 = arith.mulf %547, %525 : vector<6x18xf32>
    %549 = arith.addf %515, %548 : vector<6x18xf32>
    %c62 = arith.constant 62 : index
    %550 = memref.load %arg3[%c62] : memref<288xf32, #tpu.memory_space<smem>>
    %551 = vector.broadcast %550 : f32 to vector<6x18xf32>
    %552 = arith.mulf %551, %525 : vector<6x18xf32>
    %553 = arith.addf %519, %552 : vector<6x18xf32>
    %c63 = arith.constant 63 : index
    %554 = memref.load %arg3[%c63] : memref<288xf32, #tpu.memory_space<smem>>
    %555 = vector.broadcast %554 : f32 to vector<6x18xf32>
    %556 = arith.mulf %555, %525 : vector<6x18xf32>
    %557 = arith.addf %523, %556 : vector<6x18xf32>
    %558 = vector.extract_strided_slice %421 {offsets = [0, 1, 0], sizes = [1, 6, 18], strides = [1, 1, 1]} : vector<4x8x18xf32> to vector<1x6x18xf32>
    %559 = vector.shape_cast %558 : vector<1x6x18xf32> to vector<6x18xf32>
    %c128 = arith.constant 128 : index
    %560 = memref.load %arg3[%c128] : memref<288xf32, #tpu.memory_space<smem>>
    %561 = vector.broadcast %560 : f32 to vector<6x18xf32>
    %562 = arith.mulf %561, %559 : vector<6x18xf32>
    %563 = arith.addf %529, %562 : vector<6x18xf32>
    %c129 = arith.constant 129 : index
    %564 = memref.load %arg3[%c129] : memref<288xf32, #tpu.memory_space<smem>>
    %565 = vector.broadcast %564 : f32 to vector<6x18xf32>
    %566 = arith.mulf %565, %559 : vector<6x18xf32>
    %567 = arith.addf %533, %566 : vector<6x18xf32>
    %c130 = arith.constant 130 : index
    %568 = memref.load %arg3[%c130] : memref<288xf32, #tpu.memory_space<smem>>
    %569 = vector.broadcast %568 : f32 to vector<6x18xf32>
    %570 = arith.mulf %569, %559 : vector<6x18xf32>
    %571 = arith.addf %537, %570 : vector<6x18xf32>
    %c131 = arith.constant 131 : index
    %572 = memref.load %arg3[%c131] : memref<288xf32, #tpu.memory_space<smem>>
    %573 = vector.broadcast %572 : f32 to vector<6x18xf32>
    %574 = arith.mulf %573, %559 : vector<6x18xf32>
    %575 = arith.addf %541, %574 : vector<6x18xf32>
    %c132 = arith.constant 132 : index
    %576 = memref.load %arg3[%c132] : memref<288xf32, #tpu.memory_space<smem>>
    %577 = vector.broadcast %576 : f32 to vector<6x18xf32>
    %578 = arith.mulf %577, %559 : vector<6x18xf32>
    %579 = arith.addf %545, %578 : vector<6x18xf32>
    %c133 = arith.constant 133 : index
    %580 = memref.load %arg3[%c133] : memref<288xf32, #tpu.memory_space<smem>>
    %581 = vector.broadcast %580 : f32 to vector<6x18xf32>
    %582 = arith.mulf %581, %559 : vector<6x18xf32>
    %583 = arith.addf %549, %582 : vector<6x18xf32>
    %c134 = arith.constant 134 : index
    %584 = memref.load %arg3[%c134] : memref<288xf32, #tpu.memory_space<smem>>
    %585 = vector.broadcast %584 : f32 to vector<6x18xf32>
    %586 = arith.mulf %585, %559 : vector<6x18xf32>
    %587 = arith.addf %553, %586 : vector<6x18xf32>
    %c135 = arith.constant 135 : index
    %588 = memref.load %arg3[%c135] : memref<288xf32, #tpu.memory_space<smem>>
    %589 = vector.broadcast %588 : f32 to vector<6x18xf32>
    %590 = arith.mulf %589, %559 : vector<6x18xf32>
    %591 = arith.addf %557, %590 : vector<6x18xf32>
    %592 = vector.extract_strided_slice %421 {offsets = [1, 1, 0], sizes = [1, 6, 18], strides = [1, 1, 1]} : vector<4x8x18xf32> to vector<1x6x18xf32>
    %593 = vector.shape_cast %592 : vector<1x6x18xf32> to vector<6x18xf32>
    %c136 = arith.constant 136 : index
    %594 = memref.load %arg3[%c136] : memref<288xf32, #tpu.memory_space<smem>>
    %595 = vector.broadcast %594 : f32 to vector<6x18xf32>
    %596 = arith.mulf %595, %593 : vector<6x18xf32>
    %597 = arith.addf %563, %596 : vector<6x18xf32>
    %c137 = arith.constant 137 : index
    %598 = memref.load %arg3[%c137] : memref<288xf32, #tpu.memory_space<smem>>
    %599 = vector.broadcast %598 : f32 to vector<6x18xf32>
    %600 = arith.mulf %599, %593 : vector<6x18xf32>
    %601 = arith.addf %567, %600 : vector<6x18xf32>
    %c138 = arith.constant 138 : index
    %602 = memref.load %arg3[%c138] : memref<288xf32, #tpu.memory_space<smem>>
    %603 = vector.broadcast %602 : f32 to vector<6x18xf32>
    %604 = arith.mulf %603, %593 : vector<6x18xf32>
    %605 = arith.addf %571, %604 : vector<6x18xf32>
    %c139 = arith.constant 139 : index
    %606 = memref.load %arg3[%c139] : memref<288xf32, #tpu.memory_space<smem>>
    %607 = vector.broadcast %606 : f32 to vector<6x18xf32>
    %608 = arith.mulf %607, %593 : vector<6x18xf32>
    %609 = arith.addf %575, %608 : vector<6x18xf32>
    %c140 = arith.constant 140 : index
    %610 = memref.load %arg3[%c140] : memref<288xf32, #tpu.memory_space<smem>>
    %611 = vector.broadcast %610 : f32 to vector<6x18xf32>
    %612 = arith.mulf %611, %593 : vector<6x18xf32>
    %613 = arith.addf %579, %612 : vector<6x18xf32>
    %c141 = arith.constant 141 : index
    %614 = memref.load %arg3[%c141] : memref<288xf32, #tpu.memory_space<smem>>
    %615 = vector.broadcast %614 : f32 to vector<6x18xf32>
    %616 = arith.mulf %615, %593 : vector<6x18xf32>
    %617 = arith.addf %583, %616 : vector<6x18xf32>
    %c142 = arith.constant 142 : index
    %618 = memref.load %arg3[%c142] : memref<288xf32, #tpu.memory_space<smem>>
    %619 = vector.broadcast %618 : f32 to vector<6x18xf32>
    %620 = arith.mulf %619, %593 : vector<6x18xf32>
    %621 = arith.addf %587, %620 : vector<6x18xf32>
    %c143 = arith.constant 143 : index
    %622 = memref.load %arg3[%c143] : memref<288xf32, #tpu.memory_space<smem>>
    %623 = vector.broadcast %622 : f32 to vector<6x18xf32>
    %624 = arith.mulf %623, %593 : vector<6x18xf32>
    %625 = arith.addf %591, %624 : vector<6x18xf32>
    %626 = vector.extract_strided_slice %421 {offsets = [2, 1, 0], sizes = [1, 6, 18], strides = [1, 1, 1]} : vector<4x8x18xf32> to vector<1x6x18xf32>
    %627 = vector.shape_cast %626 : vector<1x6x18xf32> to vector<6x18xf32>
    %c144 = arith.constant 144 : index
    %628 = memref.load %arg3[%c144] : memref<288xf32, #tpu.memory_space<smem>>
    %629 = vector.broadcast %628 : f32 to vector<6x18xf32>
    %630 = arith.mulf %629, %627 : vector<6x18xf32>
    %631 = arith.addf %597, %630 : vector<6x18xf32>
    %c145 = arith.constant 145 : index
    %632 = memref.load %arg3[%c145] : memref<288xf32, #tpu.memory_space<smem>>
    %633 = vector.broadcast %632 : f32 to vector<6x18xf32>
    %634 = arith.mulf %633, %627 : vector<6x18xf32>
    %635 = arith.addf %601, %634 : vector<6x18xf32>
    %c146 = arith.constant 146 : index
    %636 = memref.load %arg3[%c146] : memref<288xf32, #tpu.memory_space<smem>>
    %637 = vector.broadcast %636 : f32 to vector<6x18xf32>
    %638 = arith.mulf %637, %627 : vector<6x18xf32>
    %639 = arith.addf %605, %638 : vector<6x18xf32>
    %c147 = arith.constant 147 : index
    %640 = memref.load %arg3[%c147] : memref<288xf32, #tpu.memory_space<smem>>
    %641 = vector.broadcast %640 : f32 to vector<6x18xf32>
    %642 = arith.mulf %641, %627 : vector<6x18xf32>
    %643 = arith.addf %609, %642 : vector<6x18xf32>
    %c148 = arith.constant 148 : index
    %644 = memref.load %arg3[%c148] : memref<288xf32, #tpu.memory_space<smem>>
    %645 = vector.broadcast %644 : f32 to vector<6x18xf32>
    %646 = arith.mulf %645, %627 : vector<6x18xf32>
    %647 = arith.addf %613, %646 : vector<6x18xf32>
    %c149 = arith.constant 149 : index
    %648 = memref.load %arg3[%c149] : memref<288xf32, #tpu.memory_space<smem>>
    %649 = vector.broadcast %648 : f32 to vector<6x18xf32>
    %650 = arith.mulf %649, %627 : vector<6x18xf32>
    %651 = arith.addf %617, %650 : vector<6x18xf32>
    %c150 = arith.constant 150 : index
    %652 = memref.load %arg3[%c150] : memref<288xf32, #tpu.memory_space<smem>>
    %653 = vector.broadcast %652 : f32 to vector<6x18xf32>
    %654 = arith.mulf %653, %627 : vector<6x18xf32>
    %655 = arith.addf %621, %654 : vector<6x18xf32>
    %c151 = arith.constant 151 : index
    %656 = memref.load %arg3[%c151] : memref<288xf32, #tpu.memory_space<smem>>
    %657 = vector.broadcast %656 : f32 to vector<6x18xf32>
    %658 = arith.mulf %657, %627 : vector<6x18xf32>
    %659 = arith.addf %625, %658 : vector<6x18xf32>
    %660 = vector.extract_strided_slice %421 {offsets = [3, 1, 0], sizes = [1, 6, 18], strides = [1, 1, 1]} : vector<4x8x18xf32> to vector<1x6x18xf32>
    %661 = vector.shape_cast %660 : vector<1x6x18xf32> to vector<6x18xf32>
    %c152 = arith.constant 152 : index
    %662 = memref.load %arg3[%c152] : memref<288xf32, #tpu.memory_space<smem>>
    %663 = vector.broadcast %662 : f32 to vector<6x18xf32>
    %664 = arith.mulf %663, %661 : vector<6x18xf32>
    %665 = arith.addf %631, %664 : vector<6x18xf32>
    %c153 = arith.constant 153 : index
    %666 = memref.load %arg3[%c153] : memref<288xf32, #tpu.memory_space<smem>>
    %667 = vector.broadcast %666 : f32 to vector<6x18xf32>
    %668 = arith.mulf %667, %661 : vector<6x18xf32>
    %669 = arith.addf %635, %668 : vector<6x18xf32>
    %c154 = arith.constant 154 : index
    %670 = memref.load %arg3[%c154] : memref<288xf32, #tpu.memory_space<smem>>
    %671 = vector.broadcast %670 : f32 to vector<6x18xf32>
    %672 = arith.mulf %671, %661 : vector<6x18xf32>
    %673 = arith.addf %639, %672 : vector<6x18xf32>
    %c155 = arith.constant 155 : index
    %674 = memref.load %arg3[%c155] : memref<288xf32, #tpu.memory_space<smem>>
    %675 = vector.broadcast %674 : f32 to vector<6x18xf32>
    %676 = arith.mulf %675, %661 : vector<6x18xf32>
    %677 = arith.addf %643, %676 : vector<6x18xf32>
    %c156 = arith.constant 156 : index
    %678 = memref.load %arg3[%c156] : memref<288xf32, #tpu.memory_space<smem>>
    %679 = vector.broadcast %678 : f32 to vector<6x18xf32>
    %680 = arith.mulf %679, %661 : vector<6x18xf32>
    %681 = arith.addf %647, %680 : vector<6x18xf32>
    %c157 = arith.constant 157 : index
    %682 = memref.load %arg3[%c157] : memref<288xf32, #tpu.memory_space<smem>>
    %683 = vector.broadcast %682 : f32 to vector<6x18xf32>
    %684 = arith.mulf %683, %661 : vector<6x18xf32>
    %685 = arith.addf %651, %684 : vector<6x18xf32>
    %c158 = arith.constant 158 : index
    %686 = memref.load %arg3[%c158] : memref<288xf32, #tpu.memory_space<smem>>
    %687 = vector.broadcast %686 : f32 to vector<6x18xf32>
    %688 = arith.mulf %687, %661 : vector<6x18xf32>
    %689 = arith.addf %655, %688 : vector<6x18xf32>
    %c159 = arith.constant 159 : index
    %690 = memref.load %arg3[%c159] : memref<288xf32, #tpu.memory_space<smem>>
    %691 = vector.broadcast %690 : f32 to vector<6x18xf32>
    %692 = arith.mulf %691, %661 : vector<6x18xf32>
    %693 = arith.addf %659, %692 : vector<6x18xf32>
    %694 = vector.extract_strided_slice %421 {offsets = [0, 2, 0], sizes = [1, 6, 18], strides = [1, 1, 1]} : vector<4x8x18xf32> to vector<1x6x18xf32>
    %695 = vector.shape_cast %694 : vector<1x6x18xf32> to vector<6x18xf32>
    %c224 = arith.constant 224 : index
    %696 = memref.load %arg3[%c224] : memref<288xf32, #tpu.memory_space<smem>>
    %697 = vector.broadcast %696 : f32 to vector<6x18xf32>
    %698 = arith.mulf %697, %695 : vector<6x18xf32>
    %699 = arith.addf %665, %698 : vector<6x18xf32>
    %c225 = arith.constant 225 : index
    %700 = memref.load %arg3[%c225] : memref<288xf32, #tpu.memory_space<smem>>
    %701 = vector.broadcast %700 : f32 to vector<6x18xf32>
    %702 = arith.mulf %701, %695 : vector<6x18xf32>
    %703 = arith.addf %669, %702 : vector<6x18xf32>
    %c226 = arith.constant 226 : index
    %704 = memref.load %arg3[%c226] : memref<288xf32, #tpu.memory_space<smem>>
    %705 = vector.broadcast %704 : f32 to vector<6x18xf32>
    %706 = arith.mulf %705, %695 : vector<6x18xf32>
    %707 = arith.addf %673, %706 : vector<6x18xf32>
    %c227 = arith.constant 227 : index
    %708 = memref.load %arg3[%c227] : memref<288xf32, #tpu.memory_space<smem>>
    %709 = vector.broadcast %708 : f32 to vector<6x18xf32>
    %710 = arith.mulf %709, %695 : vector<6x18xf32>
    %711 = arith.addf %677, %710 : vector<6x18xf32>
    %c228 = arith.constant 228 : index
    %712 = memref.load %arg3[%c228] : memref<288xf32, #tpu.memory_space<smem>>
    %713 = vector.broadcast %712 : f32 to vector<6x18xf32>
    %714 = arith.mulf %713, %695 : vector<6x18xf32>
    %715 = arith.addf %681, %714 : vector<6x18xf32>
    %c229 = arith.constant 229 : index
    %716 = memref.load %arg3[%c229] : memref<288xf32, #tpu.memory_space<smem>>
    %717 = vector.broadcast %716 : f32 to vector<6x18xf32>
    %718 = arith.mulf %717, %695 : vector<6x18xf32>
    %719 = arith.addf %685, %718 : vector<6x18xf32>
    %c230 = arith.constant 230 : index
    %720 = memref.load %arg3[%c230] : memref<288xf32, #tpu.memory_space<smem>>
    %721 = vector.broadcast %720 : f32 to vector<6x18xf32>
    %722 = arith.mulf %721, %695 : vector<6x18xf32>
    %723 = arith.addf %689, %722 : vector<6x18xf32>
    %c231 = arith.constant 231 : index
    %724 = memref.load %arg3[%c231] : memref<288xf32, #tpu.memory_space<smem>>
    %725 = vector.broadcast %724 : f32 to vector<6x18xf32>
    %726 = arith.mulf %725, %695 : vector<6x18xf32>
    %727 = arith.addf %693, %726 : vector<6x18xf32>
    %728 = vector.extract_strided_slice %421 {offsets = [1, 2, 0], sizes = [1, 6, 18], strides = [1, 1, 1]} : vector<4x8x18xf32> to vector<1x6x18xf32>
    %729 = vector.shape_cast %728 : vector<1x6x18xf32> to vector<6x18xf32>
    %c232 = arith.constant 232 : index
    %730 = memref.load %arg3[%c232] : memref<288xf32, #tpu.memory_space<smem>>
    %731 = vector.broadcast %730 : f32 to vector<6x18xf32>
    %732 = arith.mulf %731, %729 : vector<6x18xf32>
    %733 = arith.addf %699, %732 : vector<6x18xf32>
    %c233 = arith.constant 233 : index
    %734 = memref.load %arg3[%c233] : memref<288xf32, #tpu.memory_space<smem>>
    %735 = vector.broadcast %734 : f32 to vector<6x18xf32>
    %736 = arith.mulf %735, %729 : vector<6x18xf32>
    %737 = arith.addf %703, %736 : vector<6x18xf32>
    %c234 = arith.constant 234 : index
    %738 = memref.load %arg3[%c234] : memref<288xf32, #tpu.memory_space<smem>>
    %739 = vector.broadcast %738 : f32 to vector<6x18xf32>
    %740 = arith.mulf %739, %729 : vector<6x18xf32>
    %741 = arith.addf %707, %740 : vector<6x18xf32>
    %c235 = arith.constant 235 : index
    %742 = memref.load %arg3[%c235] : memref<288xf32, #tpu.memory_space<smem>>
    %743 = vector.broadcast %742 : f32 to vector<6x18xf32>
    %744 = arith.mulf %743, %729 : vector<6x18xf32>
    %745 = arith.addf %711, %744 : vector<6x18xf32>
    %c236 = arith.constant 236 : index
    %746 = memref.load %arg3[%c236] : memref<288xf32, #tpu.memory_space<smem>>
    %747 = vector.broadcast %746 : f32 to vector<6x18xf32>
    %748 = arith.mulf %747, %729 : vector<6x18xf32>
    %749 = arith.addf %715, %748 : vector<6x18xf32>
    %c237 = arith.constant 237 : index
    %750 = memref.load %arg3[%c237] : memref<288xf32, #tpu.memory_space<smem>>
    %751 = vector.broadcast %750 : f32 to vector<6x18xf32>
    %752 = arith.mulf %751, %729 : vector<6x18xf32>
    %753 = arith.addf %719, %752 : vector<6x18xf32>
    %c238 = arith.constant 238 : index
    %754 = memref.load %arg3[%c238] : memref<288xf32, #tpu.memory_space<smem>>
    %755 = vector.broadcast %754 : f32 to vector<6x18xf32>
    %756 = arith.mulf %755, %729 : vector<6x18xf32>
    %757 = arith.addf %723, %756 : vector<6x18xf32>
    %c239 = arith.constant 239 : index
    %758 = memref.load %arg3[%c239] : memref<288xf32, #tpu.memory_space<smem>>
    %759 = vector.broadcast %758 : f32 to vector<6x18xf32>
    %760 = arith.mulf %759, %729 : vector<6x18xf32>
    %761 = arith.addf %727, %760 : vector<6x18xf32>
    %762 = vector.extract_strided_slice %421 {offsets = [2, 2, 0], sizes = [1, 6, 18], strides = [1, 1, 1]} : vector<4x8x18xf32> to vector<1x6x18xf32>
    %763 = vector.shape_cast %762 : vector<1x6x18xf32> to vector<6x18xf32>
    %c240 = arith.constant 240 : index
    %764 = memref.load %arg3[%c240] : memref<288xf32, #tpu.memory_space<smem>>
    %765 = vector.broadcast %764 : f32 to vector<6x18xf32>
    %766 = arith.mulf %765, %763 : vector<6x18xf32>
    %767 = arith.addf %733, %766 : vector<6x18xf32>
    %c241 = arith.constant 241 : index
    %768 = memref.load %arg3[%c241] : memref<288xf32, #tpu.memory_space<smem>>
    %769 = vector.broadcast %768 : f32 to vector<6x18xf32>
    %770 = arith.mulf %769, %763 : vector<6x18xf32>
    %771 = arith.addf %737, %770 : vector<6x18xf32>
    %c242 = arith.constant 242 : index
    %772 = memref.load %arg3[%c242] : memref<288xf32, #tpu.memory_space<smem>>
    %773 = vector.broadcast %772 : f32 to vector<6x18xf32>
    %774 = arith.mulf %773, %763 : vector<6x18xf32>
    %775 = arith.addf %741, %774 : vector<6x18xf32>
    %c243 = arith.constant 243 : index
    %776 = memref.load %arg3[%c243] : memref<288xf32, #tpu.memory_space<smem>>
    %777 = vector.broadcast %776 : f32 to vector<6x18xf32>
    %778 = arith.mulf %777, %763 : vector<6x18xf32>
    %779 = arith.addf %745, %778 : vector<6x18xf32>
    %c244 = arith.constant 244 : index
    %780 = memref.load %arg3[%c244] : memref<288xf32, #tpu.memory_space<smem>>
    %781 = vector.broadcast %780 : f32 to vector<6x18xf32>
    %782 = arith.mulf %781, %763 : vector<6x18xf32>
    %783 = arith.addf %749, %782 : vector<6x18xf32>
    %c245 = arith.constant 245 : index
    %784 = memref.load %arg3[%c245] : memref<288xf32, #tpu.memory_space<smem>>
    %785 = vector.broadcast %784 : f32 to vector<6x18xf32>
    %786 = arith.mulf %785, %763 : vector<6x18xf32>
    %787 = arith.addf %753, %786 : vector<6x18xf32>
    %c246 = arith.constant 246 : index
    %788 = memref.load %arg3[%c246] : memref<288xf32, #tpu.memory_space<smem>>
    %789 = vector.broadcast %788 : f32 to vector<6x18xf32>
    %790 = arith.mulf %789, %763 : vector<6x18xf32>
    %791 = arith.addf %757, %790 : vector<6x18xf32>
    %c247 = arith.constant 247 : index
    %792 = memref.load %arg3[%c247] : memref<288xf32, #tpu.memory_space<smem>>
    %793 = vector.broadcast %792 : f32 to vector<6x18xf32>
    %794 = arith.mulf %793, %763 : vector<6x18xf32>
    %795 = arith.addf %761, %794 : vector<6x18xf32>
    %796 = vector.extract_strided_slice %421 {offsets = [3, 2, 0], sizes = [1, 6, 18], strides = [1, 1, 1]} : vector<4x8x18xf32> to vector<1x6x18xf32>
    %797 = vector.shape_cast %796 : vector<1x6x18xf32> to vector<6x18xf32>
    %c248 = arith.constant 248 : index
    %798 = memref.load %arg3[%c248] : memref<288xf32, #tpu.memory_space<smem>>
    %799 = vector.broadcast %798 : f32 to vector<6x18xf32>
    %800 = arith.mulf %799, %797 : vector<6x18xf32>
    %801 = arith.addf %767, %800 : vector<6x18xf32>
    %c249 = arith.constant 249 : index
    %802 = memref.load %arg3[%c249] : memref<288xf32, #tpu.memory_space<smem>>
    %803 = vector.broadcast %802 : f32 to vector<6x18xf32>
    %804 = arith.mulf %803, %797 : vector<6x18xf32>
    %805 = arith.addf %771, %804 : vector<6x18xf32>
    %c250 = arith.constant 250 : index
    %806 = memref.load %arg3[%c250] : memref<288xf32, #tpu.memory_space<smem>>
    %807 = vector.broadcast %806 : f32 to vector<6x18xf32>
    %808 = arith.mulf %807, %797 : vector<6x18xf32>
    %809 = arith.addf %775, %808 : vector<6x18xf32>
    %c251 = arith.constant 251 : index
    %810 = memref.load %arg3[%c251] : memref<288xf32, #tpu.memory_space<smem>>
    %811 = vector.broadcast %810 : f32 to vector<6x18xf32>
    %812 = arith.mulf %811, %797 : vector<6x18xf32>
    %813 = arith.addf %779, %812 : vector<6x18xf32>
    %c252 = arith.constant 252 : index
    %814 = memref.load %arg3[%c252] : memref<288xf32, #tpu.memory_space<smem>>
    %815 = vector.broadcast %814 : f32 to vector<6x18xf32>
    %816 = arith.mulf %815, %797 : vector<6x18xf32>
    %817 = arith.addf %783, %816 : vector<6x18xf32>
    %c253 = arith.constant 253 : index
    %818 = memref.load %arg3[%c253] : memref<288xf32, #tpu.memory_space<smem>>
    %819 = vector.broadcast %818 : f32 to vector<6x18xf32>
    %820 = arith.mulf %819, %797 : vector<6x18xf32>
    %821 = arith.addf %787, %820 : vector<6x18xf32>
    %c254 = arith.constant 254 : index
    %822 = memref.load %arg3[%c254] : memref<288xf32, #tpu.memory_space<smem>>
    %823 = vector.broadcast %822 : f32 to vector<6x18xf32>
    %824 = arith.mulf %823, %797 : vector<6x18xf32>
    %825 = arith.addf %791, %824 : vector<6x18xf32>
    %c255 = arith.constant 255 : index
    %826 = memref.load %arg3[%c255] : memref<288xf32, #tpu.memory_space<smem>>
    %827 = vector.broadcast %826 : f32 to vector<6x18xf32>
    %828 = arith.mulf %827, %797 : vector<6x18xf32>
    %829 = arith.addf %795, %828 : vector<6x18xf32>
    %830 = vector.extract_strided_slice %3 {offsets = [0, 0, 2], sizes = [4, 8, 18], strides = [1, 1, 1]} : vector<4x8x20xf32> to vector<4x8x18xf32>
    %831 = vector.extract_strided_slice %830 {offsets = [0, 0, 0], sizes = [1, 6, 18], strides = [1, 1, 1]} : vector<4x8x18xf32> to vector<1x6x18xf32>
    %832 = vector.shape_cast %831 : vector<1x6x18xf32> to vector<6x18xf32>
    %c64 = arith.constant 64 : index
    %833 = memref.load %arg3[%c64] : memref<288xf32, #tpu.memory_space<smem>>
    %834 = vector.broadcast %833 : f32 to vector<6x18xf32>
    %835 = arith.mulf %834, %832 : vector<6x18xf32>
    %836 = arith.addf %801, %835 : vector<6x18xf32>
    %c65 = arith.constant 65 : index
    %837 = memref.load %arg3[%c65] : memref<288xf32, #tpu.memory_space<smem>>
    %838 = vector.broadcast %837 : f32 to vector<6x18xf32>
    %839 = arith.mulf %838, %832 : vector<6x18xf32>
    %840 = arith.addf %805, %839 : vector<6x18xf32>
    %c66 = arith.constant 66 : index
    %841 = memref.load %arg3[%c66] : memref<288xf32, #tpu.memory_space<smem>>
    %842 = vector.broadcast %841 : f32 to vector<6x18xf32>
    %843 = arith.mulf %842, %832 : vector<6x18xf32>
    %844 = arith.addf %809, %843 : vector<6x18xf32>
    %c67 = arith.constant 67 : index
    %845 = memref.load %arg3[%c67] : memref<288xf32, #tpu.memory_space<smem>>
    %846 = vector.broadcast %845 : f32 to vector<6x18xf32>
    %847 = arith.mulf %846, %832 : vector<6x18xf32>
    %848 = arith.addf %813, %847 : vector<6x18xf32>
    %c68 = arith.constant 68 : index
    %849 = memref.load %arg3[%c68] : memref<288xf32, #tpu.memory_space<smem>>
    %850 = vector.broadcast %849 : f32 to vector<6x18xf32>
    %851 = arith.mulf %850, %832 : vector<6x18xf32>
    %852 = arith.addf %817, %851 : vector<6x18xf32>
    %c69 = arith.constant 69 : index
    %853 = memref.load %arg3[%c69] : memref<288xf32, #tpu.memory_space<smem>>
    %854 = vector.broadcast %853 : f32 to vector<6x18xf32>
    %855 = arith.mulf %854, %832 : vector<6x18xf32>
    %856 = arith.addf %821, %855 : vector<6x18xf32>
    %c70 = arith.constant 70 : index
    %857 = memref.load %arg3[%c70] : memref<288xf32, #tpu.memory_space<smem>>
    %858 = vector.broadcast %857 : f32 to vector<6x18xf32>
    %859 = arith.mulf %858, %832 : vector<6x18xf32>
    %860 = arith.addf %825, %859 : vector<6x18xf32>
    %c71 = arith.constant 71 : index
    %861 = memref.load %arg3[%c71] : memref<288xf32, #tpu.memory_space<smem>>
    %862 = vector.broadcast %861 : f32 to vector<6x18xf32>
    %863 = arith.mulf %862, %832 : vector<6x18xf32>
    %864 = arith.addf %829, %863 : vector<6x18xf32>
    %865 = vector.extract_strided_slice %830 {offsets = [1, 0, 0], sizes = [1, 6, 18], strides = [1, 1, 1]} : vector<4x8x18xf32> to vector<1x6x18xf32>
    %866 = vector.shape_cast %865 : vector<1x6x18xf32> to vector<6x18xf32>
    %c72 = arith.constant 72 : index
    %867 = memref.load %arg3[%c72] : memref<288xf32, #tpu.memory_space<smem>>
    %868 = vector.broadcast %867 : f32 to vector<6x18xf32>
    %869 = arith.mulf %868, %866 : vector<6x18xf32>
    %870 = arith.addf %836, %869 : vector<6x18xf32>
    %c73 = arith.constant 73 : index
    %871 = memref.load %arg3[%c73] : memref<288xf32, #tpu.memory_space<smem>>
    %872 = vector.broadcast %871 : f32 to vector<6x18xf32>
    %873 = arith.mulf %872, %866 : vector<6x18xf32>
    %874 = arith.addf %840, %873 : vector<6x18xf32>
    %c74 = arith.constant 74 : index
    %875 = memref.load %arg3[%c74] : memref<288xf32, #tpu.memory_space<smem>>
    %876 = vector.broadcast %875 : f32 to vector<6x18xf32>
    %877 = arith.mulf %876, %866 : vector<6x18xf32>
    %878 = arith.addf %844, %877 : vector<6x18xf32>
    %c75 = arith.constant 75 : index
    %879 = memref.load %arg3[%c75] : memref<288xf32, #tpu.memory_space<smem>>
    %880 = vector.broadcast %879 : f32 to vector<6x18xf32>
    %881 = arith.mulf %880, %866 : vector<6x18xf32>
    %882 = arith.addf %848, %881 : vector<6x18xf32>
    %c76 = arith.constant 76 : index
    %883 = memref.load %arg3[%c76] : memref<288xf32, #tpu.memory_space<smem>>
    %884 = vector.broadcast %883 : f32 to vector<6x18xf32>
    %885 = arith.mulf %884, %866 : vector<6x18xf32>
    %886 = arith.addf %852, %885 : vector<6x18xf32>
    %c77 = arith.constant 77 : index
    %887 = memref.load %arg3[%c77] : memref<288xf32, #tpu.memory_space<smem>>
    %888 = vector.broadcast %887 : f32 to vector<6x18xf32>
    %889 = arith.mulf %888, %866 : vector<6x18xf32>
    %890 = arith.addf %856, %889 : vector<6x18xf32>
    %c78 = arith.constant 78 : index
    %891 = memref.load %arg3[%c78] : memref<288xf32, #tpu.memory_space<smem>>
    %892 = vector.broadcast %891 : f32 to vector<6x18xf32>
    %893 = arith.mulf %892, %866 : vector<6x18xf32>
    %894 = arith.addf %860, %893 : vector<6x18xf32>
    %c79 = arith.constant 79 : index
    %895 = memref.load %arg3[%c79] : memref<288xf32, #tpu.memory_space<smem>>
    %896 = vector.broadcast %895 : f32 to vector<6x18xf32>
    %897 = arith.mulf %896, %866 : vector<6x18xf32>
    %898 = arith.addf %864, %897 : vector<6x18xf32>
    %899 = vector.extract_strided_slice %830 {offsets = [2, 0, 0], sizes = [1, 6, 18], strides = [1, 1, 1]} : vector<4x8x18xf32> to vector<1x6x18xf32>
    %900 = vector.shape_cast %899 : vector<1x6x18xf32> to vector<6x18xf32>
    %c80 = arith.constant 80 : index
    %901 = memref.load %arg3[%c80] : memref<288xf32, #tpu.memory_space<smem>>
    %902 = vector.broadcast %901 : f32 to vector<6x18xf32>
    %903 = arith.mulf %902, %900 : vector<6x18xf32>
    %904 = arith.addf %870, %903 : vector<6x18xf32>
    %c81 = arith.constant 81 : index
    %905 = memref.load %arg3[%c81] : memref<288xf32, #tpu.memory_space<smem>>
    %906 = vector.broadcast %905 : f32 to vector<6x18xf32>
    %907 = arith.mulf %906, %900 : vector<6x18xf32>
    %908 = arith.addf %874, %907 : vector<6x18xf32>
    %c82 = arith.constant 82 : index
    %909 = memref.load %arg3[%c82] : memref<288xf32, #tpu.memory_space<smem>>
    %910 = vector.broadcast %909 : f32 to vector<6x18xf32>
    %911 = arith.mulf %910, %900 : vector<6x18xf32>
    %912 = arith.addf %878, %911 : vector<6x18xf32>
    %c83 = arith.constant 83 : index
    %913 = memref.load %arg3[%c83] : memref<288xf32, #tpu.memory_space<smem>>
    %914 = vector.broadcast %913 : f32 to vector<6x18xf32>
    %915 = arith.mulf %914, %900 : vector<6x18xf32>
    %916 = arith.addf %882, %915 : vector<6x18xf32>
    %c84 = arith.constant 84 : index
    %917 = memref.load %arg3[%c84] : memref<288xf32, #tpu.memory_space<smem>>
    %918 = vector.broadcast %917 : f32 to vector<6x18xf32>
    %919 = arith.mulf %918, %900 : vector<6x18xf32>
    %920 = arith.addf %886, %919 : vector<6x18xf32>
    %c85 = arith.constant 85 : index
    %921 = memref.load %arg3[%c85] : memref<288xf32, #tpu.memory_space<smem>>
    %922 = vector.broadcast %921 : f32 to vector<6x18xf32>
    %923 = arith.mulf %922, %900 : vector<6x18xf32>
    %924 = arith.addf %890, %923 : vector<6x18xf32>
    %c86 = arith.constant 86 : index
    %925 = memref.load %arg3[%c86] : memref<288xf32, #tpu.memory_space<smem>>
    %926 = vector.broadcast %925 : f32 to vector<6x18xf32>
    %927 = arith.mulf %926, %900 : vector<6x18xf32>
    %928 = arith.addf %894, %927 : vector<6x18xf32>
    %c87 = arith.constant 87 : index
    %929 = memref.load %arg3[%c87] : memref<288xf32, #tpu.memory_space<smem>>
    %930 = vector.broadcast %929 : f32 to vector<6x18xf32>
    %931 = arith.mulf %930, %900 : vector<6x18xf32>
    %932 = arith.addf %898, %931 : vector<6x18xf32>
    %933 = vector.extract_strided_slice %830 {offsets = [3, 0, 0], sizes = [1, 6, 18], strides = [1, 1, 1]} : vector<4x8x18xf32> to vector<1x6x18xf32>
    %934 = vector.shape_cast %933 : vector<1x6x18xf32> to vector<6x18xf32>
    %c88 = arith.constant 88 : index
    %935 = memref.load %arg3[%c88] : memref<288xf32, #tpu.memory_space<smem>>
    %936 = vector.broadcast %935 : f32 to vector<6x18xf32>
    %937 = arith.mulf %936, %934 : vector<6x18xf32>
    %938 = arith.addf %904, %937 : vector<6x18xf32>
    %c89 = arith.constant 89 : index
    %939 = memref.load %arg3[%c89] : memref<288xf32, #tpu.memory_space<smem>>
    %940 = vector.broadcast %939 : f32 to vector<6x18xf32>
    %941 = arith.mulf %940, %934 : vector<6x18xf32>
    %942 = arith.addf %908, %941 : vector<6x18xf32>
    %c90 = arith.constant 90 : index
    %943 = memref.load %arg3[%c90] : memref<288xf32, #tpu.memory_space<smem>>
    %944 = vector.broadcast %943 : f32 to vector<6x18xf32>
    %945 = arith.mulf %944, %934 : vector<6x18xf32>
    %946 = arith.addf %912, %945 : vector<6x18xf32>
    %c91 = arith.constant 91 : index
    %947 = memref.load %arg3[%c91] : memref<288xf32, #tpu.memory_space<smem>>
    %948 = vector.broadcast %947 : f32 to vector<6x18xf32>
    %949 = arith.mulf %948, %934 : vector<6x18xf32>
    %950 = arith.addf %916, %949 : vector<6x18xf32>
    %c92 = arith.constant 92 : index
    %951 = memref.load %arg3[%c92] : memref<288xf32, #tpu.memory_space<smem>>
    %952 = vector.broadcast %951 : f32 to vector<6x18xf32>
    %953 = arith.mulf %952, %934 : vector<6x18xf32>
    %954 = arith.addf %920, %953 : vector<6x18xf32>
    %c93 = arith.constant 93 : index
    %955 = memref.load %arg3[%c93] : memref<288xf32, #tpu.memory_space<smem>>
    %956 = vector.broadcast %955 : f32 to vector<6x18xf32>
    %957 = arith.mulf %956, %934 : vector<6x18xf32>
    %958 = arith.addf %924, %957 : vector<6x18xf32>
    %c94 = arith.constant 94 : index
    %959 = memref.load %arg3[%c94] : memref<288xf32, #tpu.memory_space<smem>>
    %960 = vector.broadcast %959 : f32 to vector<6x18xf32>
    %961 = arith.mulf %960, %934 : vector<6x18xf32>
    %962 = arith.addf %928, %961 : vector<6x18xf32>
    %c95 = arith.constant 95 : index
    %963 = memref.load %arg3[%c95] : memref<288xf32, #tpu.memory_space<smem>>
    %964 = vector.broadcast %963 : f32 to vector<6x18xf32>
    %965 = arith.mulf %964, %934 : vector<6x18xf32>
    %966 = arith.addf %932, %965 : vector<6x18xf32>
    %967 = vector.extract_strided_slice %830 {offsets = [0, 1, 0], sizes = [1, 6, 18], strides = [1, 1, 1]} : vector<4x8x18xf32> to vector<1x6x18xf32>
    %968 = vector.shape_cast %967 : vector<1x6x18xf32> to vector<6x18xf32>
    %c160 = arith.constant 160 : index
    %969 = memref.load %arg3[%c160] : memref<288xf32, #tpu.memory_space<smem>>
    %970 = vector.broadcast %969 : f32 to vector<6x18xf32>
    %971 = arith.mulf %970, %968 : vector<6x18xf32>
    %972 = arith.addf %938, %971 : vector<6x18xf32>
    %c161 = arith.constant 161 : index
    %973 = memref.load %arg3[%c161] : memref<288xf32, #tpu.memory_space<smem>>
    %974 = vector.broadcast %973 : f32 to vector<6x18xf32>
    %975 = arith.mulf %974, %968 : vector<6x18xf32>
    %976 = arith.addf %942, %975 : vector<6x18xf32>
    %c162 = arith.constant 162 : index
    %977 = memref.load %arg3[%c162] : memref<288xf32, #tpu.memory_space<smem>>
    %978 = vector.broadcast %977 : f32 to vector<6x18xf32>
    %979 = arith.mulf %978, %968 : vector<6x18xf32>
    %980 = arith.addf %946, %979 : vector<6x18xf32>
    %c163 = arith.constant 163 : index
    %981 = memref.load %arg3[%c163] : memref<288xf32, #tpu.memory_space<smem>>
    %982 = vector.broadcast %981 : f32 to vector<6x18xf32>
    %983 = arith.mulf %982, %968 : vector<6x18xf32>
    %984 = arith.addf %950, %983 : vector<6x18xf32>
    %c164 = arith.constant 164 : index
    %985 = memref.load %arg3[%c164] : memref<288xf32, #tpu.memory_space<smem>>
    %986 = vector.broadcast %985 : f32 to vector<6x18xf32>
    %987 = arith.mulf %986, %968 : vector<6x18xf32>
    %988 = arith.addf %954, %987 : vector<6x18xf32>
    %c165 = arith.constant 165 : index
    %989 = memref.load %arg3[%c165] : memref<288xf32, #tpu.memory_space<smem>>
    %990 = vector.broadcast %989 : f32 to vector<6x18xf32>
    %991 = arith.mulf %990, %968 : vector<6x18xf32>
    %992 = arith.addf %958, %991 : vector<6x18xf32>
    %c166 = arith.constant 166 : index
    %993 = memref.load %arg3[%c166] : memref<288xf32, #tpu.memory_space<smem>>
    %994 = vector.broadcast %993 : f32 to vector<6x18xf32>
    %995 = arith.mulf %994, %968 : vector<6x18xf32>
    %996 = arith.addf %962, %995 : vector<6x18xf32>
    %c167 = arith.constant 167 : index
    %997 = memref.load %arg3[%c167] : memref<288xf32, #tpu.memory_space<smem>>
    %998 = vector.broadcast %997 : f32 to vector<6x18xf32>
    %999 = arith.mulf %998, %968 : vector<6x18xf32>
    %1000 = arith.addf %966, %999 : vector<6x18xf32>
    %1001 = vector.extract_strided_slice %830 {offsets = [1, 1, 0], sizes = [1, 6, 18], strides = [1, 1, 1]} : vector<4x8x18xf32> to vector<1x6x18xf32>
    %1002 = vector.shape_cast %1001 : vector<1x6x18xf32> to vector<6x18xf32>
    %c168 = arith.constant 168 : index
    %1003 = memref.load %arg3[%c168] : memref<288xf32, #tpu.memory_space<smem>>
    %1004 = vector.broadcast %1003 : f32 to vector<6x18xf32>
    %1005 = arith.mulf %1004, %1002 : vector<6x18xf32>
    %1006 = arith.addf %972, %1005 : vector<6x18xf32>
    %c169 = arith.constant 169 : index
    %1007 = memref.load %arg3[%c169] : memref<288xf32, #tpu.memory_space<smem>>
    %1008 = vector.broadcast %1007 : f32 to vector<6x18xf32>
    %1009 = arith.mulf %1008, %1002 : vector<6x18xf32>
    %1010 = arith.addf %976, %1009 : vector<6x18xf32>
    %c170 = arith.constant 170 : index
    %1011 = memref.load %arg3[%c170] : memref<288xf32, #tpu.memory_space<smem>>
    %1012 = vector.broadcast %1011 : f32 to vector<6x18xf32>
    %1013 = arith.mulf %1012, %1002 : vector<6x18xf32>
    %1014 = arith.addf %980, %1013 : vector<6x18xf32>
    %c171 = arith.constant 171 : index
    %1015 = memref.load %arg3[%c171] : memref<288xf32, #tpu.memory_space<smem>>
    %1016 = vector.broadcast %1015 : f32 to vector<6x18xf32>
    %1017 = arith.mulf %1016, %1002 : vector<6x18xf32>
    %1018 = arith.addf %984, %1017 : vector<6x18xf32>
    %c172 = arith.constant 172 : index
    %1019 = memref.load %arg3[%c172] : memref<288xf32, #tpu.memory_space<smem>>
    %1020 = vector.broadcast %1019 : f32 to vector<6x18xf32>
    %1021 = arith.mulf %1020, %1002 : vector<6x18xf32>
    %1022 = arith.addf %988, %1021 : vector<6x18xf32>
    %c173 = arith.constant 173 : index
    %1023 = memref.load %arg3[%c173] : memref<288xf32, #tpu.memory_space<smem>>
    %1024 = vector.broadcast %1023 : f32 to vector<6x18xf32>
    %1025 = arith.mulf %1024, %1002 : vector<6x18xf32>
    %1026 = arith.addf %992, %1025 : vector<6x18xf32>
    %c174 = arith.constant 174 : index
    %1027 = memref.load %arg3[%c174] : memref<288xf32, #tpu.memory_space<smem>>
    %1028 = vector.broadcast %1027 : f32 to vector<6x18xf32>
    %1029 = arith.mulf %1028, %1002 : vector<6x18xf32>
    %1030 = arith.addf %996, %1029 : vector<6x18xf32>
    %c175 = arith.constant 175 : index
    %1031 = memref.load %arg3[%c175] : memref<288xf32, #tpu.memory_space<smem>>
    %1032 = vector.broadcast %1031 : f32 to vector<6x18xf32>
    %1033 = arith.mulf %1032, %1002 : vector<6x18xf32>
    %1034 = arith.addf %1000, %1033 : vector<6x18xf32>
    %1035 = vector.extract_strided_slice %830 {offsets = [2, 1, 0], sizes = [1, 6, 18], strides = [1, 1, 1]} : vector<4x8x18xf32> to vector<1x6x18xf32>
    %1036 = vector.shape_cast %1035 : vector<1x6x18xf32> to vector<6x18xf32>
    %c176 = arith.constant 176 : index
    %1037 = memref.load %arg3[%c176] : memref<288xf32, #tpu.memory_space<smem>>
    %1038 = vector.broadcast %1037 : f32 to vector<6x18xf32>
    %1039 = arith.mulf %1038, %1036 : vector<6x18xf32>
    %1040 = arith.addf %1006, %1039 : vector<6x18xf32>
    %c177 = arith.constant 177 : index
    %1041 = memref.load %arg3[%c177] : memref<288xf32, #tpu.memory_space<smem>>
    %1042 = vector.broadcast %1041 : f32 to vector<6x18xf32>
    %1043 = arith.mulf %1042, %1036 : vector<6x18xf32>
    %1044 = arith.addf %1010, %1043 : vector<6x18xf32>
    %c178 = arith.constant 178 : index
    %1045 = memref.load %arg3[%c178] : memref<288xf32, #tpu.memory_space<smem>>
    %1046 = vector.broadcast %1045 : f32 to vector<6x18xf32>
    %1047 = arith.mulf %1046, %1036 : vector<6x18xf32>
    %1048 = arith.addf %1014, %1047 : vector<6x18xf32>
    %c179 = arith.constant 179 : index
    %1049 = memref.load %arg3[%c179] : memref<288xf32, #tpu.memory_space<smem>>
    %1050 = vector.broadcast %1049 : f32 to vector<6x18xf32>
    %1051 = arith.mulf %1050, %1036 : vector<6x18xf32>
    %1052 = arith.addf %1018, %1051 : vector<6x18xf32>
    %c180 = arith.constant 180 : index
    %1053 = memref.load %arg3[%c180] : memref<288xf32, #tpu.memory_space<smem>>
    %1054 = vector.broadcast %1053 : f32 to vector<6x18xf32>
    %1055 = arith.mulf %1054, %1036 : vector<6x18xf32>
    %1056 = arith.addf %1022, %1055 : vector<6x18xf32>
    %c181 = arith.constant 181 : index
    %1057 = memref.load %arg3[%c181] : memref<288xf32, #tpu.memory_space<smem>>
    %1058 = vector.broadcast %1057 : f32 to vector<6x18xf32>
    %1059 = arith.mulf %1058, %1036 : vector<6x18xf32>
    %1060 = arith.addf %1026, %1059 : vector<6x18xf32>
    %c182 = arith.constant 182 : index
    %1061 = memref.load %arg3[%c182] : memref<288xf32, #tpu.memory_space<smem>>
    %1062 = vector.broadcast %1061 : f32 to vector<6x18xf32>
    %1063 = arith.mulf %1062, %1036 : vector<6x18xf32>
    %1064 = arith.addf %1030, %1063 : vector<6x18xf32>
    %c183 = arith.constant 183 : index
    %1065 = memref.load %arg3[%c183] : memref<288xf32, #tpu.memory_space<smem>>
    %1066 = vector.broadcast %1065 : f32 to vector<6x18xf32>
    %1067 = arith.mulf %1066, %1036 : vector<6x18xf32>
    %1068 = arith.addf %1034, %1067 : vector<6x18xf32>
    %1069 = vector.extract_strided_slice %830 {offsets = [3, 1, 0], sizes = [1, 6, 18], strides = [1, 1, 1]} : vector<4x8x18xf32> to vector<1x6x18xf32>
    %1070 = vector.shape_cast %1069 : vector<1x6x18xf32> to vector<6x18xf32>
    %c184 = arith.constant 184 : index
    %1071 = memref.load %arg3[%c184] : memref<288xf32, #tpu.memory_space<smem>>
    %1072 = vector.broadcast %1071 : f32 to vector<6x18xf32>
    %1073 = arith.mulf %1072, %1070 : vector<6x18xf32>
    %1074 = arith.addf %1040, %1073 : vector<6x18xf32>
    %c185 = arith.constant 185 : index
    %1075 = memref.load %arg3[%c185] : memref<288xf32, #tpu.memory_space<smem>>
    %1076 = vector.broadcast %1075 : f32 to vector<6x18xf32>
    %1077 = arith.mulf %1076, %1070 : vector<6x18xf32>
    %1078 = arith.addf %1044, %1077 : vector<6x18xf32>
    %c186 = arith.constant 186 : index
    %1079 = memref.load %arg3[%c186] : memref<288xf32, #tpu.memory_space<smem>>
    %1080 = vector.broadcast %1079 : f32 to vector<6x18xf32>
    %1081 = arith.mulf %1080, %1070 : vector<6x18xf32>
    %1082 = arith.addf %1048, %1081 : vector<6x18xf32>
    %c187 = arith.constant 187 : index
    %1083 = memref.load %arg3[%c187] : memref<288xf32, #tpu.memory_space<smem>>
    %1084 = vector.broadcast %1083 : f32 to vector<6x18xf32>
    %1085 = arith.mulf %1084, %1070 : vector<6x18xf32>
    %1086 = arith.addf %1052, %1085 : vector<6x18xf32>
    %c188 = arith.constant 188 : index
    %1087 = memref.load %arg3[%c188] : memref<288xf32, #tpu.memory_space<smem>>
    %1088 = vector.broadcast %1087 : f32 to vector<6x18xf32>
    %1089 = arith.mulf %1088, %1070 : vector<6x18xf32>
    %1090 = arith.addf %1056, %1089 : vector<6x18xf32>
    %c189 = arith.constant 189 : index
    %1091 = memref.load %arg3[%c189] : memref<288xf32, #tpu.memory_space<smem>>
    %1092 = vector.broadcast %1091 : f32 to vector<6x18xf32>
    %1093 = arith.mulf %1092, %1070 : vector<6x18xf32>
    %1094 = arith.addf %1060, %1093 : vector<6x18xf32>
    %c190 = arith.constant 190 : index
    %1095 = memref.load %arg3[%c190] : memref<288xf32, #tpu.memory_space<smem>>
    %1096 = vector.broadcast %1095 : f32 to vector<6x18xf32>
    %1097 = arith.mulf %1096, %1070 : vector<6x18xf32>
    %1098 = arith.addf %1064, %1097 : vector<6x18xf32>
    %c191 = arith.constant 191 : index
    %1099 = memref.load %arg3[%c191] : memref<288xf32, #tpu.memory_space<smem>>
    %1100 = vector.broadcast %1099 : f32 to vector<6x18xf32>
    %1101 = arith.mulf %1100, %1070 : vector<6x18xf32>
    %1102 = arith.addf %1068, %1101 : vector<6x18xf32>
    %1103 = vector.extract_strided_slice %830 {offsets = [0, 2, 0], sizes = [1, 6, 18], strides = [1, 1, 1]} : vector<4x8x18xf32> to vector<1x6x18xf32>
    %1104 = vector.shape_cast %1103 : vector<1x6x18xf32> to vector<6x18xf32>
    %c256 = arith.constant 256 : index
    %1105 = memref.load %arg3[%c256] : memref<288xf32, #tpu.memory_space<smem>>
    %1106 = vector.broadcast %1105 : f32 to vector<6x18xf32>
    %1107 = arith.mulf %1106, %1104 : vector<6x18xf32>
    %1108 = arith.addf %1074, %1107 : vector<6x18xf32>
    %c257 = arith.constant 257 : index
    %1109 = memref.load %arg3[%c257] : memref<288xf32, #tpu.memory_space<smem>>
    %1110 = vector.broadcast %1109 : f32 to vector<6x18xf32>
    %1111 = arith.mulf %1110, %1104 : vector<6x18xf32>
    %1112 = arith.addf %1078, %1111 : vector<6x18xf32>
    %c258 = arith.constant 258 : index
    %1113 = memref.load %arg3[%c258] : memref<288xf32, #tpu.memory_space<smem>>
    %1114 = vector.broadcast %1113 : f32 to vector<6x18xf32>
    %1115 = arith.mulf %1114, %1104 : vector<6x18xf32>
    %1116 = arith.addf %1082, %1115 : vector<6x18xf32>
    %c259 = arith.constant 259 : index
    %1117 = memref.load %arg3[%c259] : memref<288xf32, #tpu.memory_space<smem>>
    %1118 = vector.broadcast %1117 : f32 to vector<6x18xf32>
    %1119 = arith.mulf %1118, %1104 : vector<6x18xf32>
    %1120 = arith.addf %1086, %1119 : vector<6x18xf32>
    %c260 = arith.constant 260 : index
    %1121 = memref.load %arg3[%c260] : memref<288xf32, #tpu.memory_space<smem>>
    %1122 = vector.broadcast %1121 : f32 to vector<6x18xf32>
    %1123 = arith.mulf %1122, %1104 : vector<6x18xf32>
    %1124 = arith.addf %1090, %1123 : vector<6x18xf32>
    %c261 = arith.constant 261 : index
    %1125 = memref.load %arg3[%c261] : memref<288xf32, #tpu.memory_space<smem>>
    %1126 = vector.broadcast %1125 : f32 to vector<6x18xf32>
    %1127 = arith.mulf %1126, %1104 : vector<6x18xf32>
    %1128 = arith.addf %1094, %1127 : vector<6x18xf32>
    %c262 = arith.constant 262 : index
    %1129 = memref.load %arg3[%c262] : memref<288xf32, #tpu.memory_space<smem>>
    %1130 = vector.broadcast %1129 : f32 to vector<6x18xf32>
    %1131 = arith.mulf %1130, %1104 : vector<6x18xf32>
    %1132 = arith.addf %1098, %1131 : vector<6x18xf32>
    %c263 = arith.constant 263 : index
    %1133 = memref.load %arg3[%c263] : memref<288xf32, #tpu.memory_space<smem>>
    %1134 = vector.broadcast %1133 : f32 to vector<6x18xf32>
    %1135 = arith.mulf %1134, %1104 : vector<6x18xf32>
    %1136 = arith.addf %1102, %1135 : vector<6x18xf32>
    %1137 = vector.extract_strided_slice %830 {offsets = [1, 2, 0], sizes = [1, 6, 18], strides = [1, 1, 1]} : vector<4x8x18xf32> to vector<1x6x18xf32>
    %1138 = vector.shape_cast %1137 : vector<1x6x18xf32> to vector<6x18xf32>
    %c264 = arith.constant 264 : index
    %1139 = memref.load %arg3[%c264] : memref<288xf32, #tpu.memory_space<smem>>
    %1140 = vector.broadcast %1139 : f32 to vector<6x18xf32>
    %1141 = arith.mulf %1140, %1138 : vector<6x18xf32>
    %1142 = arith.addf %1108, %1141 : vector<6x18xf32>
    %c265 = arith.constant 265 : index
    %1143 = memref.load %arg3[%c265] : memref<288xf32, #tpu.memory_space<smem>>
    %1144 = vector.broadcast %1143 : f32 to vector<6x18xf32>
    %1145 = arith.mulf %1144, %1138 : vector<6x18xf32>
    %1146 = arith.addf %1112, %1145 : vector<6x18xf32>
    %c266 = arith.constant 266 : index
    %1147 = memref.load %arg3[%c266] : memref<288xf32, #tpu.memory_space<smem>>
    %1148 = vector.broadcast %1147 : f32 to vector<6x18xf32>
    %1149 = arith.mulf %1148, %1138 : vector<6x18xf32>
    %1150 = arith.addf %1116, %1149 : vector<6x18xf32>
    %c267 = arith.constant 267 : index
    %1151 = memref.load %arg3[%c267] : memref<288xf32, #tpu.memory_space<smem>>
    %1152 = vector.broadcast %1151 : f32 to vector<6x18xf32>
    %1153 = arith.mulf %1152, %1138 : vector<6x18xf32>
    %1154 = arith.addf %1120, %1153 : vector<6x18xf32>
    %c268 = arith.constant 268 : index
    %1155 = memref.load %arg3[%c268] : memref<288xf32, #tpu.memory_space<smem>>
    %1156 = vector.broadcast %1155 : f32 to vector<6x18xf32>
    %1157 = arith.mulf %1156, %1138 : vector<6x18xf32>
    %1158 = arith.addf %1124, %1157 : vector<6x18xf32>
    %c269 = arith.constant 269 : index
    %1159 = memref.load %arg3[%c269] : memref<288xf32, #tpu.memory_space<smem>>
    %1160 = vector.broadcast %1159 : f32 to vector<6x18xf32>
    %1161 = arith.mulf %1160, %1138 : vector<6x18xf32>
    %1162 = arith.addf %1128, %1161 : vector<6x18xf32>
    %c270 = arith.constant 270 : index
    %1163 = memref.load %arg3[%c270] : memref<288xf32, #tpu.memory_space<smem>>
    %1164 = vector.broadcast %1163 : f32 to vector<6x18xf32>
    %1165 = arith.mulf %1164, %1138 : vector<6x18xf32>
    %1166 = arith.addf %1132, %1165 : vector<6x18xf32>
    %c271 = arith.constant 271 : index
    %1167 = memref.load %arg3[%c271] : memref<288xf32, #tpu.memory_space<smem>>
    %1168 = vector.broadcast %1167 : f32 to vector<6x18xf32>
    %1169 = arith.mulf %1168, %1138 : vector<6x18xf32>
    %1170 = arith.addf %1136, %1169 : vector<6x18xf32>
    %1171 = vector.extract_strided_slice %830 {offsets = [2, 2, 0], sizes = [1, 6, 18], strides = [1, 1, 1]} : vector<4x8x18xf32> to vector<1x6x18xf32>
    %1172 = vector.shape_cast %1171 : vector<1x6x18xf32> to vector<6x18xf32>
    %c272 = arith.constant 272 : index
    %1173 = memref.load %arg3[%c272] : memref<288xf32, #tpu.memory_space<smem>>
    %1174 = vector.broadcast %1173 : f32 to vector<6x18xf32>
    %1175 = arith.mulf %1174, %1172 : vector<6x18xf32>
    %1176 = arith.addf %1142, %1175 : vector<6x18xf32>
    %c273 = arith.constant 273 : index
    %1177 = memref.load %arg3[%c273] : memref<288xf32, #tpu.memory_space<smem>>
    %1178 = vector.broadcast %1177 : f32 to vector<6x18xf32>
    %1179 = arith.mulf %1178, %1172 : vector<6x18xf32>
    %1180 = arith.addf %1146, %1179 : vector<6x18xf32>
    %c274 = arith.constant 274 : index
    %1181 = memref.load %arg3[%c274] : memref<288xf32, #tpu.memory_space<smem>>
    %1182 = vector.broadcast %1181 : f32 to vector<6x18xf32>
    %1183 = arith.mulf %1182, %1172 : vector<6x18xf32>
    %1184 = arith.addf %1150, %1183 : vector<6x18xf32>
    %c275 = arith.constant 275 : index
    %1185 = memref.load %arg3[%c275] : memref<288xf32, #tpu.memory_space<smem>>
    %1186 = vector.broadcast %1185 : f32 to vector<6x18xf32>
    %1187 = arith.mulf %1186, %1172 : vector<6x18xf32>
    %1188 = arith.addf %1154, %1187 : vector<6x18xf32>
    %c276 = arith.constant 276 : index
    %1189 = memref.load %arg3[%c276] : memref<288xf32, #tpu.memory_space<smem>>
    %1190 = vector.broadcast %1189 : f32 to vector<6x18xf32>
    %1191 = arith.mulf %1190, %1172 : vector<6x18xf32>
    %1192 = arith.addf %1158, %1191 : vector<6x18xf32>
    %c277 = arith.constant 277 : index
    %1193 = memref.load %arg3[%c277] : memref<288xf32, #tpu.memory_space<smem>>
    %1194 = vector.broadcast %1193 : f32 to vector<6x18xf32>
    %1195 = arith.mulf %1194, %1172 : vector<6x18xf32>
    %1196 = arith.addf %1162, %1195 : vector<6x18xf32>
    %c278 = arith.constant 278 : index
    %1197 = memref.load %arg3[%c278] : memref<288xf32, #tpu.memory_space<smem>>
    %1198 = vector.broadcast %1197 : f32 to vector<6x18xf32>
    %1199 = arith.mulf %1198, %1172 : vector<6x18xf32>
    %1200 = arith.addf %1166, %1199 : vector<6x18xf32>
    %c279 = arith.constant 279 : index
    %1201 = memref.load %arg3[%c279] : memref<288xf32, #tpu.memory_space<smem>>
    %1202 = vector.broadcast %1201 : f32 to vector<6x18xf32>
    %1203 = arith.mulf %1202, %1172 : vector<6x18xf32>
    %1204 = arith.addf %1170, %1203 : vector<6x18xf32>
    %1205 = vector.extract_strided_slice %830 {offsets = [3, 2, 0], sizes = [1, 6, 18], strides = [1, 1, 1]} : vector<4x8x18xf32> to vector<1x6x18xf32>
    %1206 = vector.shape_cast %1205 : vector<1x6x18xf32> to vector<6x18xf32>
    %c280 = arith.constant 280 : index
    %1207 = memref.load %arg3[%c280] : memref<288xf32, #tpu.memory_space<smem>>
    %1208 = vector.broadcast %1207 : f32 to vector<6x18xf32>
    %1209 = arith.mulf %1208, %1206 : vector<6x18xf32>
    %1210 = arith.addf %1176, %1209 : vector<6x18xf32>
    %c281 = arith.constant 281 : index
    %1211 = memref.load %arg3[%c281] : memref<288xf32, #tpu.memory_space<smem>>
    %1212 = vector.broadcast %1211 : f32 to vector<6x18xf32>
    %1213 = arith.mulf %1212, %1206 : vector<6x18xf32>
    %1214 = arith.addf %1180, %1213 : vector<6x18xf32>
    %c282 = arith.constant 282 : index
    %1215 = memref.load %arg3[%c282] : memref<288xf32, #tpu.memory_space<smem>>
    %1216 = vector.broadcast %1215 : f32 to vector<6x18xf32>
    %1217 = arith.mulf %1216, %1206 : vector<6x18xf32>
    %1218 = arith.addf %1184, %1217 : vector<6x18xf32>
    %c283 = arith.constant 283 : index
    %1219 = memref.load %arg3[%c283] : memref<288xf32, #tpu.memory_space<smem>>
    %1220 = vector.broadcast %1219 : f32 to vector<6x18xf32>
    %1221 = arith.mulf %1220, %1206 : vector<6x18xf32>
    %1222 = arith.addf %1188, %1221 : vector<6x18xf32>
    %c284 = arith.constant 284 : index
    %1223 = memref.load %arg3[%c284] : memref<288xf32, #tpu.memory_space<smem>>
    %1224 = vector.broadcast %1223 : f32 to vector<6x18xf32>
    %1225 = arith.mulf %1224, %1206 : vector<6x18xf32>
    %1226 = arith.addf %1192, %1225 : vector<6x18xf32>
    %c285 = arith.constant 285 : index
    %1227 = memref.load %arg3[%c285] : memref<288xf32, #tpu.memory_space<smem>>
    %1228 = vector.broadcast %1227 : f32 to vector<6x18xf32>
    %1229 = arith.mulf %1228, %1206 : vector<6x18xf32>
    %1230 = arith.addf %1196, %1229 : vector<6x18xf32>
    %c286 = arith.constant 286 : index
    %1231 = memref.load %arg3[%c286] : memref<288xf32, #tpu.memory_space<smem>>
    %1232 = vector.broadcast %1231 : f32 to vector<6x18xf32>
    %1233 = arith.mulf %1232, %1206 : vector<6x18xf32>
    %1234 = arith.addf %1200, %1233 : vector<6x18xf32>
    %c287 = arith.constant 287 : index
    %1235 = memref.load %arg3[%c287] : memref<288xf32, #tpu.memory_space<smem>>
    %1236 = vector.broadcast %1235 : f32 to vector<6x18xf32>
    %1237 = arith.mulf %1236, %1206 : vector<6x18xf32>
    %1238 = arith.addf %1204, %1237 : vector<6x18xf32>
    %c0_10 = arith.constant 0 : index
    %1239 = memref.load %arg4[%c0_10] : memref<8xf32, #tpu.memory_space<smem>>
    %1240 = vector.broadcast %1239 : f32 to vector<6x18xf32>
    %1241 = arith.mulf %1210, %1240 : vector<6x18xf32>
    %c0_11 = arith.constant 0 : index
    %1242 = memref.load %arg5[%c0_11] : memref<8xf32, #tpu.memory_space<smem>>
    %1243 = vector.broadcast %1242 : f32 to vector<6x18xf32>
    %1244 = arith.addf %1241, %1243 : vector<6x18xf32>
    %cst_12 = arith.constant 0.000000e+00 : f32
    %1245 = vector.broadcast %cst_12 : f32 to vector<6x18xf32>
    %1246 = arith.maximumf %1244, %1245 : vector<6x18xf32>
    %c1_13 = arith.constant 1 : index
    %1247 = memref.load %arg4[%c1_13] : memref<8xf32, #tpu.memory_space<smem>>
    %1248 = vector.broadcast %1247 : f32 to vector<6x18xf32>
    %1249 = arith.mulf %1214, %1248 : vector<6x18xf32>
    %c1_14 = arith.constant 1 : index
    %1250 = memref.load %arg5[%c1_14] : memref<8xf32, #tpu.memory_space<smem>>
    %1251 = vector.broadcast %1250 : f32 to vector<6x18xf32>
    %1252 = arith.addf %1249, %1251 : vector<6x18xf32>
    %cst_15 = arith.constant 0.000000e+00 : f32
    %1253 = vector.broadcast %cst_15 : f32 to vector<6x18xf32>
    %1254 = arith.maximumf %1252, %1253 : vector<6x18xf32>
    %c2_16 = arith.constant 2 : index
    %1255 = memref.load %arg4[%c2_16] : memref<8xf32, #tpu.memory_space<smem>>
    %1256 = vector.broadcast %1255 : f32 to vector<6x18xf32>
    %1257 = arith.mulf %1218, %1256 : vector<6x18xf32>
    %c2_17 = arith.constant 2 : index
    %1258 = memref.load %arg5[%c2_17] : memref<8xf32, #tpu.memory_space<smem>>
    %1259 = vector.broadcast %1258 : f32 to vector<6x18xf32>
    %1260 = arith.addf %1257, %1259 : vector<6x18xf32>
    %cst_18 = arith.constant 0.000000e+00 : f32
    %1261 = vector.broadcast %cst_18 : f32 to vector<6x18xf32>
    %1262 = arith.maximumf %1260, %1261 : vector<6x18xf32>
    %c3_19 = arith.constant 3 : index
    %1263 = memref.load %arg4[%c3_19] : memref<8xf32, #tpu.memory_space<smem>>
    %1264 = vector.broadcast %1263 : f32 to vector<6x18xf32>
    %1265 = arith.mulf %1222, %1264 : vector<6x18xf32>
    %c3_20 = arith.constant 3 : index
    %1266 = memref.load %arg5[%c3_20] : memref<8xf32, #tpu.memory_space<smem>>
    %1267 = vector.broadcast %1266 : f32 to vector<6x18xf32>
    %1268 = arith.addf %1265, %1267 : vector<6x18xf32>
    %cst_21 = arith.constant 0.000000e+00 : f32
    %1269 = vector.broadcast %cst_21 : f32 to vector<6x18xf32>
    %1270 = arith.maximumf %1268, %1269 : vector<6x18xf32>
    %c4_22 = arith.constant 4 : index
    %1271 = memref.load %arg4[%c4_22] : memref<8xf32, #tpu.memory_space<smem>>
    %1272 = vector.broadcast %1271 : f32 to vector<6x18xf32>
    %1273 = arith.mulf %1226, %1272 : vector<6x18xf32>
    %c4_23 = arith.constant 4 : index
    %1274 = memref.load %arg5[%c4_23] : memref<8xf32, #tpu.memory_space<smem>>
    %1275 = vector.broadcast %1274 : f32 to vector<6x18xf32>
    %1276 = arith.addf %1273, %1275 : vector<6x18xf32>
    %cst_24 = arith.constant 0.000000e+00 : f32
    %1277 = vector.broadcast %cst_24 : f32 to vector<6x18xf32>
    %1278 = arith.maximumf %1276, %1277 : vector<6x18xf32>
    %c5_25 = arith.constant 5 : index
    %1279 = memref.load %arg4[%c5_25] : memref<8xf32, #tpu.memory_space<smem>>
    %1280 = vector.broadcast %1279 : f32 to vector<6x18xf32>
    %1281 = arith.mulf %1230, %1280 : vector<6x18xf32>
    %c5_26 = arith.constant 5 : index
    %1282 = memref.load %arg5[%c5_26] : memref<8xf32, #tpu.memory_space<smem>>
    %1283 = vector.broadcast %1282 : f32 to vector<6x18xf32>
    %1284 = arith.addf %1281, %1283 : vector<6x18xf32>
    %cst_27 = arith.constant 0.000000e+00 : f32
    %1285 = vector.broadcast %cst_27 : f32 to vector<6x18xf32>
    %1286 = arith.maximumf %1284, %1285 : vector<6x18xf32>
    %c6_28 = arith.constant 6 : index
    %1287 = memref.load %arg4[%c6_28] : memref<8xf32, #tpu.memory_space<smem>>
    %1288 = vector.broadcast %1287 : f32 to vector<6x18xf32>
    %1289 = arith.mulf %1234, %1288 : vector<6x18xf32>
    %c6_29 = arith.constant 6 : index
    %1290 = memref.load %arg5[%c6_29] : memref<8xf32, #tpu.memory_space<smem>>
    %1291 = vector.broadcast %1290 : f32 to vector<6x18xf32>
    %1292 = arith.addf %1289, %1291 : vector<6x18xf32>
    %cst_30 = arith.constant 0.000000e+00 : f32
    %1293 = vector.broadcast %cst_30 : f32 to vector<6x18xf32>
    %1294 = arith.maximumf %1292, %1293 : vector<6x18xf32>
    %c7_31 = arith.constant 7 : index
    %1295 = memref.load %arg4[%c7_31] : memref<8xf32, #tpu.memory_space<smem>>
    %1296 = vector.broadcast %1295 : f32 to vector<6x18xf32>
    %1297 = arith.mulf %1238, %1296 : vector<6x18xf32>
    %c7_32 = arith.constant 7 : index
    %1298 = memref.load %arg5[%c7_32] : memref<8xf32, #tpu.memory_space<smem>>
    %1299 = vector.broadcast %1298 : f32 to vector<6x18xf32>
    %1300 = arith.addf %1297, %1299 : vector<6x18xf32>
    %cst_33 = arith.constant 0.000000e+00 : f32
    %1301 = vector.broadcast %cst_33 : f32 to vector<6x18xf32>
    %1302 = arith.maximumf %1300, %1301 : vector<6x18xf32>
    %1303 = vector.shape_cast %1246 : vector<6x18xf32> to vector<1x6x18xf32>
    %1304 = vector.shape_cast %1254 : vector<6x18xf32> to vector<1x6x18xf32>
    %1305 = vector.shape_cast %1262 : vector<6x18xf32> to vector<1x6x18xf32>
    %1306 = vector.shape_cast %1270 : vector<6x18xf32> to vector<1x6x18xf32>
    %1307 = vector.shape_cast %1278 : vector<6x18xf32> to vector<1x6x18xf32>
    %1308 = vector.shape_cast %1286 : vector<6x18xf32> to vector<1x6x18xf32>
    %1309 = vector.shape_cast %1294 : vector<6x18xf32> to vector<1x6x18xf32>
    %1310 = vector.shape_cast %1302 : vector<6x18xf32> to vector<1x6x18xf32>
    %1311 = tpu.concatenate %1303, %1304, %1305, %1306, %1307, %1308, %1309, %1310 in 0 : vector<1x6x18xf32>, vector<1x6x18xf32>, vector<1x6x18xf32>, vector<1x6x18xf32>, vector<1x6x18xf32>, vector<1x6x18xf32>, vector<1x6x18xf32>, vector<1x6x18xf32> -> vector<8x6x18xf32>
    %c0_34 = arith.constant 0 : index
    %c0_35 = arith.constant 0 : index
    %c0_36 = arith.constant 0 : index
    %c0_37 = arith.constant 0 : index
    %c0_38 = arith.constant 0 : index
    %1312 = vector.load %arg6[%c0_34, %c0_35, %c0_36, %c0_37, %c0_38] : memref<1x8x1x6x18xf32, #tpu.memory_space<vmem>>, vector<1x8x1x6x18xf32>
    %1313 = vector.shape_cast %1312 : vector<1x8x1x6x18xf32> to vector<8x6x18xf32>
    %1314 = vector.shape_cast %1311 : vector<8x6x18xf32> to vector<1x8x1x6x18xf32>
    tpu.vector_store %arg6[%c0_34, %c0_35, %c0_36, %c0_37, %c0_38], %1314 {strides = array<i32>} : memref<1x8x1x6x18xf32, #tpu.memory_space<vmem>>, vector<1x8x1x6x18xf32>,
    return
  }
  func.func @transform_0(%arg0: i32, %arg1: i32) -> (i32, i32, i32, i32) {
    %c0_i32 = arith.constant 0 : i32
    %c0_i32_0 = arith.constant 0 : i32
    %c0_i32_1 = arith.constant 0 : i32
    %c0_i32_2 = arith.constant 0 : i32
    return %arg0, %c0_i32, %c0_i32_0, %c0_i32_1 : i32, i32, i32, i32
  }
  func.func @transform_1(%arg0: i32, %arg1: i32) -> i32 {
    %c0_i32 = arith.constant 0 : i32
    %c0_i32_0 = arith.constant 0 : i32
    return %c0_i32 : i32
  }
  func.func @transform_2(%arg0: i32, %arg1: i32) -> i32 {
    %c0_i32 = arith.constant 0 : i32
    %c0_i32_0 = arith.constant 0 : i32
    return %c0_i32 : i32
  }
  func.func @transform_3(%arg0: i32, %arg1: i32) -> i32 {
    %c0_i32 = arith.constant 0 : i32
    %c0_i32_0 = arith.constant 0 : i32
    return %c0_i32 : i32
  }
  func.func @transform_4(%arg0: i32, %arg1: i32) -> (i32, i32, i32, i32, i32) {
    %c0_i32 = arith.constant 0 : i32
    %c0_i32_0 = arith.constant 0 : i32
    %c0_i32_1 = arith.constant 0 : i32
    %c0_i32_2 = arith.constant 0 : i32
    return %arg0, %c0_i32, %arg1, %c0_i32_0, %c0_i32_1 : i32, i32, i32, i32, i32
  }
}

</mosaic_0001>

<bundles_post_ra>
// kernel: upblock_forward.3
= control target key start
LH: loop header
LB: loop body
LE: loop exit
PB: predicated region body
PF: predicated region fallthrough
CT: control target
= control target key end

     0   :  { %s5269_s0 = inlined_call_operand.vmem [shape: f32[2,4,20,20], index: 0, kind: input, shape index: {}]   ;;  %s5270_s1 = inlined_call_operand.vmem [shape: f32[288], index: 1, kind: input, shape index: {}]   ;;  %s5271_s2 = inlined_call_operand.vmem [shape: f32[8], index: 2, kind: input, shape index: {}]   ;;  %s5272_s3 = inlined_call_operand.vmem [shape: f32[8], index: 3, kind: input, shape index: {}]   ;;  %s5273_s4 = inlined_call_operand.vmem [shape: f32[2,8,3,6,18], index: 4, kind: output, shape index: {}]  }
   0x1   :  { %5282 = sst [smem:[#allocation73_spill]] %s5269_s0 }
   0x2   :  { %5283 = sst [smem:[#allocation74_spill]] %s5270_s1 }
   0x3   :  { %5284 = sst [smem:[#allocation75_spill]] %s5271_s2 }
   0x4   :  { %5285 = sst [smem:[#allocation76_spill]] %s5272_s3 }
   0x5   :  { %9 = vsyncpa [#allocation3], 0 }
   0x6   :  { %10 = vsyncpa [#allocation5], 0  ;;  %s3280_s15 = smov 0   ;;  %s3282_s16 = smov 0  }
   0x7   :  { %s3284_s17 = smov 0   ;;  %s3286_s18 = smov 0  }
   0x8   :  { %s3288_s19 = smov 0   ;;  %s3290_s20 = smov 0  }
   0x9   :  { %s3292_s21 = smov 0  }
   0xa LB: > { %s2724_s22 = sadd.s32 4294967295, %s3248_s21   ;;  %s25_s23 = sadd.s32 1, %s3240_s19  ;;  %s3248_s21 = sphi %s3292_s21, %s16_s21   ;;  %s3244_s20 = sphi %s3290_s20, %s5459_s20   ;;  %s3240_s19 = sphi %s3288_s19, %s5458_s19   ;;  %s3236_s18 = sphi %s3286_s18, %s5457_s18   ;;  %s3232_s17 = sphi %s3284_s17, %s5456_s17   ;;  %s3228_s16 = sphi %s3282_s16, %s5455_s16   ;;  %s3224_s15 = sphi %s3280_s15, %s5454_s15  }
   0xb   : > { %p26_p0 = scmp.ge.s32.totalorder %s25_s23, 3  ;;  %s28_s24 = sadd.s32 1, %s3244_s20 }
   0xc   : > { %s126_s25 = sadd.s32 1, %s3228_s16  ;;  %p136_p1 = scmp.ne.s32.totalorder %s3228_s16, %s3224_s15 }
   0xd   : > { %s5461_s23 = smov (%p26_p0, %s25_s23), 0  ;;  %s5463_s24 = smov (!%p26_p0, %s28_s24), %s3244_s20 }
   0xe   : > { %s122_s26 = ssub.s32 %s3240_s19, %s5461_s23  ;;  %p137_p2 = scmp.eq.s32.totalorder %s2724_s22, 5 }
   0xf   : > { %p30_p3 = scmp.ge.s32.totalorder %s5463_s24, 2  ;;  %p2726_p4 = scmp.ge.s32.totalorder %s3248_s21, 1 }
  0x10   : > { %p3327_p5 = por %p137_p2, %p136_p1  ;;  %p150_p6 = scmp.lt.s32.totalorder %s3248_s21, 7 }
  0x11   : > { %s5465_s24 = smov (%p30_p3, %s5463_s24), 0  ;;  %p3340_p8 = scmp.eq.s32.totalorder %s2724_s22, 0 }
  0x12   : > { %s5286_s27 = scalar_select %p3327_p5, 1, 0 }
  0x13   : > { %5287 = sst [smem:[#allocation10_spill]] %s5465_s24  ;;  %p3334_p7 = pnand %p2726_p4, %p150_p6 }
  0x14   : > { %s121_s29 = ssub.s32 %s3244_s20, %s5465_s24  ;;  %s5290_s2 = sld [smem:[#allocation75_spill]] }
  0x15   : > { %s5288_s28 = scalar_select %p3334_p7, 1, 0 }
  0x16   : > { %s5289_s30 = scalar_select %p3340_p8, 1, 0 }
  0x17   : > { %s123_s5 = sor.u32 %s122_s26, %s121_s29  ;;  %p3056_p9 = pneg %p3334_p7 }
  0x18   : > { %p124_p10 = scmp.eq.s32.totalorder %s123_s5, 0 }
  0x19   : > { %p3351_p11 = pnand %p3340_p8, %p3056_p9 }
  0x1a   : > { %s174_s8 = sshll.u32 %s5290_s2, 4  ;;  %s175_s8 = int_to_ptr.vmem [resolvable:$true] %s174_s8 }
  0x1b   : > { %s3356_s10 = scalar_select %p124_p10, %s3228_s16, %s126_s25  }
  0x1c   : > { %s3141_s11 = scalar_lea.vmem %s175_s8, 16  ;;  %p3143_p13 = pneg %p3351_p11 }
  0x1d   : > { %p3142_p12 = scmp.ne.s32.totalorder %s175_s8, %s3141_s11  ;;  %p3149_p2 = scmp.lt.s32.totalorder %s175_s8, %s175_s8 }
  0x1e   : > { %p3150_p3 = scmp.lt.s32.totalorder %s3141_s11, %s3141_s11 }
  0x1f   : > { %p3144_p0 = pnand %p3143_p13, %p3142_p12 }
  0x20   : > { %p3151_p4 = por %p3150_p3, %p3149_p2 }
  0x21   : > { %p3145_p1 = pneg %p3144_p0 }
  0x23   : > { %p3152_p6 = pnand %p3151_p4, %p3145_p1 }
  0x25   : > { %3155 = shalt.err (!%p3152_p6)
}
  0x26   : > { %s3250_s12 = smov [#allocation4]   ;;  %s5292_s1 = sld [smem:[#allocation74_spill]] }
  0x27   : > { %3062 = dma.vmem_to_smem (!%p3351_p11), %s175_s8, 16, %s3250_s12, [#allocation5]  }
  0x28   : > { %s5293_s3 = sld [smem:[#allocation76_spill]] }
  0x2c   : > { %s163_s22 = sshll.u32 %s5292_s1, 4  ;;  %s164_s22 = int_to_ptr.vmem [resolvable:$true] %s163_s22 }
  0x2d   : > { %s3156_s5 = scalar_lea.vmem %s164_s22, 48  ;;  %s3163_s6 = scalar_lea.vmem %s164_s22, 64 }
  0x2e   : > { %s185_s29 = sshll.u32 %s5293_s3, 4  ;;  %p3157_p9 = scmp.ne.s32.totalorder %s164_s22, %s3156_s5  ;;  %s186_s29 = int_to_ptr.vmem [resolvable:$true] %s185_s29 }
  0x2f   : > { %p3164_p0 = scmp.lt.s32.totalorder %s164_s22, %s164_s22  ;;  %p3165_p1 = scmp.lt.s32.totalorder %s3163_s6, %s3156_s5 }
  0x30   : > { %p3159_p10 = pnand %p3157_p9, %p3143_p13 }
  0x31   : > { %p3166_p2 = por %p3165_p1, %p3164_p0 }
  0x32   : > { %p3160_p12 = pneg %p3159_p10 }
  0x34   : > { %p3167_p3 = pnand %p3166_p2, %p3160_p12 }
  0x36   : > { %3170 = shalt.err (!%p3167_p3)
}
  0x37   : > { %s3251_s7 = smov [#allocation2]   ;;  %s3171_s8 = scalar_lea.vmem %s186_s29, 16 }
  0x38   : > { %3059 = dma.vmem_to_smem (!%p3351_p11), %s164_s22, 48, %s3251_s7, [#allocation3]  }
  0x39   : > { %p3172_p4 = scmp.ne.s32.totalorder %s186_s29, %s3171_s8  ;;  %p3179_p9 = scmp.lt.s32.totalorder %s186_s29, %s186_s29 }
  0x3a   : > { %p3180_p10 = scmp.lt.s32.totalorder %s3171_s8, %s3171_s8 }
  0x3b   : > { %p3174_p6 = pnand %p3172_p4, %p3143_p13 }
  0x3c   : > { %p3181_p8 = por %p3180_p10, %p3179_p9 }
  0x3d   : > { %p3175_p5 = pneg %p3174_p6 }
  0x3f   : > { %p3182_p7 = pnand %p3181_p8, %p3175_p5 }
  0x41   : > { %3185 = shalt.err (!%p3182_p7)
}
  0x42   : > { %s3252_s11 = smov [#allocation6]   ;;  %p5294_p12 = scmp.ne.s32.totalorder %s5288_s28, 0 }
  0x43   : > { %3065 = dma.vmem_to_smem (!%p3351_p11), %s186_s29, 16, %s3252_s11, [#allocation5]  }
  0x44   : > { %206 = sbr.rel (%p5294_p12) target bundleno = 612 (0x264), region = 36 }
  0x4b   : > { %p5295_p0 = scmp.ne.s32.totalorder %s5289_s30, 0 }
  0x4d   : > { %3215 = dma.done.wait (%p5295_p0), [#allocation3], 48  }
  0x4e   : > { %3217 = vsyncadd (%p5295_p0), [#allocation3], 4294967248 }
  0x4f   : > { %3219 = dma.done.wait (%p5295_p0), [#allocation5], 32  }
  0x50   : > { %3221 = vsyncadd (%p5295_p0), [#allocation5], 4294967264 }
  0x51   : > { %220 = sfence }
  0x52   : > { %p240_p5 = scmp.lt.s32.totalorder %s3236_s18, 1  ;;  %s245_s9 = smul.u32 6, %s3232_s17  ;;  %vm2547_vm0 = vcmask 144384  }
  0x53   : > { %s2834_s28 = sld [smem:[#allocation2 + $0x22]]  ;;  %s2832_s13 = sld [smem:[#allocation2 + $0x20]] }
  0x54   : > { %s241_s12 = scalar_select %p240_p5, %s3236_s18, 1 }
  0x55   : > { %s2835_s14 = sld [smem:[#allocation2 + $0x23]]  ;;  %s2833_s25 = sld [smem:[#allocation2 + $0x21]] }
  0x56   : > { %s3042_s22 = smul.u32 96, %s241_s12  ;;  %s2837_s26 = sld [smem:[#allocation2 + $0x25]] }
  0x57   : > { %s2836_s29 = sld [smem:[#allocation2 + $0x24]]  ;;  %s2839_s8 = sld [smem:[#allocation2 + $0x27]] }
  0x58   : > { %s5296_s0 = sld [smem:[#allocation73_spill]]  ;;  %s2838_s11 = sld [smem:[#allocation2 + $0x26]] }
  0x59   : > { %v844_v0 = vstv %s2834_s28  ;;  %v828_v3 = vstv %s2832_s13  ;;  %s5277_s12 = smov 127   ;;  %s2840_s28 = sld [smem:[#allocation2 + $0x28]] }
  0x5a   : > { %s2843_s13 = sld [smem:[#allocation2 + $0x2b]]  ;;  %s2849_s5 = sld [smem:[#allocation2 + $0x31]] }
  0x5b   : > { %v852_v4 = vstv %s2835_s14  ;;  %v836_v6 = vstv %s2833_s25  ;;  %s2842_s14 = sld [smem:[#allocation2 + $0x2a]]  ;;  %s2844_s25 = sld [smem:[#allocation2 + $0x2c]] }
  0x5c   : > { %v868_v9 = vstv %s2837_s26  ;;  %s2847_s26 = sld [smem:[#allocation2 + $0x2f]]  ;;  %s2848_s6 = sld [smem:[#allocation2 + $0x30]] }
  0x5d   : > { %v860_v10 = vstv %s2836_s29  ;;  %v884_v13 = vstv %s2839_s8  ;;  %s2846_s29 = sld [smem:[#allocation2 + $0x2e]]  ;;  %s2850_s8 = sld [smem:[#allocation2 + $0x32]] }
  0x5e   : > { %s244_s7 = scalar_lea.vmem %s5296_s0, %s3042_s22  ;;  %v876_v14 = vstv %s2838_s11  ;;  %s2845_s22 = sld [smem:[#allocation2 + $0x2d]] }
  0x5f   : > { %s3397_s30 = scalar_lea.vmem %s244_s7, %s245_s9  ;;  %s2841_s9 = sld [smem:[#allocation2 + $0x29]]  ;;  %v892_v19 = vstv %s2840_s28 }
  0x60   : > { %v3400_v1 = vld [vmem:[%s3397_s30] sm:$0xff]  ;;  %v3417_v17 = vld [vmem:[%s3397_s30 + $0x18] sm:$0xff]  ;;  %v916_v22 = vstv %s2843_s13  ;;  %s2851_s7 = sld [smem:[#allocation2 + $0x33]]  ;;  %v3436_v34 = vld [vmem:[%s3397_s30 + $0x30] sm:$0xff]  ;;  %s2853_s11 = sld [smem:[#allocation2 + $0x35]] }
  0x61   : > { %v845_v2 = vmul.f32 %v844_v0, %v3400_v1  ;;  %v829_v5 = vmul.f32 %v828_v3, %v3400_v1  ;;  %v853_v7 = vmul.f32 %v852_v4, %v3400_v1  ;;  %v837_v8 = vmul.f32 %v836_v6, %v3400_v1  ;;  %s2855_s28 = sld [smem:[#allocation2 + $0x37]]  ;;  %s2854_s13 = sld [smem:[#allocation2 + $0x36]]  ;;  %v3455_v51 = vld [vmem:[%s3397_s30 + $0x48] sm:$0xff] }
  0x62   : > { %v869_v11 = vmul.f32 %v868_v9, %v3400_v1  ;;  %v861_v12 = vmul.f32 %v860_v10, %v3400_v1  ;;  %v885_v15 = vmul.f32 %v884_v13, %v3400_v1  ;;  %v877_v16 = vmul.f32 %v876_v14, %v3400_v1  ;;  %s5308_s0 = smov 127   ;;  %s3728_s1 = sld [smem:[#allocation2 + $0xc2]] }
  0x63   : > { %847 = vrot.lane.b32.xlu1 %v845_v2, %s5277_s12  ;;  %831 = vrot.lane.b32.xlu0 %v829_v5, %s5277_s12  ;;  %v893_v21 = vmul.f32 %v892_v19, %v3417_v17  ;;  %v908_v23 = vstv %s2842_s14  ;;  %v917_v24 = vmul.f32 %v916_v22, %v3417_v17  ;;  %v924_v27 = vstv %s2844_s25  ;;  %s2857_s14 = sld [smem:[#allocation2 + $0x39]]  ;;  %s2859_s25 = sld [smem:[#allocation2 + $0x3b]] }
  0x64   : > { %v909_v25 = vmul.f32 %v908_v23, %v3417_v17  ;;  %v932_v26 = vstv %s2845_s22  ;;  %v925_v29 = vmul.f32 %v924_v27, %v3417_v17  ;;  %v948_v30 = vstv %s2847_s26  ;;  %s2856_s22 = sld [smem:[#allocation2 + $0x38]]  ;;  %s2858_s26 = sld [smem:[#allocation2 + $0x3a]] }
  0x65   : > { %v900_v18 = vstv %s2841_s9  ;;  %v933_v28 = vmul.f32 %v932_v26, %v3417_v17  ;;  %v940_v31 = vstv %s2846_s29  ;;  %v949_v32 = vmul.f32 %v948_v30, %v3417_v17  ;;  %s2852_s9 = sld [smem:[#allocation2 + $0x34]]  ;;  %s2861_s29 = sld [smem:[#allocation2 + $0x3d]] }
  0x66   : > { %v901_v20 = vmul.f32 %v900_v18, %v3417_v17  ;;  %v941_v33 = vmul.f32 %v940_v31, %v3417_v17  ;;  %v964_v35 = vstv %s2849_s5  ;;  %v956_v36 = vstv %s2848_s6  ;;  %s2860_s5 = sld [smem:[#allocation2 + $0x3c]]  ;;  %s2863_s6 = sld [smem:[#allocation2 + $0x3f]] }
  0x67   : > { %855 = vrot.lane.b32.xlu1 %v853_v7, %s5277_s12  ;;  %839 = vrot.lane.b32.xlu0 %v837_v8, %s5277_s12  ;;  %v965_v37 = vmul.f32 %v964_v35, %v3436_v34  ;;  %v957_v38 = vmul.f32 %v956_v36, %v3436_v34  ;;  %v980_v39 = vstv %s2851_s7  ;;  %v972_v40 = vstv %s2850_s8  ;;  %s2865_s7 = sld [smem:[#allocation2 + $0x81]]  ;;  %s2862_s8 = sld [smem:[#allocation2 + $0x3e]] }
  0x68   : > { %v981_v41 = vmul.f32 %v980_v39, %v3436_v34  ;;  %v973_v42 = vmul.f32 %v972_v40, %v3436_v34  ;;  %v996_v43 = vstv %s2853_s11  ;;  %v1012_v47 = vstv %s2855_s28  ;;  %s2864_s11 = sld [smem:[#allocation2 + $0x80]]  ;;  %s2866_s28 = sld [smem:[#allocation2 + $0x82]] }
  0x69   : > { %v997_v45 = vmul.f32 %v996_v43, %v3436_v34  ;;  %v1004_v48 = vstv %s2854_s13  ;;  %v1013_v49 = vmul.f32 %v1012_v47, %v3436_v34  ;;  %v1028_v52 = vstv %s2857_s14  ;;  %s2869_s13 = sld [smem:[#allocation2 + $0x85]]  ;;  %s2868_s14 = sld [smem:[#allocation2 + $0x84]] }
  0x6a   : > { %v1005_v50 = vmul.f32 %v1004_v48, %v3436_v34  ;;  %v1020_v53 = vstv %s2856_s22  ;;  %v1029_v54 = vmul.f32 %v1028_v52, %v3455_v51  ;;  %v1044_v56 = vstv %s2859_s25  ;;  %s2871_s22 = sld [smem:[#allocation2 + $0x87]]  ;;  %s2870_s25 = sld [smem:[#allocation2 + $0x86]] }
  0x6b   : > { %871 = vrot.lane.b32.xlu1 %v869_v11, %s5277_s12  ;;  %863 = vrot.lane.b32.xlu0 %v861_v12, %s5277_s12  ;;  %v988_v44 = vstv %s2852_s9  ;;  %v1021_v55 = vmul.f32 %v1020_v53, %v3455_v51  ;;  %v1036_v57 = vstv %s2858_s26  ;;  %v1045_v58 = vmul.f32 %v1044_v56, %v3455_v51  ;;  %s2867_s9 = sld [smem:[#allocation2 + $0x83]]  ;;  %s2873_s26 = sld [smem:[#allocation2 + $0x89]] }
  0x6c   : > { %v989_v46 = vmul.f32 %v988_v44, %v3436_v34  ;;  %v1037_v59 = vmul.f32 %v1036_v57, %v3455_v51  ;;  %v1060_v60 = vstv %s2861_s29  ;;  %v1052_v61 = vstv %s2860_s5  ;;  %s2872_s29 = sld [smem:[#allocation2 + $0x88]]  ;;  %s2875_s5 = sld [smem:[#allocation2 + $0x8b]] }
  0x6d   : > { %v1061_v62 = vmul.f32 %v1060_v60, %v3455_v51  ;;  %v1053_v63 = vmul.f32 %v1052_v61, %v3455_v51  ;;  %v1076_v0 = vstv %s2863_s6  ;;  %v1093_v2 = vstv %s2865_s7  ;;  %s2874_s6 = sld [smem:[#allocation2 + $0x8a]]  ;;  %s2877_s7 = sld [smem:[#allocation2 + $0x8d]] }
  0x6e   : > { %v1068_v3 = vstv %s2862_s8  ;;  %v1084_v4 = vstv %s2864_s11  ;;  %v1077_v5 = vmul.f32 %v1076_v0, %v3455_v51  ;;  %v1094_v6 = vmul.f32 %v1093_v2, %v3400_v1  ;;  %s2876_s8 = sld [smem:[#allocation2 + $0x8c]]  ;;  %s2879_s11 = sld [smem:[#allocation2 + $0x8f]] }
  0x6f   : > { %887 = vrot.lane.b32.xlu1 %v885_v15, %s5277_s12  ;;  %879 = vrot.lane.b32.xlu0 %v877_v16, %s5277_s12  ;;  %v1069_v7 = vmul.f32 %v1068_v3, %v3455_v51  ;;  %v1085_v8 = vmul.f32 %v1084_v4, %v3400_v1  ;;  %v1102_v10 = vstv %s2866_s28  ;;  %v1129_v15 = vstv %s2869_s13  ;;  %s2881_s28 = sld [smem:[#allocation2 + $0x91]]  ;;  %s2880_s13 = sld [smem:[#allocation2 + $0x90]] }
  0x70   : > { %v1096_v11 = vrot.slane %v1094_v6, 1  ;;  %v1103_v14 = vmul.f32 %v1102_v10, %v3400_v1  ;;  %v1120_v16 = vstv %s2868_s14  ;;  %v1130_v19 = vmul.f32 %v1129_v15, %v3400_v1  ;;  %s2883_s14 = sld [smem:[#allocation2 + $0x93]]  ;;  %s4313_s3 = sld [smem:[#allocation2 + $0xe]] }
  0x71   : > { %v1111_v9 = vstv %s2867_s9  ;;  %v1087_v13 = vrot.slane %v1085_v8, 1  ;;  %v1147_v22 = vstv %s2871_s22  ;;  %v1138_v23 = vstv %s2870_s25  ;;  %s2878_s9 = sld [smem:[#allocation2 + $0x8e]]  ;;  %s2882_s22 = sld [smem:[#allocation2 + $0x92]] }
  0x72   : > { %v1112_v12 = vmul.f32 %v1111_v9, %v3400_v1  ;;  %v1139_v27 = vmul.f32 %v1138_v23, %v3400_v1  ;;  %v1183_v35 = vstv %s2875_s5  ;;  %s2885_s25 = sld [smem:[#allocation2 + $0x95]]  ;;  %s2886_s5 = sld [smem:[#allocation2 + $0x96]] }
  0x73   : > { %903 = vrot.lane.b32.xlu1 %v901_v20, %s5277_s12  ;;  %895 = vrot.lane.b32.xlu0 %v893_v21, %s5277_s12  ;;  %v1105_v20 = vrot.slane %v1103_v14, 1  ;;  %v1121_v21 = vmul.f32 %v1120_v16, %v3400_v1  ;;  %v1174_v36 = vstv %s2874_s6  ;;  %s2889_s6 = sld [smem:[#allocation2 + $0x99]]  ;;  %s3952_s2 = sld [smem:[#allocation2 + $0xd3]] }
  0x74   : > { %v1114_v18 = vrot.slane %v1112_v12, 1  ;;  %v1175_v40 = vmul.f32 %v1174_v36, %v3417_v17  ;;  %v1219_v47 = vstv %s2879_s11  ;;  %s2890_s11 = sld [smem:[#allocation2 + $0x9a]]  ;;  %s4428_s24 = sld [smem:[#allocation2 + $0x6e]] }
  0x75   : > { %v1123_v26 = vrot.slane %v1121_v21, 1  ;;  %p5452_p7 = scmp.ne.s32.totalorder %s5286_s27, 0 }
  0x76   : > { %v1255_v60 = vstv %s2883_s14  ;;  %s2894_s14 = sld [smem:[#allocation2 + $0x9e]] }
  0x77   : > { %919 = vrot.lane.b32.xlu1 %v917_v24, %s5277_s12  ;;  %911 = vrot.lane.b32.xlu0 %v909_v25, %s5277_s12  ;;  %v1132_v24 = vrot.slane %v1130_v19, 1  ;;  %v1148_v25 = vmul.f32 %v1147_v22, %v3400_v1  ;;  %v1210_v48 = vstv %s2878_s9  ;;  %v1246_v61 = vstv %s2882_s22  ;;  %s2893_s9 = sld [smem:[#allocation2 + $0x9d]]  ;;  %s2897_s22 = sld [smem:[#allocation2 + $0xe1]] }
  0x78   : > { %v1211_v53 = vmul.f32 %v1210_v48, %v3417_v17  ;;  %v1247_v2 = vmul.f32 %v1246_v61, %v3436_v34  ;;  %v1273_v3 = vstv %s2885_s25  ;;  %v1282_v10 = vstv %s2886_s5  ;;  %s2896_s25 = sld [smem:[#allocation2 + $0xe0]]  ;;  %s2901_s5 = sld [smem:[#allocation2 + $0xe5]] }
  0x79   : > { %v1150_v30 = vrot.slane %v1148_v25, 1  ;;  %v1274_v6 = vmul.f32 %v1273_v3, %v3436_v34  ;;  %v1283_v14 = vmul.f32 %v1282_v10, %v3436_v34  ;;  %v1309_v15 = vstv %s2889_s6  ;;  %s2900_s6 = sld [smem:[#allocation2 + $0xe4]] }
  0x7a   : > { %v1310_v19 = vmul.f32 %v1309_v15, %v3455_v51  ;;  %v1318_v23 = vstv %s2890_s11  ;;  %s3558_s11 = sld [smem:[#allocation2 + $0xe9]] }
  0x7b   : > { %935 = vrot.lane.b32.xlu1 %v933_v28, %s5277_s12  ;;  %927 = vrot.lane.b32.xlu0 %v925_v29, %s5277_s12  ;;  %v1165_v28 = vstv %s2873_s26  ;;  %v1156_v29 = vstv %s2872_s29  ;;  %s2884_s26 = sld [smem:[#allocation2 + $0x94]]  ;;  %s2887_s29 = sld [smem:[#allocation2 + $0x97]] }
  0x7c   : > { %v1166_v31 = vmul.f32 %v1165_v28, %v3417_v17 }
  0x7d   : > { %v1345_v28 = vstv %s2893_s9  ;;  %v1381_v48 = vstv %s2897_s22  ;;  %s3563_s9 = sld [smem:[#allocation2 + $0xe8]]  ;;  %s3591_s22 = sld [smem:[#allocation2 + $0xec]] }
  0x7f   : > { %951 = vrot.lane.b32.xlu1 %v949_v32, %s5277_s12  ;;  %943 = vrot.lane.b32.xlu0 %v941_v33, %s5277_s12  ;;  %v1141_v32 = vrot.slane %v1139_v27, 1  ;;  %v1157_v33 = vmul.f32 %v1156_v29, %v3417_v17  ;;  %v1319_v27 = vmul.f32 %v1318_v23, %v3455_v51 }
  0x81   : > { %v1159_v39 = vrot.slane %v1157_v33, 1  ;;  %v1264_v4 = vstv %s2884_s26  ;;  %v1291_v9 = vstv %s2887_s29  ;;  %s2899_s26 = sld [smem:[#allocation2 + $0xe3]]  ;;  %s2898_s29 = sld [smem:[#allocation2 + $0xe2]] }
  0x82   : > { %v1265_v8 = vmul.f32 %v1264_v4, %v3436_v34  ;;  %v1292_v12 = vmul.f32 %v1291_v9, %v3436_v34 }
  0x83   : > { %967 = vrot.lane.b32.xlu1 %v965_v37, %s5277_s12  ;;  %959 = vrot.lane.b32.xlu0 %v957_v38, %s5277_s12  ;;  %v1168_v37 = vrot.slane %v1166_v31, 1  ;;  %v1184_v38 = vmul.f32 %v1183_v35, %v3417_v17  ;;  %v1346_v31 = vmul.f32 %v1345_v28, %v3455_v51  ;;  %v1444_v15 = vstv %s3563_s9  ;;  %s3639_s9 = sld [smem:[#allocation2 + $0x12]] }
  0x85   : > { %v1186_v43 = vrot.slane %v1184_v38, 1 }
  0x87   : > { %983 = vrot.lane.b32.xlu1 %v981_v41, %s5277_s12  ;;  %975 = vrot.lane.b32.xlu0 %v973_v42, %s5277_s12  ;;  %v1201_v41 = vstv %s2877_s7  ;;  %v1192_v42 = vstv %s2876_s8  ;;  %s2888_s7 = sld [smem:[#allocation2 + $0x98]]  ;;  %s2891_s8 = sld [smem:[#allocation2 + $0x9b]] }
  0x88   : > { %v1202_v44 = vmul.f32 %v1201_v41, %v3417_v17 }
  0x8b   : > { %999 = vrot.lane.b32.xlu1 %v997_v45, %s5277_s12  ;;  %991 = vrot.lane.b32.xlu0 %v989_v46, %s5277_s12  ;;  %v1177_v45 = vrot.slane %v1175_v40, 1  ;;  %v1193_v46 = vmul.f32 %v1192_v42, %v3417_v17 }
  0x8d   : > { %v1195_v52 = vrot.slane %v1193_v46, 1  ;;  %v1300_v16 = vstv %s2888_s7  ;;  %v1327_v22 = vstv %s2891_s8  ;;  %s3545_s7 = sld [smem:[#allocation2 + $0xe7]]  ;;  %s3549_s8 = sld [smem:[#allocation2 + $0xe6]] }
  0x8e   : > { %v1301_v21 = vmul.f32 %v1300_v16, %v3455_v51  ;;  %v1328_v25 = vmul.f32 %v1327_v22, %v3455_v51 }
  0x8f   : > { %1015 = vrot.lane.b32.xlu1 %v1013_v49, %s5277_s12  ;;  %1007 = vrot.lane.b32.xlu0 %v1005_v50, %s5277_s12  ;;  %v1204_v49 = vrot.slane %v1202_v44, 1  ;;  %v1220_v50 = vmul.f32 %v1219_v47, %v3417_v17 }
  0x91   : > { %v1222_v56 = vrot.slane %v1220_v50, 1  ;;  %v1399_v50 = vstv %s2899_s26  ;;  %s3605_s26 = sld [smem:[#allocation2 + $0xee]] }
  0x93   : > { %1031 = vrot.lane.b32.xlu1 %v1029_v54, %s5277_s12  ;;  %1023 = vrot.lane.b32.xlu0 %v1021_v55, %s5277_s12  ;;  %v1237_v54 = vstv %s2881_s28  ;;  %v1228_v55 = vstv %s2880_s13  ;;  %s2892_s28 = sld [smem:[#allocation2 + $0x9c]]  ;;  %s2895_s13 = sld [smem:[#allocation2 + $0x9f]] }
  0x94   : > { %v1238_v57 = vmul.f32 %v1237_v54, %v3436_v34 }
  0x97   : > { %1047 = vrot.lane.b32.xlu1 %v1045_v58, %s5277_s12  ;;  %1039 = vrot.lane.b32.xlu0 %v1037_v59, %s5277_s12  ;;  %v1213_v58 = vrot.slane %v1211_v53, 1  ;;  %v1229_v59 = vmul.f32 %v1228_v55, %v3436_v34  ;;  %v1382_v53 = vmul.f32 %v1381_v48, %v3400_v1  ;;  %v1400_v55 = vmul.f32 %v1399_v50, %v3400_v1 }
  0x99   : > { %v1231_v0 = vrot.slane %v1229_v59, 1  ;;  %v1336_v29 = vstv %s2892_s28  ;;  %v1363_v35 = vstv %s2895_s13  ;;  %s3572_s28 = sld [smem:[#allocation2 + $0xeb]]  ;;  %s3577_s13 = sld [smem:[#allocation2 + $0xea]] }
  0x9a   : > { %v1337_v33 = vmul.f32 %v1336_v29, %v3455_v51  ;;  %v1364_v40 = vmul.f32 %v1363_v35, %v3455_v51 }
  0x9b   : > { %1063 = vrot.lane.b32.xlu1 %v1061_v62, %s5277_s12  ;;  %1055 = vrot.lane.b32.xlu0 %v1053_v63, %s5277_s12  ;;  %v1240_v62 = vrot.slane %v1238_v57, 1  ;;  %v1256_v63 = vmul.f32 %v1255_v60, %v3436_v34  ;;  %v1417_v60 = vstv %s2901_s5  ;;  %s3619_s5 = sld [smem:[#allocation2 + $0xf0]] }
  0x9c   : > { %v1339_v41 = vrot.slane %v1337_v33, 1 }
  0x9f   : > { %1079 = vrot.lane.b32.xlu1 %v1077_v5, %s5277_s12  ;;  %1071 = vrot.lane.b32.xlu0 %v1069_v7, %s5277_s12  ;;  %v1258_v5 = vrot.slane %v1256_v63, 1  ;;  %v1249_v7 = vrot.slane %v1247_v2, 1  ;;  %v1402_v63 = vrot.slane %v1400_v55, 2  ;;  %v1408_v2 = vstv %s2900_s6  ;;  %s3621_s6 = sld [smem:[#allocation2 + $0x2]] }
  0xa0   : > { %v1409_v4 = vmul.f32 %v1408_v2, %v3400_v1  ;;  %v1471_v22 = vstv %s3572_s28  ;;  %s3648_s28 = sld [smem:[#allocation2 + $0xf5]] }
  0xa3   : > { %1097 = vrot.lane.b32.xlu1 %v1096_v11, %s5277_s12  ;;  %1088 = vrot.lane.b32.xlu0 %v1087_v13, %s5277_s12  ;;  %v1276_v11 = vrot.slane %v1274_v6, 1  ;;  %v1267_v13 = vrot.slane %v1265_v8, 1 }
  0xa7   : > { %1115 = vrot.lane.b32.xlu1 %v1114_v18, %s5277_s12  ;;  %1106 = vrot.lane.b32.xlu0 %v1105_v20, %s5277_s12  ;;  %v1294_v18 = vrot.slane %v1292_v12, 1  ;;  %v1285_v20 = vrot.slane %v1283_v14, 1 }
  0xab   : > { %1133 = vrot.lane.b32.xlu1 %v1132_v24, %s5277_s12  ;;  %1124 = vrot.lane.b32.xlu0 %v1123_v26, %s5277_s12  ;;  %v1312_v24 = vrot.slane %v1310_v19, 1  ;;  %v1303_v26 = vrot.slane %v1301_v21, 1  ;;  %v1445_v21 = vmul.f32 %v1444_v15, %v3417_v17 }
  0xad   : > { %v1447_v28 = vrot.slane %v1445_v21, 2 }
  0xaf   : > { %1151 = vrot.lane.b32.xlu1 %v1150_v30, %s5277_s12  ;;  %1142 = vrot.lane.b32.xlu0 %v1141_v32, %s5277_s12  ;;  %v1330_v30 = vrot.slane %v1328_v25, 1  ;;  %v1321_v32 = vrot.slane %v1319_v27, 1  ;;  %v1472_v27 = vmul.f32 %v1471_v22, %v3417_v17 }
  0xb1   : > { %v1474_v35 = vrot.slane %v1472_v27, 2 }
  0xb3   : > { %1169 = vrot.lane.b32.xlu1 %v1168_v37, %s5277_s12  ;;  %1160 = vrot.lane.b32.xlu0 %v1159_v39, %s5277_s12  ;;  %v1354_v37 = vstv %s2894_s14  ;;  %v1348_v39 = vrot.slane %v1346_v31, 1  ;;  %s3586_s14 = sld [smem:[#allocation2 + $0xed]] }
  0xb4   : > { %v1355_v42 = vmul.f32 %v1354_v37, %v3455_v51 }
  0xb6   : > { %v1357_v46 = vrot.slane %v1355_v42, 1 }
  0xb7   : > { %1187 = vrot.lane.b32.xlu1 %v1186_v43, %s5277_s12  ;;  %1178 = vrot.lane.b32.xlu0 %v1177_v45, %s5277_s12  ;;  %v1366_v45 = vrot.slane %v1364_v40, 1 }
  0xbb   : > { %1205 = vrot.lane.b32.xlu1 %v1204_v49, %s5277_s12  ;;  %1196 = vrot.lane.b32.xlu0 %v1195_v52, %s5277_s12  ;;  %v1372_v49 = vstv %s2896_s25  ;;  %s3600_s25 = sld [smem:[#allocation2 + $0xef]] }
  0xbc   : > { %v1373_v54 = vmul.f32 %v1372_v49, %v3400_v1 }
  0xbf   : > { %1223 = vrot.lane.b32.xlu1 %v1222_v56, %s5277_s12  ;;  %1214 = vrot.lane.b32.xlu0 %v1213_v58, %s5277_s12  ;;  %v1390_v56 = vstv %s2898_s29  ;;  %v1384_v58 = vrot.slane %v1382_v53, 2  ;;  %s3614_s29 = sld [smem:[#allocation2 + $0xf1]] }
  0xc0   : > { %v1391_v59 = vmul.f32 %v1390_v56, %v3400_v1  ;;  %v1516_v56 = vstv %s3619_s5  ;;  %s3682_s5 = sld [smem:[#allocation2 + $0x72]] }
  0xc1   : > { %v1517_v2 = vmul.f32 %v1516_v56, %v3436_v34 }
  0xc2   : > { %v1393_v3 = vrot.slane %v1391_v59, 2 }
  0xc3   : > { %1241 = vrot.lane.b32.xlu1 %v1240_v62, %s5277_s12  ;;  %1232 = vrot.lane.b32.xlu0 %v1231_v0, %s5277_s12  ;;  %v1375_v62 = vrot.slane %v1373_v54, 2  ;;  %v1418_v0 = vmul.f32 %v1417_v60, %v3400_v1  ;;  %v1519_v15 = vrot.slane %v1517_v2, 2 }
  0xc5   : > { %v1420_v9 = vrot.slane %v1418_v0, 2  ;;  %v1525_v54 = vstv %s3614_s29  ;;  %s3678_s29 = sld [smem:[#allocation2 + $0x6a]] }
  0xc7   : > { %1259 = vrot.lane.b32.xlu1 %v1258_v5, %s5277_s12  ;;  %1250 = vrot.lane.b32.xlu0 %v1249_v7, %s5277_s12  ;;  %v1435_v5 = vstv %s3545_s7  ;;  %v1426_v7 = vstv %s3549_s8  ;;  %s3623_s7 = sld [smem:[#allocation2 + $0xa]]  ;;  %s3632_s8 = sld [smem:[#allocation2 + $0xf3]] }
  0xc8   : > { %v1436_v10 = vmul.f32 %v1435_v5, %v3400_v1  ;;  %v1427_v12 = vmul.f32 %v1426_v7, %v3400_v1 }
  0xcb   : > { %1277 = vrot.lane.b32.xlu1 %v1276_v11, %s5277_s12  ;;  %1268 = vrot.lane.b32.xlu0 %v1267_v13, %s5277_s12  ;;  %v1411_v11 = vrot.slane %v1409_v4, 2  ;;  %v1453_v13 = vstv %s3558_s11  ;;  %s3637_s11 = sld [smem:[#allocation2 + $0xf2]] }
  0xcc   : > { %v1454_v19 = vmul.f32 %v1453_v13, %v3417_v17 }
  0xcd   : > { %v292_v59 = vstv %s3623_s7  ;;  %s3691_s7 = sld [smem:[#allocation2 + $0xf9]] }
  0xce   : > { %v293_v4 = vmul.f32 %v292_v59, %v3417_v17 }
  0xcf   : > { %1295 = vrot.lane.b32.xlu1 %v1294_v18, %s5277_s12  ;;  %1286 = vrot.lane.b32.xlu0 %v1285_v20, %s5277_s12  ;;  %v1438_v18 = vrot.slane %v1436_v10, 2  ;;  %v1429_v20 = vrot.slane %v1427_v12, 2  ;;  %v324_v10 = vstv %s3639_s9  ;;  %s3703_s9 = sld [smem:[#allocation2 + $0xd2]] }
  0xd3   : > { %1313 = vrot.lane.b32.xlu1 %v1312_v24, %s5277_s12  ;;  %1304 = vrot.lane.b32.xlu0 %v1303_v26, %s5277_s12  ;;  %v1462_v24 = vstv %s3577_s13  ;;  %v1456_v26 = vrot.slane %v1454_v19, 2  ;;  %s3653_s13 = sld [smem:[#allocation2 + $0xf4]]  ;;  %v1561_v19 = vstv %s3648_s28  ;;  %s3707_s28 = sld [smem:[#allocation2 + $0xda]] }
  0xd4   : > { %v1463_v29 = vmul.f32 %v1462_v24, %v3417_v17 }
  0xd5   : > { %v3531_v36 = vpop.permute.xlu1 %847  ;;  %v3533_v38 = vpop.permute.xlu0 %831 }
  0xd7   : > { %1331 = vrot.lane.b32.xlu1 %v1330_v30, %s5277_s12  ;;  %1322 = vrot.lane.b32.xlu0 %v1321_v32, %s5277_s12  ;;  %v1489_v30 = vstv %s3586_s14  ;;  %v1480_v32 = vstv %s3591_s22  ;;  %s3657_s14 = sld [smem:[#allocation2 + $0x1a]] }
  0xd8   : > { %v1490_v37 = vmul.f32 %v1489_v30, %v3417_v17  ;;  %v1481_v40 = vmul.f32 %v1480_v32, %v3417_v17  ;;  %s3659_s22 = sld [smem:[#allocation2 + $0x62]]  ;;  %v1562_v30 = vmul.f32 %v1561_v19, %v3436_v34 }
  0xd9   : > { %v3539_v43 = vpop.permute.xlu1 %855  ;;  %v3541_v44 = vpop.permute.xlu0 %839  ;;  %v1552_v24 = vstv %s3653_s13  ;;  %s3713_s13 = sld [smem:[#allocation2]] }
  0xda   : > { %v1492_v48 = vrot.slane %v1490_v37, 2  ;;  %v1483_v50 = vrot.slane %v1481_v40, 2  ;;  %v1564_v56 = vrot.slane %v1562_v30, 2 }
  0xdb   : > { %1349 = vrot.lane.b32.xlu1 %v1348_v39, %s5277_s12  ;;  %1340 = vrot.lane.b32.xlu0 %v1339_v41, %s5277_s12  ;;  %v1465_v39 = vrot.slane %v1463_v29, 2  ;;  %v1507_v41 = vstv %s3600_s25  ;;  %s3668_s25 = sld [smem:[#allocation2 + $0xf7]] }
  0xdc   : > { %v1508_v49 = vmul.f32 %v1507_v41, %v3417_v17 }
  0xdd   : > { %v3547_v47 = vpop.permute.xlu1 %871  ;;  %v3551_v52 = vpop.permute.xlu0 %863 }
  0xde   : > { %v394_v27 = vstv %s3659_s22  ;;  %s3725_s22 = sld [smem:[#allocation2 + $0xfa]] }
  0xdf   : > { %1367 = vrot.lane.b32.xlu1 %v1366_v45, %s5277_s12  ;;  %1358 = vrot.lane.b32.xlu0 %v1357_v46, %s5277_s12  ;;  %v1498_v45 = vstv %s3605_s26  ;;  %s3675_s26 = sld [smem:[#allocation2 + $0xf6]]  ;;  %v395_v41 = vmul.f32 %v394_v27, %v3400_v1 }
  0xe0   : > { %v1499_v53 = vmul.f32 %v1498_v45, %v3417_v17 }
  0xe1   : > { %v3560_v57 = vpop.permute.xlu1 %887  ;;  %v3565_v61 = vpop.permute.xlu0 %879  ;;  %v1579_v37 = vstv %s3668_s25  ;;  %s3734_s25 = sld [smem:[#allocation2 + $0x10]] }
  0xe2   : > { %v1501_v0 = vrot.slane %v1499_v53, 2  ;;  %v506_v53 = vstv %s3682_s5  ;;  %s3757_s5 = sld [smem:[#allocation2 + $0x18]] }
  0xe3   : > { %1385 = vrot.lane.b32.xlu1 %v1384_v58, %s5277_s12  ;;  %1376 = vrot.lane.b32.xlu0 %v1375_v62, %s5277_s12  ;;  %v260_v58 = vstv %s3621_s6  ;;  %v1510_v62 = vrot.slane %v1508_v49, 2  ;;  %s3684_s6 = sld [smem:[#allocation2 + $0x7a]]  ;;  %v450_v49 = vstv %s3678_s29  ;;  %s3747_s29 = sld [smem:[#allocation2 + $0xfc]] }
  0xe4   : > { %v261_v5 = vmul.f32 %v260_v58, %v3400_v1  ;;  %v1580_v58 = vmul.f32 %v1579_v37, %v3436_v34 }
  0xe5   : > { %v3574_v6 = vpop.permute.xlu1 %903  ;;  %v3579_v8 = vpop.permute.xlu0 %895 }
  0xe6   : > { %v294_v21 = vadd.f32 %v293_v4, %v261_v5 }
  0xe7   : > { %1403 = vrot.lane.b32.xlu1 %v1402_v63, %s5277_s12  ;;  %1394 = vrot.lane.b32.xlu0 %v1393_v3, %s5277_s12  ;;  %v1526_v63 = vmul.f32 %v1525_v54, %v3436_v34  ;;  %v1543_v3 = vstv %s3632_s8  ;;  %s3697_s8 = sld [smem:[#allocation2 + $0xf8]] }
  0xe8   : > { %v1544_v13 = vmul.f32 %v1543_v3, %v3436_v34  ;;  %v397_v3 = vrot.slane %v395_v41, 1  ;;  %v618_v41 = vstv %s3728_s1  ;;  %s3811_s1 = sld [smem:[#allocation2 + $0xc0]] }
  0xe9   : > { %v3588_v14 = vpop.permute.xlu1 %919  ;;  %v3593_v16 = vpop.permute.xlu0 %911  ;;  %v1528_v12 = vrot.slane %v1526_v63, 2  ;;  %v562_v54 = vstv %s3684_s6  ;;  %v1597_v63 = vstv %s3691_s7  ;;  %s3763_s6 = sld [smem:[#allocation2 + $0x60]] }
  0xea   : > { %v1546_v29 = vrot.slane %v1544_v13, 2  ;;  %v730_v13 = vstv %s3703_s9  ;;  %s3768_s7 = sld [smem:[#allocation2 + $0x68]] }
  0xeb   : > { %1421 = vrot.lane.b32.xlu1 %v1420_v9, %s5277_s12  ;;  %1412 = vrot.lane.b32.xlu0 %v1411_v11, %s5277_s12  ;;  %v1534_v9 = vstv %s3637_s11  ;;  %s3701_s11 = sld [smem:[#allocation2 + $0xca]]  ;;  %s3791_s9 = sld [smem:[#allocation2 + $0x78]] }
  0xed   : > { %v3602_v23 = vpop.permute.xlu1 %935  ;;  %v3607_v25 = vpop.permute.xlu0 %927  ;;  %v1588_v5 = vstv %s3697_s8  ;;  %s3778_s8 = sld [smem:[#allocation2 + $0x70]] }
  0xee   : > { %5297 = vst [vmem:[#allocation11_spill] sm:$0xff] %v3607_v25  ;;  %v1589_v27 = vmul.f32 %v1588_v5, %v3455_v51 }
  0xef   : > { %1439 = vrot.lane.b32.xlu1 %v1438_v18, %s5277_s12  ;;  %1430 = vrot.lane.b32.xlu0 %v1429_v20, %s5277_s12  ;;  %v1535_v18 = vmul.f32 %v1534_v9, %v3436_v34  ;;  %v325_v20 = vmul.f32 %v324_v10, %v3436_v34  ;;  %v3750_v9 = vmul.f32 %v506_v53, %v3436_v34 }
  0xf0   : > { %v3753_v10 = vmul.f32 %v562_v54, %v3455_v51  ;;  %v316_v54 = vstv %s3734_s25  ;;  %s3832_s25 = sld [smem:[#allocation2 + $0xb]] }
  0xf1   : > { %v3616_v31 = vpop.permute.xlu1 %951  ;;  %v3625_v33 = vpop.permute.xlu0 %943  ;;  %v1537_v32 = vrot.slane %v1535_v18, 2  ;;  %v326_v40 = vadd.f32 %v325_v20, %v294_v21  ;;  %v786_v18 = vstv %s3707_s28  ;;  %v1582_v20 = vrot.slane %v1580_v58, 2  ;;  %s3793_s28 = sld [smem:[#allocation2 + $0xc8]] }
  0xf2   : > { %5298 = vst [vmem:[#allocation12_spill] sm:$0xff] %v3616_v31  ;;  %5299 = vst [vmem:[#allocation13_spill] sm:$0xff] %v3625_v33  ;;  %v1598_v21 = vmul.f32 %v1597_v63, %v3455_v51 }
  0xf3   : > { %1457 = vrot.lane.b32.xlu1 %v1456_v26, %s5277_s12  ;;  %1448 = vrot.lane.b32.xlu0 %v1447_v28, %s5277_s12  ;;  %v356_v26 = vstv %s3657_s14  ;;  %s3718_s14 = sld [smem:[#allocation2 + $0xfb]] }
  0xf4   : > { %v1600_v58 = vrot.slane %v1598_v21, 2  ;;  %v380_v21 = vstv %s3763_s6  ;;  %s3867_s6 = sld [smem:[#allocation2 + $0x1b]] }
  0xf5   : > { %v3634_v42 = vpop.permute.xlu1 %967  ;;  %v3641_v46 = vpop.permute.xlu0 %959 }
  0xf6   : > { %5300 = vst [vmem:[#allocation14_spill] sm:$0xff] %v3634_v42  ;;  %5301 = vst [vmem:[#allocation15_spill] sm:$0xff] %v3641_v46 }
  0xf7   : > { %1475 = vrot.lane.b32.xlu1 %v1474_v35, %s5277_s12  ;;  %1466 = vrot.lane.b32.xlu0 %v1465_v39, %s5277_s12  ;;  %v1553_v35 = vmul.f32 %v1552_v24, %v3436_v34  ;;  %v357_v39 = vmul.f32 %v356_v26, %v3455_v51  ;;  %v252_v24 = vstv %s3713_s13  ;;  %s3798_s13 = sld [smem:[#allocation2 + $0xd0]] }
  0xf9   : > { %v3650_v55 = vpop.permute.xlu1 %983  ;;  %v3661_v60 = vpop.permute.xlu0 %975  ;;  %v1555_v59 = vrot.slane %v1553_v35, 2  ;;  %v358_v2 = vadd.f32 %v357_v39, %v326_v40  ;;  %v1606_v39 = vstv %s3725_s22  ;;  %v509_v40 = vrot.slane %v3750_v9, 1  ;;  %s3830_s22 = sld [smem:[#allocation2 + $0x3]] }
  0xfa   : > { %5302 = vst [vmem:[#allocation16_spill] sm:$0xff] %v3650_v55  ;;  %5303 = vst [vmem:[#allocation17_spill] sm:$0xff] %v3661_v60  ;;  %v1607_v63 = vmul.f32 %v1606_v39, %v3455_v51  ;;  %v1624_v9 = vstv %s3747_s29  ;;  %s3847_s29 = sld [smem:[#allocation2 + $0x40]] }
  0xfb   : > { %1493 = vrot.lane.b32.xlu1 %v1492_v48, %s5277_s12  ;;  %1484 = vrot.lane.b32.xlu0 %v1483_v50, %s5277_s12  ;;  %v1570_v48 = vstv %s3675_s26  ;;  %s3741_s26 = sld [smem:[#allocation2 + $0xfd]]  ;;  %v399_v35 = vadd.f32 %v397_v3, %v358_v2  ;;  %v565_v2 = vrot.slane %v3753_v10, 1  ;;  %v317_v10 = vmul.f32 %v316_v54, %v3436_v34 }
  0xfc   : > { %v436_v54 = vstv %s3768_s7  ;;  %s3871_s7 = sld [smem:[#allocation2 + $0x43]] }
  0xfd   : > { %v3672_v7 = vpop.permute.xlu1 %999  ;;  %v3680_v11 = vpop.permute.xlu0 %991 }
  0xfe   : > { %5304 = vst [vmem:[#allocation18_spill] sm:$0xff] %v3672_v7  ;;  %5305 = vst [vmem:[#allocation19_spill] sm:$0xff] %v3680_v11 }
  0xff   : > { %1511 = vrot.lane.b32.xlu1 %v1510_v62, %s5277_s12  ;;  %1502 = vrot.lane.b32.xlu0 %v1501_v0, %s5277_s12  ;;  %s3709_s12 = sld [smem:[#allocation2 + $0x8]]  ;;  %v1571_v62 = vmul.f32 %v1570_v48, %v3436_v34  ;;  %v451_v0 = vmul.f32 %v450_v49, %v3417_v17  ;;  %v3788_v48 = vmul.f32 %v730_v13, %v3436_v34  ;;  %v3820_v13 = vld [vmem:[%s3397_s30] sm:$0xff] }
 0x101   : > { %v3694_v22 = vpop.permute.xlu1 %1015  ;;  %v3705_v28 = vpop.permute.xlu0 %1007  ;;  %v1573_v26 = vrot.slane %v1571_v62, 2  ;;  %v453_v30 = vrot.slane %v451_v0, 1  ;;  %v1591_v62 = vrot.slane %v1589_v27, 2  ;;  %v1633_v0 = vstv %s3741_s26  ;;  %s3840_s26 = sld [smem:[#allocation2 + $0x41]] }
 0x102   : > { %5306 = vst [vmem:[#allocation20_spill] sm:$0xff] %v3694_v22  ;;  %5307 = vst [vmem:[#allocation21_spill] sm:$0xff] %v3705_v28  ;;  %v1634_v27 = vmul.f32 %v1633_v0, %v3455_v51  ;;  %v548_v0 = vstv %s3791_s9  ;;  %s3895_s9 = sld [smem:[#allocation2 + $0x9]] }
 0x103   : > { %1529 = vrot.lane.b32.xlu1 %v1528_v12, %s5308_s0  ;;  %1520 = vrot.lane.b32.xlu0 %v1519_v15, %s5308_s0  ;;  %v674_v12 = vstv %s3701_s11  ;;  %s3783_s11 = sld [smem:[#allocation2 + $0xfe]]  ;;  %v455_v3 = vadd.f32 %v453_v30, %v399_v35  ;;  %v1609_v30 = vrot.slane %v1607_v63, 2  ;;  %v1625_v35 = vmul.f32 %v1624_v9, %v3455_v51 }
 0x104   : > { %v381_v63 = vmul.f32 %v3820_v13, %v380_v21  ;;  %v716_v9 = vstv %s3798_s13  ;;  %s3903_s13 = sld [smem:[#allocation2 + $0x73]] }
 0x105   : > { %v3722_v45 = vpop.permute.xlu1 %1031  ;;  %v3730_v50 = vpop.permute.xlu0 %1023  ;;  %v284_v19 = vstv %s3709_s12  ;;  %s3773_s12 = sld [smem:[#allocation2 + $0xff]] }
 0x106   : > { %5309 = vst [vmem:[#allocation22_spill] sm:$0xff] %v3722_v45  ;;  %5310 = vst [vmem:[#allocation23_spill] sm:$0xff] %v3730_v50  ;;  %v285_v49 = vmul.f32 %v284_v19, %v3417_v17  ;;  %v348_v19 = vstv %s3757_s5  ;;  %s3856_s5 = sld [smem:[#allocation2 + $0x13]] }
 0x107   : > { %1547 = vrot.lane.b32.xlu1 %v1546_v29, %s5308_s0  ;;  %1538 = vrot.lane.b32.xlu0 %v1537_v32, %s5308_s0  ;;  %v1615_v29 = vstv %s3718_s14  ;;  %v3776_v32 = vmul.f32 %v674_v12, %v3417_v17  ;;  %v3804_v17 = vmul.f32 %v786_v18, %v3455_v51  ;;  %s3813_s14 = sld [smem:[#allocation2 + $0xd8]]  ;;  %v3823_v18 = vmul.f32 %v3820_v13, %v618_v41 }
 0x108   : > { %v511_v41 = vadd.f32 %v509_v40, %v455_v3  ;;  %v1636_v40 = vrot.slane %v1634_v27, 2 }
 0x109   : > { %v3744_v4 = vpop.permute.xlu1 %1047  ;;  %v3759_v15 = vpop.permute.xlu0 %1039 }
 0x10a   : > { %5311 = vst [vmem:[#allocation24_spill] sm:$0xff] %v3744_v4  ;;  %5312 = vst [vmem:[#allocation25_spill] sm:$0xff] %v3759_v15 }
 0x10b   : > { %1565 = vrot.lane.b32.xlu1 %v1564_v56, %s5308_s0  ;;  %1556 = vrot.lane.b32.xlu0 %v1555_v59, %s5308_s0  ;;  %v253_v56 = vmul.f32 %v252_v24, %v3400_v1  ;;  %v1616_v59 = vmul.f32 %v1615_v29, %v3455_v51  ;;  %v1651_v39 = vstv %s3773_s12  ;;  %v3862_v1 = vld [vmem:[%s3397_s30 + $0x18] sm:$0xff]  ;;  %s3878_s12 = sld [smem:[#allocation2 + $0x63]] }
 0x10c   : > { %v1652_v3 = vmul.f32 %v1651_v39, %v3455_v51 }
 0x10d   : > { %v3780_v37 = vpop.permute.xlu1 %1063  ;;  %v3795_v53 = vpop.permute.xlu0 %1055  ;;  %v286_v24 = vadd.f32 %v285_v49, %v253_v56  ;;  %v349_v49 = vmul.f32 %v348_v19, %v3455_v51  ;;  %v621_v19 = vrot.slane %v3823_v18, 2  ;;  %v604_v18 = vstv %s3811_s1  ;;  %s3910_s1 = sld [smem:[#allocation2 + $0x7b]] }
 0x10e   : > { %5313 = vst [vmem:[#allocation26_spill] sm:$0xff] %v3780_v37  ;;  %5314 = vst [vmem:[#allocation27_spill] sm:$0xff] %v3795_v53  ;;  %v772_v27 = vstv %s3813_s14  ;;  %s3914_s14 = sld [smem:[#allocation2 + $0x45]] }
 0x10f   : > { %1583 = vrot.lane.b32.xlu1 %v1582_v20, %s5308_s0  ;;  %1574 = vrot.lane.b32.xlu0 %v1573_v26, %s5308_s0  ;;  %v1618_v26 = vrot.slane %v1616_v59, 2  ;;  %v492_v59 = vstv %s3778_s8  ;;  %v318_v12 = vadd.f32 %v317_v10, %v286_v24  ;;  %v1627_v10 = vrot.slane %v1625_v35, 2  ;;  %s3882_s8 = sld [smem:[#allocation2 + $0x42]] }
 0x110   : > { %v567_v24 = vadd.f32 %v565_v2, %v511_v41  ;;  %v3891_v2 = vmul.f32 %v716_v9, %v3436_v34  ;;  %v383_v41 = vrot.slane %v381_v63, 1  ;;  %v328_v9 = vstv %s3856_s5  ;;  %s3946_s5 = sld [smem:[#allocation2 + $0x47]] }
 0x111   : > { %v3815_v5 = vpop.permute.xlu1 %1079  ;;  %v3827_v20 = vpop.permute.xlu0 %1071 }
 0x112   : > { %5315 = vst [vmem:[#allocation28_spill] sm:$0xff] %v3815_v5  ;;  %5316 = vst [vmem:[#allocation29_spill] sm:$0xff] %v3827_v20  ;;  %v623_v63 = vadd.f32 %v621_v19, %v567_v24 }
 0x113   : > { %1601 = vrot.lane.b32.xlu1 %v1600_v58, %s5308_s0  ;;  %1592 = vrot.lane.b32.xlu0 %v1591_v62, %s5308_s0  ;;  %v1642_v58 = vstv %s3783_s11  ;;  %v660_v62 = vstv %s3793_s28  ;;  %s3893_s11 = sld [smem:[#allocation2 + $0x1]]  ;;  %s3901_s28 = sld [smem:[#allocation2 + $0x6b]] }
 0x114   : > { %v1643_v21 = vmul.f32 %v1642_v58, %v3455_v51  ;;  %v3888_v35 = vmul.f32 %v3862_v1, %v660_v62  ;;  %v350_v58 = vadd.f32 %v349_v49, %v318_v12  ;;  %v3908_v62 = vmul.f32 %v772_v27, %v3455_v51 }
 0x115   : > { %v3844_v56 = vpop.permute.xlu1 %1097  ;;  %v3853_v29 = vpop.permute.xlu0 %1088  ;;  %v1668_v49 = vstv %s3840_s26  ;;  %s3935_s26 = sld [smem:[#allocation2 + $0xc3]] }
 0x116   : > { %5317 = vst [vmem:[#allocation30_spill] sm:$0xff] %v3844_v56  ;;  %5318 = vst [vmem:[#allocation31_spill] sm:$0xff] %v3853_v29  ;;  %v3865_v56 = vmul.f32 %v3862_v1, %v436_v54  ;;  %v1645_v12 = vrot.slane %v1643_v21, 2  ;;  %v385_v27 = vadd.f32 %v383_v41, %v350_v58  ;;  %v1684_v58 = vstv %s3871_s7  ;;  %s3967_s7 = sld [smem:[#allocation2 + $0x61]] }
 0x117   : > { %1619 = vrot.lane.b32.xlu1 %v1618_v26, %s5308_s0  ;;  %1610 = vrot.lane.b32.xlu0 %v1609_v30, %s5308_s0  ;;  %v3874_v26 = vmul.f32 %v492_v59, %v3436_v34  ;;  %v3885_v30 = vmul.f32 %v548_v0, %v3455_v51  ;;  %v264_v59 = vstv %s3830_s22  ;;  %v1654_v34 = vrot.slane %v1652_v3, 2  ;;  %s3923_s22 = sld [smem:[#allocation2 + $0x44]] }
 0x118   : > { %v439_v0 = vrot.slane %v3865_v56, 1  ;;  %v1660_v56 = vstv %s3847_s29  ;;  %v265_v19 = vmul.f32 %v3820_v13, %v264_v59  ;;  %s3937_s29 = sld [smem:[#allocation2 + $0xcb]]  ;;  %v1676_v59 = vstv %s3882_s8  ;;  %s5279_s8 = smov 126  }
 0x119   : > { %v3880_v39 = vpop.permute.xlu1 %1115  ;;  %v3897_v54 = vpop.permute.xlu0 %1106  ;;  %v1661_v41 = vmul.f32 %v3820_v13, %v1660_v56  ;;  %v457_v29 = vstv %s3901_s28  ;;  %s4003_s28 = sld [smem:[#allocation2 + $0x69]]  ;;  %v5332_v15 = vrot.slane %v3885_v30, 1 }
 0x11a   : > { %5319 = vst [vmem:[#allocation32_spill] sm:$0xff] %v3880_v39  ;;  %5320 = vst [vmem:[#allocation33_spill] sm:$0xff] %v3897_v54  ;;  %v296_v39 = vstv %s3832_s25  ;;  %s3929_s25 = sld [smem:[#allocation2 + $0x11]] }
 0x11b   : > { %1637 = vrot.lane.b32.xlu1 %v1636_v40, %s5308_s0  ;;  %1628 = vrot.lane.b32.xlu0 %v1627_v10, %s5308_s0  ;;  %v3918_v40 = vmul.f32 %v3820_v13, %v604_v18  ;;  %v297_v21 = vmul.f32 %v3862_v1, %v296_v39  ;;  %v1669_v39 = vmul.f32 %v3820_v13, %v1668_v49  ;;  %v360_v10 = vstv %s3867_s6  ;;  %s3957_s6 = sld [smem:[#allocation2 + $0x46]] }
 0x11c   : > { %v5323_v18 = vrot.slane %v3776_v32, 2 }
 0x11d   : > { %v3920_v3 = vpop.permute.xlu1 %1133  ;;  %v3931_v24 = vpop.permute.xlu0 %1124  ;;  %v298_v32 = vadd.f32 %v297_v21, %v265_v19  ;;  %v513_v21 = vstv %s3903_s13  ;;  %v569_v19 = vstv %s3910_s1  ;;  %v1692_v5 = vstv %s3923_s22  ;;  %s4019_s13 = sld [smem:[#allocation2 + $0x71]]  ;;  %s4024_s1 = sld [smem:[#allocation2 + $0x4b]] }
 0x11e   : > { %5321 = vst [vmem:[#allocation34_spill] sm:$0xff] %v3920_v3  ;;  %5322 = vst [vmem:[#allocation35_spill] sm:$0xff] %v3931_v24  ;;  %v679_v51 = vadd.f32 %v5323_v18, %v623_v63  ;;  %v401_v24 = vstv %s3878_s12  ;;  %v256_v63 = vstv %s3893_s11  ;;  %v288_v18 = vstv %s3895_s9  ;;  %v3972_v3 = vld [vmem:[%s3397_s30 + $0x48] sm:$0xff]  ;;  %s3976_s12 = sld [smem:[#allocation2 + $0xdb]]  ;;  %s3985_s11 = sld [smem:[#allocation2 + $0x49]] }
 0x11f   : > { %1655 = vrot.lane.b32.xlu1 %v1654_v34, %s5308_s0  ;;  %1646 = vrot.lane.b32.xlu0 %v1645_v12, %s5308_s0  ;;  %v3960_v12 = vld [vmem:[%s3397_s30 + $0x30] sm:$0xff]  ;;  %s3965_s0 = sld [smem:[#allocation2 + $0x19]]  ;;  %v361_v54 = vmul.f32 %v3972_v3, %v360_v10  ;;  %v5326_v10 = vrot.slane %v3788_v48, 2  ;;  %v289_v20 = vmul.f32 %v3862_v1, %v288_v18  ;;  %s3996_s9 = sld [smem:[#allocation2 + $0x48]]  ;;  %v402_v48 = vmul.f32 %v3820_v13, %v401_v24 }
 0x120   : > { %v329_v56 = vmul.f32 %v3960_v12, %v328_v9  ;;  %v1685_v9 = vmul.f32 %v3820_v13, %v1684_v58  ;;  %s4035_s22 = sld [smem:[#allocation2 + $0x79]] }
 0x121   : > { %v3954_v49 = vpop.permute.xlu1 %1151  ;;  %v3969_v34 = vpop.permute.xlu0 %1142  ;;  %v404_v53 = vrot.slane %v402_v48, 1 }
 0x122   : > { %5324 = vst [vmem:[#allocation36_spill] sm:$0xff] %v3954_v49  ;;  %5325 = vst [vmem:[#allocation37_spill] sm:$0xff] %v3969_v34  ;;  %v441_v49 = vadd.f32 %v439_v0, %v385_v27  ;;  %v1677_v0 = vmul.f32 %v3820_v13, %v1676_v59  ;;  %v1700_v27 = vstv %s3914_s14  ;;  %v3989_v34 = vadd.f32 %v5326_v10, %v679_v51  ;;  %s4031_s14 = sld [smem:[#allocation2 + $0x4a]] }
 0x123   : > { %1671 = vrot.lane.b32.xlu1 %v1669_v39, %s5279_s8  ;;  %1663 = vrot.lane.b32.xlu0 %v1661_v41, %s5279_s8  ;;  %v257_v39 = vmul.f32 %v3820_v13, %v256_v63  ;;  %v3999_v59 = vmul.f32 %v3862_v1, %v457_v29  ;;  %v330_v41 = vadd.f32 %v329_v56, %v298_v32  ;;  %v320_v51 = vstv %s3929_s25  ;;  %s4045_s25 = sld [smem:[#allocation2 + $0xd1]] }
 0x124   : > { %v5329_v63 = vrot.slane %v3874_v26, 1  ;;  %v4013_v29 = vmul.f32 %v3972_v3, %v569_v19  ;;  %v1701_v24 = vmul.f32 %v3820_v13, %v1700_v27  ;;  %v625_v56 = vstv %s3935_s26  ;;  %s4053_s26 = sld [smem:[#allocation2 + $0xd9]] }
 0x125   : > { %v3993_v58 = vpop.permute.xlu1 %1169  ;;  %v4005_v18 = vpop.permute.xlu0 %1160  ;;  %v681_v32 = vstv %s3937_s29  ;;  %v1693_v26 = vmul.f32 %v3820_v13, %v1692_v5  ;;  %v321_v19 = vmul.f32 %v3960_v12, %v320_v51  ;;  %v1708_v27 = vstv %s3957_s6  ;;  %s4058_s29 = sld [smem:[#allocation2 + $0x4d]]  ;;  %s4074_s6 = sld [smem:[#allocation2 + $0xc1]] }
 0x126   : > { %5327 = vst [vmem:[#allocation38_spill] sm:$0xff] %v3993_v58  ;;  %5328 = vst [vmem:[#allocation39_spill] sm:$0xff] %v4005_v18  ;;  %v497_v10 = vadd.f32 %v5329_v63, %v441_v49  ;;  %v4010_v58 = vmul.f32 %v3960_v12, %v513_v21  ;;  %v1716_v49 = vstv %s3946_s5  ;;  %v737_v21 = vstv %s3952_s2  ;;  %s4043_s2 = sld [smem:[#allocation2 + $0xc9]]  ;;  %s4065_s5 = sld [smem:[#allocation2 + $0x4c]] }
 0x127   : > { %1687 = vrot.lane.b32.xlu1 %v1685_v9, %s5279_s8  ;;  %1679 = vrot.lane.b32.xlu0 %v1677_v0, %s5279_s8  ;;  %v290_v9 = vadd.f32 %v289_v20, %v257_v39  ;;  %v362_v18 = vadd.f32 %v361_v54, %v330_v41  ;;  %v352_v37 = vstv %s3965_s0  ;;  %v387_v0 = vstv %s3967_s7  ;;  %s4088_s0 = sld [smem:[#allocation2 + $0xd]]  ;;  %s4093_s7 = sld [smem:[#allocation2 + $0x4f]] }
 0x128   : > { %v553_v4 = vadd.f32 %v5332_v15, %v497_v10  ;;  %v460_v51 = vrot.slane %v3999_v59, 1  ;;  %v793_v20 = vstv %s3976_s12  ;;  %v1717_v54 = vmul.f32 %v3820_v13, %v1716_v49  ;;  %s4096_s12 = sld [smem:[#allocation2 + $0x5]] }
 0x129   : > { %v4028_v63 = vpop.permute.xlu1 %1187  ;;  %v4037_v5 = vpop.permute.xlu0 %1178  ;;  %v4051_v41 = vmul.f32 %v3862_v1, %v681_v32  ;;  %v1709_v15 = vmul.f32 %v3820_v13, %v1708_v27  ;;  %v1732_v30 = vstv %s3985_s11  ;;  %v353_v59 = vmul.f32 %v3972_v3, %v352_v37  ;;  %s4101_s11 = sld [smem:[#allocation2 + $0x4e]] }
 0x12a   : > { %5330 = vst [vmem:[#allocation40_spill] sm:$0xff] %v4028_v63  ;;  %5331 = vst [vmem:[#allocation41_spill] sm:$0xff] %v4037_v5  ;;  %v322_v48 = vadd.f32 %v321_v19, %v290_v9  ;;  %v388_v10 = vmul.f32 %v3820_v13, %v387_v0  ;;  %v1724_v49 = vstv %s3996_s9  ;;  %v4068_v32 = vmul.f32 %v3960_v12, %v737_v21  ;;  %s4112_s9 = sld [smem:[#allocation2 + $0x15]] }
 0x12b   : > { %1703 = vrot.lane.b32.xlu1 %v1701_v24, %s5279_s8  ;;  %1695 = vrot.lane.b32.xlu0 %v1693_v26, %s5279_s8  ;;  %v4071_v26 = vmul.f32 %v3972_v3, %v793_v20  ;;  %v406_v27 = vadd.f32 %v404_v53, %v362_v18  ;;  %v443_v39 = vstv %s4003_s28  ;;  %v5335_v19 = vrot.slane %v3918_v40, 2  ;;  %s4118_s28 = sld [smem:[#allocation2 + $0x6d]] }
 0x12c   : > { %v1733_v21 = vmul.f32 %v3862_v1, %v1732_v30  ;;  %v499_v18 = vstv %s4019_s13  ;;  %v1748_v40 = vstv %s4024_s1  ;;  %v354_v20 = vadd.f32 %v353_v59, %v322_v48  ;;  %s4123_s13 = sld [smem:[#allocation2 + $0x51]]  ;;  %s4128_s1 = sld [smem:[#allocation2 + $0x75]] }
 0x12d   : > { %v4062_v24 = vpop.permute.xlu1 %1205  ;;  %v4076_v37 = vpop.permute.xlu0 %1196  ;;  %v609_v9 = vadd.f32 %v5335_v19, %v553_v4  ;;  %v1725_v4 = vmul.f32 %v3862_v1, %v1724_v49  ;;  %v1740_v19 = vstv %s4031_s14  ;;  %v462_v53 = vadd.f32 %v460_v51, %v406_v27  ;;  %s4133_s14 = sld [smem:[#allocation2 + $0x50]] }
 0x12e   : > { %5333 = vst [vmem:[#allocation42_spill] sm:$0xff] %v4062_v24  ;;  %5334 = vst [vmem:[#allocation43_spill] sm:$0xff] %v4076_v37  ;;  %v4082_v24 = vmul.f32 %v3820_v13, %v625_v56  ;;  %v444_v56 = vmul.f32 %v3862_v1, %v443_v39  ;;  %v555_v0 = vstv %s4035_s22  ;;  %v5338_v39 = vrot.slane %v3888_v35, 2  ;;  %s4144_s22 = sld [smem:[#allocation2 + $0x1d]] }
 0x12f   : > { %1719 = vrot.lane.b32.xlu1 %v1717_v54, %s5279_s8  ;;  %1711 = vrot.lane.b32.xlu0 %v1709_v15, %s5279_s8  ;;  %v390_v54 = vrot.slane %v388_v10, 1  ;;  %v667_v48 = vstv %s4043_s2  ;;  %v723_v10 = vstv %s4045_s25  ;;  %v1749_v5 = vmul.f32 %v3862_v1, %v1748_v40  ;;  %s4146_s2 = sld [smem:[#allocation2 + $0x7d]] }
 0x130   : > { %v665_v59 = vadd.f32 %v5338_v39, %v609_v9  ;;  %v500_v15 = vmul.f32 %v3960_v12, %v499_v18  ;;  %v779_v49 = vstv %s4053_s26  ;;  %v1741_v35 = vmul.f32 %v3862_v1, %v1740_v19  ;;  %s4158_s25 = sld [smem:[#allocation2 + $0x65]] }
 0x131   : > { %v4098_v30 = vpop.permute.xlu1 %1223  ;;  %v4106_v37 = vpop.permute.xlu0 %1214  ;;  %v1764_v51 = vstv %s4058_s29  ;;  %v446_v27 = vrot.slane %v444_v56, 1  ;;  %v4126_v9 = vmul.f32 %v3972_v3, %v555_v0  ;;  %v1756_v18 = vstv %s4065_s5  ;;  %s4160_s26 = sld [smem:[#allocation2 + $0xcd]]  ;;  %s4168_s29 = sld [smem:[#allocation2 + $0x53]] }
 0x132   : > { %5336 = vst [vmem:[#allocation44_spill] sm:$0xff] %v4098_v30  ;;  %5337 = vst [vmem:[#allocation45_spill] sm:$0xff] %v4106_v37  ;;  %v5340_v39 = vrot.slane %v4010_v58, 1  ;;  %v611_v19 = vstv %s4074_s6  ;;  %v4139_v37 = vmul.f32 %v3862_v1, %v667_v48  ;;  %v4142_v0 = vmul.f32 %v3960_v12, %v723_v10  ;;  %s4177_s5 = sld [smem:[#allocation2 + $0x52]]  ;;  %s4184_s6 = sld [smem:[#allocation2 + $0xd5]] }
 0x133   : > { %1735 = vrot.lane.b32.xlu1 %v1733_v21, %s5279_s8  ;;  %1727 = vrot.lane.b32.xlu0 %v1725_v4, %s5279_s8  ;;  %v392_v21 = vadd.f32 %v390_v54, %v354_v20  ;;  %v5342_v20 = vrot.slane %v3891_v2, 2  ;;  %v4156_v54 = vmul.f32 %v3972_v3, %v779_v49  ;;  %v1765_v48 = vmul.f32 %v3862_v1, %v1764_v51 }
 0x134   : > { %v518_v4 = vadd.f32 %v5340_v39, %v462_v53  ;;  %v628_v53 = vrot.slane %v4082_v24, 2  ;;  %v502_v10 = vrot.slane %v500_v15, 1  ;;  %v304_v39 = vstv %s4088_s0  ;;  %s4191_s0 = sld [smem:[#allocation2 + $0xc5]] }
 0x135   : > { %v4130_v40 = vpop.permute.xlu1 %1241  ;;  %v4148_v56 = vpop.permute.xlu0 %1232  ;;  %v4152_v58 = vadd.f32 %v5342_v20, %v665_v59  ;;  %v1757_v2 = vmul.f32 %v3862_v1, %v1756_v18  ;;  %v1780_v59 = vstv %s4093_s7  ;;  %v448_v24 = vadd.f32 %v446_v27, %v392_v21  ;;  %s4193_s7 = sld [smem:[#allocation2 + $0xdd]] }
 0x136   : > { %5339 = vst [vmem:[#allocation46_spill] sm:$0xff] %v4130_v40  ;;  %5341 = vst [vmem:[#allocation47_spill] sm:$0xff] %v4148_v56  ;;  %v4171_v49 = vmul.f32 %v3820_v13, %v611_v19  ;;  %v272_v20 = vstv %s4096_s12  ;;  %v5344_v15 = vrot.slane %v4013_v29, 1  ;;  %v558_v51 = vrot.slane %v4126_v9, 1  ;;  %s4202_s12 = sld [smem:[#allocation2 + $0x55]] }
 0x137   : > { %1751 = vrot.lane.b32.xlu1 %v1749_v5, %s5279_s8  ;;  %1743 = vrot.lane.b32.xlu0 %v1741_v35, %s5279_s8  ;;  %v1772_v5 = vstv %s4101_s11  ;;  %v336_v40 = vstv %s4112_s9  ;;  %v1781_v29 = vmul.f32 %v3862_v1, %v1780_v59  ;;  %v504_v19 = vadd.f32 %v502_v10, %v448_v24  ;;  %s4209_s11 = sld [smem:[#allocation2 + $0x54]] }
 0x138   : > { %v574_v35 = vadd.f32 %v5344_v15, %v518_v4  ;;  %v471_v9 = vstv %s4118_s28  ;;  %v273_v4 = vmul.f32 %v3820_v13, %v272_v20  ;;  %v1796_v15 = vstv %s4123_s13  ;;  %s4214_s9 = sld [smem:[#allocation2 + $0xc]] }
 0x139   : > { %v4174_v56 = vpop.permute.xlu1 %1259  ;;  %v4186_v21 = vpop.permute.xlu0 %1250  ;;  %v614_v27 = vrot.slane %v4171_v49, 2  ;;  %v1788_v59 = vstv %s4133_s14  ;;  %v337_v20 = vmul.f32 %v3960_v12, %v336_v40  ;;  %v583_v30 = vstv %s4146_s2  ;;  %s4223_s28 = sld [smem:[#allocation2 + $0x6c]]  ;;  %s4237_s14 = sld [smem:[#allocation2 + $0x57]] }
 0x13a   : > { %5343 = vst [vmem:[#allocation48_spill] sm:$0xff] %v4174_v56  ;;  %5345 = vst [vmem:[#allocation49_spill] sm:$0xff] %v4186_v21  ;;  %v305_v56 = vmul.f32 %v3862_v1, %v304_v39  ;;  %v1773_v39 = vmul.f32 %v3862_v1, %v1772_v5  ;;  %v630_v21 = vadd.f32 %v628_v53, %v574_v35  ;;  %v415_v63 = vstv %s4158_s25  ;;  %s4225_s13 = sld [smem:[#allocation2 + $0x74]]  ;;  %s4248_s2 = sld [smem:[#allocation2 + $0x56]] }
 0x13b   : > { %1767 = vrot.lane.b32.xlu1 %v1765_v48, %s5279_s8  ;;  %1759 = vrot.lane.b32.xlu0 %v1757_v2, %s5279_s8  ;;  %v527_v48 = vstv %s4128_s1  ;;  %v368_v2 = vstv %s4144_s22  ;;  %v4220_v10 = vmul.f32 %v3862_v1, %v471_v9  ;;  %v1797_v40 = vmul.f32 %v3960_v12, %v1796_v15  ;;  %s4232_s1 = sld [smem:[#allocation2 + $0x14]] }
 0x13c   : > { %v695_v24 = vstv %s4160_s26  ;;  %v4230_v53 = vmul.f32 %v3960_v12, %v527_v48  ;;  %v306_v49 = vadd.f32 %v305_v56, %v273_v4  ;;  %v1789_v35 = vmul.f32 %v3960_v12, %v1788_v59  ;;  %s4243_s22 = sld [smem:[#allocation2 + $0x4]] }
 0x13d   : > { %v4206_v18 = vpop.permute.xlu1 %1277  ;;  %v4216_v5 = vpop.permute.xlu0 %1268  ;;  %v1812_v9 = vstv %s4168_s29  ;;  %v4241_v15 = vmul.f32 %v3972_v3, %v583_v30  ;;  %v1804_v4 = vstv %s4177_s5  ;;  %v4255_v59 = vmul.f32 %v3862_v1, %v695_v24  ;;  %s4261_s25 = sld [smem:[#allocation2 + $0x1c]]  ;;  %s4278_s5 = sld [smem:[#allocation2 + $0x59]] }
 0x13e   : > { %5346 = vst [vmem:[#allocation50_spill] sm:$0xff] %v4206_v18  ;;  %5347 = vst [vmem:[#allocation51_spill] sm:$0xff] %v4216_v5  ;;  %v560_v5 = vadd.f32 %v558_v51, %v504_v19  ;;  %v751_v51 = vstv %s4184_s6  ;;  %v4259_v19 = vmul.f32 %v3820_v13, %v415_v63  ;;  %s4263_s26 = sld [smem:[#allocation2 + $0x7c]]  ;;  %v639_v18 = vstv %s4191_s0  ;;  %s4289_s0 = sld [smem:[#allocation2 + $0x58]] }
 0x13f   : > { %1783 = vrot.lane.b32.xlu1 %v1781_v29, %s5279_s8  ;;  %1775 = vrot.lane.b32.xlu0 %v1773_v39, %s5279_s8  ;;  %v369_v29 = vmul.f32 %v3972_v3, %v368_v2  ;;  %v5349_v39 = vrot.slane %v4051_v41, 2  ;;  %v807_v41 = vstv %s4193_s7  ;;  %s4273_s29 = sld [smem:[#allocation2 + $0xcc]]  ;;  %v1805_v63 = vmul.f32 %v3960_v12, %v1804_v4 }
 0x140   : > { %v616_v2 = vadd.f32 %v614_v27, %v560_v5  ;;  %s4284_s6 = sld [smem:[#allocation2 + $0x64]]  ;;  %v4293_v4 = vmul.f32 %v3972_v3, %v807_v41  ;;  %v418_v27 = vrot.slane %v4259_v19, 1  ;;  %v4297_v5 = vmul.f32 %v3820_v13, %v639_v18 }
 0x141   : > { %v4245_v56 = vpop.permute.xlu1 %1295  ;;  %v4252_v48 = vadd.f32 %v5349_v39, %v630_v21  ;;  %v4265_v30 = vpop.permute.xlu0 %1286  ;;  %v1813_v21 = vmul.f32 %v3960_v12, %v1812_v9  ;;  %v338_v39 = vadd.f32 %v337_v20, %v306_v49  ;;  %v4282_v9 = vmul.f32 %v3960_v12, %v751_v51  ;;  %s4299_s7 = sld [smem:[#allocation2 + $0xc4]] }
 0x142   : > { %5348 = vst [vmem:[#allocation52_spill] sm:$0xff] %v4245_v56  ;;  %5350 = vst [vmem:[#allocation53_spill] sm:$0xff] %v4265_v30  ;;  %v1828_v30 = vstv %s4202_s12  ;;  %v1820_v49 = vstv %s4209_s11  ;;  %v464_v24 = vstv %s4223_s28  ;;  %s4306_s12 = sld [smem:[#allocation2 + $0x7]]  ;;  %v332_v41 = vstv %s4232_s1  ;;  %s4324_s28 = sld [smem:[#allocation2 + $0x6]] }
 0x143   : > { %1799 = vrot.lane.b32.xlu1 %v1797_v40, %s5279_s8  ;;  %1791 = vrot.lane.b32.xlu0 %v1789_v35, %s5279_s8  ;;  %v300_v40 = vstv %s4214_s9  ;;  %s4308_s11 = sld [smem:[#allocation2 + $0xf]]  ;;  %v1829_v19 = vmul.f32 %v3960_v12, %v1828_v30  ;;  %v370_v18 = vadd.f32 %v369_v29, %v338_v39  ;;  %v1821_v35 = vmul.f32 %v3960_v12, %v1820_v49  ;;  %s4318_s9 = sld [smem:[#allocation2 + $0x5b]] }
 0x144   : > { %v5353_v56 = vrot.slane %v4139_v37, 2  ;;  %v268_v45 = vstv %s4243_s22  ;;  %v1836_v30 = vstv %s4248_s2  ;;  %v364_v39 = vstv %s4261_s25  ;;  %s4339_s1 = sld [smem:[#allocation2 + $0xd4]]  ;;  %s4352_s22 = sld [smem:[#allocation2 + $0x17]] }
 0x145   : > { %v4286_v20 = vpop.permute.xlu1 %1313  ;;  %v4301_v51 = vpop.permute.xlu0 %1304  ;;  %v576_v37 = vstv %s4263_s26  ;;  %v688_v28 = vstv %s4273_s29  ;;  %s4357_s2 = sld [smem:[#allocation2 + $0x16]]  ;;  %s4362_s25 = sld [smem:[#allocation2 + $0x5d]] }
 0x146   : > { %5351 = vst [vmem:[#allocation54_spill] sm:$0xff] %v4286_v20  ;;  %5352 = vst [vmem:[#allocation55_spill] sm:$0xff] %v4301_v51  ;;  %v520_v20 = vstv %s4225_s13  ;;  %v1844_v51 = vstv %s4237_s14  ;;  %v672_v50 = vadd.f32 %v5353_v56, %v616_v2  ;;  %s4329_s13 = sld [smem:[#allocation2 + $0x5a]]  ;;  %s4341_s14 = sld [smem:[#allocation2 + $0xdc]]  ;;  %v1860_v2 = vstv %s4278_s5 }
 0x147   : > { %1815 = vrot.lane.b32.xlu1 %v1813_v21, %s5279_s8  ;;  %1807 = vrot.lane.b32.xlu0 %v1805_v63, %s5279_s8  ;;  %v4333_v63 = vmul.f32 %v3862_v1, %v464_v24  ;;  %v4336_v49 = vmul.f32 %v3960_v12, %v520_v20  ;;  %v4347_v21 = vmul.f32 %v3862_v1, %v300_v40  ;;  %s4374_s26 = sld [smem:[#allocation2 + $0x5c]]  ;;  %s4383_s29 = sld [smem:[#allocation2 + $0x1f]] }
 0x148   : > { %v4350_v24 = vmul.f32 %v3960_v12, %v332_v41  ;;  %v1845_v20 = vmul.f32 %v3960_v12, %v1844_v51  ;;  %v1837_v40 = vmul.f32 %v3960_v12, %v1836_v30  ;;  %v4365_v41 = vmul.f32 %v3972_v3, %v364_v39  ;;  %s4385_s5 = sld [smem:[#allocation2 + $0x67]] }
 0x149   : > { %v4326_v29 = vpop.permute.xlu1 %1331  ;;  %v4343_v56 = vpop.permute.xlu0 %1322  ;;  %v4369_v51 = vmul.f32 %v3972_v3, %v576_v37  ;;  %v312_v11 = vstv %s4308_s11  ;;  %v1876_v39 = vstv %s4318_s9  ;;  %s4410_s11 = sld [smem:[#allocation2 + $0xa1]]  ;;  %s4425_s9 = sld [smem:[#allocation2 + $0x6f]] }
 0x14a   : > { %5354 = vst [vmem:[#allocation56_spill] sm:$0xff] %v4326_v29  ;;  %5355 = vst [vmem:[#allocation57_spill] sm:$0xff] %v4343_v56  ;;  %v420_v29 = vadd.f32 %v418_v27, %v370_v18  ;;  %v1852_v18 = vstv %s4289_s0  ;;  %s4396_s0 = sld [smem:[#allocation2 + $0x66]]  ;;  %v344_v7 = vstv %s4352_s22  ;;  %s4459_s22 = sld [smem:[#allocation2 + $0x77]] }
 0x14b   : > { %1831 = vrot.lane.b32.xlu1 %v1829_v19, %s5279_s8  ;;  %1823 = vrot.lane.b32.xlu0 %v1821_v35, %s5279_s8  ;;  %v408_v19 = vstv %s4284_s6  ;;  %v5357_v35 = vrot.slane %v4142_v0, 2  ;;  %v280_v0 = vstv %s4306_s12  ;;  %s4394_s6 = sld [smem:[#allocation2 + $0x1e]]  ;;  %v1853_v56 = vmul.f32 %v3972_v3, %v1852_v18  ;;  %s4408_s12 = sld [smem:[#allocation2 + $0x5f]] }
 0x14c   : > { %v340_v18 = vstv %s4357_s2  ;;  %s4466_s2 = sld [smem:[#allocation2 + $0x76]] }
 0x14d   : > { %v4371_v27 = vpop.permute.xlu1 %1349  ;;  %v4378_v30 = vadd.f32 %v5357_v35, %v672_v50  ;;  %v4387_v37 = vpop.permute.xlu0 %1340  ;;  %v1861_v50 = vmul.f32 %v3972_v3, %v1860_v2  ;;  %v5359_v35 = vrot.slane %v4220_v10, 1  ;;  %v269_v2 = vmul.f32 %v3820_v13, %v268_v45 }
 0x14e   : > { %5356 = vst [vmem:[#allocation58_spill] sm:$0xff] %v4371_v27  ;;  %5358 = vst [vmem:[#allocation59_spill] sm:$0xff] %v4387_v37  ;;  %v4390_v27 = vmul.f32 %v3862_v1, %v688_v28  ;;  %v308_v28 = vstv %s4313_s3  ;;  %v276_v37 = vstv %s4324_s28  ;;  %s4418_s3 = sld [smem:[#allocation2 + $0x5e]]  ;;  %s5362_s28 = smov 126   ;;  %v429_v46 = vstv %s4385_s5 }
 0x14f   : > { %1847 = vrot.lane.b32.xlu1 %v1845_v20, %s5279_s8  ;;  %v4402_v22 = vadd.f32 %v5359_v35, %v420_v29  ;;  %1839 = vrot.lane.b32.xlu0 %v1837_v40, %s5279_s8  ;;  %v1868_v29 = vstv %s4329_s13  ;;  %s4420_s8 = sld [smem:[#allocation2 + $0xa0]]  ;;  %v744_v40 = vstv %s4339_s1  ;;  %v313_v35 = vmul.f32 %v3862_v1, %v312_v11  ;;  %s4442_s13 = sld [smem:[#allocation2 + $0xa3]] }
 0x150   : > { %v281_v20 = vmul.f32 %v3820_v13, %v280_v0  ;;  %v309_v60 = vmul.f32 %v3862_v1, %v308_v28  ;;  %v1877_v11 = vmul.f32 %v3972_v3, %v1876_v39  ;;  %v277_v55 = vmul.f32 %v3820_v13, %v276_v37  ;;  %s4454_s1 = sld [smem:[#allocation2 + $0xa2]]  ;;  %s4489_s5 = sld [smem:[#allocation2 + $0x7e]] }
 0x151   : > { %v4415_v10 = vpop.permute.xlu1 %1367  ;;  %v4430_v45 = vpop.permute.xlu0 %1358  ;;  %v1869_v0 = vmul.f32 %v3972_v3, %v1868_v29  ;;  %v4445_v28 = vmul.f32 %v3960_v12, %v744_v40  ;;  %v1884_v37 = vstv %s4374_s26  ;;  %v376_v29 = vstv %s4383_s29  ;;  %s4478_s26 = sld [smem:[#allocation2 + $0x7f]]  ;;  %s4484_s29 = sld [smem:[#allocation2 + $0xa4]] }
 0x152   : > { %5360 = vst [vmem:[#allocation60_spill] sm:$0xff] %v4415_v10  ;;  %5361 = vst [vmem:[#allocation61_spill] sm:$0xff] %v4430_v45  ;;  %v1892_v45 = vstv %s4362_s25  ;;  %v4449_v10 = vmul.f32 %v3820_v13, %v408_v19  ;;  %v314_v40 = vadd.f32 %v313_v35, %v281_v20  ;;  %v372_v19 = vstv %s4394_s6  ;;  %s4474_s25 = sld [smem:[#allocation2 + $0xa5]]  ;;  %s4512_s6 = sld [smem:[#allocation2 + $0xa6]] }
 0x153   : > { %1863 = vrot.lane.b32.xlu1 %v1861_v50, %s5362_s28  ;;  %1855 = vrot.lane.b32.xlu0 %v1853_v56, %s5362_s28  ;;  %v302_v50 = vadd.f32 %v4347_v21, %v269_v2  ;;  %v345_v56 = vmul.f32 %v3960_v12, %v344_v7  ;;  %v341_v21 = vmul.f32 %v3960_v12, %v340_v18  ;;  %v422_v2 = vstv %s4396_s0  ;;  %s4516_s0 = sld [smem:[#allocation2 + $0xc6]] }
 0x154   : > { %v1893_v7 = vmul.f32 %v3972_v3, %v1892_v45  ;;  %v1885_v20 = vmul.f32 %v3972_v3, %v1884_v37  ;;  %v1908_v35 = vstv %s4408_s12  ;;  %v377_v33 = vmul.f32 %v3972_v3, %v376_v29  ;;  %s4526_s12 = sld [smem:[#allocation2 + $0xa9]] }
 0x155   : > { %v4451_v39 = vpop.permute.xlu1 %1385  ;;  %v4461_v42 = vpop.permute.xlu0 %1376  ;;  %v334_v18 = vadd.f32 %v4350_v24, %v302_v50  ;;  %v1916_v45 = vstv %s4420_s8  ;;  %v478_v37 = vstv %s4428_s24  ;;  %v373_v24 = vmul.f32 %v3972_v3, %v372_v19  ;;  %s4502_s24 = sld [smem:[#allocation2 + $0xa7]] }
 0x156   : > { %5363 = vst [vmem:[#allocation62_spill] sm:$0xff] %v4451_v39  ;;  %5364 = vst [vmem:[#allocation63_spill] sm:$0xff] %v4461_v42  ;;  %v310_v39 = vadd.f32 %v309_v60, %v277_v55  ;;  %v1925_v42 = vstv %s4410_s11  ;;  %v485_v55 = vstv %s4425_s9  ;;  %v346_v60 = vadd.f32 %v345_v56, %v314_v40  ;;  %s4507_s8 = sld [smem:[#allocation2 + $0xc7]]  ;;  %s4541_s9 = sld [smem:[#allocation2 + $0xce]] }
 0x157   : > { %1879 = vrot.lane.b32.xlu1 %v1877_v11, %s5362_s28  ;;  %1871 = vrot.lane.b32.xlu0 %v1869_v0, %s5362_s28  ;;  %v1900_v11 = vstv %s4418_s3  ;;  %v430_v0 = vmul.f32 %v3820_v13, %v429_v46  ;;  %v423_v50 = vmul.f32 %v3820_v13, %v422_v2  ;;  %v1909_v29 = vmul.f32 %v3972_v3, %v1908_v35  ;;  %s4532_s11 = sld [smem:[#allocation2 + $0xcf]]  ;;  %s4537_s3 = sld [smem:[#allocation2 + $0xa8]] }
 0x158   : > { %v342_v56 = vadd.f32 %v341_v21, %v310_v39  ;;  %v1901_v46 = vmul.f32 %v3972_v3, %v1900_v11  ;;  %v1917_v40 = vmul.f32 %v3820_v13, %v1916_v45  ;;  %v366_v19 = vadd.f32 %v4365_v41, %v334_v18 }
 0x159   : > { %v4480_v31 = vpop.permute.xlu1 %1403  ;;  %v4491_v25 = vpop.permute.xlu0 %1394  ;;  %v411_v2 = vrot.slane %v4449_v10, 1  ;;  %v1934_v39 = vstv %s4454_s1  ;;  %v541_v21 = vstv %s4459_s22  ;;  %v432_v35 = vrot.slane %v430_v0, 1  ;;  %s4563_s1 = sld [smem:[#allocation2 + $0xd7]]  ;;  %s4568_s22 = sld [smem:[#allocation2 + $0xaa]] }
 0x15a   : > { %5365 = vst [vmem:[#allocation64_spill] sm:$0xff] %v4480_v31  ;;  %5366 = vst [vmem:[#allocation65_spill] sm:$0xff] %v4491_v25  ;;  %v1926_v31 = vmul.f32 %v3820_v13, %v1925_v42  ;;  %v1943_v25 = vstv %s4442_s13  ;;  %v479_v11 = vmul.f32 %v3862_v1, %v478_v37  ;;  %v534_v10 = vstv %s4466_s2  ;;  %s4554_s13 = sld [smem:[#allocation2 + $0xab]]  ;;  %s4583_s2 = sld [smem:[#allocation2 + $0xad]] }
 0x15b   : > { %1895 = vrot.lane.b32.xlu1 %v1893_v7, %s5362_s28  ;;  %1887 = vrot.lane.b32.xlu0 %v1885_v20, %s5362_s28  ;;  %v486_v7 = vmul.f32 %v3862_v1, %v485_v55  ;;  %v378_v20 = vadd.f32 %v377_v33, %v346_v60  ;;  %v425_v18 = vrot.slane %v423_v50, 1  ;;  %v1944_v55 = vmul.f32 %v3820_v13, %v1943_v25 }
 0x15c   : > { %v1928_v45 = vrot.slane %v1926_v31, 1  ;;  %v1919_v33 = vrot.slane %v1917_v40, 1  ;;  %v1935_v1 = vmul.f32 %v3820_v13, %v1934_v39  ;;  %v1961_v60 = vstv %s4474_s25  ;;  %s4588_s25 = sld [smem:[#allocation2 + $0xdf]] }
 0x15d   : > { %v4509_v42 = vpop.permute.xlu1 %1421  ;;  %v4518_v41 = vpop.permute.xlu0 %1412  ;;  %v5369_v0 = vrot.slane %v4230_v53, 1  ;;  %v413_v50 = vadd.f32 %v411_v2, %v366_v19  ;;  %v1952_v31 = vstv %s4484_s29  ;;  %v542_v13 = vmul.f32 %v3960_v12, %v541_v21  ;;  %v4548_v2 = vld [vmem:[%s3397_s30] sm:$0xff]  ;;  %s4599_s29 = sld [smem:[#allocation2 + $0xde]] }
 0x15e   : > { %5367 = vst [vmem:[#allocation66_spill] sm:$0xff] %v4509_v42  ;;  %5368 = vst [vmem:[#allocation67_spill] sm:$0xff] %v4518_v41  ;;  %v374_v42 = vadd.f32 %v373_v24, %v342_v56  ;;  %v488_v24 = vrot.slane %v486_v7, 1  ;;  %v434_v56 = vadd.f32 %v432_v35, %v378_v20  ;;  %v481_v53 = vrot.slane %v479_v11, 1 }
 0x15f   : > { %1911 = vrot.lane.b32.xlu1 %v1909_v29, %s5362_s28  ;;  %1903 = vrot.lane.b32.xlu0 %v1901_v46, %s5362_s28  ;;  %v532_v37 = vadd.f32 %v5369_v0, %v4402_v22  ;;  %v597_v29 = vstv %s4478_s26  ;;  %v590_v46 = vstv %s4489_s5  ;;  %v535_v40 = vmul.f32 %v3960_v12, %v534_v10  ;;  %s4593_s26 = sld [smem:[#allocation2 + $0xac]]  ;;  %s4612_s5 = sld [smem:[#allocation2 + $0xaf]] }
 0x160   : > { %v1946_v19 = vrot.slane %v1944_v55, 1  ;;  %v1962_v7 = vmul.f32 %v4548_v2, %v1961_v60  ;;  %v427_v39 = vadd.f32 %v425_v18, %v374_v42  ;;  %v1937_v21 = vrot.slane %v1935_v1, 1 }
 0x161   : > { %v4534_v25 = vpop.permute.xlu1 %1439  ;;  %v4543_v22 = vpop.permute.xlu0 %1430  ;;  %v1953_v20 = vmul.f32 %v4548_v2, %v1952_v31  ;;  %v1979_v35 = vstv %s4502_s24  ;;  %v5371_v11 = vstv %s4299_s7  ;;  %v653_v55 = vstv %s4507_s8  ;;  %s4574_s7 = sld [smem:[#allocation2 + $0xd6]]  ;;  %s4633_s8 = sld [smem:[#allocation2 + $0xb1]] }
 0x162   : > { %5370 = vst [vmem:[#allocation68_spill] sm:$0xff] %v4543_v22  ;;  %v4559_v10 = vmul.f32 %v4548_v2, %v5371_v11  ;;  %v1970_v42 = vstv %s4512_s6  ;;  %v5373_v18 = vrot.slane %v4333_v63, 1  ;;  %v544_v1 = vrot.slane %v542_v13, 1  ;;  %s4620_s24 = sld [smem:[#allocation2 + $0xae]]  ;;  %s4642_s6 = sld [smem:[#allocation2 + $0xb0]] }
 0x163   : > { %1929 = vrot.lane.b32.xlu1 %v1928_v45, %s5362_s28  ;;  %1920 = vrot.lane.b32.xlu0 %v1919_v33, %s5362_s28  ;;  %v598_v45 = vmul.f32 %v3972_v3, %v597_v29  ;;  %v591_v0 = vmul.f32 %v3972_v3, %v590_v46  ;;  %v646_v31 = vstv %s4516_s0  ;;  %v490_v11 = vadd.f32 %v488_v24, %v434_v56  ;;  %s4653_s0 = sld [smem:[#allocation2 + $0xb3]] }
 0x164   : > { %v469_v33 = vadd.f32 %v5373_v18, %v413_v50  ;;  %v537_v41 = vrot.slane %v535_v40, 1  ;;  %v1980_v22 = vmul.f32 %v4548_v2, %v1979_v35  ;;  %v483_v63 = vadd.f32 %v481_v53, %v427_v39 }
 0x165   : > { %v4565_v60 = vpop.permute.xlu1 %1457  ;;  %v4576_v29 = vpop.permute.xlu0 %1448  ;;  %v1955_v50 = vrot.slane %v1953_v20, 1  ;;  %v1971_v13 = vmul.f32 %v4548_v2, %v1970_v42  ;;  %v1997_v46 = vstv %s4526_s12  ;;  %v5374_v18 = vrot.slane %v4241_v15, 1  ;;  %s4664_s12 = sld [smem:[#allocation2 + $0xb2]] }
 0x166   : > { %5372 = vst [vmem:[#allocation69_spill] sm:$0xff] %v4565_v60  ;;  %v1964_v60 = vrot.slane %v1962_v7, 1  ;;  %v600_v56 = vrot.slane %v598_v45, 1  ;;  %v709_v40 = vstv %s4532_s11  ;;  %v1988_v53 = vstv %s4537_s3  ;;  %s4692_s11 = sld [smem:[#allocation2 + $0xb4]]  ;;  %s4706_s3 = sld [smem:[#allocation2 + $0xb7]] }
 0x167   : > { %1947 = vrot.lane.b32.xlu1 %v1946_v19, %s5362_s28  ;;  %1938 = vrot.lane.b32.xlu0 %v1937_v21, %s5362_s28  ;;  %v588_v24 = vadd.f32 %v5374_v18, %v532_v37  ;;  %v5376_v7 = vrot.slane %v4336_v49, 1  ;;  %v654_v21 = vmul.f32 %v4548_v2, %v653_v55  ;;  %v593_v20 = vrot.slane %v591_v0, 1  ;;  %v4606_v18 = vld [vmem:[%s3397_s30 + $0x18] sm:$0xff] }
 0x168   : > { %v702_v35 = vstv %s4541_s9  ;;  %v546_v37 = vadd.f32 %v544_v1, %v490_v11  ;;  %v647_v45 = vmul.f32 %v4548_v2, %v646_v31  ;;  %v1982_v42 = vrot.slane %v1980_v22, 1  ;;  %s4729_s9 = sld [smem:[#allocation2 + $0xb9]] }
 0x169   : > { %v4590_v19 = vpop.permute.xlu1 %1475  ;;  %v525_v39 = vadd.f32 %v5376_v7, %v469_v33  ;;  %v4601_v15 = vpop.permute.xlu0 %1466  ;;  %v1998_v49 = vmul.f32 %v4606_v18, %v1997_v46  ;;  %v539_v55 = vadd.f32 %v537_v41, %v483_v63  ;;  %v1973_v33 = vrot.slane %v1971_v13, 1 }
 0x16a   : > { %5375 = vst [vmem:[#allocation70_spill] sm:$0xff] %v4590_v19  ;;  %5377 = vst [vmem:[#allocation71_spill] sm:$0xff] %v4601_v15  ;;  %v1989_v0 = vmul.f32 %v4606_v18, %v1988_v53  ;;  %v2015_v7 = vstv %s4554_s13  ;;  %v635_v1 = vrot.slane %v4559_v10, 2  ;;  %v710_v31 = vmul.f32 %v4606_v18, %v709_v40  ;;  %s4731_s13 = sld [smem:[#allocation2 + $0xb8]] }
 0x16b   : > { %1965 = vrot.lane.b32.xlu1 %v1964_v60, %s5362_s28  ;;  %1956 = vrot.lane.b32.xlu0 %v1955_v50, %s5362_s28  ;;  %v765_v60 = vstv %s4563_s1  ;;  %v2006_v11 = vstv %s4568_s22  ;;  %v5379_v41 = vrot.slane %v4369_v51, 1  ;;  %v656_v50 = vrot.slane %v654_v21, 2  ;;  %s4748_s1 = sld [smem:[#allocation2 + $0xbb]]  ;;  %s4760_s22 = sld [smem:[#allocation2 + $0xba]] }
 0x16c   : > { %v703_v13 = vmul.f32 %v4606_v18, %v702_v35  ;;  %v758_v46 = vstv %s4574_s7  ;;  %v602_v10 = vadd.f32 %v600_v56, %v546_v37  ;;  %v649_v40 = vrot.slane %v647_v45, 2  ;;  %s4768_s7 = sld [smem:[#allocation2 + $0xbd]] }
 0x16d   : > { %v4617_v22 = vpop.permute.xlu1 %1493  ;;  %v581_v63 = vadd.f32 %v5379_v41, %v525_v39  ;;  %v4626_v53 = vpop.permute.xlu0 %1484  ;;  %v2016_v15 = vmul.f32 %v4606_v18, %v2015_v7  ;;  %v595_v19 = vadd.f32 %v593_v20, %v539_v55  ;;  %v1991_v51 = vrot.slane %v1989_v0, 1 }
 0x16e   : > { %5378 = vst [vmem:[#allocation72_spill] sm:$0xff] %v4617_v22  ;;  %v2000_v22 = vrot.slane %v1998_v49, 1  ;;  %v2007_v39 = vmul.f32 %v4606_v18, %v2006_v11  ;;  %v2033_v21 = vstv %s4583_s2  ;;  %v5380_v35 = vrot.slane %v4297_v5, 2  ;;  %s4774_s2 = sld [smem:[#allocation2 + $0xbc]] }
 0x16f   : > { %1983 = vrot.lane.b32.xlu1 %v1982_v42, %s5362_s28  ;;  %1974 = vrot.lane.b32.xlu0 %v1973_v33, %s5362_s28  ;;  %v766_v56 = vmul.f32 %v3960_v12, %v765_v60  ;;  %v821_v37 = vstv %s4588_s25  ;;  %v2024_v42 = vstv %s4593_s26  ;;  %v637_v20 = vadd.f32 %v635_v1, %v581_v63  ;;  %s4776_s25 = sld [smem:[#allocation2 + $0xbf]]  ;;  %s4782_s26 = sld [smem:[#allocation2 + $0xbe]] }
 0x170   : > { %v644_v41 = vadd.f32 %v5380_v35, %v588_v24  ;;  %v712_v49 = vrot.slane %v710_v31, 2  ;;  %v759_v55 = vmul.f32 %v3960_v12, %v758_v46  ;;  %v814_v33 = vstv %s4599_s29  ;;  %s4784_s29 = sld [smem:[#allocation2 + $0x101]] }
 0x171   : > { %v4639_v45 = vpop.permute.xlu1 %1511  ;;  %v4646_v0 = vpop.permute.xlu0 %1502  ;;  %v658_v5 = vadd.f32 %v656_v50, %v602_v10  ;;  %v705_v24 = vrot.slane %v703_v13, 2  ;;  %v2018_v7 = vrot.slane %v2016_v15, 1  ;;  %v2034_v60 = vmul.f32 %v4606_v18, %v2033_v21 }
 0x172   : > { %v651_v11 = vadd.f32 %v649_v40, %v595_v19  ;;  %v2009_v1 = vrot.slane %v2007_v39, 1  ;;  %v2025_v31 = vmul.f32 %v4606_v18, %v2024_v42  ;;  %v2051_v12 = vstv %s4612_s5  ;;  %v4669_v39 = vld [vmem:[%s3397_s30 + $0x48] sm:$0xff]  ;;  %s4802_s5 = sld [smem:[#allocation2 + $0x100]] }
 0x173   : > { %2001 = vrot.lane.b32.xlu1 %v2000_v22, %s5362_s28  ;;  %1992 = vrot.lane.b32.xlu0 %v1991_v51, %s5362_s28  ;;  %v5381_v63 = vrot.slane %v4255_v59, 2  ;;  %v747_v50 = vrot.slane %v4445_v28, 2  ;;  %v5382_v13 = vstv %s4341_s14  ;;  %v2042_v10 = vstv %s4620_s24  ;;  %s4680_s14 = sld [smem:[#allocation2 + $0xb5]]  ;;  %s4814_s24 = sld [smem:[#allocation2 + $0x103]] }
 0x174   : > { %v801_v15 = vmul.f32 %v3972_v3, %v5382_v13  ;;  %v5383_v19 = vrot.slane %v4390_v27, 2  ;;  %v768_v51 = vrot.slane %v766_v56, 2  ;;  %v822_v59 = vmul.f32 %v4669_v39, %v821_v37 }
 0x175   : > { %v700_v46 = vadd.f32 %v5381_v63, %v644_v41  ;;  %v4661_v22 = vpop.permute.xlu1 %1529  ;;  %v761_v21 = vrot.slane %v759_v55, 2  ;;  %v4672_v35 = vpop.permute.xlu0 %1520  ;;  %v714_v28 = vadd.f32 %v712_v49, %v658_v5  ;;  %v815_v3 = vmul.f32 %v4669_v39, %v814_v33 }
 0x176   : > { %v693_v40 = vadd.f32 %v5383_v19, %v637_v20  ;;  %v2036_v41 = vrot.slane %v2034_v60, 1  ;;  %v2052_v42 = vmul.f32 %v4606_v18, %v2051_v12  ;;  %v707_v27 = vadd.f32 %v705_v24, %v651_v11 }
 0x177   : > { %2019 = vrot.lane.b32.xlu1 %v2018_v7, %s5362_s28  ;;  %2010 = vrot.lane.b32.xlu0 %v2009_v1, %s5362_s28  ;;  %v2027_v56 = vrot.slane %v2025_v31, 1  ;;  %v2043_v20 = vmul.f32 %v4606_v18, %v2042_v10  ;;  %v2069_v63 = vstv %s4633_s8  ;;  %v5384_v37 = vrot.slane %v4068_v32, 2  ;;  %s4822_s8 = sld [smem:[#allocation2 + $0x102]] }
 0x178   : > { %v5385_v55 = vrot.slane %v4156_v54, 2  ;;  %v810_v5 = vrot.slane %v4293_v4, 2  ;;  %v2060_v7 = vstv %s4642_s6  ;;  %v5386_v60 = vrot.slane %v4282_v9, 2  ;;  %s4832_s6 = sld [smem:[#allocation2 + $0x105]] }
 0x179   : > { %v742_v49 = vadd.f32 %v5384_v37, %v4252_v48  ;;  %v4689_v24 = vpop.permute.xlu1 %1547  ;;  %v803_v1 = vrot.slane %v801_v15, 2  ;;  %v749_v31 = vadd.f32 %v747_v50, %v693_v40  ;;  %v824_v32 = vrot.slane %v822_v59, 2  ;;  %v4696_v12 = vpop.permute.xlu0 %1538 }
 0x17a   : > { %v784_v33 = vadd.f32 %v5385_v55, %v4378_v30  ;;  %v756_v11 = vadd.f32 %v5386_v60, %v700_v46  ;;  %v770_v48 = vadd.f32 %v768_v51, %v714_v28  ;;  %v817_v54 = vrot.slane %v815_v3, 2  ;;  %v4700_v30 = vld [vmem:[%s3397_s30 + $0x30] sm:$0xff]  ;;  %s4717_s30 = sld [smem:[#allocation2 + $0xb6]] }
 0x17b   : > { %2037 = vrot.lane.b32.xlu1 %v2036_v41, %s5362_s28  ;;  %v2054_v4 = vrot.slane %v2052_v42, 1  ;;  %v2070_v13 = vmul.f32 %v4700_v30, %v2069_v63  ;;  %v763_v10 = vadd.f32 %v761_v21, %v707_v27  ;;  %2028 = vrot.lane.b32.xlu0 %v2027_v56, %s5362_s28  ;;  %v2045_v9 = vrot.slane %v2043_v20, 1 }
 0x17c   : > { %v2061_v46 = vmul.f32 %v4700_v30, %v2060_v7  ;;  %v2087_v50 = vstv %s4653_s0  ;;  %v5387_v15 = vrot.slane %v3804_v17, 2  ;;  %v5388_v40 = vrot.slane %v3908_v62, 2  ;;  %s4856_s0 = sld [smem:[#allocation2 + $0x104]] }
 0x17d   : > { %v4714_v59 = vpop.permute.xlu1 %1565  ;;  %v2078_v21 = vstv %s4664_s12  ;;  %v5389_v28 = vrot.slane %v4071_v26, 2  ;;  %v812_v41 = vadd.f32 %v810_v5, %v756_v11  ;;  %v805_v42 = vadd.f32 %v803_v1, %v749_v31  ;;  %v4721_v27 = vpop.permute.xlu0 %1556  ;;  %s4912_s12 = sld [smem:[#allocation2 + $0x107]] }
 0x17e   : > { %v791_v19 = vadd.f32 %v5387_v15, %v3989_v34  ;;  %v777_v51 = vadd.f32 %v5388_v40, %v4152_v58  ;;  %v842_v17 = vadd.f32 %v3541_v44, %v784_v33  ;;  %v826_v34 = vadd.f32 %v824_v32, %v770_v48 }
 0x17f   : > { %v798_v3 = vadd.f32 %v5389_v28, %v742_v49  ;;  %2055 = vrot.lane.b32.xlu1 %v2054_v4, %s5362_s28  ;;  %v2072_v62 = vrot.slane %v2070_v13, 1  ;;  %v2088_v58 = vmul.f32 %v4700_v30, %v2087_v50  ;;  %v819_v56 = vadd.f32 %v817_v54, %v763_v10  ;;  %2046 = vrot.lane.b32.xlu0 %v2045_v9, %s5362_s28  ;;  %v5390_v4 = vld [vmem:[#allocation11_spill] sm:$0xff]  ;;  %v5392_v9 = vld [vmem:[#allocation13_spill] sm:$0xff]  ;;  %v5393_v50 = vld [vmem:[#allocation14_spill] sm:$0xff] }
 0x180   : > { %v2063_v20 = vrot.slane %v2061_v46, 1  ;;  %v2079_v26 = vmul.f32 %v4700_v30, %v2078_v21  ;;  %v2105_v63 = vstv %s4680_s14  ;;  %v850_v37 = vadd.f32 %v3531_v36, %v791_v19  ;;  %v5395_v19 = vld [vmem:[#allocation16_spill] sm:$0xff]  ;;  %s4920_s14 = sld [smem:[#allocation2 + $0x106]] }
 0x181   : > { %v834_v44 = vadd.f32 %v3533_v38, %v777_v51  ;;  %v4735_v49 = vpop.permute.xlu1 %1583  ;;  %v2096_v55 = vstv %s4692_s11  ;;  %v858_v33 = vadd.f32 %v3539_v43, %v798_v3  ;;  %v874_v5 = vadd.f32 %v3547_v47, %v812_v41  ;;  %v4742_v11 = vpop.permute.xlu0 %1574  ;;  %s4940_s11 = sld [smem:[#allocation2 + $0x109]] }
 0x182   : > { %v866_v7 = vadd.f32 %v3551_v52, %v805_v42  ;;  %v906_v60 = vadd.f32 %v3574_v6, %v842_v17  ;;  %v890_v1 = vadd.f32 %v3560_v57, %v826_v34  ;;  %v2090_v38 = vrot.slane %v2088_v58, 1  ;;  %v5396_v17 = vld [vmem:[#allocation17_spill] sm:$0xff] }
 0x183   : > { %v898_v36 = vadd.f32 %v3579_v8, %v834_v44  ;;  %2073 = vrot.lane.b32.xlu1 %v2072_v62, %s5362_s28  ;;  %v2106_v31 = vmul.f32 %v4700_v30, %v2105_v63  ;;  %v882_v43 = vadd.f32 %v3565_v61, %v819_v56  ;;  %2064 = vrot.lane.b32.xlu0 %v2063_v20, %s5362_s28  ;;  %v2081_v47 = vrot.slane %v2079_v26, 1  ;;  %v5391_v61 = vld [vmem:[#allocation12_spill] sm:$0xff]  ;;  %v5397_v62 = vld [vmem:[#allocation18_spill] sm:$0xff]  ;;  %v5398_v56 = vld [vmem:[#allocation19_spill] sm:$0xff] }
 0x184   : > { %v2097_v52 = vmul.f32 %v4700_v30, %v2096_v55  ;;  %v2123_v6 = vstv %s4706_s3  ;;  %v922_v32 = vadd.f32 %v3588_v14, %v858_v33  ;;  %v914_v57 = vadd.f32 %v3593_v16, %v850_v37  ;;  %v5394_v16 = vld [vmem:[#allocation15_spill] sm:$0xff]  ;;  %v5399_v26 = vld [vmem:[#allocation20_spill] sm:$0xff]  ;;  %v5400_v44 = vld [vmem:[#allocation21_spill] sm:$0xff]  ;;  %s4946_s3 = sld [smem:[#allocation2 + $0x108]] }
 0x185   : > { %v938_v8 = vadd.f32 %v3602_v23, %v874_v5  ;;  %v4757_v48 = vpop.permute.xlu1 %1601  ;;  %v2114_v54 = vstv %s4717_s30  ;;  %v930_v13 = vadd.f32 %v5390_v4, %v866_v7  ;;  %v954_v10 = vadd.f32 %v5391_v61, %v890_v1  ;;  %v4766_v14 = vpop.permute.xlu0 %1592  ;;  %v5401_v33 = vld [vmem:[#allocation22_spill] sm:$0xff]  ;;  %v5402_v7 = vld [vmem:[#allocation23_spill] sm:$0xff]  ;;  %v5403_v1 = vld [vmem:[#allocation24_spill] sm:$0xff]  ;;  %s4966_s30 = sld [smem:[#allocation2 + $0x10b]] }
 0x186   : > { %v946_v46 = vadd.f32 %v5392_v9, %v882_v43  ;;  %v970_v15 = vadd.f32 %v5393_v50, %v906_v60  ;;  %v962_v23 = vadd.f32 %v5394_v16, %v898_v36  ;;  %v986_v40 = vadd.f32 %v5395_v19, %v922_v32  ;;  %v5407_v61 = vld [vmem:[#allocation28_spill] sm:$0xff]  ;;  %v5408_v9 = vld [vmem:[#allocation29_spill] sm:$0xff]  ;;  %v5409_v50 = vld [vmem:[#allocation30_spill] sm:$0xff] }
 0x187   : > { %2091 = vrot.lane.b32.xlu1 %v2090_v38, %s5362_s28  ;;  %v2108_v51 = vrot.slane %v2106_v31, 1  ;;  %v2124_v21 = vmul.f32 %v4700_v30, %v2123_v6  ;;  %2082 = vrot.lane.b32.xlu0 %v2081_v47, %s5362_s28  ;;  %v2099_v28 = vrot.slane %v2097_v52, 1  ;;  %v2115_v3 = vmul.f32 %v4700_v30, %v2114_v54  ;;  %v5404_v6 = vld [vmem:[#allocation25_spill] sm:$0xff]  ;;  %v5406_v54 = vld [vmem:[#allocation27_spill] sm:$0xff] }
 0x188   : > { %v2141_v41 = vstv %s4729_s9  ;;  %v2132_v42 = vstv %s4731_s13  ;;  %v978_v34 = vadd.f32 %v5396_v17, %v914_v57  ;;  %v1002_v58 = vadd.f32 %v5397_v62, %v938_v8  ;;  %v5405_v57 = vld [vmem:[#allocation26_spill] sm:$0xff]  ;;  %v5410_v19 = vld [vmem:[#allocation31_spill] sm:$0xff]  ;;  %s4972_s9 = sld [smem:[#allocation2 + $0x10a]]  ;;  %s4988_s13 = sld [smem:[#allocation2 + $0x10d]] }
 0x189   : > { %v994_v20 = vadd.f32 %v5398_v56, %v930_v13  ;;  %v1018_v63 = vadd.f32 %v5399_v26, %v954_v10  ;;  %v4790_v37 = vpop.permute.xlu1 %1619  ;;  %v1010_v55 = vadd.f32 %v5400_v44, %v946_v46  ;;  %v1034_v5 = vadd.f32 %v5401_v33, %v970_v15  ;;  %v4796_v38 = vpop.permute.xlu0 %1610  ;;  %v5413_v44 = vld [vmem:[#allocation34_spill] sm:$0xff]  ;;  %v5414_v33 = vld [vmem:[#allocation35_spill] sm:$0xff] }
 0x18a   : > { %v1026_v60 = vadd.f32 %v5402_v7, %v962_v23  ;;  %v1050_v36 = vadd.f32 %v5403_v1, %v986_v40  ;;  %v2126_v31 = vrot.slane %v2124_v21, 1  ;;  %v2142_v43 = vmul.f32 %v4669_v39, %v2141_v41  ;;  %v5415_v7 = vld [vmem:[#allocation36_spill] sm:$0xff] }
 0x18b   : > { %2109 = vrot.lane.b32.xlu1 %v2108_v51, %s5362_s28  ;;  %v2133_v47 = vmul.f32 %v4669_v39, %v2132_v42  ;;  %v2159_v52 = vstv %s4748_s1  ;;  %v1042_v32 = vadd.f32 %v5404_v6, %v978_v34  ;;  %v1066_v8 = vadd.f32 %v5405_v57, %v1002_v58  ;;  %2100 = vrot.lane.b32.xlu0 %v2099_v28, %s5362_s28  ;;  %v5411_v51 = vld [vmem:[#allocation32_spill] sm:$0xff]  ;;  %v5412_v42 = vld [vmem:[#allocation33_spill] sm:$0xff]  ;;  %s4993_s1 = sld [smem:[#allocation2 + $0x10c]] }
 0x18c   : > { %v1058_v4 = vadd.f32 %v5406_v54, %v994_v20  ;;  %v2117_v13 = vrot.slane %v2115_v3, 1  ;;  %v1082_v10 = vadd.f32 %v5407_v61, %v1018_v63  ;;  %v1074_v46 = vadd.f32 %v5408_v9, %v1010_v55  ;;  %v5418_v61 = vld [vmem:[#allocation39_spill] sm:$0xff]  ;;  %v5419_v9 = vld [vmem:[#allocation40_spill] sm:$0xff] }
 0x18d   : > { %v1100_v15 = vadd.f32 %v5409_v50, %v1034_v5  ;;  %v4811_v16 = vpop.permute.xlu1 %1637  ;;  %v2150_v23 = vstv %s4760_s22  ;;  %v1091_v40 = vadd.f32 %v5410_v19, %v1026_v60  ;;  %v1118_v21 = vadd.f32 %v5411_v51, %v1050_v36  ;;  %v4818_v28 = vpop.permute.xlu0 %1628  ;;  %v5420_v50 = vld [vmem:[#allocation44_spill] sm:$0xff]  ;;  %v5421_v19 = vld [vmem:[#allocation41_spill] sm:$0xff]  ;;  %s5003_s22 = sld [smem:[#allocation2 + $0x10f]] }
 0x18e   : > { %v2160_v3 = vmul.f32 %v4669_v39, %v2159_v52  ;;  %v2177_v41 = vstv %s4768_s7  ;;  %v1109_v17 = vadd.f32 %v5412_v42, %v1042_v32  ;;  %v2144_v34 = vrot.slane %v2142_v43, 1  ;;  %s5007_s7 = sld [smem:[#allocation2 + $0x10e]] }
 0x18f   : > { %2127 = vrot.lane.b32.xlu1 %v2126_v31, %s5362_s28  ;;  %v2135_v62 = vrot.slane %v2133_v47, 1  ;;  %v2168_v58 = vstv %s4774_s2  ;;  %2118 = vrot.lane.b32.xlu0 %v2117_v13, %s5362_s28  ;;  %v2151_v56 = vmul.f32 %v4669_v39, %v2150_v23  ;;  %v2195_v20 = vstv %s4776_s25  ;;  %v5416_v31 = vld [vmem:[#allocation37_spill] sm:$0xff]  ;;  %v5417_v47 = vld [vmem:[#allocation38_spill] sm:$0xff]  ;;  %s5014_s2 = sld [smem:[#allocation2 + $0x111]]  ;;  %s5017_s25 = sld [smem:[#allocation2 + $0x110]] }
 0x190   : > { %v2186_v26 = vstv %s4782_s26  ;;  %v2213_v63 = vstv %s4784_s29  ;;  %v1136_v55 = vadd.f32 %v5413_v44, %v1066_v8  ;;  %v1127_v5 = vadd.f32 %v5414_v33, %v1058_v4  ;;  %s5026_s26 = sld [smem:[#allocation2 + $0x113]]  ;;  %s5029_s29 = sld [smem:[#allocation2 + $0x112]] }
 0x191   : > { %v1154_v60 = vadd.f32 %v5415_v7, %v1082_v10  ;;  %v4837_v1 = vpop.permute.xlu1 %1655  ;;  %v2178_v36 = vmul.f32 %v4669_v39, %v2177_v41  ;;  %v1145_v43 = vadd.f32 %v5416_v31, %v1074_v46  ;;  %v1172_v52 = vadd.f32 %v5417_v47, %v1100_v15  ;;  %v4842_v6 = vpop.permute.xlu0 %1646  ;;  %v5426_v31 = vld [vmem:[#allocation60_spill] sm:$0xff] }
 0x192   : > { %v2162_v32 = vrot.slane %v2160_v3, 1  ;;  %v2169_v57 = vmul.f32 %v4669_v39, %v2168_v58  ;;  %v4847_v8 = vmul.f32 %v4669_v39, %v2195_v20  ;;  %v4850_v54 = vmul.f32 %v4669_v39, %v2186_v26  ;;  %v5422_v3 = vld [vmem:[#allocation45_spill] sm:$0xff]  ;;  %v5423_v20 = vld [vmem:[#allocation52_spill] sm:$0xff] }
 0x193   : > { %2145 = vrot.lane.b32.xlu1 %v2144_v34, %s5362_s28  ;;  %v4853_v4 = vmul.f32 %v4548_v2, %v2213_v63  ;;  %v2204_v13 = vstv %s4802_s5  ;;  %v1163_v10 = vadd.f32 %v5418_v61, %v1091_v40  ;;  %v1190_v46 = vadd.f32 %v5419_v9, %v1118_v21  ;;  %2136 = vrot.lane.b32.xlu0 %v2135_v62, %s5362_s28  ;;  %v5424_v62 = vld [vmem:[#allocation53_spill] sm:$0xff]  ;;  %s5037_s5 = sld [smem:[#allocation2 + $0x115]] }
 0x194   : > { %v1226_v15 = vadd.f32 %v5420_v50, %v1154_v60  ;;  %v2153_v23 = vrot.slane %v2151_v56, 1  ;;  %v1181_v51 = vadd.f32 %v5421_v19, %v1109_v17  ;;  %v1217_v41 = vadd.f32 %v5422_v3, %v1145_v43  ;;  %v5425_v60 = vld [vmem:[#allocation46_spill] sm:$0xff] }
 0x195   : > { %v4864_v42 = vpop.permute.xlu1 %1671  ;;  %v2180_v34 = vrot.slane %v2178_v36, 1  ;;  %v2231_v58 = vstv %s4814_s24  ;;  %v4868_v63 = vpop.permute.xlu0 %1663  ;;  %v2171_v40 = vrot.slane %v2169_v57, 1  ;;  %v4871_v21 = vmul.f32 %v4548_v2, %v2204_v13  ;;  %v5427_v13 = vld [vmem:[#allocation42_spill] sm:$0xff]  ;;  %s5040_s24 = sld [smem:[#allocation2 + $0x114]] }
 0x196   : > { %v1298_v26 = vadd.f32 %v5423_v20, %v1226_v15  ;;  %v2222_v44 = vstv %s4822_s8  ;;  %v1289_v56 = vadd.f32 %v5424_v62, %v1217_v41  ;;  %v2198_v17 = vrot.slane %v4847_v8, 1  ;;  %v5429_v8 = vld [vmem:[#allocation61_spill] sm:$0xff]  ;;  %v5431_v3 = vld [vmem:[#allocation54_spill] sm:$0xff]  ;;  %s5047_s8 = sld [smem:[#allocation2 + $0x117]] }
 0x197   : > { %2163 = vrot.lane.b32.xlu1 %v2162_v32, %s5362_s28  ;;  %v2189_v33 = vrot.slane %v4850_v54, 1  ;;  %v2216_v7 = vrot.slane %v4853_v4, 2  ;;  %v1244_v36 = vadd.f32 %v5425_v60, %v1172_v52  ;;  %2154 = vrot.lane.b32.xlu0 %v2153_v23, %s5362_s28  ;;  %v4883_v47 = vmul.f32 %v4548_v2, %v2231_v58  ;;  %v5428_v32 = vld [vmem:[#allocation47_spill] sm:$0xff]  ;;  %v5434_v60 = vld [vmem:[#allocation48_spill] sm:$0xff] }
 0x198   : > { %v1370_v43 = vadd.f32 %v5426_v31, %v1298_v26  ;;  %v2249_v57 = vstv %s4832_s6  ;;  %v1208_v61 = vadd.f32 %v5427_v13, %v1136_v55  ;;  %v1235_v9 = vadd.f32 %v5428_v32, %v1163_v10  ;;  %v5430_v52 = vld [vmem:[#allocation43_spill] sm:$0xff]  ;;  %v5433_v10 = vld [vmem:[#allocation68_spill] sm:$0xff]  ;;  %v5435_v31 = vld [vmem:[#allocation62_spill] sm:$0xff]  ;;  %s5050_s6 = sld [smem:[#allocation2 + $0x116]] }
 0x199   : > { %v1361_v50 = vadd.f32 %v5429_v8, %v1289_v56  ;;  %v4889_v54 = vpop.permute.xlu1 %1687  ;;  %v4892_v15 = vmul.f32 %v4548_v2, %v2222_v44  ;;  %v1199_v19 = vadd.f32 %v5430_v52, %v1127_v5  ;;  %v1316_v23 = vadd.f32 %v5431_v3, %v1244_v36  ;;  %v4897_v58 = vpop.permute.xlu0 %1679  ;;  %v5432_v55 = vld [vmem:[#allocation55_spill] sm:$0xff]  ;;  %v5438_v8 = vld [vmem:[#allocation56_spill] sm:$0xff]  ;;  %v5440_v3 = vld [vmem:[#allocation57_spill] sm:$0xff] }
 0x19a   : > { %v1442_v41 = vadd.f32 %v4534_v25, %v1370_v43  ;;  %v2207_v20 = vrot.slane %v4871_v21, 2  ;;  %v1307_v26 = vadd.f32 %v5432_v55, %v1235_v9  ;;  %v4904_v56 = vmul.f32 %v4548_v2, %v2249_v57  ;;  %v5436_v43 = vld [vmem:[#allocation49_spill] sm:$0xff]  ;;  %v5437_v32 = vld [vmem:[#allocation63_spill] sm:$0xff]  ;;  %v5441_v55 = vld [vmem:[#allocation50_spill] sm:$0xff] }
 0x19b   : > { %v1433_v62 = vadd.f32 %v5433_v10, %v1361_v50  ;;  %2181 = vrot.lane.b32.xlu1 %v2180_v34, %s5362_s28  ;;  %v2240_v44 = vstv %s4856_s0  ;;  %v1262_v5 = vadd.f32 %v5434_v60, %v1190_v46  ;;  %v1388_v36 = vadd.f32 %v5435_v31, %v1316_v23  ;;  %2172 = vrot.lane.b32.xlu0 %v2171_v40, %s5362_s28  ;;  %v5439_v50 = vld [vmem:[#allocation69_spill] sm:$0xff]  ;;  %v5442_v10 = vld [vmem:[#allocation64_spill] sm:$0xff]  ;;  %s5057_s0 = sld [smem:[#allocation2 + $0x119]] }
 0x19c   : > { %v1514_v25 = vadd.f32 %v4639_v45, %v1442_v41  ;;  %v2234_v21 = vrot.slane %v4883_v47, 2  ;;  %v1253_v13 = vadd.f32 %v5436_v43, %v1181_v51  ;;  %v1379_v34 = vadd.f32 %v5437_v32, %v1307_v26  ;;  %v5448_v32 = vld [vmem:[#allocation71_spill] sm:$0xff] }
 0x19d   : > { %v1505_v57 = vadd.f32 %v4646_v0, %v1433_v62  ;;  %v4917_v9 = vpop.permute.xlu1 %1703  ;;  %v2225_v46 = vrot.slane %v4892_v15, 2  ;;  %v1334_v45 = vadd.f32 %v5438_v8, %v1262_v5  ;;  %v1460_v40 = vadd.f32 %v5439_v50, %v1388_v36  ;;  %v4925_v52 = vpop.permute.xlu0 %1695  ;;  %v5444_v5 = vld [vmem:[#allocation65_spill] sm:$0xff]  ;;  %v5446_v36 = vld [vmem:[#allocation70_spill] sm:$0xff] }
 0x19e   : > { %v1586_v47 = vadd.f32 %v4735_v49, %v1514_v25  ;;  %v4928_v51 = vmul.f32 %v4548_v2, %v2240_v44  ;;  %v1325_v23 = vadd.f32 %v5440_v3, %v1253_v13  ;;  %v1451_v0 = vadd.f32 %v4576_v29, %v1379_v34  ;;  %v5443_v44 = vld [vmem:[#allocation51_spill] sm:$0xff] }
 0x19f   : > { %v1577_v41 = vadd.f32 %v4742_v11, %v1505_v57  ;;  %2199 = vrot.lane.b32.xlu1 %v2198_v17, %s5362_s28  ;;  %v2252_v15 = vrot.slane %v4904_v56, 2  ;;  %v1280_v26 = vadd.f32 %v5441_v55, %v1208_v61  ;;  %v1406_v62 = vadd.f32 %v5442_v10, %v1334_v45  ;;  %2190 = vrot.lane.b32.xlu0 %v2189_v33, %s5362_s28  ;;  %v5445_v61 = vld [vmem:[#allocation58_spill] sm:$0xff] }
 0x1a0   : > { %v1532_v49 = vadd.f32 %v4661_v22, %v1460_v40  ;;  %v1658_v60 = vadd.f32 %v4837_v1, %v1586_v47  ;;  %v1271_v29 = vadd.f32 %v5443_v44, %v1199_v19  ;;  %v1397_v11 = vadd.f32 %v5444_v5, %v1325_v23  ;;  %v5447_v19 = vld [vmem:[#allocation59_spill] sm:$0xff]  ;;  %v5449_v57 = vld [vmem:[#allocation66_spill] sm:$0xff] }
 0x1a1   : > { %v1523_v17 = vadd.f32 %v4672_v35, %v1451_v0  ;;  %v1649_v56 = vadd.f32 %v4842_v6, %v1577_v41  ;;  %v1720_v31 = vpop.permute.xlu1 %1719  ;;  %v1352_v22 = vadd.f32 %v5445_v61, %v1280_v26  ;;  %v1478_v1 = vadd.f32 %v5446_v36, %v1406_v62  ;;  %v1712_v43 = vpop.permute.xlu0 %1711  ;;  %v5450_v40 = vld [vmem:[#allocation67_spill] sm:$0xff] }
 0x1a2   : > { %v1604_v33 = vadd.f32 %v4757_v48, %v1532_v49  ;;  %v4951_v25 = vadd.f32 %v1720_v31, %v1658_v60  ;;  %v1343_v13 = vadd.f32 %v5447_v19, %v1271_v29  ;;  %v1469_v35 = vadd.f32 %v5448_v32, %v1397_v11 }
 0x1a3   : > { %v1595_v6 = vadd.f32 %v4766_v14, %v1523_v17  ;;  %v4956_v34 = vadd.f32 %v1712_v43, %v1649_v56  ;;  %2217 = vrot.lane.b32.xlu1 %v2216_v7, %s5362_s28  ;;  %v1424_v8 = vadd.f32 %v5449_v57, %v1352_v22  ;;  %v1550_v48 = vadd.f32 %v4689_v24, %v1478_v1  ;;  %v5451_v7 = vld [vmem:[#allocation72_spill] sm:$0xff] }
 0x1a4   : > { %v1674_v45 = vadd.f32 %v4864_v42, %v1604_v33  ;;  %2208 = vrot.lane.b32.xlu0 %v2207_v20, %s5362_s28  ;;  %v2267_v50 = vstv %s4912_s12  ;;  %v1415_v47 = vadd.f32 %v5450_v40, %v1343_v13  ;;  %v1541_v14 = vadd.f32 %v4696_v12, %v1469_v35  ;;  %s5060_s12 = sld [smem:[#allocation2 + $0x118]] }
 0x1a5   : > { %v1666_v3 = vadd.f32 %v4868_v63, %v1595_v6  ;;  %v1736_v23 = vpop.permute.xlu1 %1735  ;;  %v2258_v4 = vstv %s4920_s14  ;;  %v1496_v24 = vadd.f32 %v5451_v7, %v1424_v8  ;;  %v1622_v42 = vadd.f32 %v4790_v37, %v1550_v48  ;;  %v1728_v20 = vpop.permute.xlu0 %1727  ;;  %s5067_s14 = sld [smem:[#allocation2 + $0x11b]] }
 0x1a6   : > { %v4976_v0 = vadd.f32 %v1736_v23, %v1674_v45  ;;  %v2243_v41 = vrot.slane %v4928_v51, 2  ;;  %v1487_v55 = vadd.f32 %v4626_v53, %v1415_v47  ;;  %v1613_v12 = vadd.f32 %v4796_v38, %v1541_v14 }
 0x1a7   : > { %v1730_v63 = vadd.f32 %v1728_v20, %v1666_v3  ;;  %2235 = vrot.lane.b32.xlu1 %v2234_v21, %s5362_s28  ;;  %v2268_v26 = vmul.f32 %v4548_v2, %v2267_v50  ;;  %v1568_v10 = vadd.f32 %v4714_v59, %v1496_v24  ;;  %v1690_v62 = vadd.f32 %v4889_v54, %v1622_v42 }
 0x1a8   : > { %2226 = vrot.lane.b32.xlu0 %v2225_v46, %s5362_s28  ;;  %v2259_v37 = vmul.f32 %v4548_v2, %v2258_v4  ;;  %v2285_v49 = vstv %s4940_s11  ;;  %v1559_v53 = vadd.f32 %v4721_v27, %v1487_v55  ;;  %v1682_v38 = vadd.f32 %v4897_v58, %v1613_v12  ;;  %s5070_s11 = sld [smem:[#allocation2 + $0x11a]] }
 0x1a9   : > { %v1752_v51 = vpop.permute.xlu1 %1751  ;;  %v2276_v21 = vstv %s4946_s3  ;;  %v1640_v59 = vadd.f32 %v4811_v16, %v1568_v10  ;;  %v1744_v60 = vpop.permute.xlu0 %1743  ;;  %v2270_v44 = vrot.slane %v2268_v26, 2  ;;  %v2286_v27 = vmul.f32 %v4606_v18, %v2285_v49  ;;  %s5077_s3 = sld [smem:[#allocation2 + $0x11d]] }
 0x1aa   : > { %v1754_v54 = vadd.f32 %v1752_v51, %v1690_v62  ;;  %v1631_v46 = vadd.f32 %v4818_v28, %v1559_v53  ;;  %v1746_v2 = vadd.f32 %v1744_v60, %v1682_v38  ;;  %v2261_v29 = vrot.slane %v2259_v37, 2 }
 0x1ab   : > { %2253 = vrot.lane.b32.xlu1 %v2252_v15, %s5362_s28  ;;  %v1706_v58 = vadd.f32 %v4917_v9, %v1640_v59  ;;  %v2277_v5 = vmul.f32 %v4606_v18, %v2276_v21  ;;  %v2303_v16 = vstv %s4966_s30  ;;  %v2294_v17 = vstv %s4972_s9  ;;  %s5080_s30 = sld [smem:[#allocation2 + $0x11c]]  ;;  %s5087_s9 = sld [smem:[#allocation2 + $0x11f]] }
 0x1ac   : > { %2244 = vrot.lane.b32.xlu0 %v2243_v41, %s5362_s28  ;;  %v1698_v11 = vadd.f32 %v4925_v52, %v1631_v46  ;;  %v2288_v9 = vrot.slane %v2286_v27, 2  ;;  %v2304_v61 = vmul.f32 %v4606_v18, %v2303_v16  ;;  %v2295_v36 = vmul.f32 %v4606_v18, %v2294_v17 }
 0x1ad   : > { %v1768_v28 = vpop.permute.xlu1 %1767  ;;  %v1760_v56 = vpop.permute.xlu0 %1759  ;;  %v2279_v22 = vrot.slane %v2277_v5, 2  ;;  %v2321_v52 = vstv %s4988_s13  ;;  %v2312_v33 = vstv %s4993_s1  ;;  %v2339_v8 = vstv %s5003_s22  ;;  %s5090_s13 = sld [smem:[#allocation2 + $0x11e]]  ;;  %s5140_s1 = sld [smem:[#allocation6 + $0x1]] }
 0x1ae   : > { %v1770_v15 = vadd.f32 %v1768_v28, %v1706_v58  ;;  %v1762_v31 = vadd.f32 %v1760_v56, %v1698_v11  ;;  %v2306_v32 = vrot.slane %v2304_v61, 2  ;;  %v2322_v35 = vmul.f32 %v4606_v18, %v2321_v52  ;;  %s5142_s22 = sld [smem:[#allocation4]] }
 0x1af   : > { %2271 = vrot.lane.b32.xlu1 %v2270_v44, %s5362_s28  ;;  %v2297_v6 = vrot.slane %v2295_v36, 2  ;;  %v2313_v57 = vmul.f32 %v4606_v18, %v2312_v33  ;;  %v2340_v47 = vmul.f32 %v4606_v18, %v2339_v8  ;;  %v2357_v23 = vstv %s5014_s2  ;;  %s5148_s2 = sld [smem:[#allocation4 + $0x3]] }
 0x1b0   : > { %2262 = vrot.lane.b32.xlu0 %v2261_v29, %s5362_s28  ;;  %v2324_v40 = vrot.slane %v2322_v35, 2  ;;  %v2348_v7 = vstv %s5017_s25  ;;  %v2358_v41 = vmul.f32 %v4700_v30, %v2357_v23  ;;  %v2375_v12 = vstv %s5026_s26  ;;  %s5152_s25 = sld [smem:[#allocation6 + $0x3]]  ;;  %s5154_s26 = sld [smem:[#allocation4 + $0x2]] }
 0x1b1   : > { %v1784_v1 = vpop.permute.xlu1 %1783  ;;  %v1776_v19 = vpop.permute.xlu0 %1775  ;;  %v2315_v14 = vrot.slane %v2313_v57, 2  ;;  %v2342_v20 = vrot.slane %v2340_v47, 2  ;;  %v2366_v26 = vstv %s5029_s29  ;;  %v2376_v53 = vmul.f32 %v4700_v30, %v2375_v12  ;;  %s5156_s29 = sld [smem:[#allocation6 + $0x2]] }
 0x1b2   : > { %v1786_v43 = vadd.f32 %v1784_v1, %v4951_v25  ;;  %v1778_v13 = vadd.f32 %v1776_v19, %v4956_v34  ;;  %v2330_v25 = vstv %s5007_s7  ;;  %v2360_v49 = vrot.slane %v2358_v41, 2  ;;  %s5146_s7 = sld [smem:[#allocation6]] }
 0x1b3   : > { %2289 = vrot.lane.b32.xlu1 %v2288_v9, %s5362_s28  ;;  %v2331_v3 = vmul.f32 %v4606_v18, %v2330_v25  ;;  %v2349_v18 = vmul.f32 %v4700_v30, %v2348_v7  ;;  %v2367_v51 = vmul.f32 %v4700_v30, %v2366_v26  ;;  %v2393_v21 = vstv %s5037_s5  ;;  %s5160_s5 = sld [smem:[#allocation4 + $0x5]] }
 0x1b4   : > { %2280 = vrot.lane.b32.xlu0 %v2279_v22, %s5362_s28  ;;  %v2378_v44 = vrot.slane %v2376_v53, 2  ;;  %v2394_v27 = vmul.f32 %v4700_v30, %v2393_v21  ;;  %v2411_v5 = vstv %s5047_s8  ;;  %v2402_v11 = vstv %s5050_s6  ;;  %s5172_s8 = sld [smem:[#allocation4 + $0x4]]  ;;  %s5176_s6 = sld [smem:[#allocation6 + $0x5]] }
 0x1b5   : > { %v1800_v48 = vpop.permute.xlu1 %1799  ;;  %v1792_v45 = vpop.permute.xlu0 %1791  ;;  %v2333_v55 = vrot.slane %v2331_v3, 2  ;;  %v2351_v38 = vrot.slane %v2349_v18, 2  ;;  %v2369_v58 = vrot.slane %v2367_v51, 2  ;;  %v2403_v61 = vmul.f32 %v4700_v30, %v2402_v11 }
 0x1b6   : > { %v1802_v34 = vadd.f32 %v1800_v48, %v4976_v0  ;;  %v1794_v50 = vadd.f32 %v1792_v45, %v1730_v63  ;;  %v2396_v56 = vrot.slane %v2394_v27, 2  ;;  %v2429_v22 = vstv %s5057_s0  ;;  %s5181_s0 = sld [smem:[#allocation6 + $0x4]] }
 0x1b7   : > { %2307 = vrot.lane.b32.xlu1 %v2306_v32, %s5362_s28  ;;  %v2420_v52 = vstv %s5060_s12  ;;  %v2405_v32 = vrot.slane %v2403_v61, 2  ;;  %v2447_v35 = vstv %s5067_s14  ;;  %v2438_v57 = vstv %s5070_s11  ;;  %s5185_s12 = sld [smem:[#allocation4 + $0x7]]  ;;  %s5190_s14 = sld [smem:[#allocation4 + $0x6]] }
 0x1b8   : > { %2298 = vrot.lane.b32.xlu0 %v2297_v6, %s5362_s28  ;;  %v2448_v45 = vmul.f32 %v4669_v39, %v2447_v35  ;;  %v2465_v47 = vstv %s5077_s3  ;;  %v2456_v3 = vstv %s5080_s30  ;;  %v2483_v41 = vstv %s5087_s9  ;;  %s5195_s11 = sld [smem:[#allocation6 + $0x7]]  ;;  %s5199_s3 = sld [smem:[#allocation6 + $0x6]] }
 0x1b9   : > { %v1816_v4 = vpop.permute.xlu1 %1815  ;;  %v1808_v42 = vpop.permute.xlu0 %1807  ;;  %v2474_v18 = vstv %s5090_s13  ;;  %s3043_s9 = smul.u32 (%p5452_p7), 24, %s3236_s18 }
 0x1ba   : > { %v1818_v24 = vadd.f32 %v1816_v4, %v1754_v54  ;;  %v1810_v0 = vadd.f32 %v1808_v42, %v1746_v2  ;;  %v2384_v54 = vstv %s5040_s24  ;;  %v2466_v42 = vmul.f32 %v4669_v39, %v2465_v47  ;;  %s237_s24 = sand.u32 1, %s3224_s15  }
 0x1bb   : > { %2325 = vrot.lane.b32.xlu1 %v2324_v40, %s5362_s28  ;;  %v2385_v29 = vmul.f32 %v4700_v30, %v2384_v54  ;;  %v2439_v40 = vmul.f32 %v4669_v39, %v2438_v57  ;;  %s5178_s15 = sshll.u32 %s237_s24, 6  ;;  %s2564_s13 = sadd.s32 (%p5452_p7), %s3232_s17, %s3043_s9 }
 0x1bc   : > { %2316 = vrot.lane.b32.xlu0 %v2315_v14, %s5362_s28  ;;  %s5205_s30 = scalar_lea.vmem [#allocation7], %s5178_s15  ;;  %s3039_s27 = sshll.u32 (%p5452_p7), %s2564_s13, 3 }
 0x1bd   : > { %v1832_v63 = vpop.permute.xlu1 %1831  ;;  %v1824_v62 = vpop.permute.xlu0 %1823  ;;  %v2387_v9 = vrot.slane %v2385_v29, 2 }
 0x1be   : > { %v1834_v10 = vadd.f32 %v1832_v63, %v1770_v15  ;;  %v1826_v37 = vadd.f32 %v1824_v62, %v1762_v31  ;;  %v2412_v31 = vmul.f32 %v4700_v30, %v2411_v5  ;;  %v2421_v30 = vmul.f32 %v4669_v39, %v2420_v52 }
 0x1bf   : > { %2343 = vrot.lane.b32.xlu1 %v2342_v20, %s5362_s28  ;;  %v2457_v20 = vmul.f32 %v4669_v39, %v2456_v3  ;;  %v2484_v62 = vmul.f32 %v4669_v39, %v2483_v41 }
 0x1c0   : > { %2334 = vrot.lane.b32.xlu0 %v2333_v55, %s5362_s28  ;;  %v2414_v19 = vrot.slane %v2412_v31, 2 }
 0x1c1   : > { %v1848_v59 = vpop.permute.xlu1 %1847  ;;  %v1840_v46 = vpop.permute.xlu0 %1839 }
 0x1c2   : > { %v1850_v60 = vadd.f32 %v1848_v59, %v1786_v43  ;;  %v1842_v2 = vadd.f32 %v1840_v46, %v1778_v13  ;;  %v2430_v13 = vmul.f32 %v4669_v39, %v2429_v22  ;;  %v2486_v59 = vrot.slane %v2484_v62, 2 }
 0x1c3   : > { %2361 = vrot.lane.b32.xlu1 %v2360_v49, %s5362_s28  ;;  %v2475_v49 = vmul.f32 %v4669_v39, %v2474_v18 }
 0x1c4   : > { %2352 = vrot.lane.b32.xlu0 %v2351_v38, %s5362_s28 }
 0x1c5   : > { %v1864_v16 = vpop.permute.xlu1 %1863  ;;  %v1856_v17 = vpop.permute.xlu0 %1855  ;;  %v2477_v54 = vrot.slane %v2475_v49, 2 }
 0x1c6   : > { %v1866_v28 = vadd.f32 %v1864_v16, %v1802_v34  ;;  %v1858_v15 = vadd.f32 %v1856_v17, %v1794_v50  ;;  %v2432_v34 = vrot.slane %v2430_v13, 2  ;;  %v2423_v50 = vrot.slane %v2421_v30, 2 }
 0x1c7   : > { %2379 = vrot.lane.b32.xlu1 %v2378_v44, %s5362_s28 }
 0x1c8   : > { %2370 = vrot.lane.b32.xlu0 %v2369_v58, %s5362_s28 }
 0x1c9   : > { %v1880_v36 = vpop.permute.xlu1 %1879  ;;  %v1872_v33 = vpop.permute.xlu0 %1871 }
 0x1ca   : > { %v1882_v1 = vadd.f32 %v1880_v36, %v1818_v24  ;;  %v1874_v43 = vadd.f32 %v1872_v33, %v1810_v0  ;;  %v2450_v24 = vrot.slane %v2448_v45, 2  ;;  %v2441_v0 = vrot.slane %v2439_v40, 2 }
 0x1cb   : > { %2397 = vrot.lane.b32.xlu1 %v2396_v56, %s5362_s28 }
 0x1cc   : > { %2388 = vrot.lane.b32.xlu0 %v2387_v9, %s5362_s28 }
 0x1cd   : > { %v1896_v6 = vpop.permute.xlu1 %1895  ;;  %v1888_v48 = vpop.permute.xlu0 %1887 }
 0x1ce   : > { %v1898_v8 = vadd.f32 %v1896_v6, %v1834_v10  ;;  %v1890_v25 = vadd.f32 %v1888_v48, %v1826_v37  ;;  %v2468_v10 = vrot.slane %v2466_v42, 2  ;;  %v2459_v37 = vrot.slane %v2457_v20, 2 }
 0x1cf   : > { %2415 = vrot.lane.b32.xlu1 %v2414_v19, %s5362_s28 }
 0x1d0   : > { %2406 = vrot.lane.b32.xlu0 %v2405_v32, %s5362_s28 }
 0x1d1   : > { %v1912_v14 = vpop.permute.xlu1 %1911  ;;  %v1904_v4 = vpop.permute.xlu0 %1903 }
 0x1d2   : > { %v1914_v23 = vadd.f32 %v1912_v14, %v1850_v60  ;;  %v1906_v7 = vadd.f32 %v1904_v4, %v1842_v2 }
 0x1d3   : > { %2433 = vrot.lane.b32.xlu1 %v2432_v34, %s5362_s28 }
 0x1d4   : > { %2424 = vrot.lane.b32.xlu0 %v2423_v50, %s5362_s28 }
 0x1d5   : > { %v1930_v55 = vpop.permute.xlu1 %1929  ;;  %v1921_v63 = vpop.permute.xlu0 %1920 }
 0x1d6   : > { %v1932_v12 = vadd.f32 %v1930_v55, %v1866_v28  ;;  %v1923_v26 = vadd.f32 %v1921_v63, %v1858_v15 }
 0x1d7   : > { %2451 = vrot.lane.b32.xlu1 %v2450_v24, %s5362_s28 }
 0x1d8   : > { %2442 = vrot.lane.b32.xlu0 %v2441_v0, %s5362_s28 }
 0x1d9   : > { %v1948_v53 = vpop.permute.xlu1 %1947  ;;  %v1939_v51 = vpop.permute.xlu0 %1938 }
 0x1da   : > { %v1950_v38 = vadd.f32 %v1948_v53, %v1882_v1  ;;  %v1941_v21 = vadd.f32 %v1939_v51, %v1874_v43 }
 0x1db   : > { %2469 = vrot.lane.b32.xlu1 %v2468_v10, %s5362_s28 }
 0x1dc   : > { %2460 = vrot.lane.b32.xlu0 %v2459_v37, %s5362_s28 }
 0x1dd   : > { %v1966_v60 = vpop.permute.xlu1 %1965  ;;  %v1957_v2 = vpop.permute.xlu0 %1956 }
 0x1de   : > { %v1968_v46 = vadd.f32 %v1966_v60, %v1898_v8  ;;  %v1959_v44 = vadd.f32 %v1957_v2, %v1890_v25 }
 0x1df   : > { %2487 = vrot.lane.b32.xlu1 %v2486_v59, %s5362_s28 }
 0x1e0   : > { %2478 = vrot.lane.b32.xlu0 %v2477_v54, %s5362_s28  ;;  %s5138_s28 = sld [smem:[#allocation4 + $0x1]] }
 0x1e1   : > { %v1984_v27 = vpop.permute.xlu1 %1983  ;;  %v1975_v58 = vpop.permute.xlu0 %1974 }
 0x1e2   : > { %v1986_v39 = vadd.f32 %v1984_v27, %v1914_v23  ;;  %v1977_v29 = vadd.f32 %v1975_v58, %v1906_v7 }
 0x1e5   : > { %v2002_v5 = vpop.permute.xlu1 %2001  ;;  %v1993_v11 = vpop.permute.xlu0 %1992 }
 0x1e6   : > { %v2004_v16 = vadd.f32 %v2002_v5, %v1932_v12  ;;  %v1995_v28 = vadd.f32 %v1993_v11, %v1923_v26 }
 0x1e9   : > { %v2020_v17 = vpop.permute.xlu1 %2019  ;;  %v2011_v56 = vpop.permute.xlu0 %2010 }
 0x1ea   : > { %v2022_v15 = vadd.f32 %v2020_v17, %v1950_v38  ;;  %v2013_v31 = vadd.f32 %v2011_v56, %v1941_v21 }
 0x1ed   : > { %v2038_v9 = vpop.permute.xlu1 %2037  ;;  %v2029_v22 = vpop.permute.xlu0 %2028 }
 0x1ee   : > { %v2040_v61 = vadd.f32 %v2038_v9, %v1968_v46  ;;  %v2031_v36 = vadd.f32 %v2029_v22, %v1959_v44  ;;  %v2499_v9 = vstv %s5138_s28 }
 0x1f1   : > { %v2056_v52 = vpop.permute.xlu1 %2055  ;;  %v2047_v33 = vpop.permute.xlu0 %2046 }
 0x1f2   : > { %v2058_v1 = vadd.f32 %v2056_v52, %v1986_v39  ;;  %v2049_v43 = vadd.f32 %v2047_v33, %v1977_v29  ;;  %v2492_v52 = vstv %s5142_s22  ;;  %s2566_s22 = scalar_lea.vmem (%p5452_p7), %s5273_s4, %s3039_s27 }
 0x1f5   : > { %v2074_v19 = vpop.permute.xlu1 %2073  ;;  %v2065_v32 = vpop.permute.xlu0 %2064 }
 0x1f6   : > { %v2076_v13 = vadd.f32 %v2074_v19, %v2004_v16  ;;  %v2067_v30 = vadd.f32 %v2065_v32, %v1995_v28  ;;  %v2495_v19 = vstv %s5146_s7 }
 0x1f9   : > { %v2092_v35 = vpop.permute.xlu1 %2091  ;;  %v2083_v57 = vpop.permute.xlu0 %2082 }
 0x1fa   : > { %v2094_v6 = vadd.f32 %v2092_v35, %v2022_v15  ;;  %v2085_v8 = vadd.f32 %v2083_v57, %v2013_v31  ;;  %v2516_v57 = vstv %s5152_s25 }
 0x1fd   : > { %v2110_v48 = vpop.permute.xlu1 %2109  ;;  %v2101_v34 = vpop.permute.xlu0 %2100 }
 0x1fe   : > { %v5112_v25 = vadd.f32 %v2110_v48, %v2040_v61  ;;  %v5114_v45 = vadd.f32 %v2101_v34, %v2031_v36  ;;  %v2502_v36 = vstv %s5140_s1 }
 0x201   : > { %v2128_v50 = vpop.permute.xlu1 %2127  ;;  %v2119_v47 = vpop.permute.xlu0 %2118 }
 0x202   : > { %v5116_v40 = vadd.f32 %v2128_v50, %v2058_v1  ;;  %v5118_v14 = vadd.f32 %v2119_v47, %v2049_v43  ;;  %v2506_v50 = vstv %s5154_s26 }
 0x205   : > { %v2146_v3 = vpop.permute.xlu1 %2145  ;;  %v2137_v23 = vpop.permute.xlu0 %2136 }
 0x206   : > { %v2148_v39 = vadd.f32 %v2146_v3, %v2076_v13  ;;  %v2139_v29 = vadd.f32 %v2137_v23, %v2067_v30  ;;  %v2513_v13 = vstv %s5148_s2 }
 0x209   : > { %v2164_v4 = vpop.permute.xlu1 %2163  ;;  %v2155_v7 = vpop.permute.xlu0 %2154 }
 0x20a   : > { %v2166_v28 = vadd.f32 %v2164_v4, %v2094_v6  ;;  %v2157_v56 = vadd.f32 %v2155_v7, %v2085_v8 }
 0x20d   : > { %v2182_v24 = vpop.permute.xlu1 %2181  ;;  %v2173_v42 = vpop.permute.xlu0 %2172 }
 0x20e   : > { %v2184_v32 = vadd.f32 %v2182_v24, %v5112_v25  ;;  %v2175_v8 = vadd.f32 %v2173_v42, %v5114_v45  ;;  %v2509_v25 = vstv %s5156_s29 }
 0x211   : > { %v5120_v0 = vpop.permute.xlu1 %2199  ;;  %v5122_v20 = vpop.permute.xlu0 %2190 }
 0x212   : > { %v2202_v45 = vadd.f32 %v5120_v0, %v5116_v40 }
 0x215   : > { %v2218_v41 = vpop.permute.xlu1 %2217 }
 0x216   : > { %v2209_v55 = vpop.permute.xlu0 %2208  ;;  %v2220_v5 = vadd.f32 %v2218_v41, %v2148_v39 }
 0x217   : > { %v2211_v16 = vadd.f32 %v2209_v55, %v2139_v29  ;;  %v2527_v55 = vstv %s5160_s5  ;;  %v2530_v29 = vstv %s5176_s6 }
 0x219   : > { %v2236_v18 = vpop.permute.xlu1 %2235 }
 0x21a   : > { %v2227_v12 = vpop.permute.xlu0 %2226  ;;  %v2238_v61 = vadd.f32 %v2236_v18, %v2166_v28 }
 0x21b   : > { %v2229_v1 = vadd.f32 %v2227_v12, %v2157_v56 }
 0x21d   : > { %v2254_v63 = vpop.permute.xlu1 %2253 }
 0x21e   : > { %v5124_v26 = vpop.permute.xlu0 %2244  ;;  %v2256_v47 = vadd.f32 %v2254_v63, %v2184_v32 }
 0x21f   : > { %v2247_v4 = vadd.f32 %v5124_v26, %v2175_v8 }
 0x221   : > { %v5126_v10 = vpop.permute.xlu1 %2271 }
 0x222   : > { %v5128_v62 = vpop.permute.xlu0 %2262  ;;  %v2274_v40 = vadd.f32 %v5126_v10, %v2202_v45 }
 0x225   : > { %v2290_v37 = vpop.permute.xlu1 %2289 }
 0x226   : > { %v2281_v49 = vpop.permute.xlu0 %2280  ;;  %v2292_v17 = vadd.f32 %v2290_v37, %v2220_v5  ;;  %v2193_v37 = vadd.f32 %v5122_v20, %v5118_v14 }
 0x227   : > { %v2283_v31 = vadd.f32 %v2281_v49, %v2211_v16 }
 0x229   : > { %v2308_v53 = vpop.permute.xlu1 %2307 }
 0x22a   : > { %v2299_v38 = vpop.permute.xlu0 %2298  ;;  %v2310_v30 = vadd.f32 %v2308_v53, %v2238_v61  ;;  %v2541_v61 = vstv %s5185_s12 }
 0x22b   : > { %v2301_v48 = vadd.f32 %v2299_v38, %v2229_v1 }
 0x22d   : > { %v5130_v51 = vpop.permute.xlu1 %2325 }
 0x22e   : > { %v5132_v21 = vpop.permute.xlu0 %2316  ;;  %v2328_v42 = vadd.f32 %v5130_v51, %v2256_v47 }
 0x22f   : > { %v2319_v26 = vadd.f32 %v5132_v21, %v2247_v4 }
 0x231   : > { %v5134_v59 = vpop.permute.xlu1 %2343 }
 0x232   : > { %v5136_v54 = vpop.permute.xlu0 %2334 }
 0x235   : > { %v2362_v60 = vpop.permute.xlu1 %2361 }
 0x236   : > { %v2353_v46 = vpop.permute.xlu0 %2352  ;;  %v2364_v22 = vadd.f32 %v2362_v60, %v2292_v17  ;;  %v2265_v60 = vadd.f32 %v5128_v62, %v2193_v37  ;;  %v2523_v17 = vstv %s5181_s0 }
 0x237   : > { %v2355_v33 = vadd.f32 %v2353_v46, %v2283_v31 }
 0x238   : > { %v2337_v39 = vadd.f32 %v5136_v54, %v2265_v60 }
 0x239   : > { %v2380_v2 = vpop.permute.xlu1 %2379 }
 0x23a   : > { %v2371_v44 = vpop.permute.xlu0 %2370  ;;  %v2382_v3 = vadd.f32 %v2380_v2, %v2310_v30  ;;  %v2346_v2 = vadd.f32 %v5134_v59, %v2274_v40 }
 0x23b   : > { %v2373_v7 = vadd.f32 %v2371_v44, %v2301_v48 }
 0x23d   : > { %v5144_v27 = vpop.permute.xlu1 %2397 }
 0x23e   : > { %v5150_v58 = vpop.permute.xlu0 %2388  ;;  %v2400_v0 = vadd.f32 %v5144_v27, %v2328_v42  ;;  %v2520_v27 = vstv %s5172_s8 }
 0x23f   : > { %v2391_v14 = vadd.f32 %v5150_v58, %v2319_v26 }
 0x241   : > { %v5158_v11 = vpop.permute.xlu1 %2415 }
 0x242   : > { %v5162_v15 = vpop.permute.xlu0 %2406  ;;  %v2418_v5 = vadd.f32 %v5158_v11, %v2346_v2 }
 0x243   : > { %v2409_v56 = vadd.f32 %v5162_v15, %v2337_v39 }
 0x245   : > { %v2434_v43 = vpop.permute.xlu1 %2433 }
 0x246   : > { %v2436_v35 = vadd.f32 %v2434_v43, %v2364_v22  ;;  %v2425_v6 = vpop.permute.xlu0 %2424 }
 0x247   : > { %v2427_v34 = vadd.f32 %v2425_v6, %v2355_v33  ;;  %v2544_v33 = vstv %s5195_s11 }
 0x248   : > { %v2500_v23 = vmul.f32 %v2499_v9, %v2436_v35 }
 0x249   : > { %v2493_v24 = vmul.f32 %v2492_v52, %v2427_v34  ;;  %v2452_v41 = vpop.permute.xlu1 %2451  ;;  %v2534_v52 = vstv %s5190_s14 }
 0x24a   : > { %v2503_v18 = vadd.f32 %v2502_v36, %v2500_v23  ;;  %v2454_v12 = vadd.f32 %v2452_v41, %v2382_v3  ;;  %v2443_v63 = vpop.permute.xlu0 %2442 }
 0x24b   : > { %v2496_v49 = vadd.f32 %v2495_v19, %v2493_v24  ;;  %v2445_v53 = vadd.f32 %v2443_v63, %v2373_v7 }
 0x24c   : > { %v2504_v38 = vmax.f32 %v2503_v18, 0.0  ;;  %v2514_v51 = vmul.f32 %v2513_v13, %v2454_v12  ;;  %v2537_v13 = vstv %s5199_s3 }
 0x24d   : > { %v2497_v20 = vmax.f32 %v2496_v49, 0.0  ;;  %v2507_v21 = vmul.f32 %v2506_v50, %v2445_v53  ;;  %v2470_v46 = vpop.permute.xlu1 %2469 }
 0x24e   : > { %2549 = vst.msk [vmem:[%s5205_s30 + $0x8] sm:$0x3f] %vm2547_vm0, %v2504_v38  ;;  %v2517_v10 = vadd.f32 %v2516_v57, %v2514_v51  ;;  %v2472_v44 = vadd.f32 %v2470_v46, %v2400_v0  ;;  %v2461_v62 = vpop.permute.xlu0 %2460 }
 0x24f   : > { %2548 = vst.msk [vmem:[%s5205_s30] sm:$0x3f] %vm2547_vm0, %v2497_v20  ;;  %v2510_v58 = vadd.f32 %v2509_v25, %v2507_v21  ;;  %v2463_v59 = vadd.f32 %v2461_v62, %v2391_v14 }
 0x250   : > { %v2518_v16 = vmax.f32 %v2517_v10, 0.0  ;;  %v2528_v28 = vmul.f32 %v2527_v55, %v2472_v44 }
 0x251   : > { %v2511_v31 = vmax.f32 %v2510_v58, 0.0  ;;  %v2521_v9 = vmul.f32 %v2520_v27, %v2463_v59  ;;  %v2488_v54 = vpop.permute.xlu1 %2487 }
 0x252   : > { %2551 = vst.msk [vmem:[%s5205_s30 + $0x18] sm:$0x3f] %vm2547_vm0, %v2518_v16  ;;  %v2531_v22 = vadd.f32 %v2530_v29, %v2528_v28  ;;  %v2490_v36 = vadd.f32 %v2488_v54, %v2418_v5  ;;  %v2479_v1 = vpop.permute.xlu0 %2478 }
 0x253   : > { %2550 = vst.msk [vmem:[%s5205_s30 + $0x10] sm:$0x3f] %vm2547_vm0, %v2511_v31  ;;  %v2524_v11 = vadd.f32 %v2523_v17, %v2521_v9  ;;  %v2481_v15 = vadd.f32 %v2479_v1, %v2409_v56 }
 0x254   : > { %v2532_v43 = vmax.f32 %v2531_v22, 0.0  ;;  %v2542_v19 = vmul.f32 %v2541_v61, %v2490_v36 }
 0x255   : > { %v2525_v32 = vmax.f32 %v2524_v11, 0.0  ;;  %v2535_v30 = vmul.f32 %v2534_v52, %v2481_v15  ;;  %2562 = sbr.rel (!%p5452_p7) target bundleno = 612 (0x264), region = 52  ;;  %v2610_v34 = vld [vmem:[%s5205_s30 + $0x8] sm:$0xff] (%p5452_p7) }
 0x256   : > { %2553 = vst.msk [vmem:[%s5205_s30 + $0x28] sm:$0x3f] %vm2547_vm0, %v2532_v43  ;;  %v2545_v35 = vadd.f32 %v2544_v33, %v2542_v19  ;;  %v2608_v48 = vld [vmem:[%s5205_s30] sm:$0xff] (%p5452_p7)  ;;  %2611 = vst [vmem:[%s2566_s22 + $0x18] sm:$0xff] (%p5452_p7), %v2610_v34 }
 0x257   : > { %2552 = vst.msk [vmem:[%s5205_s30 + $0x20] sm:$0x3f] %vm2547_vm0, %v2525_v32  ;;  %v2538_v6 = vadd.f32 %v2537_v13, %v2535_v30  ;;  %2609 = vst [vmem:[%s2566_s22] sm:$0xff] (%p5452_p7), %v2608_v48 }
 0x258   : > { %v2546_v57 = vmax.f32 %v2545_v35, 0.0 }
 0x259   : > { %v2539_v8 = vmax.f32 %v2538_v6, 0.0  ;;  %v2614_v47 = vld [vmem:[%s5205_s30 + $0x18] sm:$0xff] (%p5452_p7) }
 0x25a   : > { %2555 = vst.msk [vmem:[%s5205_s30 + $0x38] sm:$0x3f] %vm2547_vm0, %v2546_v57  ;;  %v2612_v50 = vld [vmem:[%s5205_s30 + $0x10] sm:$0xff] (%p5452_p7)  ;;  %2615 = vst [vmem:[%s2566_s22 + $0x48] sm:$0xff] (%p5452_p7), %v2614_v47 }
 0x25b   : > { %2554 = vst.msk [vmem:[%s5205_s30 + $0x30] sm:$0x3f] %vm2547_vm0, %v2539_v8  ;;  %2613 = vst [vmem:[%s2566_s22 + $0x30] sm:$0xff] (%p5452_p7), %v2612_v50 }
 0x25d   : > { %v2618_v23 = vld [vmem:[%s5205_s30 + $0x28] sm:$0xff] }
 0x25e   : > { %v2616_v3 = vld [vmem:[%s5205_s30 + $0x20] sm:$0xff]  ;;  %2619 = vst [vmem:[%s2566_s22 + $0x78] sm:$0xff] %v2618_v23 }
 0x25f   : > { %2617 = vst [vmem:[%s2566_s22 + $0x60] sm:$0xff] %v2616_v3 }
 0x261   : > { %v2622_v4 = vld [vmem:[%s5205_s30 + $0x38] sm:$0xff] }
 0x262   : > { %v2620_v25 = vld [vmem:[%s5205_s30 + $0x30] sm:$0xff]  ;;  %2623 = vst [vmem:[%s2566_s22 + $0xa8] sm:$0xff] %v2622_v4 }
 0x263   : > { %2621 = vst [vmem:[%s2566_s22 + $0x90] sm:$0xff] %v2620_v25 }
 0x264 PF: > { %s16_s21 = sadd.s32 1, %s3248_s21   ;;  %s5453_s7 = sld [smem:[#allocation10_spill]] }
 0x265   : > { %p13_p8 = scmp.ge.s32.totalorder %s16_s21, 8   ;;  %s5454_s15 = smov %s3228_s16 }
 0x266   : > { %s5455_s16 = smov %s3356_s10  ;;  %s5456_s17 = smov %s3240_s19 }
 0x267   : > { %s5457_s18 = smov %s3244_s20  ;;  %s5458_s19 = smov %s5461_s23 }
 0x268   :  { %15 = sbr.rel (!%p13_p8) target bundleno = 10 (0xa), region = 118 }
 0x26a   : > { %s5459_s20 = smov %s5453_s7 }
 0x26f   :  { %2639 = vsyncpa [#allocation3], 1 }
 0x270   :  { %2641 = vsyncpa [#allocation3 + $0x1], 1 }
 0x271   :  { %2642 = vsyncpa [#allocation5], 1 }

// kernel: upblock_forward.2
= control target key start
LH: loop header
LB: loop body
LE: loop exit
PB: predicated region body
PF: predicated region fallthrough
CT: control target
= control target key end

     0   :  { %9 = vsyncpa [#allocation3], 0  ;;  %s3284_s12 = smov 0   ;;  %s3286_s13 = smov 0   ;;  %s5288_s0 = inlined_call_operand.vmem [shape: f32[2,4,20,20], index: 0, kind: input, shape index: {}]   ;;  %s5289_s1 = inlined_call_operand.vmem [shape: f32[288], index: 1, kind: input, shape index: {}]   ;;  %s5290_s2 = inlined_call_operand.vmem [shape: f32[2,3,8,1,1], index: 2, kind: output, shape index: {0}]   ;;  %s5291_s3 = inlined_call_operand.vmem [shape: f32[2,3,8,1,1], index: 3, kind: output, shape index: {1}]  }
   0x1   :  { %s3288_s14 = smov 0   ;;  %s3290_s15 = smov 0  }
   0x2   :  { %s3292_s16 = smov 0  }
   0x3 LB: > { %s2838_s17 = sadd.s32 4294967295, %s3259_s16   ;;  %s24_s18 = sadd.s32 1, %s3251_s14  ;;  %s3259_s16 = sphi %s3292_s16, %s15_s16   ;;  %s3255_s15 = sphi %s3290_s15, %s5485_s15   ;;  %s3251_s14 = sphi %s3288_s14, %s5484_s14   ;;  %s3247_s13 = sphi %s3286_s13, %s5483_s13   ;;  %s3243_s12 = sphi %s3284_s12, %s5482_s12  }
   0x4   : > { %p25_p0 = scmp.ge.s32.totalorder %s24_s18, 3  ;;  %s27_s19 = sadd.s32 1, %s3255_s15 }
   0x5   : > { %p2840_p1 = scmp.ge.s32.totalorder %s3259_s16, 1  ;;  %p135_p2 = scmp.lt.s32.totalorder %s3259_s16, 7 }
   0x6   : > { %s5487_s18 = smov (%p25_p0, %s24_s18), 0  ;;  %s5489_s19 = smov (!%p25_p0, %s27_s19), %s3255_s15 }
   0x7   : > { %p3317_p3 = pnand %p2840_p1, %p135_p2  ;;  %p29_p4 = scmp.ge.s32.totalorder %s5489_s19, 2 }
   0x8   : > { %p3321_p5 = scmp.eq.s32.totalorder %s2838_s17, 0  ;;  %s148_s24 = sshll.u32 %s5289_s1, 4  ;;  %s149_s24 = int_to_ptr.vmem [resolvable:$true] %s148_s24 }
   0x9   : > { %p3143_p6 = pneg %p3317_p3  ;;  %s5491_s19 = smov (%p29_p4, %s5489_s19), 0 }
   0xa   : > { %s3202_s25 = scalar_lea.vmem %s149_s24, 48  ;;  %s3209_s26 = scalar_lea.vmem %s149_s24, 64 }
   0xb   : > { %p3144_p7 = pnand %p3321_p5, %p3143_p6  ;;  %p3203_p8 = scmp.ne.s32.totalorder %s149_s24, %s3202_s25 }
   0xc   : > { %p3210_p12 = scmp.lt.s32.totalorder %s149_s24, %s149_s24  ;;  %p3211_p13 = scmp.lt.s32.totalorder %s3209_s26, %s3202_s25 }
   0xd   : > { %p3204_p9 = pneg %p3144_p7 }
   0xe   : > { %p3212_p0 = por %p3211_p13, %p3210_p12 }
   0xf   : > { %p3205_p10 = pnand %p3204_p9, %p3203_p8 }
  0x11   : > { %p3206_p11 = pneg %p3205_p10 }
  0x13   : > { %p3213_p1 = pnand %p3212_p0, %p3206_p11 }
  0x15   : > { %3216 = shalt.err (!%p3213_p1)
}
  0x16   : > { %s3261_s27 = smov [#allocation2]   ;;  %169 = sbr.rel (%p3317_p3) target bundleno = 865 (0x361), region = 28 }
  0x17   : > { %3146 = dma.vmem_to_smem (!%p3144_p7), %s149_s24, 48, %s3261_s27, [#allocation3]  }
  0x1d   : > { %3238 = dma.done.wait (%p3321_p5), [#allocation3], 48  }
  0x1e   : > { %3240 = vsyncadd (%p3321_p5), [#allocation3], 4294967248 }
  0x1f   : > { %175 = sfence }
  0x20   : > { %p205_p2 = scmp.lt.s32.totalorder %s3247_s13, 1  ;;  %s5292_s28 = smul.u32 6, %s3243_s12  ;;  %vm2477_vm0 = vcmask 144384   ;;  %vm2502_vm1 = vcmask 1045504   ;;  %vm2679_vm2 = vcmask 0  }
  0x21   : > { %s2945_s29 = sld [smem:[#allocation2 + $0x22]]  ;;  %s2943_s30 = sld [smem:[#allocation2 + $0x20]] }
  0x22   : > { %s5493_s13 = smov (!%p205_p2, %s3247_s13), 1  ;;  %s2946_s4 = sld [smem:[#allocation2 + $0x23]] }
  0x23   : > { %s3137_s5 = smul.u32 96, %s5493_s13  ;;  %s2944_s6 = sld [smem:[#allocation2 + $0x21]] }
  0x24   : > { %s2948_s7 = sld [smem:[#allocation2 + $0x25]]  ;;  %s2947_s8 = sld [smem:[#allocation2 + $0x24]] }
  0x25   : > { %s209_s11 = scalar_lea.vmem %s5288_s0, %s3137_s5  ;;  %s2950_s20 = sld [smem:[#allocation2 + $0x27]] }
  0x26   : > { %s3351_s17 = scalar_lea.vmem %s209_s11, %s5292_s28  ;;  %s2949_s21 = sld [smem:[#allocation2 + $0x26]] }
  0x27   : > { %v825_v0 = vstv %s2945_s29  ;;  %v3354_v1 = vld [vmem:[%s3351_s17] sm:$0xff]  ;;  %v809_v3 = vstv %s2943_s30  ;;  %s3262_s22 = smov 127   ;;  %s2952_s23 = sld [smem:[#allocation2 + $0x29]]  ;;  %v3371_v17 = vld [vmem:[%s3351_s17 + $0x18] sm:$0xff] }
  0x28   : > { %v826_v2 = vmul.f32 %v825_v0, %v3354_v1  ;;  %v833_v4 = vstv %s2946_s4  ;;  %v810_v5 = vmul.f32 %v809_v3, %v3354_v1  ;;  %s2951_s24 = sld [smem:[#allocation2 + $0x28]]  ;;  %s2954_s25 = sld [smem:[#allocation2 + $0x2b]]  ;;  %v3390_v34 = vld [vmem:[%s3351_s17 + $0x30] sm:$0xff]  ;;  %v3409_v51 = vld [vmem:[%s3351_s17 + $0x48] sm:$0xff] }
  0x29   : > { %v817_v6 = vstv %s2944_s6  ;;  %v834_v7 = vmul.f32 %v833_v4, %v3354_v1  ;;  %s2953_s26 = sld [smem:[#allocation2 + $0x2a]]  ;;  %s2956_s27 = sld [smem:[#allocation2 + $0x2d]] }
  0x2a   : > { %828 = vrot.lane.b32.xlu1 %v826_v2, %s3262_s22  ;;  %812 = vrot.lane.b32.xlu0 %v810_v5, %s3262_s22  ;;  %v818_v8 = vmul.f32 %v817_v6, %v3354_v1  ;;  %v849_v9 = vstv %s2948_s7  ;;  %v841_v10 = vstv %s2947_s8  ;;  %s2955_s29 = sld [smem:[#allocation2 + $0x2c]]  ;;  %s2958_s30 = sld [smem:[#allocation2 + $0x2f]] }
  0x2b   : > { %v850_v11 = vmul.f32 %v849_v9, %v3354_v1  ;;  %v842_v12 = vmul.f32 %v841_v10, %v3354_v1  ;;  %v865_v13 = vstv %s2950_s20  ;;  %s2957_s4 = sld [smem:[#allocation2 + $0x2e]]  ;;  %s2960_s5 = sld [smem:[#allocation2 + $0x31]] }
  0x2c   : > { %v857_v14 = vstv %s2949_s21  ;;  %v866_v15 = vmul.f32 %v865_v13, %v3354_v1  ;;  %s2959_s6 = sld [smem:[#allocation2 + $0x30]]  ;;  %s2962_s7 = sld [smem:[#allocation2 + $0x33]] }
  0x2d   : > { %v858_v16 = vmul.f32 %v857_v14, %v3354_v1  ;;  %v881_v18 = vstv %s2952_s23  ;;  %s2961_s8 = sld [smem:[#allocation2 + $0x32]]  ;;  %s2964_s9 = sld [smem:[#allocation2 + $0x35]] }
  0x2e   : > { %836 = vrot.lane.b32.xlu1 %v834_v7, %s3262_s22  ;;  %820 = vrot.lane.b32.xlu0 %v818_v8, %s3262_s22  ;;  %v873_v19 = vstv %s2951_s24  ;;  %v882_v20 = vmul.f32 %v881_v18, %v3371_v17  ;;  %v897_v22 = vstv %s2954_s25  ;;  %s2963_s10 = sld [smem:[#allocation2 + $0x34]]  ;;  %s2966_s11 = sld [smem:[#allocation2 + $0x37]] }
  0x2f   : > { %v874_v21 = vmul.f32 %v873_v19, %v3371_v17  ;;  %v889_v23 = vstv %s2953_s26  ;;  %v898_v24 = vmul.f32 %v897_v22, %v3371_v17  ;;  %v913_v26 = vstv %s2956_s27  ;;  %s2965_s20 = sld [smem:[#allocation2 + $0x36]]  ;;  %s2968_s21 = sld [smem:[#allocation2 + $0x39]] }
  0x30   : > { %v890_v25 = vmul.f32 %v889_v23, %v3371_v17  ;;  %v905_v27 = vstv %s2955_s29  ;;  %v914_v28 = vmul.f32 %v913_v26, %v3371_v17  ;;  %v929_v30 = vstv %s2958_s30  ;;  %s2967_s23 = sld [smem:[#allocation2 + $0x38]]  ;;  %s2970_s24 = sld [smem:[#allocation2 + $0x3b]] }
  0x31   : > { %v906_v29 = vmul.f32 %v905_v27, %v3371_v17  ;;  %v921_v31 = vstv %s2957_s4  ;;  %v930_v32 = vmul.f32 %v929_v30, %v3371_v17  ;;  %v945_v35 = vstv %s2960_s5  ;;  %s2969_s25 = sld [smem:[#allocation2 + $0x3a]]  ;;  %s2972_s26 = sld [smem:[#allocation2 + $0x3d]] }
  0x32   : > { %852 = vrot.lane.b32.xlu1 %v850_v11, %s3262_s22  ;;  %844 = vrot.lane.b32.xlu0 %v842_v12, %s3262_s22  ;;  %v922_v33 = vmul.f32 %v921_v31, %v3371_v17  ;;  %v937_v36 = vstv %s2959_s6  ;;  %v946_v37 = vmul.f32 %v945_v35, %v3390_v34  ;;  %v961_v39 = vstv %s2962_s7  ;;  %s2971_s27 = sld [smem:[#allocation2 + $0x3c]]  ;;  %s2974_s29 = sld [smem:[#allocation2 + $0x3f]] }
  0x33   : > { %v938_v38 = vmul.f32 %v937_v36, %v3390_v34  ;;  %v953_v40 = vstv %s2961_s8  ;;  %v962_v41 = vmul.f32 %v961_v39, %v3390_v34  ;;  %v977_v43 = vstv %s2964_s9  ;;  %s2976_s30 = sld [smem:[#allocation2 + $0x81]]  ;;  %s2973_s4 = sld [smem:[#allocation2 + $0x3e]] }
  0x34   : > { %v954_v42 = vmul.f32 %v953_v40, %v3390_v34  ;;  %v969_v44 = vstv %s2963_s10  ;;  %v978_v45 = vmul.f32 %v977_v43, %v3390_v34  ;;  %v993_v47 = vstv %s2966_s11  ;;  %s2975_s5 = sld [smem:[#allocation2 + $0x80]]  ;;  %s2978_s6 = sld [smem:[#allocation2 + $0x83]] }
  0x35   : > { %v970_v46 = vmul.f32 %v969_v44, %v3390_v34  ;;  %v985_v48 = vstv %s2965_s20  ;;  %v994_v49 = vmul.f32 %v993_v47, %v3390_v34  ;;  %v1009_v52 = vstv %s2968_s21  ;;  %s2977_s7 = sld [smem:[#allocation2 + $0x82]]  ;;  %s2980_s8 = sld [smem:[#allocation2 + $0x85]] }
  0x36   : > { %868 = vrot.lane.b32.xlu1 %v866_v15, %s3262_s22  ;;  %860 = vrot.lane.b32.xlu0 %v858_v16, %s3262_s22  ;;  %v986_v50 = vmul.f32 %v985_v48, %v3390_v34  ;;  %v1001_v53 = vstv %s2967_s23  ;;  %v1010_v54 = vmul.f32 %v1009_v52, %v3409_v51  ;;  %v1025_v56 = vstv %s2970_s24  ;;  %s2979_s9 = sld [smem:[#allocation2 + $0x84]]  ;;  %s2982_s10 = sld [smem:[#allocation2 + $0x87]] }
  0x37   : > { %v1002_v55 = vmul.f32 %v1001_v53, %v3409_v51  ;;  %v1017_v57 = vstv %s2969_s25  ;;  %v1026_v58 = vmul.f32 %v1025_v56, %v3409_v51  ;;  %v1041_v60 = vstv %s2972_s26  ;;  %s2981_s11 = sld [smem:[#allocation2 + $0x86]]  ;;  %s2984_s20 = sld [smem:[#allocation2 + $0x89]] }
  0x38   : > { %v1018_v59 = vmul.f32 %v1017_v57, %v3409_v51  ;;  %v1033_v61 = vstv %s2971_s27  ;;  %v1042_v62 = vmul.f32 %v1041_v60, %v3409_v51  ;;  %v1057_v0 = vstv %s2974_s29  ;;  %s2983_s21 = sld [smem:[#allocation2 + $0x88]]  ;;  %s2986_s23 = sld [smem:[#allocation2 + $0x8b]] }
  0x39   : > { %v1034_v63 = vmul.f32 %v1033_v61, %v3409_v51  ;;  %v1074_v2 = vstv %s2976_s30  ;;  %v1049_v3 = vstv %s2973_s4  ;;  %v1058_v5 = vmul.f32 %v1057_v0, %v3409_v51  ;;  %s2985_s24 = sld [smem:[#allocation2 + $0x8a]]  ;;  %s2988_s25 = sld [smem:[#allocation2 + $0x8d]] }
  0x3a   : > { %884 = vrot.lane.b32.xlu1 %v882_v20, %s3262_s22  ;;  %876 = vrot.lane.b32.xlu0 %v874_v21, %s3262_s22  ;;  %v1065_v4 = vstv %s2975_s5  ;;  %v1075_v6 = vmul.f32 %v1074_v2, %v3354_v1  ;;  %v1050_v7 = vmul.f32 %v1049_v3, %v3409_v51  ;;  %v1092_v9 = vstv %s2978_s6  ;;  %s2987_s26 = sld [smem:[#allocation2 + $0x8c]]  ;;  %s2990_s27 = sld [smem:[#allocation2 + $0x8f]] }
  0x3b   : > { %v1066_v8 = vmul.f32 %v1065_v4, %v3354_v1  ;;  %v1083_v10 = vstv %s2977_s7  ;;  %v1093_v12 = vmul.f32 %v1092_v9, %v3354_v1  ;;  %v1110_v15 = vstv %s2980_s8  ;;  %s2989_s29 = sld [smem:[#allocation2 + $0x8e]]  ;;  %s2992_s30 = sld [smem:[#allocation2 + $0x91]] }
  0x3c   : > { %v1077_v11 = vrot.slane %v1075_v6, 1  ;;  %v1084_v14 = vmul.f32 %v1083_v10, %v3354_v1  ;;  %v1101_v16 = vstv %s2979_s9  ;;  %v1111_v19 = vmul.f32 %v1110_v15, %v3354_v1  ;;  %s2991_s4 = sld [smem:[#allocation2 + $0x90]]  ;;  %s2994_s5 = sld [smem:[#allocation2 + $0x93]] }
  0x3d   : > { %v1068_v13 = vrot.slane %v1066_v8, 1  ;;  %v1095_v18 = vrot.slane %v1093_v12, 1  ;;  %v1102_v21 = vmul.f32 %v1101_v16, %v3354_v1  ;;  %v1128_v22 = vstv %s2982_s10  ;;  %s2993_s6 = sld [smem:[#allocation2 + $0x92]]  ;;  %s2996_s7 = sld [smem:[#allocation2 + $0x95]] }
  0x3e   : > { %900 = vrot.lane.b32.xlu1 %v898_v24, %s3262_s22  ;;  %892 = vrot.lane.b32.xlu0 %v890_v25, %s3262_s22  ;;  %v1086_v20 = vrot.slane %v1084_v14, 1  ;;  %v1119_v23 = vstv %s2981_s11  ;;  %v1113_v24 = vrot.slane %v1111_v19, 1  ;;  %v1129_v25 = vmul.f32 %v1128_v22, %v3354_v1  ;;  %s2995_s8 = sld [smem:[#allocation2 + $0x94]]  ;;  %s2998_s9 = sld [smem:[#allocation2 + $0x97]] }
  0x3f   : > { %v1104_v26 = vrot.slane %v1102_v21, 1  ;;  %v1120_v27 = vmul.f32 %v1119_v23, %v3354_v1  ;;  %v1164_v35 = vstv %s2986_s23  ;;  %v1155_v36 = vstv %s2985_s24  ;;  %s2997_s10 = sld [smem:[#allocation2 + $0x96]]  ;;  %s3000_s11 = sld [smem:[#allocation2 + $0x99]] }
  0x40   : > { %v1131_v30 = vrot.slane %v1129_v25, 1  ;;  %v1156_v40 = vmul.f32 %v1155_v36, %v3371_v17  ;;  %v1200_v47 = vstv %s2990_s27  ;;  %s3001_s23 = sld [smem:[#allocation2 + $0x9a]]  ;;  %s3004_s24 = sld [smem:[#allocation2 + $0x9d]] }
  0x41   : > { %v1191_v48 = vstv %s2989_s29  ;;  %s3005_s27 = sld [smem:[#allocation2 + $0x9e]]  ;;  %s3008_s29 = sld [smem:[#allocation2 + $0xe1]] }
  0x42   : > { %916 = vrot.lane.b32.xlu1 %v914_v28, %s3262_s22  ;;  %908 = vrot.lane.b32.xlu0 %v906_v29, %s3262_s22  ;;  %v1146_v28 = vstv %s2984_s20  ;;  %v1137_v29 = vstv %s2983_s21  ;;  %v1192_v53 = vmul.f32 %v1191_v48, %v3371_v17  ;;  %s2999_s20 = sld [smem:[#allocation2 + $0x98]]  ;;  %s3002_s21 = sld [smem:[#allocation2 + $0x9b]] }
  0x43   : > { %v1147_v31 = vmul.f32 %v1146_v28, %v3371_v17  ;;  %v1236_v60 = vstv %s2994_s5  ;;  %v1227_v61 = vstv %s2993_s6  ;;  %v1254_v3 = vstv %s2996_s7  ;;  %s3009_s5 = sld [smem:[#allocation2 + $0xe2]]  ;;  %s3012_s6 = sld [smem:[#allocation2 + $0xe5]] }
  0x44   : > { %v1228_v2 = vmul.f32 %v1227_v61, %v3390_v34  ;;  %v1245_v4 = vstv %s2995_s8  ;;  %v1255_v6 = vmul.f32 %v1254_v3, %v3390_v34  ;;  %v1272_v9 = vstv %s2998_s9  ;;  %s3011_s7 = sld [smem:[#allocation2 + $0xe4]]  ;;  %s3499_s8 = sld [smem:[#allocation2 + $0xe7]] }
  0x45   : > { %v1246_v8 = vmul.f32 %v1245_v4, %v3390_v34  ;;  %v1263_v10 = vstv %s2997_s10  ;;  %v1273_v12 = vmul.f32 %v1272_v9, %v3390_v34  ;;  %v1290_v15 = vstv %s3000_s11  ;;  %s3503_s9 = sld [smem:[#allocation2 + $0xe6]]  ;;  %s3512_s10 = sld [smem:[#allocation2 + $0xe9]] }
  0x46   : > { %932 = vrot.lane.b32.xlu1 %v930_v32, %s3262_s22  ;;  %924 = vrot.lane.b32.xlu0 %v922_v33, %s3262_s22  ;;  %v1122_v32 = vrot.slane %v1120_v27, 1  ;;  %v1138_v33 = vmul.f32 %v1137_v29, %v3371_v17  ;;  %v1264_v14 = vmul.f32 %v1263_v10, %v3390_v34  ;;  %v1291_v19 = vmul.f32 %v1290_v15, %v3409_v51  ;;  %s3517_s11 = sld [smem:[#allocation2 + $0xe8]]  ;;  %p212_p4 = scmp.lt.s32.totalorder %s3243_s12, 2 }
  0x47   : > { %v1299_v23 = vstv %s3001_s23  ;;  %v1326_v28 = vstv %s3004_s24  ;;  %v1362_v48 = vstv %s3008_s29  ;;  %s3540_s23 = sld [smem:[#allocation2 + $0xed]]  ;;  %s3545_s24 = sld [smem:[#allocation2 + $0xec]] }
  0x48   : > { %v1140_v39 = vrot.slane %v1138_v33, 1  ;;  %v1281_v16 = vstv %s2999_s20  ;;  %v1308_v22 = vstv %s3002_s21  ;;  %v1300_v27 = vmul.f32 %v1299_v23, %v3409_v51  ;;  %s3526_s20 = sld [smem:[#allocation2 + $0xeb]]  ;;  %s3531_s21 = sld [smem:[#allocation2 + $0xea]] }
  0x49   : > { %v1282_v21 = vmul.f32 %v1281_v16, %v3409_v51  ;;  %v1309_v25 = vmul.f32 %v1308_v22, %v3409_v51  ;;  %s3573_s29 = sld [smem:[#allocation2 + $0xf0]] }
  0x4a   : > { %948 = vrot.lane.b32.xlu1 %v946_v37, %s3262_s22  ;;  %940 = vrot.lane.b32.xlu0 %v938_v38, %s3262_s22  ;;  %v1149_v37 = vrot.slane %v1147_v31, 1  ;;  %v1165_v38 = vmul.f32 %v1164_v35, %v3371_v17  ;;  %v1327_v31 = vmul.f32 %v1326_v28, %v3409_v51  ;;  %s4227_s28 = sld [smem:[#allocation2 + $0xa0]] }
  0x4c   : > { %v1167_v43 = vrot.slane %v1165_v38, 1  ;;  %v1425_v15 = vstv %s3517_s11  ;;  %s3638_s11 = sld [smem:[#allocation2 + $0xfb]] }
  0x4e   : > { %964 = vrot.lane.b32.xlu1 %v962_v41, %s3262_s22  ;;  %956 = vrot.lane.b32.xlu0 %v954_v42, %s3262_s22  ;;  %v1182_v41 = vstv %s2988_s25  ;;  %v1173_v42 = vstv %s2987_s26  ;;  %s3003_s25 = sld [smem:[#allocation2 + $0x9c]]  ;;  %s3006_s26 = sld [smem:[#allocation2 + $0x9f]] }
  0x4f   : > { %v1183_v44 = vmul.f32 %v1182_v41, %v3371_v17  ;;  %v1452_v22 = vstv %s3526_s20  ;;  %s3643_s20 = sld [smem:[#allocation2 + $0xfa]] }
  0x52   : > { %980 = vrot.lane.b32.xlu1 %v978_v45, %s3262_s22  ;;  %972 = vrot.lane.b32.xlu0 %v970_v46, %s3262_s22  ;;  %v1158_v45 = vrot.slane %v1156_v40, 1  ;;  %v1174_v46 = vmul.f32 %v1173_v42, %v3371_v17 }
  0x54   : > { %v1176_v52 = vrot.slane %v1174_v46, 1  ;;  %v1317_v29 = vstv %s3003_s25  ;;  %v1344_v35 = vstv %s3006_s26  ;;  %s3554_s25 = sld [smem:[#allocation2 + $0xef]]  ;;  %s3559_s26 = sld [smem:[#allocation2 + $0xee]] }
  0x55   : > { %v1318_v33 = vmul.f32 %v1317_v29, %v3409_v51  ;;  %v1345_v40 = vmul.f32 %v1344_v35, %v3409_v51 }
  0x56   : > { %996 = vrot.lane.b32.xlu1 %v994_v49, %s3262_s22  ;;  %988 = vrot.lane.b32.xlu0 %v986_v50, %s3262_s22  ;;  %v1185_v49 = vrot.slane %v1183_v44, 1  ;;  %v1201_v50 = vmul.f32 %v1200_v47, %v3371_v17 }
  0x57   : > { %v1320_v41 = vrot.slane %v1318_v33, 1 }
  0x58   : > { %v1203_v56 = vrot.slane %v1201_v50, 1 }
  0x5a   : > { %1012 = vrot.lane.b32.xlu1 %v1010_v54, %s3262_s22  ;;  %1004 = vrot.lane.b32.xlu0 %v1002_v55, %s3262_s22  ;;  %v1218_v54 = vstv %s2992_s30  ;;  %v1209_v55 = vstv %s2991_s4  ;;  %s3007_s30 = sld [smem:[#allocation2 + $0xe0]]  ;;  %s3010_s4 = sld [smem:[#allocation2 + $0xe3]] }
  0x5b   : > { %v1219_v57 = vmul.f32 %v1218_v54, %v3390_v34 }
  0x5e   : > { %1028 = vrot.lane.b32.xlu1 %v1026_v58, %s3262_s22  ;;  %1020 = vrot.lane.b32.xlu0 %v1018_v59, %s3262_s22  ;;  %v1194_v58 = vrot.slane %v1192_v53, 1  ;;  %v1210_v59 = vmul.f32 %v1209_v55, %v3390_v34  ;;  %v1363_v53 = vmul.f32 %v1362_v48, %v3354_v1 }
  0x60   : > { %v1212_v0 = vrot.slane %v1210_v59, 1  ;;  %v1380_v50 = vstv %s3010_s4  ;;  %s3587_s4 = sld [smem:[#allocation2 + $0xf2]] }
  0x61   : > { %v1381_v55 = vmul.f32 %v1380_v50, %v3354_v1 }
  0x62   : > { %1044 = vrot.lane.b32.xlu1 %v1042_v62, %s3262_s22  ;;  %1036 = vrot.lane.b32.xlu0 %v1034_v63, %s3262_s22  ;;  %v1221_v62 = vrot.slane %v1219_v57, 1  ;;  %v1237_v63 = vmul.f32 %v1236_v60, %v3390_v34  ;;  %v1398_v60 = vstv %s3012_s6  ;;  %s3601_s6 = sld [smem:[#allocation2 + $0xf4]] }
  0x66   : > { %1060 = vrot.lane.b32.xlu1 %v1058_v5, %s3262_s22  ;;  %1052 = vrot.lane.b32.xlu0 %v1050_v7, %s3262_s22  ;;  %v1239_v5 = vrot.slane %v1237_v63, 1  ;;  %v1230_v7 = vrot.slane %v1228_v2, 1  ;;  %v1383_v63 = vrot.slane %v1381_v55, 2  ;;  %v1389_v2 = vstv %s3011_s7  ;;  %s3610_s7 = sld [smem:[#allocation2 + $0xf7]] }
  0x67   : > { %v1390_v4 = vmul.f32 %v1389_v2, %v3354_v1 }
  0x6a   : > { %1078 = vrot.lane.b32.xlu1 %v1077_v11, %s3262_s22  ;;  %1069 = vrot.lane.b32.xlu0 %v1068_v13, %s3262_s22  ;;  %v1257_v11 = vrot.slane %v1255_v6, 1  ;;  %v1248_v13 = vrot.slane %v1246_v8, 1 }
  0x6e   : > { %1096 = vrot.lane.b32.xlu1 %v1095_v18, %s3262_s22  ;;  %1087 = vrot.lane.b32.xlu0 %v1086_v20, %s3262_s22  ;;  %v1275_v18 = vrot.slane %v1273_v12, 1  ;;  %v1266_v20 = vrot.slane %v1264_v14, 1 }
  0x72   : > { %1114 = vrot.lane.b32.xlu1 %v1113_v24, %s3262_s22  ;;  %1105 = vrot.lane.b32.xlu0 %v1104_v26, %s3262_s22  ;;  %v1293_v24 = vrot.slane %v1291_v19, 1  ;;  %v1284_v26 = vrot.slane %v1282_v21, 1  ;;  %v1426_v21 = vmul.f32 %v1425_v15, %v3371_v17 }
  0x74   : > { %v1428_v28 = vrot.slane %v1426_v21, 2 }
  0x76   : > { %1132 = vrot.lane.b32.xlu1 %v1131_v30, %s3262_s22  ;;  %1123 = vrot.lane.b32.xlu0 %v1122_v32, %s3262_s22  ;;  %v1311_v30 = vrot.slane %v1309_v25, 1  ;;  %v1302_v32 = vrot.slane %v1300_v27, 1  ;;  %v1453_v27 = vmul.f32 %v1452_v22, %v3371_v17  ;;  %v1560_v22 = vstv %s3610_s7  ;;  %s3712_s7 = sld [smem:[#allocation2 + $0x40]] }
  0x78   : > { %v1455_v35 = vrot.slane %v1453_v27, 2 }
  0x7a   : > { %1150 = vrot.lane.b32.xlu1 %v1149_v37, %s3262_s22  ;;  %1141 = vrot.lane.b32.xlu0 %v1140_v39, %s3262_s22  ;;  %v1335_v37 = vstv %s3005_s27  ;;  %v1329_v39 = vrot.slane %v1327_v31, 1  ;;  %s3568_s27 = sld [smem:[#allocation2 + $0xf1]] }
  0x7b   : > { %v1336_v42 = vmul.f32 %v1335_v37, %v3409_v51 }
  0x7d   : > { %v1338_v46 = vrot.slane %v1336_v42, 1 }
  0x7e   : > { %1168 = vrot.lane.b32.xlu1 %v1167_v43, %s3262_s22  ;;  %1159 = vrot.lane.b32.xlu0 %v1158_v45, %s3262_s22  ;;  %v1347_v45 = vrot.slane %v1345_v40, 1 }
  0x82   : > { %1186 = vrot.lane.b32.xlu1 %v1185_v49, %s3262_s22  ;;  %1177 = vrot.lane.b32.xlu0 %v1176_v52, %s3262_s22  ;;  %v1353_v49 = vstv %s3007_s30  ;;  %s3582_s30 = sld [smem:[#allocation2 + $0xf3]] }
  0x83   : > { %v1354_v54 = vmul.f32 %v1353_v49, %v3354_v1 }
  0x86   : > { %1204 = vrot.lane.b32.xlu1 %v1203_v56, %s3262_s22  ;;  %1195 = vrot.lane.b32.xlu0 %v1194_v58, %s3262_s22  ;;  %v1371_v56 = vstv %s3009_s5  ;;  %v1365_v58 = vrot.slane %v1363_v53, 2  ;;  %s3596_s5 = sld [smem:[#allocation2 + $0xf5]] }
  0x87   : > { %v1372_v59 = vmul.f32 %v1371_v56, %v3354_v1  ;;  %v1497_v56 = vstv %s3573_s29  ;;  %s3677_s29 = sld [smem:[#allocation2 + $0xfe]] }
  0x89   : > { %v1374_v3 = vrot.slane %v1372_v59, 2 }
  0x8a   : > { %1222 = vrot.lane.b32.xlu1 %v1221_v62, %s3262_s22  ;;  %1213 = vrot.lane.b32.xlu0 %v1212_v0, %s3262_s22  ;;  %v1356_v62 = vrot.slane %v1354_v54, 2  ;;  %v1399_v0 = vmul.f32 %v1398_v60, %v3354_v1  ;;  %v1506_v54 = vstv %s3568_s27  ;;  %s3672_s27 = sld [smem:[#allocation2 + $0xff]] }
  0x8b   : > { %v1507_v60 = vmul.f32 %v1506_v54, %v3390_v34  ;;  %v1587_v54 = vstv %s3643_s20  ;;  %s3733_s20 = sld [smem:[#allocation2 + $0x42]] }
  0x8c   : > { %v1401_v9 = vrot.slane %v1399_v0, 2  ;;  %v1524_v0 = vstv %s3582_s30  ;;  %s3685_s30 = sld [smem:[#allocation2 + $0x1a]] }
  0x8e   : > { %1240 = vrot.lane.b32.xlu1 %v1239_v5, %s3262_s22  ;;  %1231 = vrot.lane.b32.xlu0 %v1230_v7, %s3262_s22  ;;  %v1416_v5 = vstv %s3499_s8  ;;  %v1407_v7 = vstv %s3503_s9  ;;  %s3615_s8 = sld [smem:[#allocation2 + $0xf6]]  ;;  %s3624_s9 = sld [smem:[#allocation2 + $0xf9]] }
  0x8f   : > { %v1417_v10 = vmul.f32 %v1416_v5, %v3354_v1  ;;  %v1408_v12 = vmul.f32 %v1407_v7, %v3354_v1  ;;  %v1509_v5 = vrot.slane %v1507_v60, 2  ;;  %v1525_v7 = vmul.f32 %v1524_v0, %v3390_v34 }
  0x92   : > { %1258 = vrot.lane.b32.xlu1 %v1257_v11, %s3262_s22  ;;  %1249 = vrot.lane.b32.xlu0 %v1248_v13, %s3262_s22  ;;  %v1392_v11 = vrot.slane %v1390_v4, 2  ;;  %v1434_v13 = vstv %s3512_s10  ;;  %s3629_s10 = sld [smem:[#allocation2 + $0xf8]] }
  0x93   : > { %v1435_v19 = vmul.f32 %v1434_v13, %v3371_v17  ;;  %v1533_v13 = vstv %s3601_s6  ;;  %s3707_s6 = sld [smem:[#allocation2 + $0x41]] }
  0x94   : > { %v1534_v21 = vmul.f32 %v1533_v13, %v3390_v34 }
  0x96   : > { %1276 = vrot.lane.b32.xlu1 %v1275_v18, %s3262_s22  ;;  %1267 = vrot.lane.b32.xlu0 %v1266_v20, %s3262_s22  ;;  %v1419_v18 = vrot.slane %v1417_v10, 2  ;;  %v1410_v20 = vrot.slane %v1408_v12, 2 }
  0x9a   : > { %1294 = vrot.lane.b32.xlu1 %v1293_v24, %s3262_s22  ;;  %1285 = vrot.lane.b32.xlu0 %v1284_v26, %s3262_s22  ;;  %v1443_v24 = vstv %s3531_s21  ;;  %v1437_v26 = vrot.slane %v1435_v19, 2  ;;  %s3647_s21 = sld [smem:[#allocation2 + $0x2]] }
  0x9b   : > { %v1444_v29 = vmul.f32 %v1443_v24, %v3371_v17 }
  0x9c   : > { %v3485_v36 = vpop.permute.xlu1 %828  ;;  %v3487_v38 = vpop.permute.xlu0 %812 }
  0x9e   : > { %1312 = vrot.lane.b32.xlu1 %v1311_v30, %s3262_s22  ;;  %1303 = vrot.lane.b32.xlu0 %v1302_v32, %s3262_s22  ;;  %v1470_v30 = vstv %s3540_s23  ;;  %v1461_v32 = vstv %s3545_s24  ;;  %s3651_s23 = sld [smem:[#allocation2 + $0xa]]  ;;  %s3656_s24 = sld [smem:[#allocation2 + $0xfd]] }
  0x9f   : > { %v1471_v37 = vmul.f32 %v1470_v30, %v3371_v17  ;;  %v1462_v40 = vmul.f32 %v1461_v32, %v3371_v17  ;;  %v1536_v30 = vrot.slane %v1534_v21, 2 }
  0xa0   : > { %v3493_v43 = vpop.permute.xlu1 %836  ;;  %v3495_v44 = vpop.permute.xlu0 %820 }
  0xa1   : > { %v1473_v48 = vrot.slane %v1471_v37, 2  ;;  %v1464_v50 = vrot.slane %v1462_v40, 2 }
  0xa2   : > { %1330 = vrot.lane.b32.xlu1 %v1329_v39, %s3262_s22  ;;  %1321 = vrot.lane.b32.xlu0 %v1320_v41, %s3262_s22  ;;  %v1446_v39 = vrot.slane %v1444_v29, 2  ;;  %v1488_v41 = vstv %s3554_s25  ;;  %v1561_v29 = vmul.f32 %v1560_v22, %v3390_v34  ;;  %s3661_s25 = sld [smem:[#allocation2 + $0xfc]] }
  0xa3   : > { %v1489_v49 = vmul.f32 %v1488_v41, %v3371_v17 }
  0xa4   : > { %v3501_v47 = vpop.permute.xlu1 %852  ;;  %v3505_v52 = vpop.permute.xlu0 %844  ;;  %v1563_v41 = vrot.slane %v1561_v29, 2  ;;  %v1623_v29 = vstv %s3677_s29  ;;  %s3759_s29 = sld [smem:[#allocation2 + $0xc2]] }
  0xa5   : > { %v1491_v59 = vrot.slane %v1489_v49, 2 }
  0xa6   : > { %1348 = vrot.lane.b32.xlu1 %v1347_v45, %s3262_s22  ;;  %1339 = vrot.lane.b32.xlu0 %v1338_v46, %s3262_s22  ;;  %v1479_v45 = vstv %s3559_s26  ;;  %s3667_s26 = sld [smem:[#allocation2 + $0x12]] }
  0xa7   : > { %v1480_v53 = vmul.f32 %v1479_v45, %v3371_v17 }
  0xa8   : > { %v3514_v57 = vpop.permute.xlu1 %868  ;;  %v3519_v61 = vpop.permute.xlu0 %860 }
  0xaa   : > { %1366 = vrot.lane.b32.xlu1 %v1365_v58, %s3262_s22  ;;  %1357 = vrot.lane.b32.xlu0 %v1356_v62, %s3262_s22  ;;  %v1482_v62 = vrot.slane %v1480_v53, 2 }
  0xac   : > { %v3528_v6 = vpop.permute.xlu1 %884  ;;  %v3533_v8 = vpop.permute.xlu0 %876 }
  0xae   : > { %1384 = vrot.lane.b32.xlu1 %v1383_v63, %s3262_s22  ;;  %1375 = vrot.lane.b32.xlu0 %v1374_v3, %s3262_s22  ;;  %v1498_v63 = vmul.f32 %v1497_v56, %v3390_v34  ;;  %v1515_v3 = vstv %s3587_s4  ;;  %s3687_s4 = sld [smem:[#allocation2 + $0x62]] }
  0xaf   : > { %v1516_v10 = vmul.f32 %v1515_v3, %v3390_v34  ;;  %v1588_v3 = vmul.f32 %v1587_v54, %v3409_v51 }
  0xb0   : > { %v3542_v14 = vpop.permute.xlu1 %900  ;;  %v3547_v16 = vpop.permute.xlu0 %892 }
  0xb1   : > { %v1590_v21 = vrot.slane %v1588_v3, 2 }
  0xb2   : > { %1402 = vrot.lane.b32.xlu1 %v1401_v9, %s3262_s22  ;;  %1393 = vrot.lane.b32.xlu0 %v1392_v11, %s3262_s22  ;;  %v1500_v9 = vrot.slane %v1498_v63, 2  ;;  %v1542_v11 = vstv %s3596_s5  ;;  %v273_v63 = vstv %s3651_s23  ;;  %s3702_s5 = sld [smem:[#allocation2 + $0x6a]] }
  0xb3   : > { %v1543_v19 = vmul.f32 %v1542_v11, %v3390_v34  ;;  %v274_v11 = vmul.f32 %v273_v63, %v3371_v17  ;;  %s3737_s23 = sld [smem:[#allocation2 + $0xca]] }
  0xb4   : > { %v3556_v23 = vpop.permute.xlu1 %916  ;;  %v3561_v25 = vpop.permute.xlu0 %908 }
  0xb5   : > { %5295 = vst [vmem:[#allocation5_spill] sm:$0xff] %v3556_v23  ;;  %5296 = vst [vmem:[#allocation6_spill] sm:$0xff] %v3561_v25 }
  0xb6   : > { %1420 = vrot.lane.b32.xlu1 %v1419_v18, %s3262_s22  ;;  %1411 = vrot.lane.b32.xlu0 %v1410_v20, %s3262_s22  ;;  %v1527_v18 = vrot.slane %v1525_v7, 2  ;;  %v1518_v20 = vrot.slane %v1516_v10, 2 }
  0xb8   : > { %v3570_v31 = vpop.permute.xlu1 %932  ;;  %v3575_v33 = vpop.permute.xlu0 %924  ;;  %v431_v3 = vstv %s3702_s5  ;;  %s3776_s5 = sld [smem:[#allocation2 + $0x47]] }
  0xb9   : > { %5297 = vst [vmem:[#allocation7_spill] sm:$0xff] %v3570_v31  ;;  %5298 = vst [vmem:[#allocation8_spill] sm:$0xff] %v3575_v33 }
  0xba   : > { %1438 = vrot.lane.b32.xlu1 %v1437_v26, %s3262_s22  ;;  %1429 = vrot.lane.b32.xlu0 %v1428_v28, %s3262_s22  ;;  %v1551_v26 = vstv %s3615_s8  ;;  %v1545_v28 = vrot.slane %v1543_v19, 2  ;;  %s3714_s8 = sld [smem:[#allocation2 + $0x72]] }
  0xbb   : > { %v1552_v32 = vmul.f32 %v1551_v26, %v3390_v34  ;;  %v1632_v26 = vstv %s3672_s27  ;;  %s3756_s27 = sld [smem:[#allocation2 + $0x44]] }
  0xbc   : > { %v3584_v42 = vpop.permute.xlu1 %948  ;;  %v3589_v46 = vpop.permute.xlu0 %940 }
  0xbd   : > { %5299 = vst [vmem:[#allocation9_spill] sm:$0xff] %v3584_v42  ;;  %5300 = vst [vmem:[#allocation10_spill] sm:$0xff] %v3589_v46 }
  0xbe   : > { %1456 = vrot.lane.b32.xlu1 %v1455_v35, %s3262_s22  ;;  %1447 = vrot.lane.b32.xlu0 %v1446_v39, %s3262_s22  ;;  %v1578_v35 = vstv %s3624_s9  ;;  %v1569_v39 = vstv %s3629_s10  ;;  %s3723_s9 = sld [smem:[#allocation2]]  ;;  %s3727_s10 = sld [smem:[#allocation2 + $0x43]] }
  0xbf   : > { %v1579_v45 = vmul.f32 %v1578_v35, %v3409_v51  ;;  %v1570_v49 = vmul.f32 %v1569_v39, %v3409_v51 }
  0xc0   : > { %v3598_v55 = vpop.permute.xlu1 %964  ;;  %v3603_v58 = vpop.permute.xlu0 %956 }
  0xc1   : > { %5301 = vst [vmem:[#allocation11_spill] sm:$0xff] %v3598_v55  ;;  %5302 = vst [vmem:[#allocation12_spill] sm:$0xff] %v3603_v58  ;;  %v1581_v60 = vrot.slane %v1579_v45, 2  ;;  %v1572_v0 = vrot.slane %v1570_v49, 2  ;;  %v337_v45 = vstv %s3685_s30  ;;  %s3761_s30 = sld [smem:[#allocation2 + $0xda]] }
  0xc2   : > { %1474 = vrot.lane.b32.xlu1 %v1473_v48, %s3262_s22  ;;  %1465 = vrot.lane.b32.xlu0 %v1464_v50, %s3262_s22  ;;  %v1554_v48 = vrot.slane %v1552_v32, 2  ;;  %v1596_v50 = vstv %s3638_s11  ;;  %s3729_s11 = sld [smem:[#allocation2 + $0x8]] }
  0xc4   : > { %v3612_v2 = vpop.permute.xlu1 %980  ;;  %v3617_v4 = vpop.permute.xlu0 %972 }
  0xc5   : > { %5303 = vst [vmem:[#allocation13_spill] sm:$0xff] %v3612_v2  ;;  %5304 = vst [vmem:[#allocation14_spill] sm:$0xff] %v3617_v4 }
  0xc6   : > { %1492 = vrot.lane.b32.xlu1 %v1491_v59, %s3262_s22  ;;  %1483 = vrot.lane.b32.xlu0 %v1482_v62, %s3262_s22  ;;  %v241_v59 = vstv %s3647_s21  ;;  %v1597_v62 = vmul.f32 %v1596_v50, %v3409_v51  ;;  %v1624_v50 = vmul.f32 %v1623_v29, %v3409_v51  ;;  %s3735_s21 = sld [smem:[#allocation2 + $0x7a]] }
  0xc7   : > { %v242_v13 = vmul.f32 %v241_v59, %v3354_v1 }
  0xc8   : > { %v3626_v12 = vpop.permute.xlu1 %996  ;;  %v3631_v15 = vpop.permute.xlu0 %988 }
  0xc9   : > { %5305 = vst [vmem:[#allocation15_spill] sm:$0xff] %v3626_v12  ;;  %5306 = vst [vmem:[#allocation16_spill] sm:$0xff] %v3631_v15  ;;  %v275_v35 = vadd.f32 %v274_v11, %v242_v13  ;;  %v1641_v13 = vstv %s3712_s7  ;;  %s3785_s7 = sld [smem:[#allocation2 + $0x46]]  ;;  %v1897_v12 = vstv %s4227_s28  ;;  %s4312_s28 = sld [smem:[#allocation2 + $0x14]] }
  0xca   : > { %1510 = vrot.lane.b32.xlu1 %v1509_v5, %s3262_s22  ;;  %1501 = vrot.lane.b32.xlu0 %v1500_v9, %s3262_s22  ;;  %v1614_v5 = vstv %s3656_s24  ;;  %v1605_v9 = vstv %s3661_s25  ;;  %s3742_s24 = sld [smem:[#allocation2 + $0xd2]]  ;;  %s3749_s25 = sld [smem:[#allocation2 + $0x45]] }
  0xcb   : > { %v1615_v19 = vmul.f32 %v1614_v5, %v3409_v51  ;;  %v1606_v22 = vmul.f32 %v1605_v9, %v3409_v51  ;;  %v1626_v5 = vrot.slane %v1624_v50, 2  ;;  %v1649_v9 = vstv %s3707_s6  ;;  %s3780_s6 = sld [smem:[#allocation2 + $0x60]] }
  0xcc   : > { %v3640_v24 = vpop.permute.xlu1 %1012  ;;  %v3645_v27 = vpop.permute.xlu0 %1004 }
  0xcd   : > { %5307 = vst [vmem:[#allocation17_spill] sm:$0xff] %v3640_v24  ;;  %5308 = vst [vmem:[#allocation18_spill] sm:$0xff] %v3645_v27  ;;  %v1617_v39 = vrot.slane %v1615_v19, 2  ;;  %v1608_v49 = vrot.slane %v1606_v22, 2  ;;  %v432_v19 = vmul.f32 %v431_v3, %v3371_v17  ;;  %v3770_v22 = vld [vmem:[%s3351_s17] sm:$0xff]  ;;  %v233_v17 = vstv %s3723_s9  ;;  %s3263_s9 = smov 126  }
  0xce   : > { %1528 = vrot.lane.b32.xlu1 %v1527_v18, %s3262_s22  ;;  %1519 = vrot.lane.b32.xlu0 %v1518_v20, %s3262_s22  ;;  %v1599_v18 = vrot.slane %v1597_v62, 2  ;;  %v305_v20 = vstv %s3667_s26  ;;  %s3751_s26 = sld [smem:[#allocation2 + $0x10]]  ;;  %v1642_v29 = vmul.f32 %v3770_v22, %v1641_v13  ;;  %v3800_v3 = vld [vmem:[%s3351_s17 + $0x18] sm:$0xff] }
  0xcf   : > { %v306_v32 = vmul.f32 %v305_v20, %v3390_v34 }
  0xd0   : > { %v3658_v37 = vpop.permute.xlu1 %1028  ;;  %v3663_v40 = vpop.permute.xlu0 %1020 }
  0xd1   : > { %5309 = vst [vmem:[#allocation19_spill] sm:$0xff] %v3658_v37  ;;  %5310 = vst [vmem:[#allocation20_spill] sm:$0xff] %v3663_v40  ;;  %v307_v62 = vadd.f32 %v306_v32, %v275_v35  ;;  %v1665_v32 = vstv %s3727_s10  ;;  %v265_v35 = vstv %s3729_s11  ;;  %s3807_s10 = sld [smem:[#allocation2 + $0x49]]  ;;  %s3813_s11 = sld [smem:[#allocation2 + $0x78]] }
  0xd2   : > { %1546 = vrot.lane.b32.xlu1 %v1545_v28, %s3262_s22  ;;  %1537 = vrot.lane.b32.xlu0 %v1536_v30, %s3262_s22 }
  0xd4   : > { %v3674_v53 = vpop.permute.xlu1 %1044  ;;  %v3679_v56 = vpop.permute.xlu0 %1036 }
  0xd5   : > { %5311 = vst [vmem:[#allocation21_spill] sm:$0xff] %v3674_v53  ;;  %5312 = vst [vmem:[#allocation22_spill] sm:$0xff] %v3679_v56 }
  0xd6   : > { %1564 = vrot.lane.b32.xlu1 %v1563_v41, %s3262_s22  ;;  %1555 = vrot.lane.b32.xlu0 %v1554_v48, %s3262_s22  ;;  %v1633_v41 = vmul.f32 %v1632_v26, %v3409_v51  ;;  %v375_v48 = vstv %s3687_s4  ;;  %s3766_s4 = sld [smem:[#allocation2 + $0x18]]  ;;  %v1650_v26 = vmul.f32 %v3770_v22, %v1649_v9  ;;  %v234_v9 = vmul.f32 %v3770_v22, %v233_v17 }
  0xd7   : > { %v376_v63 = vmul.f32 %v375_v48, %v3354_v1  ;;  %v487_v1 = vstv %s3714_s8  ;;  %v543_v48 = vstv %s3735_s21  ;;  %s3795_s8 = sld [smem:[#allocation2 + $0x70]]  ;;  %v599_v17 = vstv %s3759_s29  ;;  %s3825_s21 = sld [smem:[#allocation2 + $0x3]] }
  0xd8   : > { %v3692_v7 = vpop.permute.xlu1 %1060  ;;  %v3695_v10 = vpop.permute.xlu0 %1052  ;;  %s3859_s29 = sld [smem:[#allocation2 + $0x4a]] }
  0xd9   : > { %5313 = vst [vmem:[#allocation23_spill] sm:$0xff] %v3692_v7  ;;  %5314 = vst [vmem:[#allocation24_spill] sm:$0xff] %v3695_v10 }
  0xda   : > { %1582 = vrot.lane.b32.xlu1 %v1581_v60, %s3262_s22  ;;  %1573 = vrot.lane.b32.xlu0 %v1572_v0, %s3262_s22  ;;  %v338_v60 = vmul.f32 %v337_v45, %v3409_v51  ;;  %v1635_v0 = vrot.slane %v1633_v41, 2  ;;  %v1657_v41 = vstv %s3733_s20  ;;  %v488_v45 = vmul.f32 %v487_v1, %v3390_v34  ;;  %s3818_s20 = sld [smem:[#allocation2 + $0x48]] }
  0xdb   : > { %v1658_v13 = vmul.f32 %v3770_v22, %v1657_v41  ;;  %v1681_v1 = vstv %s3749_s25  ;;  %s3840_s25 = sld [smem:[#allocation2 + $0xc0]] }
  0xdc   : > { %v3709_v28 = vpop.permute.xlu1 %1078  ;;  %v3716_v30 = vpop.permute.xlu0 %1069  ;;  %v339_v20 = vadd.f32 %v338_v60, %v307_v62  ;;  %v434_v60 = vrot.slane %v432_v19, 1  ;;  %v711_v62 = vstv %s3742_s24  ;;  %v3810_v19 = vmul.f32 %v543_v48, %v3409_v51  ;;  %s3835_s24 = sld [smem:[#allocation2 + $0xc8]] }
  0xdd   : > { %5315 = vst [vmem:[#allocation25_spill] sm:$0xff] %v3709_v28  ;;  %5316 = vst [vmem:[#allocation26_spill] sm:$0xff] %v3716_v30  ;;  %v3832_v48 = vmul.f32 %v711_v62, %v3390_v34  ;;  %v1697_v62 = vstv %s3776_s5  ;;  %s3878_s5 = sld [smem:[#allocation2 + $0x4d]] }
  0xde   : > { %1600 = vrot.lane.b32.xlu1 %v1599_v18, %s3262_s22  ;;  %1591 = vrot.lane.b32.xlu0 %v1590_v21, %s3262_s22  ;;  %v378_v21 = vrot.slane %v376_v63, 1 }
  0xe0   : > { %v3731_v54 = vpop.permute.xlu1 %1096  ;;  %v3739_v59 = vpop.permute.xlu0 %1087  ;;  %v380_v63 = vadd.f32 %v378_v21, %v339_v20  ;;  %v297_v20 = vstv %s3751_s26  ;;  %s3845_s26 = sld [smem:[#allocation2 + $0x4b]] }
  0xe1   : > { %5317 = vst [vmem:[#allocation27_spill] sm:$0xff] %v3731_v54  ;;  %5318 = vst [vmem:[#allocation28_spill] sm:$0xff] %v3739_v59 }
  0xe2   : > { %1618 = vrot.lane.b32.xlu1 %v1617_v39, %s3262_s22  ;;  %1609 = vrot.lane.b32.xlu0 %v1608_v49, %s3262_s22  ;;  %v655_v49 = vstv %s3737_s23  ;;  %s3827_s23 = sld [smem:[#allocation2 + $0xb]] }
  0xe4   : > { %v3753_v11 = vpop.permute.xlu1 %1114  ;;  %v3763_v18 = vpop.permute.xlu0 %1105 }
  0xe5   : > { %5319 = vst [vmem:[#allocation29_spill] sm:$0xff] %v3753_v11  ;;  %5320 = vst [vmem:[#allocation30_spill] sm:$0xff] %v3763_v18 }
  0xe6   : > { %1636 = vrot.lane.b32.xlu1 %v1635_v0, %s3262_s22  ;;  %1627 = vrot.lane.b32.xlu0 %v1626_v5, %s3262_s22  ;;  %s3793_s22 = sld [smem:[#allocation2 + $0x68]]  ;;  %v1666_v0 = vmul.f32 %v3770_v22, %v1665_v32  ;;  %v266_v5 = vmul.f32 %v3800_v3, %v265_v35  ;;  %v490_v32 = vrot.slane %v488_v45, 1  ;;  %v767_v35 = vstv %s3761_s30 }
  0xe7   : > { %v1682_v45 = vmul.f32 %v3770_v22, %v1681_v1  ;;  %s3864_s30 = sld [smem:[#allocation2 + $0xd8]] }
  0xe8   : > { %v3782_v39 = vpop.permute.xlu1 %1132  ;;  %v3790_v50 = vpop.permute.xlu0 %1123 }
  0xe9   : > { %5321 = vst [vmem:[#allocation31_spill] sm:$0xff] %v3782_v39  ;;  %5322 = vst [vmem:[#allocation32_spill] sm:$0xff] %v3790_v50  ;;  %v329_v50 = vstv %s3766_s4  ;;  %v267_v39 = vadd.f32 %v266_v5, %v234_v9  ;;  %v1689_v5 = vstv %s3785_s7  ;;  %v546_v9 = vrot.slane %v3810_v19, 1  ;;  %s3866_s4 = sld [smem:[#allocation2 + $0x13]] }
  0xea   : > { %1652 = vrot.lane.b32.xlu1 %v1650_v26, %s3263_s9  ;;  %1644 = vrot.lane.b32.xlu0 %v1642_v29, %s3263_s9  ;;  %v1673_v26 = vstv %s3756_s27  ;;  %v3822_v29 = vmul.f32 %v3800_v3, %v655_v49  ;;  %v298_v49 = vmul.f32 %v297_v20, %v3390_v34  ;;  %s3854_s27 = sld [smem:[#allocation2 + $0xd0]]  ;;  %v330_v1 = vmul.f32 %v329_v50, %v3409_v51  ;;  %s3894_s7 = sld [smem:[#allocation2 + $0x1b]] }
  0xeb   : > { %v1698_v19 = vmul.f32 %v3770_v22, %v1697_v62  ;;  %v1690_v50 = vmul.f32 %v3770_v22, %v1689_v5  ;;  %v277_v5 = vstv %s3827_s23  ;;  %s3946_s23 = sld [smem:[#allocation2 + $0x1]] }
  0xec   : > { %v3815_v21 = vpop.permute.xlu1 %1150  ;;  %v3829_v41 = vpop.permute.xlu0 %1141 }
  0xed   : > { %5323 = vst [vmem:[#allocation33_spill] sm:$0xff] %v3815_v21  ;;  %5324 = vst [vmem:[#allocation34_spill] sm:$0xff] %v3829_v41  ;;  %v436_v21 = vadd.f32 %v434_v60, %v380_v63  ;;  %v1674_v41 = vmul.f32 %v3770_v22, %v1673_v26  ;;  %v3848_v60 = vmul.f32 %v767_v35, %v3409_v51  ;;  %v473_v35 = vstv %s3795_s8  ;;  %s3909_s8 = sld [smem:[#allocation2 + $0x6b]] }
  0xee   : > { %1668 = vrot.lane.b32.xlu1 %v1666_v0, %s3263_s9  ;;  %1660 = vrot.lane.b32.xlu0 %v1658_v13, %s3263_s9  ;;  %v3851_v63 = vmul.f32 %v3770_v22, %v599_v17  ;;  %v361_v0 = vstv %s3780_s6  ;;  %v417_v17 = vstv %s3793_s22  ;;  %v299_v13 = vadd.f32 %v298_v49, %v267_v39  ;;  %s3886_s6 = sld [smem:[#allocation2 + $0x4c]]  ;;  %s3896_s22 = sld [smem:[#allocation2 + $0x63]] }
  0xef   : > { %v492_v26 = vadd.f32 %v490_v32, %v436_v21  ;;  %v362_v51 = vmul.f32 %v3770_v22, %v361_v0  ;;  %v1705_v39 = vstv %s3818_s20  ;;  %v529_v49 = vstv %s3813_s11  ;;  %v3901_v21 = vld [vmem:[%s3351_s17 + $0x30] sm:$0xff]  ;;  %s3922_s11 = sld [smem:[#allocation2 + $0x4e]]  ;;  %s3933_s20 = sld [smem:[#allocation2 + $0x73]] }
  0xf0   : > { %v3856_v34 = vpop.permute.xlu1 %1168  ;;  %v3868_v20 = vpop.permute.xlu0 %1159  ;;  %v245_v0 = vstv %s3825_s21  ;;  %v331_v18 = vadd.f32 %v330_v1, %v299_v13  ;;  %v1721_v13 = vstv %s3859_s29  ;;  %v3925_v1 = vld [vmem:[%s3351_s17 + $0x48] sm:$0xff]  ;;  %v309_v59 = vstv %s3866_s4  ;;  %s3941_s21 = sld [smem:[#allocation2 + $0x7b]] }
  0xf1   : > { %5325 = vst [vmem:[#allocation35_spill] sm:$0xff] %v3856_v34  ;;  %5326 = vst [vmem:[#allocation36_spill] sm:$0xff] %v3868_v20  ;;  %v1713_v34 = vstv %s3807_s10  ;;  %v3904_v20 = vmul.f32 %v3901_v21, %v473_v35  ;;  %v364_v11 = vrot.slane %v362_v51, 1  ;;  %s3914_s10 = sld [smem:[#allocation2 + $0x4f]]  ;;  %v585_v35 = vstv %s3840_s25  ;;  %s3957_s25 = sld [smem:[#allocation2 + $0x9]] }
  0xf2   : > { %1684 = vrot.lane.b32.xlu1 %v1682_v45, %s3263_s9  ;;  %1676 = vrot.lane.b32.xlu0 %v1674_v41, %s3263_s9  ;;  %v602_v45 = vrot.slane %v3851_v63, 2  ;;  %v3889_v41 = vmul.f32 %v3800_v3, %v417_v17  ;;  %v548_v63 = vadd.f32 %v546_v9, %v492_v26  ;;  %v641_v17 = vstv %s3835_s24  ;;  %s3951_s24 = sld [smem:[#allocation2 + $0x51]]  ;;  %s3974_s29 = sld [smem:[#allocation2 + $0xcb]] }
  0xf3   : > { %v1706_v9 = vmul.f32 %v3800_v3, %v1705_v39  ;;  %v1729_v26 = vstv %s3845_s26  ;;  %v3928_v51 = vmul.f32 %v3925_v1, %v529_v49  ;;  %v753_v39 = vstv %s3864_s30  ;;  %s3962_s26 = sld [smem:[#allocation2 + $0x50]]  ;;  %s3982_s30 = sld [smem:[#allocation2 + $0xd3]] }
  0xf4   : > { %v3883_v62 = vpop.permute.xlu1 %1186  ;;  %v3898_v32 = vpop.permute.xlu0 %1177  ;;  %v1730_v49 = vmul.f32 %v3800_v3, %v1729_v26  ;;  %v476_v30 = vrot.slane %v3904_v20, 1  ;;  %v366_v28 = vadd.f32 %v364_v11, %v331_v18  ;;  %v1737_v11 = vstv %s3886_s6  ;;  %s3984_s4 = sld [smem:[#allocation2 + $0xdb]]  ;;  %s3996_s6 = sld [smem:[#allocation2 + $0x11]] }
  0xf5   : > { %5327 = vst [vmem:[#allocation37_spill] sm:$0xff] %v3883_v62  ;;  %5328 = vst [vmem:[#allocation38_spill] sm:$0xff] %v3898_v32  ;;  %v1714_v62 = vmul.f32 %v3800_v3, %v1713_v34  ;;  %v278_v32 = vmul.f32 %v3800_v3, %v277_v5  ;;  %v604_v5 = vadd.f32 %v602_v45, %v548_v63  ;;  %v341_v26 = vstv %s3894_s7  ;;  %s4001_s7 = sld [smem:[#allocation2 + $0x52]] }
  0xf6   : > { %1700 = vrot.lane.b32.xlu1 %v1698_v19, %s3263_s9  ;;  %1692 = vrot.lane.b32.xlu0 %v1690_v50, %s3263_s9  ;;  %v246_v19 = vmul.f32 %v3770_v22, %v245_v0  ;;  %v697_v50 = vstv %s3854_s27  ;;  %v420_v0 = vrot.slane %v3889_v41, 1  ;;  %v1722_v45 = vmul.f32 %v3800_v3, %v1721_v13  ;;  %s3972_s27 = sld [smem:[#allocation2 + $0xc3]] }
  0xf7   : > { %v1745_v41 = vstv %s3878_s5  ;;  %v3954_v63 = vmul.f32 %v3901_v21, %v697_v50  ;;  %v3965_v18 = vmul.f32 %v3925_v1, %v753_v39  ;;  %v382_v13 = vstv %s3896_s22  ;;  %s3992_s5 = sld [smem:[#allocation2 + $0x53]]  ;;  %s4017_s22 = sld [smem:[#allocation2 + $0x19]] }
  0xf8   : > { %v3919_v34 = vpop.permute.xlu1 %1204  ;;  %v3935_v54 = vpop.permute.xlu0 %1195  ;;  %v383_v50 = vmul.f32 %v3770_v22, %v382_v13  ;;  %v5339_v10 = vrot.slane %v3928_v51, 1 }
  0xf9   : > { %5329 = vst [vmem:[#allocation39_spill] sm:$0xff] %v3919_v34  ;;  %5330 = vst [vmem:[#allocation40_spill] sm:$0xff] %v3935_v54  ;;  %v3939_v34 = vmul.f32 %v3800_v3, %v641_v17  ;;  %v279_v17 = vadd.f32 %v278_v32, %v246_v19  ;;  %v5333_v32 = vrot.slane %v3822_v29, 2  ;;  %v438_v54 = vstv %s3909_s8  ;;  %s4025_s8 = sld [smem:[#allocation2 + $0x55]] }
  0xfa   : > { %1716 = vrot.lane.b32.xlu1 %v1714_v62, %s3263_s9  ;;  %1708 = vrot.lane.b32.xlu0 %v1706_v9, %s3263_s9  ;;  %v310_v62 = vmul.f32 %v3901_v21, %v309_v59  ;;  %v3968_v9 = vmul.f32 %v3770_v22, %v585_v35  ;;  %v1746_v35 = vmul.f32 %v3800_v3, %v1745_v41  ;;  %v237_v41 = vstv %s3946_s23  ;;  %s4052_s23 = sld [smem:[#allocation2 + $0x79]] }
  0xfb   : > { %v660_v19 = vadd.f32 %v5333_v32, %v604_v5  ;;  %v1738_v29 = vmul.f32 %v3800_v3, %v1737_v11  ;;  %v1761_v5 = vstv %s3914_s10  ;;  %v342_v32 = vmul.f32 %v3925_v1, %v341_v26  ;;  %s4028_s10 = sld [smem:[#allocation2 + $0x61]] }
  0xfc   : > { %v3959_v20 = vpop.permute.xlu1 %1222  ;;  %v3976_v59 = vpop.permute.xlu0 %1213  ;;  %v311_v39 = vadd.f32 %v310_v62, %v279_v17  ;;  %v494_v11 = vstv %s3933_s20  ;;  %v5336_v17 = vrot.slane %v3832_v48, 2  ;;  %v4014_v13 = vmul.f32 %v3800_v3, %v438_v54  ;;  %s4043_s20 = sld [smem:[#allocation2 + $0x69]] }
  0xfd   : > { %5331 = vst [vmem:[#allocation41_spill] sm:$0xff] %v3959_v20  ;;  %5332 = vst [vmem:[#allocation42_spill] sm:$0xff] %v3976_v59  ;;  %v422_v20 = vadd.f32 %v420_v0, %v366_v28  ;;  %v1753_v28 = vstv %s3922_s11  ;;  %s4033_s11 = sld [smem:[#allocation2 + $0x54]]  ;;  %v774_v59 = vstv %s3984_s4  ;;  %v301_v53 = vstv %s3996_s6  ;;  %s4102_s4 = sld [smem:[#allocation2 + $0x59]] }
  0xfe   : > { %1732 = vrot.lane.b32.xlu1 %v1730_v49, %s3263_s9  ;;  %1724 = vrot.lane.b32.xlu0 %v1722_v45, %s3263_s9  ;;  %v4011_v26 = vadd.f32 %v5336_v17, %v660_v19  ;;  %v1762_v45 = vmul.f32 %v3800_v3, %v1761_v5  ;;  %v1754_v48 = vmul.f32 %v3800_v3, %v1753_v28  ;;  %v1777_v19 = vstv %s3951_s24  ;;  %s4054_s24 = sld [smem:[#allocation2 + $0xc9]]  ;;  %s4124_s6 = sld [smem:[#allocation2 + $0xd]] }
  0xff   : > { %v478_v0 = vadd.f32 %v476_v30, %v422_v20  ;;  %v343_v54 = vadd.f32 %v342_v32, %v311_v39  ;;  %v385_v17 = vrot.slane %v383_v50, 1  ;;  %v1769_v5 = vstv %s3962_s26  ;;  %s4071_s26 = sld [smem:[#allocation2 + $0x56]] }
 0x100   : > { %v3998_v49 = vpop.permute.xlu1 %1240  ;;  %v4007_v62 = vpop.permute.xlu0 %1231  ;;  %v4036_v30 = vmul.f32 %v3901_v21, %v494_v11  ;;  %v662_v28 = vstv %s3974_s29  ;;  %v441_v39 = vrot.slane %v4014_v13, 1  ;;  %v718_v32 = vstv %s3982_s30  ;;  %s4083_s29 = sld [smem:[#allocation2 + $0xd9]] }
 0x101   : > { %5334 = vst [vmem:[#allocation43_spill] sm:$0xff] %v3998_v49  ;;  %5335 = vst [vmem:[#allocation44_spill] sm:$0xff] %v4007_v62  ;;  %v550_v49 = vstv %s3941_s21  ;;  %v269_v62 = vstv %s3957_s25  ;;  %s4045_s21 = sld [smem:[#allocation2 + $0x71]]  ;;  %v1793_v13 = vstv %s3992_s5  ;;  %s4063_s25 = sld [smem:[#allocation2 + $0x57]]  ;;  %v534_v7 = vadd.f32 %v5339_v10, %v478_v0 }
 0x102   : > { %1748 = vrot.lane.b32.xlu1 %v1746_v35, %s3263_s9  ;;  %1740 = vrot.lane.b32.xlu0 %v1738_v29, %s3263_s9  ;;  %v4039_v20 = vmul.f32 %v3925_v1, %v550_v49  ;;  %v606_v29 = vstv %s3972_s27  ;;  %v1778_v49 = vmul.f32 %v3901_v21, %v1777_v19  ;;  %v270_v11 = vmul.f32 %v3800_v3, %v269_v62  ;;  %s4081_s27 = sld [smem:[#allocation2 + $0xd1]]  ;;  %s4110_s5 = sld [smem:[#allocation2 + $0x58]] }
 0x103   : > { %v387_v56 = vadd.f32 %v385_v17, %v343_v54  ;;  %v1785_v19 = vstv %s4001_s7  ;;  %v4088_v51 = vmul.f32 %v3925_v1, %v774_v59  ;;  %v4091_v0 = vmul.f32 %v3770_v22, %v606_v29  ;;  %s4094_s30 = sld [smem:[#allocation2 + $0xc1]]  ;;  %s4129_s7 = sld [smem:[#allocation2 + $0x5b]] }
 0x104   : > { %v4030_v35 = vpop.permute.xlu1 %1258  ;;  %v4047_v50 = vpop.permute.xlu0 %1249  ;;  %v333_v54 = vstv %s4017_s22  ;;  %v1794_v17 = vmul.f32 %v3901_v21, %v1793_v13  ;;  %v1786_v59 = vmul.f32 %v3901_v21, %v1785_v19  ;;  %v1809_v29 = vstv %s4025_s8  ;;  %s4134_s22 = sld [smem:[#allocation2 + $0x5]]  ;;  %s4139_s8 = sld [smem:[#allocation2 + $0x5a]] }
 0x105   : > { %5337 = vst [vmem:[#allocation45_spill] sm:$0xff] %v4030_v35  ;;  %5338 = vst [vmem:[#allocation46_spill] sm:$0xff] %v4047_v50  ;;  %v238_v35 = vmul.f32 %v3770_v22, %v237_v41  ;;  %v1770_v50 = vmul.f32 %v3901_v21, %v1769_v5  ;;  %v497_v41 = vrot.slane %v4036_v30, 1  ;;  %v4079_v5 = vmul.f32 %v3901_v21, %v718_v32 }
 0x106   : > { %1764 = vrot.lane.b32.xlu1 %v1762_v45, %s3263_s9  ;;  %1756 = vrot.lane.b32.xlu0 %v1754_v48, %s3263_s9  ;;  %v4076_v48 = vmul.f32 %v3800_v3, %v662_v28  ;;  %v302_v30 = vmul.f32 %v3901_v21, %v301_v53  ;;  %v5342_v32 = vrot.slane %v3968_v9, 2  ;;  %v536_v9 = vstv %s4052_s23  ;;  %s4168_s23 = sld [smem:[#allocation2 + $0x7d]] }
 0x107   : > { %v271_v28 = vadd.f32 %v270_v11, %v238_v35  ;;  %v424_v11 = vstv %s4043_s20  ;;  %v480_v40 = vstv %s4045_s21  ;;  %v1825_v35 = vstv %s4063_s25  ;;  %s4162_s20 = sld [smem:[#allocation2 + $0x6d]] }
 0x108   : > { %v4068_v45 = vpop.permute.xlu1 %1276  ;;  %v4085_v10 = vpop.permute.xlu0 %1267  ;;  %v590_v62 = vadd.f32 %v5342_v32, %v534_v7  ;;  %v1810_v7 = vmul.f32 %v3901_v21, %v1809_v29  ;;  %v5345_v53 = vrot.slane %v3939_v34, 2  ;;  %v704_v29 = vstv %s4081_s27  ;;  %s4164_s21 = sld [smem:[#allocation2 + $0x75]] }
 0x109   : > { %5340 = vst [vmem:[#allocation47_spill] sm:$0xff] %v4068_v45  ;;  %5341 = vst [vmem:[#allocation48_spill] sm:$0xff] %v4085_v10  ;;  %v368_v10 = vstv %s4028_s10  ;;  %v1801_v45 = vstv %s4033_s11  ;;  %v760_v34 = vstv %s4083_s29  ;;  %s4149_s10 = sld [smem:[#allocation2 + $0x15]] }
 0x10a   : > { %1780 = vrot.lane.b32.xlu1 %v1778_v49, %s3263_s9  ;;  %1772 = vrot.lane.b32.xlu0 %v1770_v50, %s3263_s9  ;;  %v443_v49 = vadd.f32 %v441_v39, %v387_v56  ;;  %v334_v50 = vmul.f32 %v3925_v1, %v333_v54  ;;  %v648_v56 = vstv %s4054_s24  ;;  %v303_v39 = vadd.f32 %v302_v30, %v271_v28  ;;  %s4151_s11 = sld [smem:[#allocation2 + $0x1d]] }
 0x10b   : > { %v369_v32 = vmul.f32 %v3770_v22, %v368_v10  ;;  %v1802_v54 = vmul.f32 %v3901_v21, %v1801_v45  ;;  %v609_v30 = vrot.slane %v4091_v0, 2  ;;  %v1817_v28 = vstv %s4071_s26  ;;  %s4173_s24 = sld [smem:[#allocation2 + $0x5d]]  ;;  %s4188_s26 = sld [smem:[#allocation2 + $0x5c]] }
 0x10c   : > { %v4107_v13 = vpop.permute.xlu1 %1294  ;;  %v4116_v19 = vpop.permute.xlu0 %1285  ;;  %v4145_v45 = vmul.f32 %v3901_v21, %v480_v40  ;;  %v592_v0 = vstv %s4094_s30  ;;  %v1826_v40 = vmul.f32 %v3901_v21, %v1825_v35  ;;  %s4183_s25 = sld [smem:[#allocation2 + $0x65]] }
 0x10d   : > { %5343 = vst [vmem:[#allocation49_spill] sm:$0xff] %v4107_v13  ;;  %5344 = vst [vmem:[#allocation50_spill] sm:$0xff] %v4116_v19  ;;  %v499_v19 = vadd.f32 %v497_v41, %v443_v49  ;;  %v4160_v49 = vmul.f32 %v3800_v3, %v648_v56  ;;  %v5348_v56 = vrot.slane %v4039_v20, 1  ;;  %v4178_v13 = vmul.f32 %v3901_v21, %v704_v29  ;;  %s4199_s27 = sld [smem:[#allocation2 + $0xc5]] }
 0x10e   : > { %1796 = vrot.lane.b32.xlu1 %v1794_v17, %s3263_s9  ;;  %1788 = vrot.lane.b32.xlu0 %v1786_v59, %s3263_s9  ;;  %v646_v17 = vadd.f32 %v5345_v53, %v590_v62  ;;  %v4142_v59 = vmul.f32 %v3800_v3, %v424_v11  ;;  %v4156_v62 = vmul.f32 %v3925_v1, %v536_v9  ;;  %v371_v11 = vrot.slane %v369_v32, 1  ;;  %s4201_s29 = sld [smem:[#allocation2 + $0xcd]] }
 0x10f   : > { %v335_v53 = vadd.f32 %v334_v50, %v303_v39  ;;  %v1818_v9 = vmul.f32 %v3901_v21, %v1817_v28  ;;  %v1833_v50 = vstv %s4110_s5  ;;  %v5350_v39 = vrot.slane %v3954_v63, 2  ;;  %s4208_s30 = sld [smem:[#allocation2 + $0xd5]]  ;;  %s4218_s5 = sld [smem:[#allocation2 + $0xa1]] }
 0x110   : > { %v4136_v10 = vpop.permute.xlu1 %1312  ;;  %v4153_v41 = vpop.permute.xlu0 %1303  ;;  %v483_v29 = vrot.slane %v4145_v45, 1  ;;  %v1834_v45 = vmul.f32 %v3925_v1, %v1833_v50  ;;  %v253_v50 = vstv %s4134_s22  ;;  %v317_v20 = vstv %s4149_s10  ;;  %s4246_s22 = sld [smem:[#allocation2 + $0xa3]]  ;;  %s4274_s10 = sld [smem:[#allocation2 + $0x4]] }
 0x111   : > { %5346 = vst [vmem:[#allocation51_spill] sm:$0xff] %v4136_v10  ;;  %5347 = vst [vmem:[#allocation52_spill] sm:$0xff] %v4153_v41  ;;  %v1841_v41 = vstv %s4102_s4  ;;  %v555_v10 = vadd.f32 %v5348_v56, %v499_v19  ;;  %v4192_v32 = vadd.f32 %v5350_v39, %v646_v17  ;;  %v427_v19 = vrot.slane %v4142_v59, 1  ;;  %s4216_s4 = sld [smem:[#allocation2 + $0x5f]] }
 0x112   : > { %1812 = vrot.lane.b32.xlu1 %v1810_v7, %s3263_s9  ;;  %1804 = vrot.lane.b32.xlu0 %v1802_v54, %s3263_s9  ;;  %v4181_v7 = vmul.f32 %v3925_v1, %v760_v34  ;;  %v4197_v54 = vmul.f32 %v3770_v22, %v592_v0  ;;  %v1842_v59 = vmul.f32 %v3925_v1, %v1841_v41  ;;  %v285_v0 = vstv %s4124_s6  ;;  %s4225_s6 = sld [smem:[#allocation2 + $0x5e]] }
 0x113   : > { %v373_v34 = vadd.f32 %v371_v11, %v335_v53  ;;  %v1857_v56 = vstv %s4129_s7  ;;  %v611_v39 = vadd.f32 %v609_v30, %v555_v10  ;;  %v1849_v11 = vstv %s4139_s8  ;;  %s4233_s7 = sld [smem:[#allocation2 + $0xdd]]  ;;  %s4257_s8 = sld [smem:[#allocation2 + $0xa2]] }
 0x114   : > { %v4185_v35 = vpop.permute.xlu1 %1330  ;;  %v4203_v28 = vpop.permute.xlu0 %1321  ;;  %v349_v17 = vstv %s4151_s11  ;;  %v286_v10 = vmul.f32 %v3800_v3, %v285_v0  ;;  %v452_v41 = vstv %s4162_s20  ;;  %v1858_v63 = vmul.f32 %v3925_v1, %v1857_v56  ;;  %s4276_s11 = sld [smem:[#allocation2 + $0xc]]  ;;  %s4284_s20 = sld [smem:[#allocation2 + $0xa5]] }
 0x115   : > { %5349 = vst [vmem:[#allocation53_spill] sm:$0xff] %v4185_v35  ;;  %5351 = vst [vmem:[#allocation54_spill] sm:$0xff] %v4203_v28  ;;  %v429_v28 = vadd.f32 %v427_v19, %v373_v34  ;;  %v1873_v35 = vstv %s4173_s24  ;;  %v5354_v0 = vrot.slane %v4076_v48, 2  ;;  %v318_v37 = vmul.f32 %v3901_v21, %v317_v20  ;;  %s4306_s24 = sld [smem:[#allocation2 + $0x74]] }
 0x116   : > { %1828 = vrot.lane.b32.xlu1 %v1826_v40, %s3263_s9  ;;  %1820 = vrot.lane.b32.xlu0 %v1818_v9, %s3263_s9  ;;  %v508_v40 = vstv %s4164_s21  ;;  %v1850_v9 = vmul.f32 %v3925_v1, %v1849_v11  ;;  %v1865_v19 = vstv %s4188_s26  ;;  %v254_v48 = vmul.f32 %v3770_v22, %v253_v50  ;;  %s4295_s21 = sld [smem:[#allocation2 + $0xa4]] }
 0x117   : > { %v396_v34 = vstv %s4183_s25  ;;  %v4264_v11 = vmul.f32 %v3901_v21, %v508_v40  ;;  %v1874_v40 = vmul.f32 %v3925_v1, %v1873_v35  ;;  %v1866_v50 = vmul.f32 %v3925_v1, %v1865_v19  ;;  %s4314_s25 = sld [smem:[#allocation2 + $0x7c]] }
 0x118   : > { %v4222_v53 = vpop.permute.xlu1 %1348  ;;  %v4235_v30 = vpop.permute.xlu0 %1339  ;;  %v620_v24 = vstv %s4199_s27  ;;  %s4321_s26 = sld [smem:[#allocation2 + $0x1c]]  ;;  %s4327_s27 = sld [smem:[#allocation2 + $0xa7]] }
 0x119   : > { %5352 = vst [vmem:[#allocation55_spill] sm:$0xff] %v4222_v53  ;;  %5353 = vst [vmem:[#allocation56_spill] sm:$0xff] %v4235_v30  ;;  %v564_v53 = vstv %s4168_s23  ;;  %v667_v30 = vadd.f32 %v5354_v0, %v611_v39  ;;  %v676_v39 = vstv %s4201_s29  ;;  %v732_v0 = vstv %s4208_s30  ;;  %s4304_s23 = sld [smem:[#allocation2 + $0x6c]]  ;;  %s4339_s29 = sld [smem:[#allocation2 + $0xa6]] }
 0x11a   : > { %1844 = vrot.lane.b32.xlu1 %v1842_v59, %s3263_s9  ;;  %1836 = vrot.lane.b32.xlu0 %v1834_v45, %s3263_s9  ;;  %v4252_v59 = vmul.f32 %v3925_v1, %v349_v17  ;;  %v4261_v45 = vmul.f32 %v3800_v3, %v452_v41  ;;  %v4270_v17 = vmul.f32 %v3925_v1, %v564_v53  ;;  %v1889_v53 = vstv %s4216_s4  ;;  %s4344_s30 = sld [smem:[#allocation2 + $0xcc]] }
 0x11b   : > { %v485_v41 = vadd.f32 %v483_v29, %v429_v28  ;;  %v4298_v35 = vmul.f32 %v3800_v3, %v676_v39  ;;  %v4301_v28 = vmul.f32 %v3901_v21, %v732_v0  ;;  %v788_v29 = vstv %s4233_s7  ;;  %s4350_s4 = sld [smem:[#allocation2 + $0x64]]  ;;  %s4368_s7 = sld [smem:[#allocation2 + $0xa8]] }
 0x11c   : > { %v4254_v56 = vpop.permute.xlu1 %1366  ;;  %v4267_v20 = vpop.permute.xlu0 %1357 }
 0x11d   : > { %5355 = vst [vmem:[#allocation57_spill] sm:$0xff] %v4254_v56  ;;  %5356 = vst [vmem:[#allocation58_spill] sm:$0xff] %v4267_v20  ;;  %v1906_v20 = vstv %s4218_s5  ;;  %v5357_v56 = vrot.slane %v4079_v5, 2  ;;  %s4356_s5 = sld [smem:[#allocation2 + $0xc4]] }
 0x11e   : > { %1860 = vrot.lane.b32.xlu1 %v1858_v63, %s3263_s9  ;;  %1852 = vrot.lane.b32.xlu0 %v1850_v9, %s3263_s9  ;;  %v1881_v63 = vstv %s4225_s6  ;;  %v287_v9 = vadd.f32 %v286_v10, %v254_v48  ;;  %v1890_v10 = vmul.f32 %v3925_v1, %v1889_v53  ;;  %v1907_v19 = vmul.f32 %v3770_v22, %v1906_v20  ;;  %s4361_s6 = sld [smem:[#allocation2 + $0xa9]] }
 0x11f   : > { %v4288_v27 = vadd.f32 %v5357_v56, %v667_v30  ;;  %v5360_v48 = vrot.slane %v4156_v62, 1  ;;  %v1882_v0 = vmul.f32 %v3925_v1, %v1881_v63  ;;  %v1898_v56 = vmul.f32 %v3770_v22, %v1897_v12 }
 0x120   : > { %v4291_v15 = vpop.permute.xlu1 %1384  ;;  %v4308_v5 = vpop.permute.xlu0 %1375  ;;  %v1924_v30 = vstv %s4246_s22  ;;  %v397_v20 = vmul.f32 %v3770_v22, %v396_v34  ;;  %v4334_v62 = vmul.f32 %v3770_v22, %v620_v24  ;;  %v281_v24 = vstv %s4276_s11  ;;  %s4376_s22 = sld [smem:[#allocation2 + $0xd4]]  ;;  %s4384_s11 = sld [smem:[#allocation2 + $0xf]] }
 0x121   : > { %5358 = vst [vmem:[#allocation59_spill] sm:$0xff] %v4291_v15  ;;  %5359 = vst [vmem:[#allocation60_spill] sm:$0xff] %v4308_v5  ;;  %v541_v39 = vadd.f32 %v5360_v48, %v485_v41  ;;  %v319_v48 = vadd.f32 %v318_v37, %v287_v9  ;;  %v1909_v5 = vrot.slane %v1907_v19, 1  ;;  %v1925_v53 = vmul.f32 %v3770_v22, %v1924_v30 }
 0x122   : > { %1876 = vrot.lane.b32.xlu1 %v1874_v40, %s3263_s9  ;;  %1868 = vrot.lane.b32.xlu0 %v1866_v50, %s3263_s9  ;;  %v4330_v40 = vmul.f32 %v3925_v1, %v788_v29  ;;  %v1915_v50 = vstv %s4257_s8  ;;  %v5363_v12 = vrot.slane %v4197_v54, 2  ;;  %v1900_v37 = vrot.slane %v1898_v56, 1  ;;  %s4378_s8 = sld [smem:[#allocation2 + $0x7]] }
 0x123   : > { %v1916_v9 = vmul.f32 %v3770_v22, %v1915_v50  ;;  %v1942_v63 = vstv %s4284_s20  ;;  %v399_v30 = vrot.slane %v397_v20, 1  ;;  %v351_v56 = vadd.f32 %v4252_v59, %v319_v48  ;;  %s4386_s20 = sld [smem:[#allocation2 + $0xe]] }
 0x124   : > { %v4336_v41 = vpop.permute.xlu1 %1402  ;;  %v4346_v29 = vpop.permute.xlu0 %1393  ;;  %v597_v15 = vadd.f32 %v5363_v12, %v541_v39  ;;  %v1933_v39 = vstv %s4295_s21  ;;  %v445_v50 = vstv %s4304_s23  ;;  %v501_v12 = vstv %s4306_s24  ;;  %s4391_s21 = sld [smem:[#allocation2 + $0x6]]  ;;  %s4396_s23 = sld [smem:[#allocation2 + $0xab]] }
 0x125   : > { %5361 = vst [vmem:[#allocation61_spill] sm:$0xff] %v4336_v41  ;;  %5362 = vst [vmem:[#allocation62_spill] sm:$0xff] %v4346_v29  ;;  %v557_v54 = vstv %s4314_s25  ;;  %v1927_v59 = vrot.slane %v1925_v53, 1  ;;  %v1943_v48 = vmul.f32 %v3770_v22, %v1942_v63  ;;  %v1918_v34 = vrot.slane %v1916_v9, 1  ;;  %s4408_s24 = sld [smem:[#allocation2 + $0xdc]]  ;;  %s4422_s25 = sld [smem:[#allocation2 + $0x17]] }
 0x126   : > { %1892 = vrot.lane.b32.xlu1 %v1890_v10, %s3263_s9  ;;  %1884 = vrot.lane.b32.xlu0 %v1882_v0, %s3263_s9  ;;  %v4372_v0 = vmul.f32 %v3800_v3, %v281_v24  ;;  %v313_v10 = vstv %s4312_s28  ;;  %v345_v24 = vstv %s4321_s26  ;;  %v4406_v53 = vmul.f32 %v3901_v21, %v501_v12  ;;  %s4413_s28 = sld [smem:[#allocation2 + $0xaa]]  ;;  %s4430_s26 = sld [smem:[#allocation2 + $0x16]] }
 0x127   : > { %v1960_v29 = vstv %s4327_s27  ;;  %v401_v9 = vadd.f32 %v399_v30, %v351_v56  ;;  %v1945_v30 = vrot.slane %v1943_v48, 1  ;;  %s4438_s27 = sld [smem:[#allocation2 + $0xad]]  ;;  %v725_v12 = vstv %s4376_s22  ;;  %s4470_s22 = sld [smem:[#allocation2 + $0x66]] }
 0x128   : > { %v4365_v19 = vpop.permute.xlu1 %1420  ;;  %v4380_v20 = vpop.permute.xlu0 %1411 }
 0x129   : > { %5364 = vst [vmem:[#allocation63_spill] sm:$0xff] %v4365_v19  ;;  %5365 = vst [vmem:[#allocation64_spill] sm:$0xff] %v4380_v20  ;;  %v1934_v20 = vmul.f32 %v3770_v22, %v1933_v39  ;;  %v5366_v19 = vrot.slane %v4160_v49, 2  ;;  %v4416_v49 = vmul.f32 %v3901_v21, %v313_v10  ;;  %v1961_v10 = vmul.f32 %v3770_v22, %v1960_v29 }
 0x12a   : > { %1910 = vrot.lane.b32.xlu1 %v1909_v5, %s3263_s9  ;;  %1901 = vrot.lane.b32.xlu0 %v1900_v37, %s3263_s9  ;;  %v4403_v5 = vmul.f32 %v3800_v3, %v445_v50  ;;  %v1951_v37 = vstv %s4339_s29  ;;  %v4427_v50 = vmul.f32 %v3925_v1, %v345_v24  ;;  %v1978_v24 = vstv %s4361_s6  ;;  %s4445_s29 = sld [smem:[#allocation2 + $0x1f]] }
 0x12b   : > { %v4400_v41 = vadd.f32 %v5366_v19, %v597_v15  ;;  %v4419_v15 = vmul.f32 %v3925_v1, %v557_v54  ;;  %v669_v19 = vstv %s4344_s30  ;;  %v1936_v56 = vrot.slane %v1934_v20, 1  ;;  %s4450_s30 = sld [smem:[#allocation2 + $0xac]]  ;;  %s4459_s6 = sld [smem:[#allocation2 + $0x67]] }
 0x12c   : > { %v4410_v63 = vpop.permute.xlu1 %1438  ;;  %v4424_v39 = vpop.permute.xlu0 %1429  ;;  %v4443_v48 = vmul.f32 %v3800_v3, %v669_v19  ;;  %v5370_v20 = vrot.slane %v4261_v45, 1  ;;  %v1963_v45 = vrot.slane %v1961_v10, 1  ;;  %v1996_v4 = vstv %s4396_s23  ;;  %s4522_s23 = sld [smem:[#allocation2 + $0xb0]] }
 0x12d   : > { %5367 = vst [vmem:[#allocation65_spill] sm:$0xff] %v4410_v63  ;;  %5368 = vst [vmem:[#allocation66_spill] sm:$0xff] %v4424_v39  ;;  %v1952_v39 = vmul.f32 %v3770_v22, %v1951_v37  ;;  %v293_v63 = vstv %s4384_s11  ;;  %s4482_s11 = sld [smem:[#allocation2 + $0x6f]]  ;;  %v1987_v55 = vstv %s4413_s28  ;;  %v321_v58 = vstv %s4430_s26 }
 0x12e   : > { %1928 = vrot.lane.b32.xlu1 %v1927_v59, %s3263_s9  ;;  %1919 = vrot.lane.b32.xlu0 %v1918_v34, %s3263_s9  ;;  %v1969_v34 = vstv %s4368_s7  ;;  %v4454_v37 = vadd.f32 %v5370_v20, %v401_v9  ;;  %v261_v59 = vstv %s4378_s8  ;;  %s4465_s7 = sld [smem:[#allocation2 + $0x1e]]  ;;  %v1979_v9 = vmul.f32 %v3800_v3, %v1978_v24  ;;  %s4475_s8 = sld [smem:[#allocation2 + $0xaf]] }
 0x12f   : > { %v257_v20 = vstv %s4391_s21  ;;  %v1954_v54 = vrot.slane %v1952_v39, 1  ;;  %v294_v39 = vmul.f32 %v3800_v3, %v293_v63  ;;  %v1997_v63 = vmul.f32 %v3800_v3, %v1996_v4  ;;  %s4507_s21 = sld [smem:[#allocation2 + $0xb1]]  ;;  %s4526_s28 = sld [smem:[#allocation2 + $0x77]] }
 0x130   : > { %v4447_v29 = vpop.permute.xlu1 %1456  ;;  %v4461_v19 = vpop.permute.xlu0 %1447  ;;  %v1981_v46 = vrot.slane %v1979_v9, 1  ;;  %v1988_v42 = vmul.f32 %v3800_v3, %v1987_v55  ;;  %v357_v4 = vstv %s4445_s29  ;;  %v403_v23 = vstv %s4470_s22  ;;  %s4545_s26 = sld [smem:[#allocation2 + $0x7f]]  ;;  %s4555_s29 = sld [smem:[#allocation2 + $0x7e]] }
 0x131   : > { %5369 = vst [vmem:[#allocation67_spill] sm:$0xff] %v4447_v29  ;;  %5371 = vst [vmem:[#allocation68_spill] sm:$0xff] %v4461_v19  ;;  %v289_v29 = vstv %s4386_s20  ;;  %v1970_v19 = vmul.f32 %v3800_v3, %v1969_v34  ;;  %s4487_s20 = sld [smem:[#allocation2 + $0xae]]  ;;  %v262_v34 = vmul.f32 %v3770_v22, %v261_v59  ;;  %v4502_v59 = vmul.f32 %v3901_v21, %v725_v12 }
 0x132   : > { %1946 = vrot.lane.b32.xlu1 %v1945_v30, %s3263_s9  ;;  %1937 = vrot.lane.b32.xlu0 %v1936_v56, %s3263_s9  ;;  %v5372_v30 = vstv %s4274_s10  ;;  %v325_v56 = vstv %s4422_s25  ;;  %v290_v2 = vmul.f32 %v3800_v3, %v289_v29  ;;  %s4493_s10 = sld [smem:[#allocation2 + $0x6e]]  ;;  %s4540_s25 = sld [smem:[#allocation2 + $0xb3]] }
 0x133   : > { %v250_v10 = vmul.f32 %v3770_v22, %v5372_v30  ;;  %v1972_v29 = vrot.slane %v1970_v19, 1  ;;  %v326_v55 = vmul.f32 %v3901_v21, %v325_v56  ;;  %v410_v19 = vstv %s4459_s6  ;;  %s4579_s6 = sld [smem:[#allocation2 + $0xb4]]  ;;  %s4590_s22 = sld [smem:[#allocation2 + $0xc6]] }
 0x134   : > { %v4484_v24 = vpop.permute.xlu1 %1474  ;;  %v4495_v30 = vpop.permute.xlu0 %1465  ;;  %v2032_v56 = vstv %s4475_s8  ;;  %s4595_s8 = sld [smem:[#allocation2 + $0xb7]] }
 0x135   : > { %5373 = vst [vmem:[#allocation69_spill] sm:$0xff] %v4484_v24  ;;  %5374 = vst [vmem:[#allocation70_spill] sm:$0xff] %v4495_v30  ;;  %v258_v24 = vmul.f32 %v3770_v22, %v257_v20  ;;  %v2014_v30 = vstv %s4438_s27  ;;  %v283_v22 = vadd.f32 %v4372_v0, %v250_v10  ;;  %v4511_v20 = vld [vmem:[%s3351_s17] sm:$0xff]  ;;  %v295_v0 = vadd.f32 %v294_v39, %v262_v34  ;;  %s4550_s27 = sld [smem:[#allocation2 + $0xb2]] }
 0x136   : > { %1964 = vrot.lane.b32.xlu1 %v1963_v45, %s3263_s9  ;;  %1955 = vrot.lane.b32.xlu0 %v1954_v54, %s3263_s9  ;;  %v5375_v45 = vstv %s4350_s4  ;;  %v2005_v54 = vstv %s4450_s30  ;;  %v322_v10 = vmul.f32 %v3901_v21, %v321_v58  ;;  %v2015_v25 = vmul.f32 %v3800_v3, %v2014_v30  ;;  %s4535_s4 = sld [smem:[#allocation2 + $0x76]]  ;;  %s4571_s30 = sld [smem:[#allocation2 + $0xb5]] }
 0x137   : > { %v4516_v9 = vmul.f32 %v4511_v20, %v5375_v45  ;;  %v353_v45 = vstv %s4465_s7  ;;  %v291_v31 = vadd.f32 %v290_v2, %v258_v24  ;;  %v1990_v39 = vrot.slane %v1988_v42, 1  ;;  %s4582_s7 = sld [smem:[#allocation2 + $0xc7]] }
 0x138   : > { %v4519_v12 = vpop.permute.xlu1 %1492  ;;  %v4529_v33 = vpop.permute.xlu0 %1483  ;;  %v2006_v58 = vmul.f32 %v3800_v3, %v2005_v54  ;;  %v315_v2 = vadd.f32 %v4416_v49, %v283_v22  ;;  %v358_v24 = vmul.f32 %v3925_v1, %v357_v4  ;;  %v2023_v30 = vstv %s4487_s20  ;;  %s4604_s20 = sld [smem:[#allocation2 + $0xb6]] }
 0x139   : > { %5376 = vst [vmem:[#allocation71_spill] sm:$0xff] %v4519_v12  ;;  %5377 = vst [vmem:[#allocation72_spill] sm:$0xff] %v4529_v33  ;;  %v1999_v12 = vrot.slane %v1997_v63, 1  ;;  %v327_v63 = vadd.f32 %v326_v55, %v295_v0  ;;  %v411_v42 = vmul.f32 %v4511_v20, %v410_v19  ;;  %v354_v3 = vmul.f32 %v3925_v1, %v353_v45  ;;  %v4562_v33 = vld [vmem:[%s3351_s17 + $0x18] sm:$0xff] }
 0x13a   : > { %1982 = vrot.lane.b32.xlu1 %v1981_v46, %s3263_s9  ;;  %1973 = vrot.lane.b32.xlu0 %v1972_v29, %s3263_s9  ;;  %v466_v46 = vstv %s4482_s11  ;;  %v459_v29 = vstv %s4493_s10  ;;  %v323_v22 = vadd.f32 %v322_v10, %v291_v31  ;;  %v404_v4 = vmul.f32 %v4511_v20, %v403_v23  ;;  %s4599_s11 = sld [smem:[#allocation2 + $0xcf]]  ;;  %s4607_s10 = sld [smem:[#allocation2 + $0xce]] }
 0x13b   : > { %v2017_v54 = vrot.slane %v2015_v25, 1  ;;  %v2033_v55 = vmul.f32 %v4562_v33, %v2032_v56  ;;  %v5379_v19 = vrot.slane %v4264_v11, 1  ;;  %v2008_v45 = vrot.slane %v2006_v58, 1 }
 0x13c   : > { %v4547_v34 = vpop.permute.xlu1 %1510  ;;  %v4557_v49 = vpop.permute.xlu0 %1501  ;;  %v2024_v31 = vmul.f32 %v4562_v33, %v2023_v30  ;;  %v2050_v10 = vstv %s4507_s21  ;;  %v347_v23 = vadd.f32 %v4427_v50, %v315_v2  ;;  %v392_v25 = vrot.slane %v4516_v9, 1  ;;  %s4625_s21 = sld [smem:[#allocation2 + $0xb9]] }
 0x13d   : > { %5378 = vst [vmem:[#allocation73_spill] sm:$0xff] %v4557_v49  ;;  %v513_v0 = vadd.f32 %v5379_v19, %v4454_v37  ;;  %v2041_v49 = vstv %s4522_s23  ;;  %v522_v11 = vstv %s4526_s28  ;;  %v359_v37 = vadd.f32 %v358_v24, %v327_v63  ;;  %s4639_s23 = sld [smem:[#allocation2 + $0xb8]]  ;;  %s4643_s28 = sld [smem:[#allocation2 + $0xd6]] }
 0x13e   : > { %2000 = vrot.lane.b32.xlu1 %v1999_v12, %s3263_s9  ;;  %1991 = vrot.lane.b32.xlu0 %v1990_v39, %s3263_s9  ;;  %v467_v12 = vmul.f32 %v4562_v33, %v466_v46  ;;  %v413_v39 = vrot.slane %v411_v42, 1  ;;  %v460_v58 = vmul.f32 %v4562_v33, %v459_v29  ;;  %v355_v9 = vadd.f32 %v354_v3, %v323_v22 }
 0x13f   : > { %v406_v2 = vrot.slane %v404_v4, 1  ;;  %v2035_v46 = vrot.slane %v2033_v55, 1  ;;  %v2051_v30 = vmul.f32 %v3901_v21, %v2050_v10  ;;  %v515_v19 = vstv %s4535_s4  ;;  %s4653_s4 = sld [smem:[#allocation2 + $0xbb]] }
 0x140   : > { %v4576_v56 = vpop.permute.xlu1 %1528  ;;  %v4585_v50 = vpop.permute.xlu0 %1519  ;;  %v2026_v24 = vrot.slane %v2024_v31, 1  ;;  %v2042_v63 = vmul.f32 %v3901_v21, %v2041_v49  ;;  %v2068_v42 = vstv %s4540_s25  ;;  %v394_v3 = vadd.f32 %v392_v25, %v347_v23  ;;  %s4661_s25 = sld [smem:[#allocation2 + $0xba]] }
 0x141   : > { %5380 = vst [vmem:[#allocation74_spill] sm:$0xff] %v4576_v56  ;;  %5381 = vst [vmem:[#allocation75_spill] sm:$0xff] %v4585_v50  ;;  %v523_v29 = vmul.f32 %v3901_v21, %v522_v11  ;;  %v578_v22 = vstv %s4545_s26  ;;  %v469_v55 = vrot.slane %v467_v12, 1  ;;  %v462_v49 = vrot.slane %v460_v58, 1  ;;  %s4663_s26 = sld [smem:[#allocation2 + $0xdf]] }
 0x142   : > { %2018 = vrot.lane.b32.xlu1 %v2017_v54, %s3263_s9  ;;  %2009 = vrot.lane.b32.xlu0 %v2008_v45, %s3263_s9  ;;  %v2059_v54 = vstv %s4550_s27  ;;  %v415_v45 = vadd.f32 %v413_v39, %v359_v37  ;;  %v571_v31 = vstv %s4555_s29  ;;  %v516_v23 = vmul.f32 %v3901_v21, %v515_v19  ;;  %s4673_s27 = sld [smem:[#allocation2 + $0xde]]  ;;  %s4678_s29 = sld [smem:[#allocation2 + $0xbd]] }
 0x143   : > { %v408_v25 = vadd.f32 %v406_v2, %v355_v9  ;;  %v2053_v11 = vrot.slane %v2051_v30, 1  ;;  %v2069_v50 = vmul.f32 %v3901_v21, %v2068_v42  ;;  %v5383_v56 = vstv %s4356_s5  ;;  %v4621_v39 = vld [vmem:[%s3351_s17 + $0x30] sm:$0xff]  ;;  %s4634_s5 = sld [smem:[#allocation2 + $0xd7]] }
 0x144   : > { %v4601_v4 = vpop.permute.xlu1 %1546  ;;  %v4609_v10 = vpop.permute.xlu0 %1537  ;;  %v4617_v12 = vmul.f32 %v4511_v20, %v5383_v56  ;;  %v2044_v37 = vrot.slane %v2042_v63, 1  ;;  %v2060_v58 = vmul.f32 %v4621_v39, %v2059_v54  ;;  %v2086_v19 = vstv %s4571_s30  ;;  %s4687_s30 = sld [smem:[#allocation2 + $0xbc]] }
 0x145   : > { %5382 = vst [vmem:[#allocation76_spill] sm:$0xff] %v4609_v10  ;;  %v5384_v9 = vrot.slane %v4270_v17, 1  ;;  %v5385_v21 = vrot.slane %v4403_v5, 1  ;;  %v579_v56 = vmul.f32 %v3925_v1, %v578_v22  ;;  %v525_v63 = vrot.slane %v523_v29, 1 }
 0x146   : > { %2036 = vrot.lane.b32.xlu1 %v2035_v46, %s3263_s9  ;;  %2027 = vrot.lane.b32.xlu0 %v2026_v24, %s3263_s9  ;;  %v2077_v24 = vstv %s4579_s6  ;;  %v634_v42 = vstv %s4582_s7  ;;  %v471_v54 = vadd.f32 %v469_v55, %v415_v45  ;;  %v572_v17 = vmul.f32 %v3925_v1, %v571_v31  ;;  %s4706_s6 = sld [smem:[#allocation2 + $0xbf]]  ;;  %s4737_s7 = sld [smem:[#allocation2 + $0x100]] }
 0x147   : > { %v4629_v2 = vadd.f32 %v5384_v9, %v513_v0  ;;  %v450_v46 = vadd.f32 %v5385_v21, %v394_v3  ;;  %v518_v0 = vrot.slane %v516_v23, 1  ;;  %v464_v3 = vadd.f32 %v462_v49, %v408_v25 }
 0x148   : > { %v4636_v30 = vpop.permute.xlu1 %1564  ;;  %v4645_v5 = vpop.permute.xlu0 %1555  ;;  %v2071_v22 = vrot.slane %v2069_v50, 1  ;;  %v2087_v9 = vmul.f32 %v4621_v39, %v2086_v19  ;;  %v627_v21 = vstv %s4590_s22  ;;  %v2062_v29 = vrot.slane %v2060_v58, 1  ;;  %s4751_s22 = sld [smem:[#allocation2 + $0x103]] }
 0x149   : > { %5386 = vst [vmem:[#allocation77_spill] sm:$0xff] %v4645_v5  ;;  %v2078_v1 = vmul.f32 %v4621_v39, %v2077_v24  ;;  %v2104_v55 = vstv %s4595_s8  ;;  %v5387_v45 = vrot.slane %v4406_v53, 1  ;;  %v581_v23 = vrot.slane %v579_v56, 1  ;;  %s4759_s8 = sld [smem:[#allocation2 + $0x102]] }
 0x14a   : > { %2054 = vrot.lane.b32.xlu1 %v2053_v11, %s3263_s9  ;;  %2045 = vrot.lane.b32.xlu0 %v2044_v37, %s3263_s9  ;;  %v690_v49 = vstv %s4599_s11  ;;  %v2095_v50 = vstv %s4604_s20  ;;  %v527_v11 = vadd.f32 %v525_v63, %v471_v54  ;;  %v635_v37 = vmul.f32 %v4511_v20, %v634_v42  ;;  %s4776_s11 = sld [smem:[#allocation2 + $0x105]]  ;;  %s4786_s20 = sld [smem:[#allocation2 + $0x104]] }
 0x14b   : > { %v506_v31 = vadd.f32 %v5387_v45, %v450_v46  ;;  %v574_v58 = vrot.slane %v572_v17, 1  ;;  %v683_v19 = vstv %s4607_s10  ;;  %v520_v53 = vadd.f32 %v518_v0, %v464_v3  ;;  %s4798_s10 = sld [smem:[#allocation2 + $0x107]] }
 0x14c   : > { %v4658_v25 = vpop.permute.xlu1 %1582  ;;  %v4667_v24 = vpop.permute.xlu0 %1573  ;;  %v628_v46 = vmul.f32 %v4511_v20, %v627_v21  ;;  %v2089_v56 = vrot.slane %v2087_v9, 1  ;;  %v2105_v45 = vmul.f32 %v4621_v39, %v2104_v55  ;;  %v616_v5 = vrot.slane %v4617_v12, 2 }
 0x14d   : > { %5388 = vst [vmem:[#allocation78_spill] sm:$0xff] %v4667_v24  ;;  %v2080_v63 = vrot.slane %v2078_v1, 1  ;;  %v2096_v42 = vmul.f32 %v4621_v39, %v2095_v50  ;;  %v2122_v54 = vstv %s4625_s21  ;;  %v5389_v17 = vrot.slane %v4419_v15, 1  ;;  %s4806_s21 = sld [smem:[#allocation2 + $0x106]] }
 0x14e   : > { %2072 = vrot.lane.b32.xlu1 %v2071_v22, %s3263_s9  ;;  %2063 = vrot.lane.b32.xlu0 %v2062_v29, %s3263_s9  ;;  %v691_v3 = vmul.f32 %v4562_v33, %v690_v49  ;;  %v746_v22 = vstv %s4634_s5  ;;  %v2113_v9 = vstv %s4639_s23  ;;  %v583_v21 = vadd.f32 %v581_v23, %v527_v11  ;;  %s4822_s5 = sld [smem:[#allocation2 + $0x109]]  ;;  %s4830_s23 = sld [smem:[#allocation2 + $0x108]] }
 0x14f   : > { %v562_v0 = vadd.f32 %v5389_v17, %v506_v31  ;;  %v637_v29 = vrot.slane %v635_v37, 2  ;;  %v684_v1 = vmul.f32 %v4562_v33, %v683_v19  ;;  %v739_v55 = vstv %s4643_s28  ;;  %v4695_v17 = vld [vmem:[%s3351_s17 + $0x48] sm:$0xff]  ;;  %s4715_s17 = sld [smem:[#allocation2 + $0xbe]]  ;;  %s4846_s28 = sld [smem:[#allocation2 + $0x10b]] }
 0x150   : > { %v4684_v12 = vpop.permute.xlu1 %1600  ;;  %v4691_v50 = vpop.permute.xlu0 %1591  ;;  %v576_v15 = vadd.f32 %v574_v58, %v520_v53  ;;  %v630_v31 = vrot.slane %v628_v46, 2  ;;  %v2107_v49 = vrot.slane %v2105_v45, 1  ;;  %v2123_v10 = vmul.f32 %v4695_v17, %v2122_v54 }
 0x151   : > { %5390 = vst [vmem:[#allocation79_spill] sm:$0xff] %v4684_v12  ;;  %5391 = vst [vmem:[#allocation80_spill] sm:$0xff] %v4691_v50  ;;  %v5392_v12 = vstv %s4408_s24  ;;  %v2098_v11 = vrot.slane %v2096_v42, 1  ;;  %v2114_v37 = vmul.f32 %v4695_v17, %v2113_v9  ;;  %v2140_v58 = vstv %s4653_s4  ;;  %s4727_s24 = sld [smem:[#allocation2 + $0x101]]  ;;  %s4854_s4 = sld [smem:[#allocation2 + $0x10a]] }
 0x152   : > { %2090 = vrot.lane.b32.xlu1 %v2089_v56, %s3263_s9  ;;  %v4701_v23 = vmul.f32 %v4695_v17, %v5392_v12  ;;  %2081 = vrot.lane.b32.xlu0 %v2080_v63, %s3263_s9  ;;  %v5393_v19 = vrot.slane %v4334_v62, 2  ;;  %v618_v46 = vadd.f32 %v616_v5, %v562_v0  ;;  %v747_v56 = vmul.f32 %v4621_v39, %v746_v22 }
 0x153   : > { %v2131_v54 = vstv %s4661_s25  ;;  %v693_v63 = vrot.slane %v691_v3, 2  ;;  %v802_v42 = vstv %s4663_s26  ;;  %v639_v12 = vadd.f32 %v637_v29, %v583_v21  ;;  %s4862_s25 = sld [smem:[#allocation2 + $0x10d]]  ;;  %s4864_s26 = sld [smem:[#allocation2 + $0x10c]] }
 0x154   : > { %v625_v53 = vadd.f32 %v5393_v19, %v4629_v2  ;;  %v4712_v45 = vpop.permute.xlu1 %1618  ;;  %v740_v9 = vmul.f32 %v4621_v39, %v739_v55  ;;  %v4719_v50 = vpop.permute.xlu0 %1609  ;;  %v686_v62 = vrot.slane %v684_v1, 2  ;;  %v632_v2 = vadd.f32 %v630_v31, %v576_v15 }
 0x155   : > { %v2125_v5 = vrot.slane %v2123_v10, 1  ;;  %v2141_v0 = vmul.f32 %v4695_v17, %v2140_v58  ;;  %v795_v22 = vstv %s4673_s27  ;;  %v2116_v19 = vrot.slane %v2114_v37, 1  ;;  %s4874_s27 = sld [smem:[#allocation2 + $0x10f]] }
 0x156   : > { %2108 = vrot.lane.b32.xlu1 %v2107_v49, %s3263_s9  ;;  %2099 = vrot.lane.b32.xlu0 %v2098_v11, %s3263_s9  ;;  %v2132_v3 = vmul.f32 %v4695_v17, %v2131_v54  ;;  %v2158_v24 = vstv %s4678_s29  ;;  %v5394_v21 = vrot.slane %v4298_v35, 2  ;;  %v728_v1 = vrot.slane %v4502_v59, 2  ;;  %s4888_s29 = sld [smem:[#allocation2 + $0x10e]] }
 0x157   : > { %v5395_v55 = vrot.slane %v4443_v48, 2  ;;  %v2149_v31 = vstv %s4687_s30  ;;  %v749_v49 = vrot.slane %v747_v56, 2  ;;  %v803_v11 = vmul.f32 %v4695_v17, %v802_v42  ;;  %s4894_s30 = sld [smem:[#allocation2 + $0x111]] }
 0x158   : > { %v681_v29 = vadd.f32 %v5394_v21, %v625_v53  ;;  %v4734_v10 = vpop.permute.xlu1 %1636  ;;  %v695_v37 = vadd.f32 %v693_v63, %v639_v12  ;;  %v742_v58 = vrot.slane %v740_v9, 2  ;;  %v4740_v54 = vpop.permute.xlu0 %1627  ;;  %v796_v35 = vmul.f32 %v4695_v17, %v795_v22 }
 0x159   : > { %v674_v15 = vadd.f32 %v5395_v55, %v618_v46  ;;  %v688_v59 = vadd.f32 %v686_v62, %v632_v2  ;;  %v2143_v48 = vrot.slane %v2141_v0, 1  ;;  %v2159_v53 = vmul.f32 %v4695_v17, %v2158_v24 }
 0x15a   : > { %2126 = vrot.lane.b32.xlu1 %v2125_v5, %s3263_s9  ;;  %v5396_v46 = vrot.slane %v4178_v13, 2  ;;  %2117 = vrot.lane.b32.xlu0 %v2116_v19, %s3263_s9  ;;  %v2134_v56 = vrot.slane %v2132_v3, 1  ;;  %v2150_v63 = vmul.f32 %v4695_v17, %v2149_v31  ;;  %v2176_v42 = vstv %s4706_s6  ;;  %s4900_s6 = sld [smem:[#allocation2 + $0x110]] }
 0x15b   : > { %v5397_v12 = vrot.slane %v4301_v28, 2  ;;  %v784_v62 = vrot.slane %v4701_v23, 2  ;;  %v730_v2 = vadd.f32 %v728_v1, %v674_v15  ;;  %v2167_v24 = vstv %s4715_s17  ;;  %s4918_s17 = sld [smem:[#allocation2 + $0x113]] }
 0x15c   : > { %v709_v21 = vadd.f32 %v5396_v46, %v4400_v41  ;;  %v4756_v5 = vpop.permute.xlu1 %1652  ;;  %v5398_v13 = vrot.slane %v3965_v18, 2  ;;  %v5399_v0 = vrot.slane %v4088_v51, 2  ;;  %v805_v19 = vrot.slane %v803_v11, 2  ;;  %v4767_v3 = vpop.permute.xlu0 %1644 }
 0x15d   : > { %v737_v9 = vadd.f32 %v5397_v12, %v681_v29  ;;  %v751_v28 = vadd.f32 %v749_v49, %v695_v37  ;;  %v798_v23 = vrot.slane %v796_v35, 2  ;;  %v744_v29 = vadd.f32 %v742_v58, %v688_v59 }
 0x15e   : > { %v758_v41 = vadd.f32 %v5398_v13, %v4192_v32  ;;  %v779_v22 = vadd.f32 %v5399_v0, %v4288_v27  ;;  %2144 = vrot.lane.b32.xlu1 %v2143_v48, %s3263_s9  ;;  %v2161_v1 = vrot.slane %v2159_v53, 1  ;;  %v2177_v55 = vmul.f32 %v4695_v17, %v2176_v42  ;;  %2135 = vrot.lane.b32.xlu0 %v2134_v56, %s3263_s9 }
 0x15f   : > { %v5400_v15 = vrot.slane %v4181_v7, 2  ;;  %v2152_v32 = vrot.slane %v2150_v63, 1  ;;  %v2168_v27 = vmul.f32 %v4695_v17, %v2167_v24  ;;  %v2194_v51 = vstv %s4727_s24  ;;  %s4924_s24 = sld [smem:[#allocation2 + $0x112]] }
 0x160   : > { %v5401_v31 = vrot.slane %v3848_v60, 2  ;;  %v5402_v11 = vrot.slane %v4330_v40, 2  ;;  %v786_v58 = vadd.f32 %v784_v62, %v730_v2  ;;  %v4783_v35 = vpop.permute.xlu1 %1668  ;;  %v2185_v7 = vstv %s4737_s7  ;;  %v4789_v53 = vpop.permute.xlu0 %1660  ;;  %s4954_s7 = sld [smem:[#allocation2 + $0x115]] }
 0x161   : > { %v765_v18 = vadd.f32 %v5400_v15, %v709_v21  ;;  %v815_v59 = vadd.f32 %v3487_v38, %v758_v41  ;;  %v807_v48 = vadd.f32 %v805_v19, %v751_v28  ;;  %v839_v46 = vadd.f32 %v3493_v43, %v779_v22  ;;  %v5403_v22 = vld [vmem:[#allocation5_spill] sm:$0xff]  ;;  %v5404_v19 = vld [vmem:[#allocation6_spill] sm:$0xff] }
 0x162   : > { %v772_v49 = vadd.f32 %v5401_v31, %v4011_v26  ;;  %v793_v37 = vadd.f32 %v5402_v11, %v737_v9  ;;  %v800_v60 = vadd.f32 %v798_v23, %v744_v29  ;;  %2162 = vrot.lane.b32.xlu1 %v2161_v1, %s3263_s9  ;;  %v2179_v26 = vrot.slane %v2177_v55, 1  ;;  %2153 = vrot.lane.b32.xlu0 %v2152_v32, %s3263_s9  ;;  %v5407_v15 = vld [vmem:[#allocation9_spill] sm:$0xff]  ;;  %v5408_v32 = vld [vmem:[#allocation10_spill] sm:$0xff] }
 0x163   : > { %v2195_v40 = vmul.f32 %v4511_v20, %v2194_v51  ;;  %v823_v21 = vadd.f32 %v3495_v44, %v765_v18  ;;  %v2170_v56 = vrot.slane %v2168_v27, 1  ;;  %v2186_v63 = vmul.f32 %v4511_v20, %v2185_v7  ;;  %v5409_v51 = vld [vmem:[#allocation11_spill] sm:$0xff] }
 0x164   : > { %v2212_v38 = vstv %s4751_s22  ;;  %v831_v42 = vadd.f32 %v3485_v36, %v772_v49  ;;  %v855_v43 = vadd.f32 %v3501_v47, %v793_v37  ;;  %v847_v12 = vadd.f32 %v3505_v52, %v786_v58  ;;  %v4803_v9 = vpop.permute.xlu1 %1684  ;;  %v4812_v41 = vpop.permute.xlu0 %1676  ;;  %v5410_v49 = vld [vmem:[#allocation12_spill] sm:$0xff]  ;;  %v5411_v58 = vld [vmem:[#allocation13_spill] sm:$0xff]  ;;  %s4976_s22 = sld [smem:[#allocation2 + $0x114]] }
 0x165   : > { %v2203_v62 = vstv %s4759_s8  ;;  %v871_v44 = vadd.f32 %v3514_v57, %v807_v48  ;;  %v887_v2 = vadd.f32 %v3528_v6, %v823_v21  ;;  %v879_v24 = vadd.f32 %v3533_v8, %v815_v59  ;;  %v5412_v59 = vld [vmem:[#allocation14_spill] sm:$0xff]  ;;  %s4998_s8 = sld [smem:[#allocation2 + $0x117]] }
 0x166   : > { %v903_v13 = vadd.f32 %v3542_v14, %v839_v46  ;;  %v863_v36 = vadd.f32 %v3519_v61, %v800_v60  ;;  %v895_v47 = vadd.f32 %v3547_v16, %v831_v42  ;;  %2180 = vrot.lane.b32.xlu1 %v2179_v26, %s3263_s9  ;;  %v2197_v52 = vrot.slane %v2195_v40, 2  ;;  %2171 = vrot.lane.b32.xlu0 %v2170_v56, %s3263_s9  ;;  %v5405_v61 = vld [vmem:[#allocation7_spill] sm:$0xff]  ;;  %v5406_v16 = vld [vmem:[#allocation8_spill] sm:$0xff] }
 0x167   : > { %v2213_v0 = vmul.f32 %v4511_v20, %v2212_v38  ;;  %v919_v57 = vadd.f32 %v5403_v22, %v855_v43  ;;  %v2188_v6 = vrot.slane %v2186_v63, 2  ;;  %v2204_v8 = vmul.f32 %v4511_v20, %v2203_v62  ;;  %v5413_v26 = vld [vmem:[#allocation15_spill] sm:$0xff]  ;;  %v5414_v38 = vld [vmem:[#allocation16_spill] sm:$0xff]  ;;  %v5415_v43 = vld [vmem:[#allocation17_spill] sm:$0xff] }
 0x168   : > { %v2230_v14 = vstv %s4776_s11  ;;  %v911_v28 = vadd.f32 %v5404_v19, %v847_v12  ;;  %v935_v23 = vadd.f32 %v5405_v61, %v871_v44  ;;  %v927_v29 = vadd.f32 %v5406_v16, %v863_v36  ;;  %v4827_v1 = vpop.permute.xlu1 %1700  ;;  %v4836_v37 = vpop.permute.xlu0 %1692  ;;  %v5416_v62 = vld [vmem:[#allocation18_spill] sm:$0xff]  ;;  %s5005_s11 = sld [smem:[#allocation2 + $0x116]] }
 0x169   : > { %v2221_v55 = vstv %s4786_s20  ;;  %v951_v18 = vadd.f32 %v5407_v15, %v887_v2  ;;  %v943_v27 = vadd.f32 %v5408_v32, %v879_v24  ;;  %v967_v31 = vadd.f32 %v5409_v51, %v903_v13  ;;  %v5417_v13 = vld [vmem:[#allocation19_spill] sm:$0xff]  ;;  %s5028_s20 = sld [smem:[#allocation2 + $0x119]] }
 0x16a   : > { %v959_v11 = vadd.f32 %v5410_v49, %v895_v47  ;;  %v983_v7 = vadd.f32 %v5411_v58, %v919_v57  ;;  %v975_v48 = vadd.f32 %v5412_v59, %v911_v28  ;;  %2198 = vrot.lane.b32.xlu1 %v2197_v52, %s3263_s9  ;;  %v2215_v46 = vrot.slane %v2213_v0, 2  ;;  %2189 = vrot.lane.b32.xlu0 %v2188_v6, %s3263_s9  ;;  %v5418_v47 = vld [vmem:[#allocation20_spill] sm:$0xff]  ;;  %v5419_v0 = vld [vmem:[#allocation21_spill] sm:$0xff]  ;;  %v5420_v57 = vld [vmem:[#allocation22_spill] sm:$0xff] }
 0x16b   : > { %v2231_v60 = vmul.f32 %v4511_v20, %v2230_v14  ;;  %v999_v40 = vadd.f32 %v5413_v26, %v935_v23  ;;  %v2206_v21 = vrot.slane %v2204_v8, 2  ;;  %v2222_v56 = vmul.f32 %v4511_v20, %v2221_v55  ;;  %v5421_v14 = vld [vmem:[#allocation23_spill] sm:$0xff]  ;;  %v5422_v28 = vld [vmem:[#allocation24_spill] sm:$0xff] }
 0x16c   : > { %v2248_v63 = vstv %s4798_s10  ;;  %v991_v42 = vadd.f32 %v5414_v38, %v927_v29  ;;  %v1015_v12 = vadd.f32 %v5415_v43, %v951_v18  ;;  %v1007_v44 = vadd.f32 %v5416_v62, %v943_v27  ;;  %v4851_v2 = vpop.permute.xlu1 %1716  ;;  %v4860_v8 = vpop.permute.xlu0 %1708  ;;  %v5423_v29 = vld [vmem:[#allocation25_spill] sm:$0xff]  ;;  %v5424_v27 = vld [vmem:[#allocation26_spill] sm:$0xff]  ;;  %s5034_s10 = sld [smem:[#allocation2 + $0x118]] }
 0x16d   : > { %v2239_v24 = vstv %s4806_s21  ;;  %v1031_v36 = vadd.f32 %v5417_v13, %v967_v31  ;;  %v1023_v52 = vadd.f32 %v5418_v47, %v959_v11  ;;  %v1047_v22 = vadd.f32 %v5419_v0, %v983_v7  ;;  %v5425_v31 = vld [vmem:[#allocation27_spill] sm:$0xff]  ;;  %v5426_v11 = vld [vmem:[#allocation28_spill] sm:$0xff]  ;;  %v5431_v38 = vld [vmem:[#allocation33_spill] sm:$0xff]  ;;  %s5054_s21 = sld [smem:[#allocation2 + $0x11b]] }
 0x16e   : > { %v1039_v6 = vadd.f32 %v5420_v57, %v975_v48  ;;  %v1063_v19 = vadd.f32 %v5421_v14, %v999_v40  ;;  %v1055_v61 = vadd.f32 %v5422_v28, %v991_v42  ;;  %2216 = vrot.lane.b32.xlu1 %v2215_v46, %s3263_s9  ;;  %v2233_v23 = vrot.slane %v2231_v60, 2  ;;  %2207 = vrot.lane.b32.xlu0 %v2206_v21, %s3263_s9  ;;  %v5427_v48 = vld [vmem:[#allocation29_spill] sm:$0xff]  ;;  %v5428_v60 = vld [vmem:[#allocation30_spill] sm:$0xff]  ;;  %v5429_v40 = vld [vmem:[#allocation31_spill] sm:$0xff] }
 0x16f   : > { %v2249_v16 = vmul.f32 %v4511_v20, %v2248_v63  ;;  %v1081_v55 = vadd.f32 %v5423_v29, %v1015_v12  ;;  %v2224_v15 = vrot.slane %v2222_v56, 2  ;;  %v2240_v18 = vmul.f32 %v4511_v20, %v2239_v24  ;;  %v5430_v20 = vld [vmem:[#allocation32_spill] sm:$0xff]  ;;  %v5432_v43 = vld [vmem:[#allocation34_spill] sm:$0xff]  ;;  %v5433_v24 = vld [vmem:[#allocation37_spill] sm:$0xff] }
 0x170   : > { %v2266_v32 = vstv %s4822_s5  ;;  %v1072_v51 = vadd.f32 %v5424_v27, %v1007_v44  ;;  %v1099_v49 = vadd.f32 %v5425_v31, %v1031_v36  ;;  %v1090_v58 = vadd.f32 %v5426_v11, %v1023_v52  ;;  %v4879_v7 = vpop.permute.xlu1 %1732  ;;  %v4886_v63 = vpop.permute.xlu0 %1724  ;;  %v5434_v0 = vld [vmem:[#allocation35_spill] sm:$0xff]  ;;  %v5435_v57 = vld [vmem:[#allocation36_spill] sm:$0xff]  ;;  %v5436_v14 = vld [vmem:[#allocation38_spill] sm:$0xff]  ;;  %s5060_s5 = sld [smem:[#allocation2 + $0x11a]] }
 0x171   : > { %v2257_v59 = vstv %s4830_s23  ;;  %v1117_v46 = vadd.f32 %v5427_v48, %v1047_v22  ;;  %v1108_v26 = vadd.f32 %v5428_v60, %v1039_v6  ;;  %v1135_v21 = vadd.f32 %v5429_v40, %v1063_v19  ;;  %v5438_v29 = vld [vmem:[#allocation45_spill] sm:$0xff]  ;;  %v5439_v27 = vld [vmem:[#allocation40_spill] sm:$0xff]  ;;  %v5442_v40 = vld [vmem:[#allocation42_spill] sm:$0xff]  ;;  %s5074_s23 = sld [smem:[#allocation2 + $0x11d]] }
 0x172   : > { %v1126_v56 = vadd.f32 %v5430_v20, %v1055_v61  ;;  %v1153_v42 = vadd.f32 %v5431_v38, %v1081_v55  ;;  %v1144_v12 = vadd.f32 %v5432_v43, %v1072_v51  ;;  %2234 = vrot.lane.b32.xlu1 %v2233_v23, %s3263_s9  ;;  %v2251_v62 = vrot.slane %v2249_v16, 2  ;;  %2225 = vrot.lane.b32.xlu0 %v2224_v15, %s3263_s9  ;;  %v5437_v23 = vld [vmem:[#allocation39_spill] sm:$0xff]  ;;  %v5440_v31 = vld [vmem:[#allocation41_spill] sm:$0xff] }
 0x173   : > { %v2267_v44 = vmul.f32 %v4562_v33, %v2266_v32  ;;  %v1189_v13 = vadd.f32 %v5433_v24, %v1117_v46  ;;  %v2242_v36 = vrot.slane %v2240_v18, 2  ;;  %v2258_v47 = vmul.f32 %v4562_v33, %v2257_v59  ;;  %v5441_v59 = vld [vmem:[#allocation53_spill] sm:$0xff]  ;;  %v5443_v20 = vld [vmem:[#allocation43_spill] sm:$0xff] }
 0x174   : > { %v2284_v52 = vstv %s4846_s28  ;;  %v1171_v22 = vadd.f32 %v5434_v0, %v1099_v49  ;;  %v1162_v6 = vadd.f32 %v5435_v57, %v1090_v58  ;;  %v1180_v19 = vadd.f32 %v5436_v14, %v1108_v26  ;;  %v4905_v28 = vpop.permute.xlu1 %1748  ;;  %v4910_v15 = vpop.permute.xlu0 %1740  ;;  %v5445_v24 = vld [vmem:[#allocation47_spill] sm:$0xff]  ;;  %v5447_v57 = vld [vmem:[#allocation46_spill] sm:$0xff]  ;;  %s5080_s28 = sld [smem:[#allocation2 + $0x11c]] }
 0x175   : > { %v2275_v61 = vstv %s4854_s4  ;;  %v1207_v16 = vadd.f32 %v5437_v23, %v1135_v21  ;;  %v1261_v55 = vadd.f32 %v5438_v29, %v1189_v13  ;;  %v2302_v18 = vstv %s4862_s25  ;;  %v5448_v23 = vld [vmem:[#allocation55_spill] sm:$0xff]  ;;  %s5089_s4 = sld [smem:[#allocation2 + $0x11f]]  ;;  %s5094_s25 = sld [smem:[#allocation2 + $0x11e]] }
 0x176   : > { %v2293_v32 = vstv %s4864_s26  ;;  %v1198_v51 = vadd.f32 %v5439_v27, %v1126_v56  ;;  %v1225_v49 = vadd.f32 %v5440_v31, %v1153_v42  ;;  %2252 = vrot.lane.b32.xlu1 %v2251_v62, %s3263_s9  ;;  %v2269_v11 = vrot.slane %v2267_v44, 2  ;;  %2243 = vrot.lane.b32.xlu0 %v2242_v36, %s3263_s9  ;;  %v5444_v62 = vld [vmem:[#allocation44_spill] sm:$0xff]  ;;  %v5446_v36 = vld [vmem:[#allocation61_spill] sm:$0xff] }
 0x177   : > { %v2285_v58 = vmul.f32 %v4562_v33, %v2284_v52  ;;  %v1333_v48 = vadd.f32 %v5441_v59, %v1261_v55  ;;  %v2260_v46 = vrot.slane %v2258_v47, 2  ;;  %v2276_v60 = vmul.f32 %v4562_v33, %v2275_v61  ;;  %v5449_v55 = vld [vmem:[#allocation69_spill] sm:$0xff] }
 0x178   : > { %v2320_v26 = vstv %s4874_s27  ;;  %v1216_v21 = vadd.f32 %v5442_v40, %v1144_v12  ;;  %v1243_v56 = vadd.f32 %v5443_v20, %v1171_v22  ;;  %v4928_v38 = vpop.permute.xlu1 %1764  ;;  %v2303_v42 = vmul.f32 %v4562_v33, %v2302_v18  ;;  %v4935_v52 = vpop.permute.xlu0 %1756  ;;  %v5451_v59 = vld [vmem:[#allocation49_spill] sm:$0xff]  ;;  %v5453_v20 = vld [vmem:[#allocation50_spill] sm:$0xff] }
 0x179   : > { %v2294_v43 = vmul.f32 %v4562_v33, %v2293_v32  ;;  %v1234_v44 = vadd.f32 %v5444_v62, %v1162_v6  ;;  %v1279_v13 = vadd.f32 %v5445_v24, %v1207_v16  ;;  %v1405_v47 = vadd.f32 %v5446_v36, %v1333_v48  ;;  %v5450_v32 = vld [vmem:[#allocation48_spill] sm:$0xff] }
 0x17a   : > { %v2311_v0 = vstv %s4888_s29  ;;  %v1252_v12 = vadd.f32 %v5447_v57, %v1180_v19  ;;  %2270 = vrot.lane.b32.xlu1 %v2269_v11, %s3263_s9  ;;  %v2287_v22 = vrot.slane %v2285_v58, 2  ;;  %v4941_v14 = vmul.f32 %v4562_v33, %v2320_v26  ;;  %2261 = vrot.lane.b32.xlu0 %v2260_v46, %s3263_s9  ;;  %v5452_v26 = vld [vmem:[#allocation63_spill] sm:$0xff]  ;;  %v5457_v57 = vld [vmem:[#allocation52_spill] sm:$0xff] }
 0x17b   : > { %v2338_v61 = vstv %s4894_s30  ;;  %v1351_v29 = vadd.f32 %v5448_v23, %v1279_v13  ;;  %v1477_v6 = vadd.f32 %v5449_v55, %v1405_v47  ;;  %v2278_v16 = vrot.slane %v2276_v60, 2  ;;  %v5455_v13 = vld [vmem:[#allocation71_spill] sm:$0xff]  ;;  %v5459_v55 = vld [vmem:[#allocation65_spill] sm:$0xff]  ;;  %s3138_s30 = smul.u32 24, %s5493_s13 }
 0x17c   : > { %v2329_v18 = vstv %s4900_s6  ;;  %v4949_v27 = vadd.f32 %v5450_v32, %v1198_v51  ;;  %v4951_v19 = vpop.permute.xlu1 %1780  ;;  %v2305_v31 = vrot.slane %v2303_v42, 2  ;;  %v2296_v11 = vrot.slane %v2294_v43, 2  ;;  %v4959_v60 = vpop.permute.xlu0 %1772 }
 0x17d   : > { %v2312_v58 = vmul.f32 %v4562_v33, %v2311_v0  ;;  %v1297_v48 = vadd.f32 %v5451_v59, %v1225_v49  ;;  %v1423_v40 = vadd.f32 %v5452_v26, %v1351_v29  ;;  %v1549_v46 = vadd.f32 %v4601_v4, %v1477_v6  ;;  %v5454_v49 = vld [vmem:[#allocation57_spill] sm:$0xff]  ;;  %v5460_v59 = vld [vmem:[#allocation66_spill] sm:$0xff] }
 0x17e   : > { %v4962_v51 = vmul.f32 %v4621_v39, %v2338_v61  ;;  %v1288_v62 = vadd.f32 %v5453_v20, %v1216_v21  ;;  %2288 = vrot.lane.b32.xlu1 %v2287_v22, %s3263_s9  ;;  %v2323_v33 = vrot.slane %v4941_v14, 2  ;;  %v4968_v42 = vmul.f32 %v4621_v39, %v2329_v18  ;;  %2279 = vrot.lane.b32.xlu0 %v2278_v16, %s3263_s9  ;;  %v5456_v21 = vld [vmem:[#allocation51_spill] sm:$0xff]  ;;  %v5458_v14 = vld [vmem:[#allocation58_spill] sm:$0xff]  ;;  %v5463_v20 = vld [vmem:[#allocation60_spill] sm:$0xff] }
 0x17f   : > { %v2356_v43 = vstv %s4918_s17  ;;  %v1369_v24 = vadd.f32 %v5454_v49, %v1297_v48  ;;  %v1495_v36 = vadd.f32 %v5455_v13, %v1423_v40  ;;  %v1621_v4 = vadd.f32 %v4712_v45, %v1549_v46  ;;  %v5465_v13 = vld [vmem:[#allocation67_spill] sm:$0xff] }
 0x180   : > { %v2347_v47 = vstv %s4924_s24  ;;  %v1315_v0 = vadd.f32 %v5456_v21, %v1243_v56  ;;  %v1306_v22 = vadd.f32 %v5457_v57, %v1234_v44  ;;  %v1360_v61 = vadd.f32 %v5458_v14, %v1288_v62  ;;  %v4981_v23 = vpop.permute.xlu1 %1796  ;;  %v4986_v32 = vpop.permute.xlu0 %1788 }
 0x181   : > { %v2314_v29 = vrot.slane %v2312_v58, 2  ;;  %v1441_v6 = vadd.f32 %v5459_v55, %v1369_v24  ;;  %v1567_v18 = vadd.f32 %v4636_v30, %v1495_v36  ;;  %v1687_v45 = vadd.f32 %v4803_v9, %v1621_v4  ;;  %v5461_v30 = vld [vmem:[#allocation59_spill] sm:$0xff]  ;;  %v5466_v4 = vld [vmem:[#allocation68_spill] sm:$0xff]  ;;  %v5469_v55 = vld [vmem:[#allocation62_spill] sm:$0xff] }
 0x182   : > { %v2341_v16 = vrot.slane %v4962_v51, 2  ;;  %v1432_v48 = vadd.f32 %v5460_v59, %v1360_v61  ;;  %2306 = vrot.lane.b32.xlu1 %v2305_v31, %s3263_s9  ;;  %v2332_v56 = vrot.slane %v4968_v42, 2  ;;  %v4993_v44 = vmul.f32 %v4621_v39, %v2356_v43  ;;  %2297 = vrot.lane.b32.xlu0 %v2296_v11, %s3263_s9  ;;  %v5462_v31 = vld [vmem:[#allocation54_spill] sm:$0xff]  ;;  %v5464_v42 = vld [vmem:[#allocation73_spill] sm:$0xff] }
 0x183   : > { %v4996_v58 = vmul.f32 %v4621_v39, %v2347_v47  ;;  %v1387_v9 = vadd.f32 %v5461_v30, %v1315_v0  ;;  %v1513_v26 = vadd.f32 %v4547_v34, %v1441_v6  ;;  %v1639_v40 = vadd.f32 %v4734_v10, %v1567_v18  ;;  %v5470_v18 = vld [vmem:[#allocation75_spill] sm:$0xff] }
 0x184   : > { %v1751_v46 = vadd.f32 %v4905_v28, %v1687_v45  ;;  %v1324_v51 = vadd.f32 %v5462_v31, %v1252_v12  ;;  %v1378_v62 = vadd.f32 %v5463_v20, %v1306_v22  ;;  %v1504_v43 = vadd.f32 %v5464_v42, %v1432_v48  ;;  %v1813_v49 = vpop.permute.xlu1 %1812  ;;  %v5016_v11 = vpop.permute.xlu0 %1804  ;;  %v5467_v12 = vld [vmem:[#allocation78_spill] sm:$0xff]  ;;  %v5475_v42 = vld [vmem:[#allocation64_spill] sm:$0xff] }
 0x185   : > { %v2374_v24 = vstv %s4954_s7  ;;  %v1459_v36 = vadd.f32 %v5465_v13, %v1387_v9  ;;  %v1585_v34 = vadd.f32 %v4658_v25, %v1513_v26  ;;  %v1703_v10 = vadd.f32 %v4827_v1, %v1639_v40  ;;  %v5468_v22 = vld [vmem:[#allocation74_spill] sm:$0xff] }
 0x186   : > { %v5014_v28 = vadd.f32 %v1813_v49, %v1751_v46  ;;  %v1450_v47 = vadd.f32 %v5466_v4, %v1378_v62  ;;  %v1576_v21 = vadd.f32 %v5467_v12, %v1504_v43  ;;  %2324 = vrot.lane.b32.xlu1 %v2323_v33, %s3263_s9  ;;  %v2359_v0 = vrot.slane %v4993_v44, 2  ;;  %2315 = vrot.lane.b32.xlu0 %v2314_v29, %s3263_s9  ;;  %v5472_v29 = vld [vmem:[#allocation79_spill] sm:$0xff]  ;;  %v5473_v26 = vld [vmem:[#allocation70_spill] sm:$0xff]  ;;  %v5476_v49 = vld [vmem:[#allocation76_spill] sm:$0xff] }
 0x187   : > { %v2350_v57 = vrot.slane %v4996_v58, 2  ;;  %v1531_v14 = vadd.f32 %v5468_v22, %v1459_v36  ;;  %v1655_v25 = vadd.f32 %v4756_v5, %v1585_v34  ;;  %v1767_v1 = vadd.f32 %v4928_v38, %v1703_v10  ;;  %v5471_v5 = vld [vmem:[#allocation56_spill] sm:$0xff] }
 0x188   : > { %v2365_v61 = vstv %s4976_s22  ;;  %v1396_v6 = vadd.f32 %v5469_v55, %v1324_v51  ;;  %v1522_v33 = vadd.f32 %v5470_v18, %v1450_v47  ;;  %v1647_v45 = vadd.f32 %v4767_v3, %v1576_v21  ;;  %v1829_v59 = vpop.permute.xlu1 %1828  ;;  %v5042_v9 = vpop.permute.xlu0 %1820  ;;  %v5474_v3 = vld [vmem:[#allocation80_spill] sm:$0xff] }
 0x189   : > { %v2375_v48 = vmul.f32 %v4621_v39, %v2374_v24  ;;  %v1342_v38 = vadd.f32 %v5471_v5, %v4949_v27  ;;  %v1603_v44 = vadd.f32 %v5472_v29, %v1531_v14  ;;  %v1719_v58 = vadd.f32 %v4851_v2, %v1655_v25  ;;  %v5477_v10 = vld [vmem:[#allocation72_spill] sm:$0xff]  ;;  %v5478_v14 = vld [vmem:[#allocation77_spill] sm:$0xff] }
 0x18a   : > { %v5040_v30 = vadd.f32 %v1829_v59, %v1767_v1  ;;  %v1468_v40 = vadd.f32 %v5473_v26, %v1396_v6  ;;  %v1594_v46 = vadd.f32 %v5474_v3, %v1522_v33  ;;  %v1711_v31 = vadd.f32 %v4860_v8, %v1647_v45  ;;  %2342 = vrot.lane.b32.xlu1 %v2341_v16, %s3263_s9 }
 0x18b   : > { %v2392_v51 = vstv %s4998_s8  ;;  %v1671_v20 = vadd.f32 %v4783_v35, %v1603_v44  ;;  %v1783_v27 = vadd.f32 %v4951_v19, %v1719_v58  ;;  %2333 = vrot.lane.b32.xlu0 %v2332_v56, %s3263_s9  ;;  %v2366_v2 = vmul.f32 %v4621_v39, %v2365_v61 }
 0x18c   : > { %v2383_v62 = vstv %s5005_s11  ;;  %v1414_v43 = vadd.f32 %v5475_v42, %v1342_v38  ;;  %v1540_v24 = vadd.f32 %v5476_v49, %v1468_v40  ;;  %v1663_v8 = vadd.f32 %v4789_v53, %v1594_v46  ;;  %v1845_v13 = vpop.permute.xlu1 %1844  ;;  %v1837_v56 = vpop.permute.xlu0 %1836 }
 0x18d   : > { %v1775_v16 = vadd.f32 %v4959_v60, %v1711_v31  ;;  %v1735_v35 = vadd.f32 %v4879_v7, %v1671_v20  ;;  %v5063_v19 = vadd.f32 %v1845_v13, %v1783_v27  ;;  %v2377_v36 = vrot.slane %v2375_v48, 2 }
 0x18e   : > { %v2393_v34 = vmul.f32 %v4621_v39, %v2392_v51  ;;  %v1486_v4 = vadd.f32 %v5477_v10, %v1414_v43  ;;  %v1612_v47 = vadd.f32 %v4719_v50, %v1540_v24  ;;  %v1727_v53 = vadd.f32 %v4886_v63, %v1663_v8  ;;  %2360 = vrot.lane.b32.xlu1 %v2359_v0, %s3263_s9 }
 0x18f   : > { %v1839_v60 = vadd.f32 %v1837_v56, %v1775_v16  ;;  %v1799_v12 = vadd.f32 %v4981_v23, %v1735_v35  ;;  %2351 = vrot.lane.b32.xlu0 %v2350_v57, %s3263_s9  ;;  %v2368_v7 = vrot.slane %v2366_v2, 2  ;;  %v2384_v21 = vmul.f32 %v4621_v39, %v2383_v62 }
 0x190   : > { %v2410_v22 = vstv %s5028_s20  ;;  %v1558_v25 = vadd.f32 %v5478_v14, %v1486_v4  ;;  %v1679_v1 = vadd.f32 %v4812_v41, %v1612_v47  ;;  %v1791_v50 = vadd.f32 %v4986_v32, %v1727_v53  ;;  %v1861_v63 = vpop.permute.xlu1 %1860  ;;  %v1853_v0 = vpop.permute.xlu0 %1852 }
 0x191   : > { %v2401_v61 = vstv %s5034_s10  ;;  %v1863_v23 = vadd.f32 %v1861_v63, %v1799_v12  ;;  %v2395_v57 = vrot.slane %v2393_v34, 2  ;;  %v2411_v41 = vmul.f32 %v4695_v17, %v2410_v22 }
 0x192   : > { %v1630_v39 = vadd.f32 %v4740_v54, %v1558_v25  ;;  %v1743_v55 = vadd.f32 %v4910_v15, %v1679_v1  ;;  %v1855_v6 = vadd.f32 %v1853_v0, %v1791_v50  ;;  %2378 = vrot.lane.b32.xlu1 %v2377_v36, %s3263_s9  ;;  %v2386_v32 = vrot.slane %v2384_v21, 2 }
 0x193   : > { %2369 = vrot.lane.b32.xlu0 %v2368_v7, %s3263_s9  ;;  %v2402_v18 = vmul.f32 %v4695_v17, %v2401_v61  ;;  %v2428_v33 = vstv %s5054_s21  ;;  %v2419_v15 = vstv %s5060_s5  ;;  %v2413_v44 = vrot.slane %v2411_v41, 2 }
 0x194   : > { %v1695_v45 = vadd.f32 %v4836_v37, %v1630_v39  ;;  %v1807_v54 = vadd.f32 %v5016_v11, %v1743_v55  ;;  %v1877_v59 = vpop.permute.xlu1 %1876  ;;  %v1869_v5 = vpop.permute.xlu0 %1868  ;;  %v2429_v58 = vmul.f32 %v4695_v17, %v2428_v33  ;;  %v2420_v11 = vmul.f32 %v4695_v17, %v2419_v15 }
 0x195   : > { %v1879_v48 = vadd.f32 %v1877_v59, %v5014_v28  ;;  %v2404_v37 = vrot.slane %v2402_v18, 2  ;;  %v2446_v26 = vstv %s5074_s23  ;;  %v2437_v3 = vstv %s5080_s28 }
 0x196   : > { %v1759_v38 = vadd.f32 %v4935_v52, %v1695_v45  ;;  %v1871_v29 = vadd.f32 %v1869_v5, %v1807_v54  ;;  %2396 = vrot.lane.b32.xlu1 %v2395_v57, %s3263_s9  ;;  %v2431_v51 = vrot.slane %v2429_v58, 2  ;;  %v2447_v20 = vmul.f32 %v4695_v17, %v2446_v26 }
 0x197   : > { %2387 = vrot.lane.b32.xlu0 %v2386_v32, %s3263_s9  ;;  %v2422_v27 = vrot.slane %v2420_v11, 2  ;;  %v2438_v2 = vmul.f32 %v4695_v17, %v2437_v3  ;;  %v2464_v62 = vstv %s5089_s4  ;;  %v2455_v43 = vstv %s5094_s25 }
 0x198   : > { %v1823_v40 = vadd.f32 %v5042_v9, %v1759_v38  ;;  %v1893_v28 = vpop.permute.xlu1 %1892  ;;  %v1885_v46 = vpop.permute.xlu0 %1884  ;;  %v2465_v8 = vmul.f32 %v4695_v17, %v2464_v62  ;;  %v2456_v13 = vmul.f32 %v4695_v17, %v2455_v43 }
 0x199   : > { %v1895_v52 = vadd.f32 %v1893_v28, %v5040_v30  ;;  %v2449_v30 = vrot.slane %v2447_v20, 2  ;;  %v2440_v16 = vrot.slane %v2438_v2, 2 }
 0x19a   : > { %v1887_v31 = vadd.f32 %v1885_v46, %v1823_v40  ;;  %2414 = vrot.lane.b32.xlu1 %v2413_v44, %s3263_s9  ;;  %v2467_v10 = vrot.slane %v2465_v8, 2 }
 0x19b   : > { %2405 = vrot.lane.b32.xlu0 %v2404_v37, %s3263_s9 }
 0x19c   : > { %v1911_v42 = vpop.permute.xlu1 %1910  ;;  %v1902_v49 = vpop.permute.xlu0 %1901 }
 0x19d   : > { %v1913_v9 = vadd.f32 %v1911_v42, %v5063_v19  ;;  %v1904_v24 = vadd.f32 %v1902_v49, %v1839_v60  ;;  %v2458_v19 = vrot.slane %v2456_v13, 2 }
 0x19e   : > { %2432 = vrot.lane.b32.xlu1 %v2431_v51, %s3263_s9 }
 0x19f   : > { %2423 = vrot.lane.b32.xlu0 %v2422_v27, %s3263_s9 }
 0x1a0   : > { %v1929_v35 = vpop.permute.xlu1 %1928  ;;  %v1920_v36 = vpop.permute.xlu0 %1919 }
 0x1a1   : > { %v1931_v56 = vadd.f32 %v1929_v35, %v1863_v23  ;;  %v1922_v34 = vadd.f32 %v1920_v36, %v1855_v6 }
 0x1a2   : > { %2450 = vrot.lane.b32.xlu1 %v2449_v30, %s3263_s9 }
 0x1a3   : > { %2441 = vrot.lane.b32.xlu0 %v2440_v16, %s3263_s9 }
 0x1a4   : > { %v1947_v4 = vpop.permute.xlu1 %1946  ;;  %v1938_v53 = vpop.permute.xlu0 %1937 }
 0x1a5   : > { %v1949_v47 = vadd.f32 %v1947_v4, %v1879_v48  ;;  %v1940_v60 = vadd.f32 %v1938_v53, %v1871_v29 }
 0x1a6   : > { %2468 = vrot.lane.b32.xlu1 %v2467_v10, %s3263_s9 }
 0x1a7   : > { %2459 = vrot.lane.b32.xlu0 %v2458_v19, %s3263_s9  ;;  %s5479_s9 = smul.u32 6, %s3243_s12  ;;  %s5497_s12 = smov (!%p212_p4, %s3243_s12), 2 }
 0x1a8   : > { %v1965_v12 = vpop.permute.xlu1 %1964  ;;  %v1956_v7 = vpop.permute.xlu0 %1955  ;;  %s2846_s6 = sshll.u32 %s5497_s12, 3 }
 0x1a9   : > { %v1967_v17 = vadd.f32 %v1965_v12, %v1895_v52  ;;  %v1958_v21 = vadd.f32 %v1956_v7, %v1887_v31  ;;  %s2472_s26 = ssub.s32 18, %s5479_s9  ;;  %s5169_s17 = sadd.s32 %s3138_s30, %s2846_s6 }
 0x1aa   : > { %p2473_p3 = scmp.lt.s32.totalorder %s2472_s26, 6  ;;  %s5178_s24 = scalar_lea.vmem %s5290_s2, %s5169_s17 }
 0x1ab   : > { %s5252_s8 = scalar_lea.vmem %s5291_s3, %s5169_s17 }
 0x1ac   : > { %v1983_v22 = vpop.permute.xlu1 %1982  ;;  %v1974_v25 = vpop.permute.xlu0 %1973  ;;  %s5495_s26 = smov (!%p2473_p3, %s2472_s26), 6 }
 0x1ad   : > { %v1985_v14 = vadd.f32 %v1983_v22, %v1913_v9  ;;  %v1976_v1 = vadd.f32 %v1974_v25, %v1904_v24  ;;  %s2475_s27 = smul.u32 18, %s5495_s26 }
 0x1af   : > { %s2476_s29 = scvt.s32.f32 %s2475_s27 }
 0x1b0   : > { %v2001_v50 = vpop.permute.xlu1 %2000  ;;  %v1992_v61 = vpop.permute.xlu0 %1991 }
 0x1b1   : > { %v2003_v63 = vadd.f32 %v2001_v50, %v1931_v56  ;;  %v1994_v23 = vadd.f32 %v1992_v61, %v1922_v34 }
 0x1b4   : > { %v2019_v0 = vpop.permute.xlu1 %2018  ;;  %v2010_v39 = vpop.permute.xlu0 %2009 }
 0x1b5   : > { %v2021_v57 = vadd.f32 %v2019_v0, %v1949_v47  ;;  %v2012_v55 = vadd.f32 %v2010_v39, %v1940_v60 }
 0x1b8   : > { %v2037_v6 = vpop.permute.xlu1 %2036  ;;  %v2028_v32 = vpop.permute.xlu0 %2027 }
 0x1b9   : > { %v2039_v41 = vadd.f32 %v2037_v6, %v1967_v17  ;;  %v2030_v18 = vadd.f32 %v2028_v32, %v1958_v21 }
 0x1bc   : > { %v2055_v33 = vpop.permute.xlu1 %2054  ;;  %v2046_v54 = vpop.permute.xlu0 %2045 }
 0x1bd   : > { %v2057_v45 = vadd.f32 %v2055_v33, %v1985_v14  ;;  %v2048_v59 = vadd.f32 %v2046_v54, %v1976_v1 }
 0x1c0   : > { %v2073_v15 = vpop.permute.xlu1 %2072  ;;  %v2064_v5 = vpop.permute.xlu0 %2063 }
 0x1c1   : > { %v2075_v48 = vadd.f32 %v2073_v15, %v2003_v63  ;;  %v2066_v38 = vadd.f32 %v2064_v5, %v1994_v23 }
 0x1c4   : > { %v2091_v29 = vpop.permute.xlu1 %2090  ;;  %v2082_v58 = vpop.permute.xlu0 %2081 }
 0x1c5   : > { %v2093_v44 = vadd.f32 %v2091_v29, %v2021_v57  ;;  %v2084_v37 = vadd.f32 %v2082_v58, %v2012_v55 }
 0x1c8   : > { %v2109_v11 = vpop.permute.xlu1 %2108  ;;  %v2100_v40 = vpop.permute.xlu0 %2099 }
 0x1c9   : > { %v5121_v26 = vadd.f32 %v2109_v11, %v2039_v41  ;;  %v2102_v28 = vadd.f32 %v2100_v40, %v2030_v18 }
 0x1cc   : > { %v2127_v3 = vpop.permute.xlu1 %2126  ;;  %v2118_v52 = vpop.permute.xlu0 %2117 }
 0x1cd   : > { %v2129_v17 = vadd.f32 %v2127_v3, %v2057_v45  ;;  %v2120_v21 = vadd.f32 %v2118_v52, %v2048_v59 }
 0x1d0   : > { %v2145_v46 = vpop.permute.xlu1 %2144  ;;  %v2136_v31 = vpop.permute.xlu0 %2135 }
 0x1d1   : > { %v2138_v63 = vadd.f32 %v2136_v31, %v2066_v38  ;;  %v2147_v0 = vadd.f32 %v2145_v46, %v2075_v48 }
 0x1d4   : > { %v2163_v51 = vpop.permute.xlu1 %2162  ;;  %v2154_v20 = vpop.permute.xlu0 %2153 }
 0x1d5   : > { %v2156_v32 = vadd.f32 %v2154_v20, %v2084_v37  ;;  %v2165_v54 = vadd.f32 %v2163_v51, %v2093_v44 }
 0x1d8   : > { %v2181_v27 = vpop.permute.xlu1 %2180  ;;  %v2172_v2 = vpop.permute.xlu0 %2171 }
 0x1d9   : > { %v2174_v58 = vadd.f32 %v2172_v2, %v2102_v28  ;;  %v2183_v44 = vadd.f32 %v2181_v27, %v5121_v26 }
 0x1dc   : > { %v2199_v62 = vpop.permute.xlu1 %2198  ;;  %v2190_v42 = vpop.permute.xlu0 %2189 }
 0x1dd   : > { %v2201_v22 = vadd.f32 %v2199_v62, %v2129_v17  ;;  %v2192_v14 = vadd.f32 %v2190_v42, %v2120_v21 }
 0x1e0   : > { %v2217_v43 = vpop.permute.xlu1 %2216  ;;  %v2208_v9 = vpop.permute.xlu0 %2207 }
 0x1e1   : > { %v2210_v57 = vadd.f32 %v2208_v9, %v2138_v63  ;;  %v2219_v18 = vadd.f32 %v2217_v43, %v2147_v0 }
 0x1e4   : > { %v2235_v49 = vpop.permute.xlu1 %2234  ;;  %v2226_v24 = vpop.permute.xlu0 %2225 }
 0x1e5   : > { %v2228_v15 = vadd.f32 %v2226_v24, %v2156_v32  ;;  %v2237_v37 = vadd.f32 %v2235_v49, %v2165_v54 }
 0x1e8   : > { %v2253_v30 = vpop.permute.xlu1 %2252  ;;  %v2244_v8 = vpop.permute.xlu0 %2243 }
 0x1e9   : > { %v2246_v46 = vadd.f32 %v2244_v8, %v2174_v58  ;;  %v2255_v43 = vadd.f32 %v2253_v30, %v2183_v44 }
 0x1ec   : > { %v2271_v16 = vpop.permute.xlu1 %2270  ;;  %v2262_v13 = vpop.permute.xlu0 %2261 }
 0x1ed   : > { %v2273_v1 = vadd.f32 %v2271_v16, %v2201_v22  ;;  %v2264_v61 = vadd.f32 %v2262_v13, %v2192_v14 }
 0x1f0   : > { %v2289_v35 = vpop.permute.xlu1 %2288  ;;  %v2280_v56 = vpop.permute.xlu0 %2279 }
 0x1f1   : > { %v2282_v33 = vadd.f32 %v2280_v56, %v2210_v57  ;;  %v2291_v5 = vadd.f32 %v2289_v35, %v2219_v18 }
 0x1f4   : > { %v2307_v36 = vpop.permute.xlu1 %2306  ;;  %v2298_v34 = vpop.permute.xlu0 %2297 }
 0x1f5   : > { %v2300_v40 = vadd.f32 %v2298_v34, %v2228_v15  ;;  %v2309_v31 = vadd.f32 %v2307_v36, %v2237_v37 }
 0x1f8   : > { %v2325_v10 = vpop.permute.xlu1 %2324  ;;  %v2316_v19 = vpop.permute.xlu0 %2315 }
 0x1f9   : > { %v2318_v2 = vadd.f32 %v2316_v19, %v2246_v46  ;;  %v2327_v24 = vadd.f32 %v2325_v10, %v2255_v43 }
 0x1fc   : > { %v2343_v4 = vpop.permute.xlu1 %2342 }
 0x1fd   : > { %v2334_v47 = vpop.permute.xlu0 %2333  ;;  %v2345_v23 = vadd.f32 %v2343_v4, %v2273_v1  ;;  %v2559_v4 = vstv %s2476_s29 }
 0x1fe   : > { %v2336_v39 = vadd.f32 %v2334_v47, %v2264_v61  ;;  %3192 = vrcp.f32 %v2559_v4 }
 0x200   : > { %v2361_v53 = vpop.permute.xlu1 %2360 }
 0x201   : > { %v2352_v60 = vpop.permute.xlu0 %2351  ;;  %v2363_v3 = vadd.f32 %v2361_v53, %v2291_v5 }
 0x202   : > { %v2354_v38 = vadd.f32 %v2352_v60, %v2282_v33 }
 0x204   : > { %v2379_v12 = vpop.permute.xlu1 %2378 }
 0x205   : > { %v2370_v7 = vpop.permute.xlu0 %2369  ;;  %v2381_v9 = vadd.f32 %v2379_v12, %v2309_v31 }
 0x206   : > { %v2372_v51 = vadd.f32 %v2370_v7, %v2300_v40 }
 0x208   : > { %v2397_v25 = vpop.permute.xlu1 %2396  ;;  %v5171_v33 = vpop.eup %3192 }
 0x209   : > { %v2388_v50 = vpop.permute.xlu0 %2387  ;;  %v2399_v30 = vadd.f32 %v2397_v25, %v2327_v24 }
 0x20a   : > { %v2390_v16 = vadd.f32 %v2388_v50, %v2318_v2 }
 0x20c   : > { %v2415_v55 = vpop.permute.xlu1 %2414 }
 0x20d   : > { %v5123_v6 = vadd.f32 %v2415_v55, %v2345_v23  ;;  %v2406_v41 = vpop.permute.xlu0 %2405  ;;  %v2569_v23 = vlaneseq }
 0x20e   : > { %v5125_v45 = vadd.f32 %v2406_v41, %v2336_v39 }
 0x20f   : > { %v2481_v59 = vsel %vm2477_vm0, %v5123_v6, 0.0 }
 0x210   : > { %v2433_v48 = vpop.permute.xlu1 %2432  ;;  %2482 = vadd.xlane.f32.xlu1 %v2481_v59  ;;  %v2478_v29 = vsel %vm2477_vm0, %v5125_v45, 0.0 }
 0x211   : > { %v2424_v11 = vpop.permute.xlu0 %2423  ;;  %2479 = vadd.xlane.f32.xlu0 %v2478_v29  ;;  %v5134_v20 = vadd.f32 %v2433_v48, %v2363_v3  ;;  %v2570_v48 = vshrl.u32 %v2569_v23, 7  ;;  %v2579_v29 = vstv %s5495_s26 }
 0x212   : > { %v5131_v52 = vadd.f32 %v2424_v11, %v2354_v38 }
 0x213   : > { %v2487_v27 = vsel %vm2477_vm0, %v5134_v20, 0.0  ;;  %vm5184_vm3 = vcmp.lt.s32.totalorder %v2570_v48, %v2579_v29 }
 0x214   : > { %v2451_v62 = vpop.permute.xlu1 %2450  ;;  %v2484_v42 = vsel %vm2477_vm0, %v5131_v52, 0.0 }
 0x215   : > { %v2442_v28 = vpop.permute.xlu0 %2441  ;;  %2485 = vadd.xlane.f32.xlu0 %v2484_v42  ;;  %v5140_v13 = vadd.f32 %v2451_v62, %v2381_v9 }
 0x216   : > { %v5138_v49 = vadd.f32 %v2442_v28, %v2372_v51 }
 0x217   : > { %v2493_v10 = vsel %vm2477_vm0, %v5140_v13, 0.0 }
 0x218   : > { %v2490_v26 = vsel %vm2477_vm0, %v5138_v49, 0.0  ;;  %v2469_v8 = vpop.permute.xlu1 %2468 }
 0x219   : > { %v2460_v35 = vpop.permute.xlu0 %2459  ;;  %2491 = vadd.xlane.f32.xlu1 %v2490_v26  ;;  %2488 = vadd.xlane.f32.xlu0 %v2487_v27  ;;  %v5148_v36 = vadd.f32 %v2469_v8, %v2399_v30 }
 0x21a   : > { %v5146_v56 = vadd.f32 %v2460_v35, %v2390_v16 }
 0x21b   : > { %v2499_v19 = vsel %vm2477_vm0, %v5148_v36, 0.0 }
 0x21c   : > { %v2496_v34 = vsel %vm2477_vm0, %v5146_v56, 0.0 }
 0x21d   : > { %2497 = vadd.xlane.f32.xlu1 %v2496_v34  ;;  %2494 = vadd.xlane.f32.xlu0 %v2493_v10 }
 0x221   : > { %2500 = vadd.xlane.f32.xlu0 %v2499_v19 }
 0x29d   : > { %v2483_v47 = vpop.xlane.xlu1 %2482 }
 0x29e   : > { %v2510_v53 = vsel %vm2502_vm1, %v2483_v47, 0.0  ;;  %v2480_v60 = vpop.xlane.xlu0 %2479 }
 0x29f   : > { %v2511_v12 = vrot.slane %v2510_v53, 4  ;;  %v2503_v17 = vsel %vm2502_vm1, %v2480_v60, 0.0 }
 0x2a0   : > { %v2504_v7 = vrot.slane %v2503_v17, 4 }
 0x2a1   : > { %v2512_v21 = vadd.f32 %v2511_v12, %v2510_v53 }
 0x2a2   : > { %v2505_v22 = vadd.f32 %v2504_v7, %v2503_v17  ;;  %v2486_v14 = vpop.xlane.xlu0 %2485 }
 0x2a3   : > { %v2513_v25 = vrot.slane %v2512_v21, 2  ;;  %v2517_v1 = vsel %vm2502_vm1, %v2486_v14, 0.0 }
 0x2a4   : > { %v2506_v50 = vrot.slane %v2505_v22, 2  ;;  %v2518_v63 = vrot.slane %v2517_v1, 4 }
 0x2a5   : > { %v2514_v61 = vadd.f32 %v2513_v25, %v2512_v21 }
 0x2a6   : > { %v2507_v0 = vadd.f32 %v2506_v50, %v2505_v22  ;;  %v2519_v57 = vadd.f32 %v2518_v63, %v2517_v1  ;;  %v2492_v39 = vpop.xlane.xlu1 %2491  ;;  %v2489_v55 = vpop.xlane.xlu0 %2488 }
 0x2a7   : > { %v2515_v41 = vrot.slane %v2514_v61, 1  ;;  %v2531_v32 = vsel %vm2502_vm1, %v2492_v39, 0.0  ;;  %v2524_v18 = vsel %vm2502_vm1, %v2489_v55, 0.0 }
 0x2a8   : > { %v2508_v54 = vrot.slane %v2507_v0, 1  ;;  %v2520_v59 = vrot.slane %v2519_v57, 2  ;;  %v2532_v15 = vrot.slane %v2531_v32, 4  ;;  %v2525_v5 = vrot.slane %v2524_v18, 4 }
 0x2a9   : > { %v2516_v38 = vadd.f32 %v2515_v41, %v2514_v61 }
 0x2aa   : > { %v2509_v58 = vadd.f32 %v2508_v54, %v2507_v0  ;;  %v2521_v11 = vadd.f32 %v2520_v59, %v2519_v57  ;;  %v2533_v37 = vadd.f32 %v2532_v15, %v2531_v32  ;;  %v2526_v40 = vadd.f32 %v2525_v5, %v2524_v18  ;;  %v2498_v3 = vpop.xlane.xlu1 %2497  ;;  %v2495_v44 = vpop.xlane.xlu0 %2494 }
 0x2ab   : > { %v2545_v46 = vsel %vm2502_vm1, %v2498_v3, 0.0  ;;  %v2538_v31 = vsel %vm2502_vm1, %v2495_v44, 0.0  ;;  %v2562_v51 = vmul.f32 %v5171_v33, %v2516_v38 }
 0x2ac   : > { %v2522_v62 = vrot.slane %v2521_v11, 1  ;;  %v2534_v42 = vrot.slane %v2533_v37, 2  ;;  %v2527_v43 = vrot.slane %v2526_v40, 2  ;;  %v2546_v28 = vrot.slane %v2545_v46, 4 }
 0x2ad   : > { %v2539_v2 = vrot.slane %v2538_v31, 4  ;;  %v2572_v9 = vsub.f32 %v5123_v6, %v2562_v51  ;;  %2681 = vst.msk [vmem:[%s5178_s24 + $0x1] sm:$0x1] %vm2679_vm2, %v2562_v51  ;;  %v2561_v16 = vmul.f32 %v5171_v33, %v2509_v58 }
 0x2ae   : > { %v2523_v26 = vadd.f32 %v2522_v62, %v2521_v11  ;;  %v2535_v27 = vadd.f32 %v2534_v42, %v2533_v37  ;;  %v2528_v8 = vadd.f32 %v2527_v43, %v2526_v40  ;;  %v2547_v35 = vadd.f32 %v2546_v28, %v2545_v46  ;;  %v2501_v30 = vpop.xlane.xlu0 %2500 }
 0x2af   : > { %v2540_v34 = vadd.f32 %v2539_v2, %v2538_v31  ;;  %v2552_v10 = vsel %vm2502_vm1, %v2501_v30, 0.0  ;;  %v2582_v19 = vmul.f32 %v2572_v9, %v2572_v9  ;;  %v2571_v4 = vsub.f32 %v5125_v45, %v2561_v16  ;;  %2680 = vst.msk [vmem:[%s5178_s24] sm:$0x1] %vm2679_vm2, %v2561_v16 }
 0x2b0   : > { %v2536_v6 = vrot.slane %v2535_v27, 1  ;;  %v2529_v47 = vrot.slane %v2528_v8, 1  ;;  %v2548_v53 = vrot.slane %v2547_v35, 2  ;;  %v2553_v60 = vrot.slane %v2552_v10, 4 }
 0x2b1   : > { %v2541_v12 = vrot.slane %v2540_v34, 2  ;;  %v2592_v17 = vsel %vm5184_vm3, %v2582_v19, 0.0  ;;  %v2581_v7 = vmul.f32 %v2571_v4, %v2571_v4  ;;  %v2563_v21 = vmul.f32 %v5171_v33, %v2523_v26 }
 0x2b2   : > { %v2537_v22 = vadd.f32 %v2536_v6, %v2535_v27  ;;  %v2530_v14 = vadd.f32 %v2529_v47, %v2528_v8  ;;  %v2549_v25 = vadd.f32 %v2548_v53, %v2547_v35  ;;  %v2554_v1 = vadd.f32 %v2553_v60, %v2552_v10 }
 0x2b3   : > { %v2542_v50 = vadd.f32 %v2541_v12, %v2540_v34  ;;  %v2602_v45 = vsel %vm2477_vm0, %v2592_v17, 0.0  ;;  %v2591_v63 = vsel %vm5184_vm3, %v2581_v7, 0.0  ;;  %v2573_v61 = vsub.f32 %v5131_v52, %v2563_v21  ;;  %2682 = vst.msk [vmem:[%s5178_s24 + $0x2] sm:$0x1] %vm2679_vm2, %v2563_v21 }
 0x2b4   : > { %v2550_v23 = vrot.slane %v2549_v25, 1  ;;  %v2555_v0 = vrot.slane %v2554_v1, 2  ;;  %2603 = vadd.xlane.f32.xlu0 %v2602_v45  ;;  %v2599_v57 = vsel %vm2477_vm0, %v2591_v63, 0.0  ;;  %v2565_v39 = vmul.f32 %v5171_v33, %v2537_v22 }
 0x2b5   : > { %v2543_v55 = vrot.slane %v2542_v50, 1  ;;  %2600 = vadd.xlane.f32.xlu1 %v2599_v57  ;;  %v2583_v41 = vmul.f32 %v2573_v61, %v2573_v61  ;;  %v2564_v32 = vmul.f32 %v5171_v33, %v2530_v14 }
 0x2b6   : > { %v2551_v18 = vadd.f32 %v2550_v23, %v2549_v25  ;;  %v2556_v54 = vadd.f32 %v2555_v0, %v2554_v1  ;;  %v2575_v59 = vsub.f32 %v5138_v49, %v2565_v39  ;;  %2684 = vst.msk [vmem:[%s5178_s24 + $0x4] sm:$0x1] %vm2679_vm2, %v2565_v39 }
 0x2b7   : > { %v2544_v52 = vadd.f32 %v2543_v55, %v2542_v50  ;;  %v2593_v15 = vsel %vm5184_vm3, %v2583_v41, 0.0  ;;  %v2574_v5 = vsub.f32 %v5134_v20, %v2564_v32  ;;  %2683 = vst.msk [vmem:[%s5178_s24 + $0x3] sm:$0x1] %vm2679_vm2, %v2564_v32 }
 0x2b8   : > { %v2557_v38 = vrot.slane %v2556_v54, 1  ;;  %v2605_v48 = vsel %vm2477_vm0, %v2593_v15, 0.0  ;;  %v2585_v29 = vmul.f32 %v2575_v59, %v2575_v59  ;;  %v2567_v58 = vmul.f32 %v5171_v33, %v2551_v18 }
 0x2b9   : > { %2606 = vadd.xlane.f32.xlu1 %v2605_v48  ;;  %v2584_v49 = vmul.f32 %v2574_v5, %v2574_v5  ;;  %v2566_v11 = vmul.f32 %v5171_v33, %v2544_v52 }
 0x2ba   : > { %v2558_v37 = vadd.f32 %v2557_v38, %v2556_v54  ;;  %v2595_v40 = vsel %vm5184_vm3, %v2585_v29, 0.0  ;;  %v2577_v20 = vsub.f32 %v5146_v56, %v2567_v58  ;;  %2686 = vst.msk [vmem:[%s5178_s24 + $0x6] sm:$0x1] %vm2679_vm2, %v2567_v58 }
 0x2bb   : > { %v2611_v3 = vsel %vm2477_vm0, %v2595_v40, 0.0  ;;  %v2594_v44 = vsel %vm5184_vm3, %v2584_v49, 0.0  ;;  %v2576_v46 = vsub.f32 %v5140_v13, %v2566_v11  ;;  %2685 = vst.msk [vmem:[%s5178_s24 + $0x5] sm:$0x1] %vm2679_vm2, %v2566_v11 }
 0x2bc   : > { %v2608_v31 = vsel %vm2477_vm0, %v2594_v44, 0.0  ;;  %v2587_v51 = vmul.f32 %v2577_v20, %v2577_v20  ;;  %v2568_v62 = vmul.f32 %v5171_v33, %v2558_v37 }
 0x2bd   : > { %2612 = vadd.xlane.f32.xlu1 %v2611_v3  ;;  %2609 = vadd.xlane.f32.xlu0 %v2608_v31  ;;  %v2586_v42 = vmul.f32 %v2576_v46, %v2576_v46 }
 0x2be   : > { %v2597_v56 = vsel %vm5184_vm3, %v2587_v51, 0.0  ;;  %v2578_v43 = vsub.f32 %v5148_v36, %v2568_v62  ;;  %2687 = vst.msk [vmem:[%s5178_s24 + $0x7] sm:$0x1] %vm2679_vm2, %v2568_v62 }
 0x2bf   : > { %v2617_v28 = vsel %vm2477_vm0, %v2597_v56, 0.0  ;;  %v2596_v13 = vsel %vm5184_vm3, %v2586_v42, 0.0 }
 0x2c0   : > { %v2614_v2 = vsel %vm2477_vm0, %v2596_v13, 0.0  ;;  %v2588_v9 = vmul.f32 %v2578_v43, %v2578_v43 }
 0x2c1   : > { %2618 = vadd.xlane.f32.xlu1 %v2617_v28  ;;  %2615 = vadd.xlane.f32.xlu0 %v2614_v2 }
 0x2c2   : > { %v2598_v33 = vsel %vm5184_vm3, %v2588_v9, 0.0 }
 0x2c3   : > { %v2620_v16 = vsel %vm2477_vm0, %v2598_v33, 0.0 }
 0x2c5   : > { %2621 = vadd.xlane.f32.xlu0 %v2620_v16 }
 0x341   : > { %v2604_v26 = vpop.xlane.xlu0 %2603 }
 0x342   : > { %v2601_v36 = vpop.xlane.xlu1 %2600  ;;  %v2630_v27 = vsel %vm2502_vm1, %v2604_v26, 0.0 }
 0x343   : > { %v2623_v8 = vsel %vm2502_vm1, %v2601_v36, 0.0  ;;  %v2631_v35 = vrot.slane %v2630_v27, 4 }
 0x344   : > { %v2624_v30 = vrot.slane %v2623_v8, 4 }
 0x345   : > { %v2632_v34 = vadd.f32 %v2631_v35, %v2630_v27 }
 0x346   : > { %v2625_v10 = vadd.f32 %v2624_v30, %v2623_v8  ;;  %v2607_v19 = vpop.xlane.xlu1 %2606 }
 0x347   : > { %v2633_v4 = vrot.slane %v2632_v34, 2  ;;  %v2637_v6 = vsel %vm2502_vm1, %v2607_v19, 0.0 }
 0x348   : > { %v2626_v24 = vrot.slane %v2625_v10, 2  ;;  %v2638_v47 = vrot.slane %v2637_v6, 4 }
 0x349   : > { %v2634_v53 = vadd.f32 %v2633_v4, %v2632_v34 }
 0x34a   : > { %v2627_v60 = vadd.f32 %v2626_v24, %v2625_v10  ;;  %v2639_v12 = vadd.f32 %v2638_v47, %v2637_v6  ;;  %v2613_v17 = vpop.xlane.xlu1 %2612  ;;  %v2610_v7 = vpop.xlane.xlu0 %2609 }
 0x34b   : > { %v2635_v21 = vrot.slane %v2634_v53, 1  ;;  %v2651_v22 = vsel %vm2502_vm1, %v2613_v17, 0.0  ;;  %v2644_v14 = vsel %vm2502_vm1, %v2610_v7, 0.0 }
 0x34c   : > { %v2628_v25 = vrot.slane %v2627_v60, 1  ;;  %v2640_v1 = vrot.slane %v2639_v12, 2  ;;  %v2652_v50 = vrot.slane %v2651_v22, 4  ;;  %v2645_v45 = vrot.slane %v2644_v14, 4 }
 0x34d   : > { %v2636_v63 = vadd.f32 %v2635_v21, %v2634_v53 }
 0x34e   : > { %v2629_v61 = vadd.f32 %v2628_v25, %v2627_v60  ;;  %v2641_v23 = vadd.f32 %v2640_v1, %v2639_v12  ;;  %v2653_v0 = vadd.f32 %v2652_v50, %v2651_v22  ;;  %v2646_v57 = vadd.f32 %v2645_v45, %v2644_v14  ;;  %v2619_v39 = vpop.xlane.xlu1 %2618  ;;  %v2616_v55 = vpop.xlane.xlu0 %2615 }
 0x34f   : > { %2689 = vst.msk [vmem:[%s5252_s8 + $0x1] sm:$0x1] %vm2679_vm2, %v2636_v63  ;;  %v2665_v41 = vsel %vm2502_vm1, %v2619_v39, 0.0  ;;  %v2658_v32 = vsel %vm2502_vm1, %v2616_v55, 0.0 }
 0x350   : > { %2688 = vst.msk [vmem:[%s5252_s8] sm:$0x1] %vm2679_vm2, %v2629_v61  ;;  %v2642_v18 = vrot.slane %v2641_v23, 1  ;;  %v2654_v54 = vrot.slane %v2653_v0, 2  ;;  %v2647_v59 = vrot.slane %v2646_v57, 2  ;;  %v2666_v52 = vrot.slane %v2665_v41, 4 }
 0x351   : > { %v2659_v15 = vrot.slane %v2658_v32, 4 }
 0x352   : > { %v2643_v5 = vadd.f32 %v2642_v18, %v2641_v23  ;;  %v2655_v38 = vadd.f32 %v2654_v54, %v2653_v0  ;;  %v2648_v48 = vadd.f32 %v2647_v59, %v2646_v57  ;;  %v2667_v29 = vadd.f32 %v2666_v52, %v2665_v41  ;;  %v2622_v58 = vpop.xlane.xlu0 %2621 }
 0x353   : > { %v2660_v49 = vadd.f32 %v2659_v15, %v2658_v32  ;;  %v2672_v11 = vsel %vm2502_vm1, %v2622_v58, 0.0 }
 0x354   : > { %2690 = vst.msk [vmem:[%s5252_s8 + $0x2] sm:$0x1] %vm2679_vm2, %v2643_v5  ;;  %v2656_v37 = vrot.slane %v2655_v38, 1  ;;  %v2649_v40 = vrot.slane %v2648_v48, 1  ;;  %v2668_v20 = vrot.slane %v2667_v29, 2  ;;  %v2673_v3 = vrot.slane %v2672_v11, 4 }
 0x355   : > { %v2661_v44 = vrot.slane %v2660_v49, 2 }
 0x356   : > { %v2657_v46 = vadd.f32 %v2656_v37, %v2655_v38  ;;  %v2650_v31 = vadd.f32 %v2649_v40, %v2648_v48  ;;  %v2669_v51 = vadd.f32 %v2668_v20, %v2667_v29  ;;  %v2674_v62 = vadd.f32 %v2673_v3, %v2672_v11 }
 0x357   : > { %v2662_v42 = vadd.f32 %v2661_v44, %v2660_v49 }
 0x358   : > { %2692 = vst.msk [vmem:[%s5252_s8 + $0x4] sm:$0x1] %vm2679_vm2, %v2657_v46  ;;  %2691 = vst.msk [vmem:[%s5252_s8 + $0x3] sm:$0x1] %vm2679_vm2, %v2650_v31  ;;  %v2670_v56 = vrot.slane %v2669_v51, 1  ;;  %v2675_v43 = vrot.slane %v2674_v62, 2 }
 0x359   : > { %v2663_v28 = vrot.slane %v2662_v42, 1 }
 0x35a   : > { %v2671_v13 = vadd.f32 %v2670_v56, %v2669_v51  ;;  %v2676_v2 = vadd.f32 %v2675_v43, %v2674_v62 }
 0x35b   : > { %v2664_v9 = vadd.f32 %v2663_v28, %v2662_v42 }
 0x35c   : > { %2694 = vst.msk [vmem:[%s5252_s8 + $0x6] sm:$0x1] %vm2679_vm2, %v2671_v13  ;;  %v2677_v33 = vrot.slane %v2676_v2, 1 }
 0x35d   : > { %2693 = vst.msk [vmem:[%s5252_s8 + $0x5] sm:$0x1] %vm2679_vm2, %v2664_v9 }
 0x35e   : > { %v2678_v16 = vadd.f32 %v2677_v33, %v2676_v2 }
 0x360   : > { %2695 = vst.msk [vmem:[%s5252_s8 + $0x7] sm:$0x1] %vm2679_vm2, %v2678_v16 }
 0x361 PF: > { %s15_s16 = sadd.s32 1, %s3259_s16   ;;  %s5482_s12 = smov %s3251_s14 }
 0x362   : > { %p12_p5 = scmp.ge.s32.totalorder %s15_s16, 8   ;;  %s5483_s13 = smov %s3255_s15 }
 0x363   : > { %s5484_s14 = smov %s5487_s18  ;;  %s5485_s15 = smov %s5491_s19 }
 0x364   :  { %14 = sbr.rel (!%p12_p5) target bundleno = 3 (0x3), region = 76 }
 0x36b   :  { %2745 = vsyncpa [#allocation3], 1 }
 0x36c   :  { %2747 = vsyncpa [#allocation3 + $0x1], 1 }

</bundles_post_ra>
